<compile_context>
chip_gen: v7x
topology: tpu7x:2x2x1
jax: 0.10.0
libtpu: 0.0.40
codegen_flags: <defaults>
</compile_context>

<pallas_src>
import jax
import jax.numpy as jnp
from functools import partial
from jax.experimental import pallas as pl
from jax.experimental.pallas import tpu as pltpu

BN_EPS = 1e-5
_VMEM = pl.BlockSpec(memory_space=pltpu.MemorySpace.VMEM)


# ----------------------------------------------------------------------------------
# Fused stage kernel:  conv3x3(d) + BN + ReLU  ->  conv3x3(d) + BN + ReLU  -> 2x2 max
# Data layout inside the kernel: (C, P) where P = Hp*Wp is the flattened zero-padded
# spatial grid of ONE sample (lanes = spatial). Tap (ky, kx) of a dilated 3x3 conv is
# then simply the input shifted by ky*d*Wp + kx*d columns.
# ----------------------------------------------------------------------------------
def _stage_kernel(x_ref, wa_ref, sa_ref, wb_ref, sb_ref, mask_ref, o_ref, scr_ref,
                  *, d, Wp, Mp, pool):
    offs = [(ky, kx) for ky in range(3) for kx in range(3)]

    # ---- conv_a: 9 shifted matmuls, f32 accumulation, folded-BN epilogue ----
    acc = None
    for k, (ky, kx) in enumerate(offs):
        s = ky * d * Wp + kx * d
        p = jnp.dot(wa_ref[k], x_ref[:, pl.ds(s, Mp)],
                    preferred_element_type=jnp.float32)
        acc = p if acc is None else acc + p
    y1 = jnp.maximum(acc + sa_ref[...], 0.0)                      # (Cout, Mp) f32

    # ---- re-pad + mask conv_a output into VMEM scratch (conv_b input never hits HBM)
    scr_ref[...] = jnp.zeros_like(scr_ref)
    scr_ref[:, pl.ds(Wp + 1, Mp)] = (y1 * mask_ref[...]).astype(scr_ref.dtype)

    # ---- conv_b ----
    acc = None
    for k, (ky, kx) in enumerate(offs):
        s = ky * d * Wp + kx * d
        p = jnp.dot(wb_ref[k], scr_ref[:, pl.ds(s, Mp)],
                    preferred_element_type=jnp.float32)
        acc = p if acc is None else acc + p
    y2 = jnp.maximum(acc + sb_ref[...], 0.0)                      # (Cout, Mp) f32

    if pool:
        # fused 2x2 max: combine the four pooling phases in VMEM; the wrapper picks
        # the stride-2 sub-grid (floor mode) afterwards.
        scr_ref[:, pl.ds(0, Mp)] = y2.astype(scr_ref.dtype)
        m = jnp.maximum(
            jnp.maximum(scr_ref[:, pl.ds(0, Mp)], scr_ref[:, pl.ds(1, Mp)]),
            jnp.maximum(scr_ref[:, pl.ds(Wp, Mp)], scr_ref[:, pl.ds(Wp + 1, Mp)]))
        o_ref[...] = m.astype(o_ref.dtype)
    else:
        o_ref[...] = y2.astype(o_ref.dtype)


def run_stage(x_nchw, pa, pb, d, pool):
    """One conv_block (+ optional MaxPool2d(2)) as a single Pallas call."""
    N, Cin, H, W = x_nchw.shape
    Hp, Wp = H + 2, W + 2                         # zero-padded grid (pad = 1)
    Ho, Wo = H + 2 - 2 * d, W + 2 - 2 * d         # conv_a output extent
    Ho2, Wo2 = Ho + 2 - 2 * d, Wo + 2 - 2 * d     # conv_b output extent
    Mp = Hp * Wp
    tail = 2 * d * (Wp + 1)                       # room for the largest column shift
    cols = Mp + tail
    Cout = pa['w'].shape[1]

    # Flatten the padded input onto the (Hp, Wp) grid, zero tail, bf16 for the MXU.
    xp = jnp.pad(x_nchw, ((0, 0), (0, 0), (1, 1), (1, 1)))
    xf = jnp.pad(xp.reshape(N, Cin, Mp), ((0, 0), (0, 0), (0, tail))).astype(jnp.bfloat16)

    # Mask of valid conv_a outputs on the (Hp, Wp) grid (also realizes conv_b's padding).
    mask = jnp.zeros((Hp, Wp), jnp.float32).at[:Ho, :Wo].set(1.0).reshape(1, Mp)

    out = pl.pallas_call(
        partial(_stage_kernel, d=d, Wp=Wp, Mp=Mp, pool=pool),
        out_shape=jax.ShapeDtypeStruct((N, Cout, Mp), jnp.float32),
        grid=(N,),
        in_specs=[
            pl.BlockSpec((None, Cin, cols), lambda n: (n, 0, 0)),   # per-sample block
            pl.BlockSpec(pa['w'].shape, lambda n: (0, 0, 0)),       # folded weights a
            pl.BlockSpec(pa['shift'].shape, lambda n: (0, 0)),      # folded shift a
            pl.BlockSpec(pb['w'].shape, lambda n: (0, 0, 0)),       # folded weights b
            pl.BlockSpec(pb['shift'].shape, lambda n: (0, 0)),      # folded shift b
            pl.BlockSpec((1, Mp), lambda n: (0, 0)),                # valid-output mask
        ],
        out_specs=pl.BlockSpec((None, Cout, Mp), lambda n: (n, 0, 0)),
        scratch_shapes=[pltpu.VMEM((Cout, cols), jnp.bfloat16)],
        compiler_params=pltpu.CompilerParams(dimension_semantics=("parallel",)),
    )(xf, pa['w'], pa['shift'], pb['w'], pb['shift'], mask)

    y = out.reshape(N, Cout, Hp, Wp)
    if pool:
        # stride-2 sub-grid of the fused max == MaxPool2d(2) (floor mode)
        return y[:, :, 0:(Ho2 // 2) * 2:2, 0:(Wo2 // 2) * 2:2]
    return y[:, :, :Ho2, :Wo2]


# ----------------------------------------------------------------------------------
# Head kernel: global spatial mean + fc1/ReLU + fc2/ReLU + fc3, all in one call.
# ----------------------------------------------------------------------------------
def _head_kernel(y_ref, w1_ref, b1_ref, w2_ref, b2_ref, w3_ref, b3_ref, o_ref):
    feats = jnp.mean(y_ref[...], axis=1)                                   # (N, C4)
    h = jnp.maximum(jnp.dot(feats, w1_ref[...],
                            preferred_element_type=jnp.float32) + b1_ref[...], 0.0)
    h = jnp.maximum(jnp.dot(h, w2_ref[...],
                            preferred_element_type=jnp.float32) + b2_ref[...], 0.0)
    o_ref[...] = (jnp.dot(h, w3_ref[...],
                          preferred_element_type=jnp.float32) + b3_ref[...]).astype(o_ref.dtype)


# ----------------------------------------------------------------------------------
# Parameters: synthetic PyTorch-layout params + folding of bias/BN into the weights.
# ----------------------------------------------------------------------------------
def init_params(key, n_channels, n_st, n_classes):
    def conv(k, cin, cout):
        k1, k2 = jax.random.split(k)
        return dict(
            w=jax.random.normal(k1, (cout, cin, 3, 3), jnp.float32) / jnp.sqrt(9.0 * cin),
            b=jax.random.normal(k2, (cout,), jnp.float32) * 0.01,
            # BatchNorm2d eval-mode statistics / affine (fresh-module defaults)
            gamma=jnp.ones((cout,), jnp.float32), beta=jnp.zeros((cout,), jnp.float32),
            mean=jnp.zeros((cout,), jnp.float32), var=jnp.ones((cout,), jnp.float32),
        )

    def fc(k, din, dout):
        k1, k2 = jax.random.split(k)
        return dict(w=jax.random.normal(k1, (dout, din), jnp.float32) / jnp.sqrt(float(din)),
                    b=jax.random.normal(k2, (dout,), jnp.float32) * 0.01)

    ks = jax.random.split(key, 11)
    c1, c2, c3, c4 = n_st * 2, n_st * 4, n_st * 8, n_st * 16
    return dict(
        conv1a=conv(ks[0], n_channels, c1), conv1b=conv(ks[1], c1, c1),
        conv2a=conv(ks[2], c1, c2),         conv2b=conv(ks[3], c2, c2),
        conv3a=conv(ks[4], c2, c3),         conv3b=conv(ks[5], c3, c3),
        conv4a=conv(ks[6], c3, c4),         conv4b=conv(ks[7], c4, c4),
        fc1=fc(ks[8], c4, 256), fc2=fc(ks[9], 256, 256), fc3=fc(ks[10], 256, n_classes),
    )


def fold_conv_bn(p):
    """Fold Conv2d bias + BatchNorm2d(eval) into the weight and a per-channel shift.
    Returns w: (9, Cout, Cin) bf16 (tap k = ky*3 + kx) and shift: (Cout, 1) f32."""
    s = p['gamma'] / jnp.sqrt(p['var'] + BN_EPS)
    w = p['w'] * s[:, None, None, None]
    shift = (p['b'] - p['mean']) * s + p['beta']
    cout, cin = p['w'].shape[0], p['w'].shape[1]
    w9 = jnp.transpose(w, (2, 3, 0, 1)).reshape(9, cout, cin)
    return dict(w=w9.astype(jnp.bfloat16), shift=shift.reshape(-1, 1))


def prepare_params(raw):
    p = {k: fold_conv_bn(v) for k, v in raw.items() if k.startswith('conv')}
    for name in ('fc1', 'fc2', 'fc3'):
        p[name] = dict(w=raw[name]['w'].T, b=raw[name]['b'].reshape(1, -1))
    return p


# ----------------------------------------------------------------------------------
# Forward (eval mode): 4 fused conv-stage kernels + 1 fused head kernel.
# ----------------------------------------------------------------------------------
def forward(params, x_nchw):
    x = run_stage(x_nchw, params['conv1a'], params['conv1b'], d=1, pool=True)
    x = run_stage(x,      params['conv2a'], params['conv2b'], d=2, pool=True)   # Dropout2d: eval identity
    x = run_stage(x,      params['conv3a'], params['conv3b'], d=3, pool=True)   # Dropout2d: eval identity
    x = run_stage(x,      params['conv4a'], params['conv4b'], d=1, pool=False)  # Dropout2d: eval identity

    N, C4, Ho, Wo = x.shape
    yv = x.reshape(N, C4, Ho * Wo).transpose(0, 2, 1)                # (N, S, C4)
    ncls = params['fc3']['w'].shape[1]
    # out_emb = F.normalize(mean) is only used when return_embs=True; not returned here.
    return pl.pallas_call(
        _head_kernel,
        out_shape=jax.ShapeDtypeStruct((N, ncls), jnp.float32),
        in_specs=[_VMEM] * 7,
        out_specs=_VMEM,
    )(yv, params['fc1']['w'], params['fc1']['b'],
      params['fc2']['w'], params['fc2']['b'],
      params['fc3']['w'], params['fc3']['b'])


if __name__ == "__main__":
    key = jax.random.PRNGKey(0)
    kp, kx = jax.random.split(key)
    n_channels, n_st, n_classes = 3, 4, 10
    raw = init_params(kp, n_channels, n_st, n_classes)
    params = prepare_params(raw)
    # spatial 48: 48 -(d1 convs, pool)-> 24 -(d2 convs, pool)-> 10 -(d3 convs, pool)-> 1 -(d1 convs)-> 1
    x = jax.random.normal(kx, (2, n_channels, 48, 48), jnp.float32)
    out = jax.jit(forward)(params, x)
    out = jax.block_until_ready(out)
    assert out.shape == (2, n_classes), out.shape
    assert jnp.all(jnp.isfinite(out))
    print("KERNEL_OK")
</pallas_src>

<mosaic_0001>
module attributes {stable_mosaic.version = 11 : i64} {
  func.func @_stage_kernel(%arg0: i32, %arg1: memref<1x3x2602xbf16, #tpu.memory_space<vmem>>, %arg2: memref<9x8x3xbf16, #tpu.memory_space<vmem>>, %arg3: memref<8x1xf32, #tpu.memory_space<vmem>>, %arg4: memref<9x8x8xbf16, #tpu.memory_space<vmem>>, %arg5: memref<8x1xf32, #tpu.memory_space<vmem>>, %arg6: memref<1x2500xf32, #tpu.memory_space<vmem>>, %arg7: memref<1x8x2500xf32, #tpu.memory_space<vmem>>, %arg8: memref<8x2602xbf16, #tpu.memory_space<vmem>>) attributes {dimension_semantics = [#tpu.dimension_semantics<parallel>], iteration_bounds = array<i64: 2>, scalar_prefetch = 0 : i64, scratch_operands = 1 : i64, tpu.core_type = #tpu.core_type<tc>, window_params = [{transform_indices = @transform_0, window_bounds = array<i64: 1, 3, 2602>}, {pipeline_mode = #tpu.pipeline_mode<synchronous>, transform_indices = @transform_1, window_bounds = array<i64: 9, 8, 3>}, {pipeline_mode = #tpu.pipeline_mode<synchronous>, transform_indices = @transform_2, window_bounds = array<i64: 8, 1>}, {pipeline_mode = #tpu.pipeline_mode<synchronous>, transform_indices = @transform_3, window_bounds = array<i64: 9, 8, 8>}, {pipeline_mode = #tpu.pipeline_mode<synchronous>, transform_indices = @transform_4, window_bounds = array<i64: 8, 1>}, {pipeline_mode = #tpu.pipeline_mode<synchronous>, transform_indices = @transform_5, window_bounds = array<i64: 1, 2500>}, {transform_indices = @transform_6, window_bounds = array<i64: 1, 8, 2500>}]} {
    %c0 = arith.constant 0 : index
    %c0_0 = arith.constant 0 : index
    %c0_1 = arith.constant 0 : index
    %0 = vector.load %arg2[%c0, %c0_0, %c0_1] : memref<9x8x3xbf16, #tpu.memory_space<vmem>>, vector<1x8x3xbf16>
    %1 = vector.shape_cast %0 : vector<1x8x3xbf16> to vector<8x3xbf16>
    %c0_2 = arith.constant 0 : index
    %c0_3 = arith.constant 0 : index
    %c0_4 = arith.constant 0 : index
    %2 = vector.load %arg1[%c0_2, %c0_3, %c0_4] : memref<1x3x2602xbf16, #tpu.memory_space<vmem>>, vector<1x3x2500xbf16>
    %3 = vector.shape_cast %2 : vector<1x3x2500xbf16> to vector<3x2500xbf16>
    %cst = arith.constant dense<0.000000e+00> : vector<8x2500xf32>
    %4 = tpu.matmul %1, %3, %cst {dimension_numbers = #tpu.dot_dimension_numbers<[1], [0], [0], [1], [0, 0, 1, 1], [], []>} : vector<8x3xbf16>, vector<3x2500xbf16>, vector<8x2500xf32> -> vector<8x2500xf32>
    %c1 = arith.constant 1 : index
    %c0_5 = arith.constant 0 : index
    %c0_6 = arith.constant 0 : index
    %5 = vector.load %arg2[%c1, %c0_5, %c0_6] : memref<9x8x3xbf16, #tpu.memory_space<vmem>>, vector<1x8x3xbf16>
    %6 = vector.shape_cast %5 : vector<1x8x3xbf16> to vector<8x3xbf16>
    %c0_7 = arith.constant 0 : index
    %c0_8 = arith.constant 0 : index
    %c1_9 = arith.constant 1 : index
    %7 = vector.load %arg1[%c0_7, %c0_8, %c1_9] : memref<1x3x2602xbf16, #tpu.memory_space<vmem>>, vector<1x3x2500xbf16>
    %8 = vector.shape_cast %7 : vector<1x3x2500xbf16> to vector<3x2500xbf16>
    %cst_10 = arith.constant dense<0.000000e+00> : vector<8x2500xf32>
    %9 = tpu.matmul %6, %8, %cst_10 {dimension_numbers = #tpu.dot_dimension_numbers<[1], [0], [0], [1], [0, 0, 1, 1], [], []>} : vector<8x3xbf16>, vector<3x2500xbf16>, vector<8x2500xf32> -> vector<8x2500xf32>
    %10 = arith.addf %4, %9 : vector<8x2500xf32>
    %c2 = arith.constant 2 : index
    %c0_11 = arith.constant 0 : index
    %c0_12 = arith.constant 0 : index
    %11 = vector.load %arg2[%c2, %c0_11, %c0_12] : memref<9x8x3xbf16, #tpu.memory_space<vmem>>, vector<1x8x3xbf16>
    %12 = vector.shape_cast %11 : vector<1x8x3xbf16> to vector<8x3xbf16>
    %c0_13 = arith.constant 0 : index
    %c0_14 = arith.constant 0 : index
    %c2_15 = arith.constant 2 : index
    %13 = vector.load %arg1[%c0_13, %c0_14, %c2_15] : memref<1x3x2602xbf16, #tpu.memory_space<vmem>>, vector<1x3x2500xbf16>
    %14 = vector.shape_cast %13 : vector<1x3x2500xbf16> to vector<3x2500xbf16>
    %cst_16 = arith.constant dense<0.000000e+00> : vector<8x2500xf32>
    %15 = tpu.matmul %12, %14, %cst_16 {dimension_numbers = #tpu.dot_dimension_numbers<[1], [0], [0], [1], [0, 0, 1, 1], [], []>} : vector<8x3xbf16>, vector<3x2500xbf16>, vector<8x2500xf32> -> vector<8x2500xf32>
    %16 = arith.addf %10, %15 : vector<8x2500xf32>
    %c3 = arith.constant 3 : index
    %c0_17 = arith.constant 0 : index
    %c0_18 = arith.constant 0 : index
    %17 = vector.load %arg2[%c3, %c0_17, %c0_18] : memref<9x8x3xbf16, #tpu.memory_space<vmem>>, vector<1x8x3xbf16>
    %18 = vector.shape_cast %17 : vector<1x8x3xbf16> to vector<8x3xbf16>
    %c0_19 = arith.constant 0 : index
    %c0_20 = arith.constant 0 : index
    %c50 = arith.constant 50 : index
    %19 = vector.load %arg1[%c0_19, %c0_20, %c50] : memref<1x3x2602xbf16, #tpu.memory_space<vmem>>, vector<1x3x2500xbf16>
    %20 = vector.shape_cast %19 : vector<1x3x2500xbf16> to vector<3x2500xbf16>
    %cst_21 = arith.constant dense<0.000000e+00> : vector<8x2500xf32>
    %21 = tpu.matmul %18, %20, %cst_21 {dimension_numbers = #tpu.dot_dimension_numbers<[1], [0], [0], [1], [0, 0, 1, 1], [], []>} : vector<8x3xbf16>, vector<3x2500xbf16>, vector<8x2500xf32> -> vector<8x2500xf32>
    %22 = arith.addf %16, %21 : vector<8x2500xf32>
    %c4 = arith.constant 4 : index
    %c0_22 = arith.constant 0 : index
    %c0_23 = arith.constant 0 : index
    %23 = vector.load %arg2[%c4, %c0_22, %c0_23] : memref<9x8x3xbf16, #tpu.memory_space<vmem>>, vector<1x8x3xbf16>
    %24 = vector.shape_cast %23 : vector<1x8x3xbf16> to vector<8x3xbf16>
    %c0_24 = arith.constant 0 : index
    %c0_25 = arith.constant 0 : index
    %c51 = arith.constant 51 : index
    %25 = vector.load %arg1[%c0_24, %c0_25, %c51] : memref<1x3x2602xbf16, #tpu.memory_space<vmem>>, vector<1x3x2500xbf16>
    %26 = vector.shape_cast %25 : vector<1x3x2500xbf16> to vector<3x2500xbf16>
    %cst_26 = arith.constant dense<0.000000e+00> : vector<8x2500xf32>
    %27 = tpu.matmul %24, %26, %cst_26 {dimension_numbers = #tpu.dot_dimension_numbers<[1], [0], [0], [1], [0, 0, 1, 1], [], []>} : vector<8x3xbf16>, vector<3x2500xbf16>, vector<8x2500xf32> -> vector<8x2500xf32>
    %28 = arith.addf %22, %27 : vector<8x2500xf32>
    %c5 = arith.constant 5 : index
    %c0_27 = arith.constant 0 : index
    %c0_28 = arith.constant 0 : index
    %29 = vector.load %arg2[%c5, %c0_27, %c0_28] : memref<9x8x3xbf16, #tpu.memory_space<vmem>>, vector<1x8x3xbf16>
    %30 = vector.shape_cast %29 : vector<1x8x3xbf16> to vector<8x3xbf16>
    %c0_29 = arith.constant 0 : index
    %c0_30 = arith.constant 0 : index
    %c52 = arith.constant 52 : index
    %31 = vector.load %arg1[%c0_29, %c0_30, %c52] : memref<1x3x2602xbf16, #tpu.memory_space<vmem>>, vector<1x3x2500xbf16>
    %32 = vector.shape_cast %31 : vector<1x3x2500xbf16> to vector<3x2500xbf16>
    %cst_31 = arith.constant dense<0.000000e+00> : vector<8x2500xf32>
    %33 = tpu.matmul %30, %32, %cst_31 {dimension_numbers = #tpu.dot_dimension_numbers<[1], [0], [0], [1], [0, 0, 1, 1], [], []>} : vector<8x3xbf16>, vector<3x2500xbf16>, vector<8x2500xf32> -> vector<8x2500xf32>
    %34 = arith.addf %28, %33 : vector<8x2500xf32>
    %c6 = arith.constant 6 : index
    %c0_32 = arith.constant 0 : index
    %c0_33 = arith.constant 0 : index
    %35 = vector.load %arg2[%c6, %c0_32, %c0_33] : memref<9x8x3xbf16, #tpu.memory_space<vmem>>, vector<1x8x3xbf16>
    %36 = vector.shape_cast %35 : vector<1x8x3xbf16> to vector<8x3xbf16>
    %c0_34 = arith.constant 0 : index
    %c0_35 = arith.constant 0 : index
    %c100 = arith.constant 100 : index
    %37 = vector.load %arg1[%c0_34, %c0_35, %c100] : memref<1x3x2602xbf16, #tpu.memory_space<vmem>>, vector<1x3x2500xbf16>
    %38 = vector.shape_cast %37 : vector<1x3x2500xbf16> to vector<3x2500xbf16>
    %cst_36 = arith.constant dense<0.000000e+00> : vector<8x2500xf32>
    %39 = tpu.matmul %36, %38, %cst_36 {dimension_numbers = #tpu.dot_dimension_numbers<[1], [0], [0], [1], [0, 0, 1, 1], [], []>} : vector<8x3xbf16>, vector<3x2500xbf16>, vector<8x2500xf32> -> vector<8x2500xf32>
    %40 = arith.addf %34, %39 : vector<8x2500xf32>
    %c7 = arith.constant 7 : index
    %c0_37 = arith.constant 0 : index
    %c0_38 = arith.constant 0 : index
    %41 = vector.load %arg2[%c7, %c0_37, %c0_38] : memref<9x8x3xbf16, #tpu.memory_space<vmem>>, vector<1x8x3xbf16>
    %42 = vector.shape_cast %41 : vector<1x8x3xbf16> to vector<8x3xbf16>
    %c0_39 = arith.constant 0 : index
    %c0_40 = arith.constant 0 : index
    %c101 = arith.constant 101 : index
    %43 = vector.load %arg1[%c0_39, %c0_40, %c101] : memref<1x3x2602xbf16, #tpu.memory_space<vmem>>, vector<1x3x2500xbf16>
    %44 = vector.shape_cast %43 : vector<1x3x2500xbf16> to vector<3x2500xbf16>
    %cst_41 = arith.constant dense<0.000000e+00> : vector<8x2500xf32>
    %45 = tpu.matmul %42, %44, %cst_41 {dimension_numbers = #tpu.dot_dimension_numbers<[1], [0], [0], [1], [0, 0, 1, 1], [], []>} : vector<8x3xbf16>, vector<3x2500xbf16>, vector<8x2500xf32> -> vector<8x2500xf32>
    %46 = arith.addf %40, %45 : vector<8x2500xf32>
    %c8 = arith.constant 8 : index
    %c0_42 = arith.constant 0 : index
    %c0_43 = arith.constant 0 : index
    %47 = vector.load %arg2[%c8, %c0_42, %c0_43] : memref<9x8x3xbf16, #tpu.memory_space<vmem>>, vector<1x8x3xbf16>
    %48 = vector.shape_cast %47 : vector<1x8x3xbf16> to vector<8x3xbf16>
    %c0_44 = arith.constant 0 : index
    %c0_45 = arith.constant 0 : index
    %c102 = arith.constant 102 : index
    %49 = vector.load %arg1[%c0_44, %c0_45, %c102] : memref<1x3x2602xbf16, #tpu.memory_space<vmem>>, vector<1x3x2500xbf16>
    %50 = vector.shape_cast %49 : vector<1x3x2500xbf16> to vector<3x2500xbf16>
    %cst_46 = arith.constant dense<0.000000e+00> : vector<8x2500xf32>
    %51 = tpu.matmul %48, %50, %cst_46 {dimension_numbers = #tpu.dot_dimension_numbers<[1], [0], [0], [1], [0, 0, 1, 1], [], []>} : vector<8x3xbf16>, vector<3x2500xbf16>, vector<8x2500xf32> -> vector<8x2500xf32>
    %52 = arith.addf %46, %51 : vector<8x2500xf32>
    %c0_47 = arith.constant 0 : index
    %c0_48 = arith.constant 0 : index
    %53 = vector.load %arg3[%c0_47, %c0_48] : memref<8x1xf32, #tpu.memory_space<vmem>>, vector<8x1xf32>
    %54 = vector.broadcast %53 : vector<8x1xf32> to vector<8x2500xf32>
    %55 = arith.addf %52, %54 : vector<8x2500xf32>
    %cst_49 = arith.constant 0.000000e+00 : f32
    %56 = vector.broadcast %cst_49 : f32 to vector<8x2500xf32>
    %57 = arith.maximumf %55, %56 : vector<8x2500xf32>
    %cst_50 = arith.constant 0.000000e+00 : bf16
    %58 = vector.broadcast %cst_50 : bf16 to vector<8x2602xbf16>
    %c0_51 = arith.constant 0 : index
    %c0_52 = arith.constant 0 : index
    %59 = vector.load %arg8[%c0_51, %c0_52] : memref<8x2602xbf16, #tpu.memory_space<vmem>>, vector<8x2602xbf16>
    tpu.vector_store %arg8[%c0_51, %c0_52], %58 {strides = array<i32>} : memref<8x2602xbf16, #tpu.memory_space<vmem>>, vector<8x2602xbf16>,
    %c0_53 = arith.constant 0 : index
    %c0_54 = arith.constant 0 : index
    %60 = vector.load %arg6[%c0_53, %c0_54] : memref<1x2500xf32, #tpu.memory_space<vmem>>, vector<1x2500xf32>
    %61 = vector.broadcast %60 : vector<1x2500xf32> to vector<8x2500xf32>
    %62 = arith.mulf %57, %61 : vector<8x2500xf32>
    %63 = arith.truncf %62 : vector<8x2500xf32> to vector<8x2500xbf16>
    %c0_55 = arith.constant 0 : index
    %c51_56 = arith.constant 51 : index
    %64 = vector.load %arg8[%c0_55, %c51_56] : memref<8x2602xbf16, #tpu.memory_space<vmem>>, vector<8x2500xbf16>
    tpu.vector_store %arg8[%c0_55, %c51_56], %63 {strides = array<i32>} : memref<8x2602xbf16, #tpu.memory_space<vmem>>, vector<8x2500xbf16>,
    %c0_57 = arith.constant 0 : index
    %c0_58 = arith.constant 0 : index
    %c0_59 = arith.constant 0 : index
    %65 = vector.load %arg4[%c0_57, %c0_58, %c0_59] : memref<9x8x8xbf16, #tpu.memory_space<vmem>>, vector<1x8x8xbf16>
    %66 = vector.shape_cast %65 : vector<1x8x8xbf16> to vector<8x8xbf16>
    %c0_60 = arith.constant 0 : index
    %c0_61 = arith.constant 0 : index
    %67 = vector.load %arg8[%c0_60, %c0_61] : memref<8x2602xbf16, #tpu.memory_space<vmem>>, vector<8x2500xbf16>
    %cst_62 = arith.constant dense<0.000000e+00> : vector<8x2500xf32>
    %68 = tpu.matmul %66, %67, %cst_62 {dimension_numbers = #tpu.dot_dimension_numbers<[1], [0], [0], [1], [0, 0, 1, 1], [], []>} : vector<8x8xbf16>, vector<8x2500xbf16>, vector<8x2500xf32> -> vector<8x2500xf32>
    %c1_63 = arith.constant 1 : index
    %c0_64 = arith.constant 0 : index
    %c0_65 = arith.constant 0 : index
    %69 = vector.load %arg4[%c1_63, %c0_64, %c0_65] : memref<9x8x8xbf16, #tpu.memory_space<vmem>>, vector<1x8x8xbf16>
    %70 = vector.shape_cast %69 : vector<1x8x8xbf16> to vector<8x8xbf16>
    %c0_66 = arith.constant 0 : index
    %c1_67 = arith.constant 1 : index
    %71 = vector.load %arg8[%c0_66, %c1_67] : memref<8x2602xbf16, #tpu.memory_space<vmem>>, vector<8x2500xbf16>
    %cst_68 = arith.constant dense<0.000000e+00> : vector<8x2500xf32>
    %72 = tpu.matmul %70, %71, %cst_68 {dimension_numbers = #tpu.dot_dimension_numbers<[1], [0], [0], [1], [0, 0, 1, 1], [], []>} : vector<8x8xbf16>, vector<8x2500xbf16>, vector<8x2500xf32> -> vector<8x2500xf32>
    %73 = arith.addf %68, %72 : vector<8x2500xf32>
    %c2_69 = arith.constant 2 : index
    %c0_70 = arith.constant 0 : index
    %c0_71 = arith.constant 0 : index
    %74 = vector.load %arg4[%c2_69, %c0_70, %c0_71] : memref<9x8x8xbf16, #tpu.memory_space<vmem>>, vector<1x8x8xbf16>
    %75 = vector.shape_cast %74 : vector<1x8x8xbf16> to vector<8x8xbf16>
    %c0_72 = arith.constant 0 : index
    %c2_73 = arith.constant 2 : index
    %76 = vector.load %arg8[%c0_72, %c2_73] : memref<8x2602xbf16, #tpu.memory_space<vmem>>, vector<8x2500xbf16>
    %cst_74 = arith.constant dense<0.000000e+00> : vector<8x2500xf32>
    %77 = tpu.matmul %75, %76, %cst_74 {dimension_numbers = #tpu.dot_dimension_numbers<[1], [0], [0], [1], [0, 0, 1, 1], [], []>} : vector<8x8xbf16>, vector<8x2500xbf16>, vector<8x2500xf32> -> vector<8x2500xf32>
    %78 = arith.addf %73, %77 : vector<8x2500xf32>
    %c3_75 = arith.constant 3 : index
    %c0_76 = arith.constant 0 : index
    %c0_77 = arith.constant 0 : index
    %79 = vector.load %arg4[%c3_75, %c0_76, %c0_77] : memref<9x8x8xbf16, #tpu.memory_space<vmem>>, vector<1x8x8xbf16>
    %80 = vector.shape_cast %79 : vector<1x8x8xbf16> to vector<8x8xbf16>
    %c0_78 = arith.constant 0 : index
    %c50_79 = arith.constant 50 : index
    %81 = vector.load %arg8[%c0_78, %c50_79] : memref<8x2602xbf16, #tpu.memory_space<vmem>>, vector<8x2500xbf16>
    %cst_80 = arith.constant dense<0.000000e+00> : vector<8x2500xf32>
    %82 = tpu.matmul %80, %81, %cst_80 {dimension_numbers = #tpu.dot_dimension_numbers<[1], [0], [0], [1], [0, 0, 1, 1], [], []>} : vector<8x8xbf16>, vector<8x2500xbf16>, vector<8x2500xf32> -> vector<8x2500xf32>
    %83 = arith.addf %78, %82 : vector<8x2500xf32>
    %c4_81 = arith.constant 4 : index
    %c0_82 = arith.constant 0 : index
    %c0_83 = arith.constant 0 : index
    %84 = vector.load %arg4[%c4_81, %c0_82, %c0_83] : memref<9x8x8xbf16, #tpu.memory_space<vmem>>, vector<1x8x8xbf16>
    %85 = vector.shape_cast %84 : vector<1x8x8xbf16> to vector<8x8xbf16>
    %c0_84 = arith.constant 0 : index
    %c51_85 = arith.constant 51 : index
    %86 = vector.load %arg8[%c0_84, %c51_85] : memref<8x2602xbf16, #tpu.memory_space<vmem>>, vector<8x2500xbf16>
    %cst_86 = arith.constant dense<0.000000e+00> : vector<8x2500xf32>
    %87 = tpu.matmul %85, %86, %cst_86 {dimension_numbers = #tpu.dot_dimension_numbers<[1], [0], [0], [1], [0, 0, 1, 1], [], []>} : vector<8x8xbf16>, vector<8x2500xbf16>, vector<8x2500xf32> -> vector<8x2500xf32>
    %88 = arith.addf %83, %87 : vector<8x2500xf32>
    %c5_87 = arith.constant 5 : index
    %c0_88 = arith.constant 0 : index
    %c0_89 = arith.constant 0 : index
    %89 = vector.load %arg4[%c5_87, %c0_88, %c0_89] : memref<9x8x8xbf16, #tpu.memory_space<vmem>>, vector<1x8x8xbf16>
    %90 = vector.shape_cast %89 : vector<1x8x8xbf16> to vector<8x8xbf16>
    %c0_90 = arith.constant 0 : index
    %c52_91 = arith.constant 52 : index
    %91 = vector.load %arg8[%c0_90, %c52_91] : memref<8x2602xbf16, #tpu.memory_space<vmem>>, vector<8x2500xbf16>
    %cst_92 = arith.constant dense<0.000000e+00> : vector<8x2500xf32>
    %92 = tpu.matmul %90, %91, %cst_92 {dimension_numbers = #tpu.dot_dimension_numbers<[1], [0], [0], [1], [0, 0, 1, 1], [], []>} : vector<8x8xbf16>, vector<8x2500xbf16>, vector<8x2500xf32> -> vector<8x2500xf32>
    %93 = arith.addf %88, %92 : vector<8x2500xf32>
    %c6_93 = arith.constant 6 : index
    %c0_94 = arith.constant 0 : index
    %c0_95 = arith.constant 0 : index
    %94 = vector.load %arg4[%c6_93, %c0_94, %c0_95] : memref<9x8x8xbf16, #tpu.memory_space<vmem>>, vector<1x8x8xbf16>
    %95 = vector.shape_cast %94 : vector<1x8x8xbf16> to vector<8x8xbf16>
    %c0_96 = arith.constant 0 : index
    %c100_97 = arith.constant 100 : index
    %96 = vector.load %arg8[%c0_96, %c100_97] : memref<8x2602xbf16, #tpu.memory_space<vmem>>, vector<8x2500xbf16>
    %cst_98 = arith.constant dense<0.000000e+00> : vector<8x2500xf32>
    %97 = tpu.matmul %95, %96, %cst_98 {dimension_numbers = #tpu.dot_dimension_numbers<[1], [0], [0], [1], [0, 0, 1, 1], [], []>} : vector<8x8xbf16>, vector<8x2500xbf16>, vector<8x2500xf32> -> vector<8x2500xf32>
    %98 = arith.addf %93, %97 : vector<8x2500xf32>
    %c7_99 = arith.constant 7 : index
    %c0_100 = arith.constant 0 : index
    %c0_101 = arith.constant 0 : index
    %99 = vector.load %arg4[%c7_99, %c0_100, %c0_101] : memref<9x8x8xbf16, #tpu.memory_space<vmem>>, vector<1x8x8xbf16>
    %100 = vector.shape_cast %99 : vector<1x8x8xbf16> to vector<8x8xbf16>
    %c0_102 = arith.constant 0 : index
    %c101_103 = arith.constant 101 : index
    %101 = vector.load %arg8[%c0_102, %c101_103] : memref<8x2602xbf16, #tpu.memory_space<vmem>>, vector<8x2500xbf16>
    %cst_104 = arith.constant dense<0.000000e+00> : vector<8x2500xf32>
    %102 = tpu.matmul %100, %101, %cst_104 {dimension_numbers = #tpu.dot_dimension_numbers<[1], [0], [0], [1], [0, 0, 1, 1], [], []>} : vector<8x8xbf16>, vector<8x2500xbf16>, vector<8x2500xf32> -> vector<8x2500xf32>
    %103 = arith.addf %98, %102 : vector<8x2500xf32>
    %c8_105 = arith.constant 8 : index
    %c0_106 = arith.constant 0 : index
    %c0_107 = arith.constant 0 : index
    %104 = vector.load %arg4[%c8_105, %c0_106, %c0_107] : memref<9x8x8xbf16, #tpu.memory_space<vmem>>, vector<1x8x8xbf16>
    %105 = vector.shape_cast %104 : vector<1x8x8xbf16> to vector<8x8xbf16>
    %c0_108 = arith.constant 0 : index
    %c102_109 = arith.constant 102 : index
    %106 = vector.load %arg8[%c0_108, %c102_109] : memref<8x2602xbf16, #tpu.memory_space<vmem>>, vector<8x2500xbf16>
    %cst_110 = arith.constant dense<0.000000e+00> : vector<8x2500xf32>
    %107 = tpu.matmul %105, %106, %cst_110 {dimension_numbers = #tpu.dot_dimension_numbers<[1], [0], [0], [1], [0, 0, 1, 1], [], []>} : vector<8x8xbf16>, vector<8x2500xbf16>, vector<8x2500xf32> -> vector<8x2500xf32>
    %108 = arith.addf %103, %107 : vector<8x2500xf32>
    %c0_111 = arith.constant 0 : index
    %c0_112 = arith.constant 0 : index
    %109 = vector.load %arg5[%c0_111, %c0_112] : memref<8x1xf32, #tpu.memory_space<vmem>>, vector<8x1xf32>
    %110 = vector.broadcast %109 : vector<8x1xf32> to vector<8x2500xf32>
    %111 = arith.addf %108, %110 : vector<8x2500xf32>
    %cst_113 = arith.constant 0.000000e+00 : f32
    %112 = vector.broadcast %cst_113 : f32 to vector<8x2500xf32>
    %113 = arith.maximumf %111, %112 : vector<8x2500xf32>
    %114 = arith.truncf %113 : vector<8x2500xf32> to vector<8x2500xbf16>
    %c0_114 = arith.constant 0 : index
    %c0_115 = arith.constant 0 : index
    %115 = vector.load %arg8[%c0_114, %c0_115] : memref<8x2602xbf16, #tpu.memory_space<vmem>>, vector<8x2500xbf16>
    tpu.vector_store %arg8[%c0_114, %c0_115], %114 {strides = array<i32>} : memref<8x2602xbf16, #tpu.memory_space<vmem>>, vector<8x2500xbf16>,
    %c0_116 = arith.constant 0 : index
    %c0_117 = arith.constant 0 : index
    %116 = vector.load %arg8[%c0_116, %c0_117] : memref<8x2602xbf16, #tpu.memory_space<vmem>>, vector<8x2500xbf16>
    %c0_118 = arith.constant 0 : index
    %c1_119 = arith.constant 1 : index
    %117 = vector.load %arg8[%c0_118, %c1_119] : memref<8x2602xbf16, #tpu.memory_space<vmem>>, vector<8x2500xbf16>
    %118 = arith.maximumf %116, %117 : vector<8x2500xbf16>
    %c0_120 = arith.constant 0 : index
    %c50_121 = arith.constant 50 : index
    %119 = vector.load %arg8[%c0_120, %c50_121] : memref<8x2602xbf16, #tpu.memory_space<vmem>>, vector<8x2500xbf16>
    %c0_122 = arith.constant 0 : index
    %c51_123 = arith.constant 51 : index
    %120 = vector.load %arg8[%c0_122, %c51_123] : memref<8x2602xbf16, #tpu.memory_space<vmem>>, vector<8x2500xbf16>
    %121 = arith.maximumf %119, %120 : vector<8x2500xbf16>
    %122 = arith.maximumf %118, %121 : vector<8x2500xbf16>
    %123 = arith.extf %122 : vector<8x2500xbf16> to vector<8x2500xf32>
    %c0_124 = arith.constant 0 : index
    %c0_125 = arith.constant 0 : index
    %c0_126 = arith.constant 0 : index
    %124 = vector.load %arg7[%c0_124, %c0_125, %c0_126] : memref<1x8x2500xf32, #tpu.memory_space<vmem>>, vector<1x8x2500xf32>
    %125 = vector.shape_cast %124 : vector<1x8x2500xf32> to vector<8x2500xf32>
    %126 = vector.shape_cast %123 : vector<8x2500xf32> to vector<1x8x2500xf32>
    tpu.vector_store %arg7[%c0_124, %c0_125, %c0_126], %126 {strides = array<i32>} : memref<1x8x2500xf32, #tpu.memory_space<vmem>>, vector<1x8x2500xf32>,
    return
  }
  func.func @transform_0(%arg0: i32) -> (i32, i32, i32) {
    %c0_i32 = arith.constant 0 : i32
    %c0_i32_0 = arith.constant 0 : i32
    %c0_i32_1 = arith.constant 0 : i32
    return %arg0, %c0_i32, %c0_i32_0 : i32, i32, i32
  }
  func.func @transform_1(%arg0: i32) -> (i32, i32, i32) {
    %c0_i32 = arith.constant 0 : i32
    %c0_i32_0 = arith.constant 0 : i32
    %c0_i32_1 = arith.constant 0 : i32
    %c0_i32_2 = arith.constant 0 : i32
    return %c0_i32, %c0_i32_0, %c0_i32_1 : i32, i32, i32
  }
  func.func @transform_2(%arg0: i32) -> (i32, i32) {
    %c0_i32 = arith.constant 0 : i32
    %c0_i32_0 = arith.constant 0 : i32
    %c0_i32_1 = arith.constant 0 : i32
    return %c0_i32, %c0_i32_0 : i32, i32
  }
  func.func @transform_3(%arg0: i32) -> (i32, i32, i32) {
    %c0_i32 = arith.constant 0 : i32
    %c0_i32_0 = arith.constant 0 : i32
    %c0_i32_1 = arith.constant 0 : i32
    %c0_i32_2 = arith.constant 0 : i32
    return %c0_i32, %c0_i32_0, %c0_i32_1 : i32, i32, i32
  }
  func.func @transform_4(%arg0: i32) -> (i32, i32) {
    %c0_i32 = arith.constant 0 : i32
    %c0_i32_0 = arith.constant 0 : i32
    %c0_i32_1 = arith.constant 0 : i32
    return %c0_i32, %c0_i32_0 : i32, i32
  }
  func.func @transform_5(%arg0: i32) -> (i32, i32) {
    %c0_i32 = arith.constant 0 : i32
    %c0_i32_0 = arith.constant 0 : i32
    %c0_i32_1 = arith.constant 0 : i32
    return %c0_i32, %c0_i32_0 : i32, i32
  }
  func.func @transform_6(%arg0: i32) -> (i32, i32, i32) {
    %c0_i32 = arith.constant 0 : i32
    %c0_i32_0 = arith.constant 0 : i32
    %c0_i32_1 = arith.constant 0 : i32
    return %arg0, %c0_i32, %c0_i32_0 : i32, i32, i32
  }
}

module attributes {stable_mosaic.version = 11 : i64} {
  func.func @_stage_kernel(%arg0: i32, %arg1: memref<1x8x784xbf16, #tpu.memory_space<vmem>>, %arg2: memref<9x16x8xbf16, #tpu.memory_space<vmem>>, %arg3: memref<16x1xf32, #tpu.memory_space<vmem>>, %arg4: memref<9x16x16xbf16, #tpu.memory_space<vmem>>, %arg5: memref<16x1xf32, #tpu.memory_space<vmem>>, %arg6: memref<1x676xf32, #tpu.memory_space<vmem>>, %arg7: memref<1x16x676xf32, #tpu.memory_space<vmem>>, %arg8: memref<16x784xbf16, #tpu.memory_space<vmem>>) attributes {dimension_semantics = [#tpu.dimension_semantics<parallel>], iteration_bounds = array<i64: 2>, scalar_prefetch = 0 : i64, scratch_operands = 1 : i64, tpu.core_type = #tpu.core_type<tc>, window_params = [{transform_indices = @transform_0, window_bounds = array<i64: 1, 8, 784>}, {pipeline_mode = #tpu.pipeline_mode<synchronous>, transform_indices = @transform_1, window_bounds = array<i64: 9, 16, 8>}, {pipeline_mode = #tpu.pipeline_mode<synchronous>, transform_indices = @transform_2, window_bounds = array<i64: 16, 1>}, {pipeline_mode = #tpu.pipeline_mode<synchronous>, transform_indices = @transform_3, window_bounds = array<i64: 9, 16, 16>}, {pipeline_mode = #tpu.pipeline_mode<synchronous>, transform_indices = @transform_4, window_bounds = array<i64: 16, 1>}, {pipeline_mode = #tpu.pipeline_mode<synchronous>, transform_indices = @transform_5, window_bounds = array<i64: 1, 676>}, {transform_indices = @transform_6, window_bounds = array<i64: 1, 16, 676>}]} {
    %c0 = arith.constant 0 : index
    %c0_0 = arith.constant 0 : index
    %c0_1 = arith.constant 0 : index
    %0 = vector.load %arg2[%c0, %c0_0, %c0_1] : memref<9x16x8xbf16, #tpu.memory_space<vmem>>, vector<1x16x8xbf16>
    %1 = vector.shape_cast %0 : vector<1x16x8xbf16> to vector<16x8xbf16>
    %c0_2 = arith.constant 0 : index
    %c0_3 = arith.constant 0 : index
    %c0_4 = arith.constant 0 : index
    %2 = vector.load %arg1[%c0_2, %c0_3, %c0_4] : memref<1x8x784xbf16, #tpu.memory_space<vmem>>, vector<1x8x676xbf16>
    %3 = vector.shape_cast %2 : vector<1x8x676xbf16> to vector<8x676xbf16>
    %cst = arith.constant dense<0.000000e+00> : vector<16x676xf32>
    %4 = tpu.matmul %1, %3, %cst {dimension_numbers = #tpu.dot_dimension_numbers<[1], [0], [0], [1], [0, 0, 1, 1], [], []>} : vector<16x8xbf16>, vector<8x676xbf16>, vector<16x676xf32> -> vector<16x676xf32>
    %c1 = arith.constant 1 : index
    %c0_5 = arith.constant 0 : index
    %c0_6 = arith.constant 0 : index
    %5 = vector.load %arg2[%c1, %c0_5, %c0_6] : memref<9x16x8xbf16, #tpu.memory_space<vmem>>, vector<1x16x8xbf16>
    %6 = vector.shape_cast %5 : vector<1x16x8xbf16> to vector<16x8xbf16>
    %c0_7 = arith.constant 0 : index
    %c0_8 = arith.constant 0 : index
    %c2 = arith.constant 2 : index
    %7 = vector.load %arg1[%c0_7, %c0_8, %c2] : memref<1x8x784xbf16, #tpu.memory_space<vmem>>, vector<1x8x676xbf16>
    %8 = vector.shape_cast %7 : vector<1x8x676xbf16> to vector<8x676xbf16>
    %cst_9 = arith.constant dense<0.000000e+00> : vector<16x676xf32>
    %9 = tpu.matmul %6, %8, %cst_9 {dimension_numbers = #tpu.dot_dimension_numbers<[1], [0], [0], [1], [0, 0, 1, 1], [], []>} : vector<16x8xbf16>, vector<8x676xbf16>, vector<16x676xf32> -> vector<16x676xf32>
    %10 = arith.addf %4, %9 : vector<16x676xf32>
    %c2_10 = arith.constant 2 : index
    %c0_11 = arith.constant 0 : index
    %c0_12 = arith.constant 0 : index
    %11 = vector.load %arg2[%c2_10, %c0_11, %c0_12] : memref<9x16x8xbf16, #tpu.memory_space<vmem>>, vector<1x16x8xbf16>
    %12 = vector.shape_cast %11 : vector<1x16x8xbf16> to vector<16x8xbf16>
    %c0_13 = arith.constant 0 : index
    %c0_14 = arith.constant 0 : index
    %c4 = arith.constant 4 : index
    %13 = vector.load %arg1[%c0_13, %c0_14, %c4] : memref<1x8x784xbf16, #tpu.memory_space<vmem>>, vector<1x8x676xbf16>
    %14 = vector.shape_cast %13 : vector<1x8x676xbf16> to vector<8x676xbf16>
    %cst_15 = arith.constant dense<0.000000e+00> : vector<16x676xf32>
    %15 = tpu.matmul %12, %14, %cst_15 {dimension_numbers = #tpu.dot_dimension_numbers<[1], [0], [0], [1], [0, 0, 1, 1], [], []>} : vector<16x8xbf16>, vector<8x676xbf16>, vector<16x676xf32> -> vector<16x676xf32>
    %16 = arith.addf %10, %15 : vector<16x676xf32>
    %c3 = arith.constant 3 : index
    %c0_16 = arith.constant 0 : index
    %c0_17 = arith.constant 0 : index
    %17 = vector.load %arg2[%c3, %c0_16, %c0_17] : memref<9x16x8xbf16, #tpu.memory_space<vmem>>, vector<1x16x8xbf16>
    %18 = vector.shape_cast %17 : vector<1x16x8xbf16> to vector<16x8xbf16>
    %c0_18 = arith.constant 0 : index
    %c0_19 = arith.constant 0 : index
    %c52 = arith.constant 52 : index
    %19 = vector.load %arg1[%c0_18, %c0_19, %c52] : memref<1x8x784xbf16, #tpu.memory_space<vmem>>, vector<1x8x676xbf16>
    %20 = vector.shape_cast %19 : vector<1x8x676xbf16> to vector<8x676xbf16>
    %cst_20 = arith.constant dense<0.000000e+00> : vector<16x676xf32>
    %21 = tpu.matmul %18, %20, %cst_20 {dimension_numbers = #tpu.dot_dimension_numbers<[1], [0], [0], [1], [0, 0, 1, 1], [], []>} : vector<16x8xbf16>, vector<8x676xbf16>, vector<16x676xf32> -> vector<16x676xf32>
    %22 = arith.addf %16, %21 : vector<16x676xf32>
    %c4_21 = arith.constant 4 : index
    %c0_22 = arith.constant 0 : index
    %c0_23 = arith.constant 0 : index
    %23 = vector.load %arg2[%c4_21, %c0_22, %c0_23] : memref<9x16x8xbf16, #tpu.memory_space<vmem>>, vector<1x16x8xbf16>
    %24 = vector.shape_cast %23 : vector<1x16x8xbf16> to vector<16x8xbf16>
    %c0_24 = arith.constant 0 : index
    %c0_25 = arith.constant 0 : index
    %c54 = arith.constant 54 : index
    %25 = vector.load %arg1[%c0_24, %c0_25, %c54] : memref<1x8x784xbf16, #tpu.memory_space<vmem>>, vector<1x8x676xbf16>
    %26 = vector.shape_cast %25 : vector<1x8x676xbf16> to vector<8x676xbf16>
    %cst_26 = arith.constant dense<0.000000e+00> : vector<16x676xf32>
    %27 = tpu.matmul %24, %26, %cst_26 {dimension_numbers = #tpu.dot_dimension_numbers<[1], [0], [0], [1], [0, 0, 1, 1], [], []>} : vector<16x8xbf16>, vector<8x676xbf16>, vector<16x676xf32> -> vector<16x676xf32>
    %28 = arith.addf %22, %27 : vector<16x676xf32>
    %c5 = arith.constant 5 : index
    %c0_27 = arith.constant 0 : index
    %c0_28 = arith.constant 0 : index
    %29 = vector.load %arg2[%c5, %c0_27, %c0_28] : memref<9x16x8xbf16, #tpu.memory_space<vmem>>, vector<1x16x8xbf16>
    %30 = vector.shape_cast %29 : vector<1x16x8xbf16> to vector<16x8xbf16>
    %c0_29 = arith.constant 0 : index
    %c0_30 = arith.constant 0 : index
    %c56 = arith.constant 56 : index
    %31 = vector.load %arg1[%c0_29, %c0_30, %c56] : memref<1x8x784xbf16, #tpu.memory_space<vmem>>, vector<1x8x676xbf16>
    %32 = vector.shape_cast %31 : vector<1x8x676xbf16> to vector<8x676xbf16>
    %cst_31 = arith.constant dense<0.000000e+00> : vector<16x676xf32>
    %33 = tpu.matmul %30, %32, %cst_31 {dimension_numbers = #tpu.dot_dimension_numbers<[1], [0], [0], [1], [0, 0, 1, 1], [], []>} : vector<16x8xbf16>, vector<8x676xbf16>, vector<16x676xf32> -> vector<16x676xf32>
    %34 = arith.addf %28, %33 : vector<16x676xf32>
    %c6 = arith.constant 6 : index
    %c0_32 = arith.constant 0 : index
    %c0_33 = arith.constant 0 : index
    %35 = vector.load %arg2[%c6, %c0_32, %c0_33] : memref<9x16x8xbf16, #tpu.memory_space<vmem>>, vector<1x16x8xbf16>
    %36 = vector.shape_cast %35 : vector<1x16x8xbf16> to vector<16x8xbf16>
    %c0_34 = arith.constant 0 : index
    %c0_35 = arith.constant 0 : index
    %c104 = arith.constant 104 : index
    %37 = vector.load %arg1[%c0_34, %c0_35, %c104] : memref<1x8x784xbf16, #tpu.memory_space<vmem>>, vector<1x8x676xbf16>
    %38 = vector.shape_cast %37 : vector<1x8x676xbf16> to vector<8x676xbf16>
    %cst_36 = arith.constant dense<0.000000e+00> : vector<16x676xf32>
    %39 = tpu.matmul %36, %38, %cst_36 {dimension_numbers = #tpu.dot_dimension_numbers<[1], [0], [0], [1], [0, 0, 1, 1], [], []>} : vector<16x8xbf16>, vector<8x676xbf16>, vector<16x676xf32> -> vector<16x676xf32>
    %40 = arith.addf %34, %39 : vector<16x676xf32>
    %c7 = arith.constant 7 : index
    %c0_37 = arith.constant 0 : index
    %c0_38 = arith.constant 0 : index
    %41 = vector.load %arg2[%c7, %c0_37, %c0_38] : memref<9x16x8xbf16, #tpu.memory_space<vmem>>, vector<1x16x8xbf16>
    %42 = vector.shape_cast %41 : vector<1x16x8xbf16> to vector<16x8xbf16>
    %c0_39 = arith.constant 0 : index
    %c0_40 = arith.constant 0 : index
    %c106 = arith.constant 106 : index
    %43 = vector.load %arg1[%c0_39, %c0_40, %c106] : memref<1x8x784xbf16, #tpu.memory_space<vmem>>, vector<1x8x676xbf16>
    %44 = vector.shape_cast %43 : vector<1x8x676xbf16> to vector<8x676xbf16>
    %cst_41 = arith.constant dense<0.000000e+00> : vector<16x676xf32>
    %45 = tpu.matmul %42, %44, %cst_41 {dimension_numbers = #tpu.dot_dimension_numbers<[1], [0], [0], [1], [0, 0, 1, 1], [], []>} : vector<16x8xbf16>, vector<8x676xbf16>, vector<16x676xf32> -> vector<16x676xf32>
    %46 = arith.addf %40, %45 : vector<16x676xf32>
    %c8 = arith.constant 8 : index
    %c0_42 = arith.constant 0 : index
    %c0_43 = arith.constant 0 : index
    %47 = vector.load %arg2[%c8, %c0_42, %c0_43] : memref<9x16x8xbf16, #tpu.memory_space<vmem>>, vector<1x16x8xbf16>
    %48 = vector.shape_cast %47 : vector<1x16x8xbf16> to vector<16x8xbf16>
    %c0_44 = arith.constant 0 : index
    %c0_45 = arith.constant 0 : index
    %c108 = arith.constant 108 : index
    %49 = vector.load %arg1[%c0_44, %c0_45, %c108] : memref<1x8x784xbf16, #tpu.memory_space<vmem>>, vector<1x8x676xbf16>
    %50 = vector.shape_cast %49 : vector<1x8x676xbf16> to vector<8x676xbf16>
    %cst_46 = arith.constant dense<0.000000e+00> : vector<16x676xf32>
    %51 = tpu.matmul %48, %50, %cst_46 {dimension_numbers = #tpu.dot_dimension_numbers<[1], [0], [0], [1], [0, 0, 1, 1], [], []>} : vector<16x8xbf16>, vector<8x676xbf16>, vector<16x676xf32> -> vector<16x676xf32>
    %52 = arith.addf %46, %51 : vector<16x676xf32>
    %c0_47 = arith.constant 0 : index
    %c0_48 = arith.constant 0 : index
    %53 = vector.load %arg3[%c0_47, %c0_48] : memref<16x1xf32, #tpu.memory_space<vmem>>, vector<16x1xf32>
    %54 = vector.broadcast %53 : vector<16x1xf32> to vector<16x676xf32>
    %55 = arith.addf %52, %54 : vector<16x676xf32>
    %cst_49 = arith.constant 0.000000e+00 : f32
    %56 = vector.broadcast %cst_49 : f32 to vector<16x676xf32>
    %57 = arith.maximumf %55, %56 : vector<16x676xf32>
    %cst_50 = arith.constant 0.000000e+00 : bf16
    %58 = vector.broadcast %cst_50 : bf16 to vector<16x784xbf16>
    %c0_51 = arith.constant 0 : index
    %c0_52 = arith.constant 0 : index
    %59 = vector.load %arg8[%c0_51, %c0_52] : memref<16x784xbf16, #tpu.memory_space<vmem>>, vector<16x784xbf16>
    tpu.vector_store %arg8[%c0_51, %c0_52], %58 {strides = array<i32>} : memref<16x784xbf16, #tpu.memory_space<vmem>>, vector<16x784xbf16>,
    %c0_53 = arith.constant 0 : index
    %c0_54 = arith.constant 0 : index
    %60 = vector.load %arg6[%c0_53, %c0_54] : memref<1x676xf32, #tpu.memory_space<vmem>>, vector<1x676xf32>
    %61 = vector.broadcast %60 : vector<1x676xf32> to vector<16x676xf32>
    %62 = arith.mulf %57, %61 : vector<16x676xf32>
    %63 = arith.truncf %62 : vector<16x676xf32> to vector<16x676xbf16>
    %c0_55 = arith.constant 0 : index
    %c27 = arith.constant 27 : index
    %64 = vector.load %arg8[%c0_55, %c27] : memref<16x784xbf16, #tpu.memory_space<vmem>>, vector<16x676xbf16>
    tpu.vector_store %arg8[%c0_55, %c27], %63 {strides = array<i32>} : memref<16x784xbf16, #tpu.memory_space<vmem>>, vector<16x676xbf16>,
    %c0_56 = arith.constant 0 : index
    %c0_57 = arith.constant 0 : index
    %c0_58 = arith.constant 0 : index
    %65 = vector.load %arg4[%c0_56, %c0_57, %c0_58] : memref<9x16x16xbf16, #tpu.memory_space<vmem>>, vector<1x16x16xbf16>
    %66 = vector.shape_cast %65 : vector<1x16x16xbf16> to vector<16x16xbf16>
    %c0_59 = arith.constant 0 : index
    %c0_60 = arith.constant 0 : index
    %67 = vector.load %arg8[%c0_59, %c0_60] : memref<16x784xbf16, #tpu.memory_space<vmem>>, vector<16x676xbf16>
    %cst_61 = arith.constant dense<0.000000e+00> : vector<16x676xf32>
    %68 = tpu.matmul %66, %67, %cst_61 {dimension_numbers = #tpu.dot_dimension_numbers<[1], [0], [0], [1], [0, 0, 1, 1], [], []>} : vector<16x16xbf16>, vector<16x676xbf16>, vector<16x676xf32> -> vector<16x676xf32>
    %c1_62 = arith.constant 1 : index
    %c0_63 = arith.constant 0 : index
    %c0_64 = arith.constant 0 : index
    %69 = vector.load %arg4[%c1_62, %c0_63, %c0_64] : memref<9x16x16xbf16, #tpu.memory_space<vmem>>, vector<1x16x16xbf16>
    %70 = vector.shape_cast %69 : vector<1x16x16xbf16> to vector<16x16xbf16>
    %c0_65 = arith.constant 0 : index
    %c2_66 = arith.constant 2 : index
    %71 = vector.load %arg8[%c0_65, %c2_66] : memref<16x784xbf16, #tpu.memory_space<vmem>>, vector<16x676xbf16>
    %cst_67 = arith.constant dense<0.000000e+00> : vector<16x676xf32>
    %72 = tpu.matmul %70, %71, %cst_67 {dimension_numbers = #tpu.dot_dimension_numbers<[1], [0], [0], [1], [0, 0, 1, 1], [], []>} : vector<16x16xbf16>, vector<16x676xbf16>, vector<16x676xf32> -> vector<16x676xf32>
    %73 = arith.addf %68, %72 : vector<16x676xf32>
    %c2_68 = arith.constant 2 : index
    %c0_69 = arith.constant 0 : index
    %c0_70 = arith.constant 0 : index
    %74 = vector.load %arg4[%c2_68, %c0_69, %c0_70] : memref<9x16x16xbf16, #tpu.memory_space<vmem>>, vector<1x16x16xbf16>
    %75 = vector.shape_cast %74 : vector<1x16x16xbf16> to vector<16x16xbf16>
    %c0_71 = arith.constant 0 : index
    %c4_72 = arith.constant 4 : index
    %76 = vector.load %arg8[%c0_71, %c4_72] : memref<16x784xbf16, #tpu.memory_space<vmem>>, vector<16x676xbf16>
    %cst_73 = arith.constant dense<0.000000e+00> : vector<16x676xf32>
    %77 = tpu.matmul %75, %76, %cst_73 {dimension_numbers = #tpu.dot_dimension_numbers<[1], [0], [0], [1], [0, 0, 1, 1], [], []>} : vector<16x16xbf16>, vector<16x676xbf16>, vector<16x676xf32> -> vector<16x676xf32>
    %78 = arith.addf %73, %77 : vector<16x676xf32>
    %c3_74 = arith.constant 3 : index
    %c0_75 = arith.constant 0 : index
    %c0_76 = arith.constant 0 : index
    %79 = vector.load %arg4[%c3_74, %c0_75, %c0_76] : memref<9x16x16xbf16, #tpu.memory_space<vmem>>, vector<1x16x16xbf16>
    %80 = vector.shape_cast %79 : vector<1x16x16xbf16> to vector<16x16xbf16>
    %c0_77 = arith.constant 0 : index
    %c52_78 = arith.constant 52 : index
    %81 = vector.load %arg8[%c0_77, %c52_78] : memref<16x784xbf16, #tpu.memory_space<vmem>>, vector<16x676xbf16>
    %cst_79 = arith.constant dense<0.000000e+00> : vector<16x676xf32>
    %82 = tpu.matmul %80, %81, %cst_79 {dimension_numbers = #tpu.dot_dimension_numbers<[1], [0], [0], [1], [0, 0, 1, 1], [], []>} : vector<16x16xbf16>, vector<16x676xbf16>, vector<16x676xf32> -> vector<16x676xf32>
    %83 = arith.addf %78, %82 : vector<16x676xf32>
    %c4_80 = arith.constant 4 : index
    %c0_81 = arith.constant 0 : index
    %c0_82 = arith.constant 0 : index
    %84 = vector.load %arg4[%c4_80, %c0_81, %c0_82] : memref<9x16x16xbf16, #tpu.memory_space<vmem>>, vector<1x16x16xbf16>
    %85 = vector.shape_cast %84 : vector<1x16x16xbf16> to vector<16x16xbf16>
    %c0_83 = arith.constant 0 : index
    %c54_84 = arith.constant 54 : index
    %86 = vector.load %arg8[%c0_83, %c54_84] : memref<16x784xbf16, #tpu.memory_space<vmem>>, vector<16x676xbf16>
    %cst_85 = arith.constant dense<0.000000e+00> : vector<16x676xf32>
    %87 = tpu.matmul %85, %86, %cst_85 {dimension_numbers = #tpu.dot_dimension_numbers<[1], [0], [0], [1], [0, 0, 1, 1], [], []>} : vector<16x16xbf16>, vector<16x676xbf16>, vector<16x676xf32> -> vector<16x676xf32>
    %88 = arith.addf %83, %87 : vector<16x676xf32>
    %c5_86 = arith.constant 5 : index
    %c0_87 = arith.constant 0 : index
    %c0_88 = arith.constant 0 : index
    %89 = vector.load %arg4[%c5_86, %c0_87, %c0_88] : memref<9x16x16xbf16, #tpu.memory_space<vmem>>, vector<1x16x16xbf16>
    %90 = vector.shape_cast %89 : vector<1x16x16xbf16> to vector<16x16xbf16>
    %c0_89 = arith.constant 0 : index
    %c56_90 = arith.constant 56 : index
    %91 = vector.load %arg8[%c0_89, %c56_90] : memref<16x784xbf16, #tpu.memory_space<vmem>>, vector<16x676xbf16>
    %cst_91 = arith.constant dense<0.000000e+00> : vector<16x676xf32>
    %92 = tpu.matmul %90, %91, %cst_91 {dimension_numbers = #tpu.dot_dimension_numbers<[1], [0], [0], [1], [0, 0, 1, 1], [], []>} : vector<16x16xbf16>, vector<16x676xbf16>, vector<16x676xf32> -> vector<16x676xf32>
    %93 = arith.addf %88, %92 : vector<16x676xf32>
    %c6_92 = arith.constant 6 : index
    %c0_93 = arith.constant 0 : index
    %c0_94 = arith.constant 0 : index
    %94 = vector.load %arg4[%c6_92, %c0_93, %c0_94] : memref<9x16x16xbf16, #tpu.memory_space<vmem>>, vector<1x16x16xbf16>
    %95 = vector.shape_cast %94 : vector<1x16x16xbf16> to vector<16x16xbf16>
    %c0_95 = arith.constant 0 : index
    %c104_96 = arith.constant 104 : index
    %96 = vector.load %arg8[%c0_95, %c104_96] : memref<16x784xbf16, #tpu.memory_space<vmem>>, vector<16x676xbf16>
    %cst_97 = arith.constant dense<0.000000e+00> : vector<16x676xf32>
    %97 = tpu.matmul %95, %96, %cst_97 {dimension_numbers = #tpu.dot_dimension_numbers<[1], [0], [0], [1], [0, 0, 1, 1], [], []>} : vector<16x16xbf16>, vector<16x676xbf16>, vector<16x676xf32> -> vector<16x676xf32>
    %98 = arith.addf %93, %97 : vector<16x676xf32>
    %c7_98 = arith.constant 7 : index
    %c0_99 = arith.constant 0 : index
    %c0_100 = arith.constant 0 : index
    %99 = vector.load %arg4[%c7_98, %c0_99, %c0_100] : memref<9x16x16xbf16, #tpu.memory_space<vmem>>, vector<1x16x16xbf16>
    %100 = vector.shape_cast %99 : vector<1x16x16xbf16> to vector<16x16xbf16>
    %c0_101 = arith.constant 0 : index
    %c106_102 = arith.constant 106 : index
    %101 = vector.load %arg8[%c0_101, %c106_102] : memref<16x784xbf16, #tpu.memory_space<vmem>>, vector<16x676xbf16>
    %cst_103 = arith.constant dense<0.000000e+00> : vector<16x676xf32>
    %102 = tpu.matmul %100, %101, %cst_103 {dimension_numbers = #tpu.dot_dimension_numbers<[1], [0], [0], [1], [0, 0, 1, 1], [], []>} : vector<16x16xbf16>, vector<16x676xbf16>, vector<16x676xf32> -> vector<16x676xf32>
    %103 = arith.addf %98, %102 : vector<16x676xf32>
    %c8_104 = arith.constant 8 : index
    %c0_105 = arith.constant 0 : index
    %c0_106 = arith.constant 0 : index
    %104 = vector.load %arg4[%c8_104, %c0_105, %c0_106] : memref<9x16x16xbf16, #tpu.memory_space<vmem>>, vector<1x16x16xbf16>
    %105 = vector.shape_cast %104 : vector<1x16x16xbf16> to vector<16x16xbf16>
    %c0_107 = arith.constant 0 : index
    %c108_108 = arith.constant 108 : index
    %106 = vector.load %arg8[%c0_107, %c108_108] : memref<16x784xbf16, #tpu.memory_space<vmem>>, vector<16x676xbf16>
    %cst_109 = arith.constant dense<0.000000e+00> : vector<16x676xf32>
    %107 = tpu.matmul %105, %106, %cst_109 {dimension_numbers = #tpu.dot_dimension_numbers<[1], [0], [0], [1], [0, 0, 1, 1], [], []>} : vector<16x16xbf16>, vector<16x676xbf16>, vector<16x676xf32> -> vector<16x676xf32>
    %108 = arith.addf %103, %107 : vector<16x676xf32>
    %c0_110 = arith.constant 0 : index
    %c0_111 = arith.constant 0 : index
    %109 = vector.load %arg5[%c0_110, %c0_111] : memref<16x1xf32, #tpu.memory_space<vmem>>, vector<16x1xf32>
    %110 = vector.broadcast %109 : vector<16x1xf32> to vector<16x676xf32>
    %111 = arith.addf %108, %110 : vector<16x676xf32>
    %cst_112 = arith.constant 0.000000e+00 : f32
    %112 = vector.broadcast %cst_112 : f32 to vector<16x676xf32>
    %113 = arith.maximumf %111, %112 : vector<16x676xf32>
    %114 = arith.truncf %113 : vector<16x676xf32> to vector<16x676xbf16>
    %c0_113 = arith.constant 0 : index
    %c0_114 = arith.constant 0 : index
    %115 = vector.load %arg8[%c0_113, %c0_114] : memref<16x784xbf16, #tpu.memory_space<vmem>>, vector<16x676xbf16>
    tpu.vector_store %arg8[%c0_113, %c0_114], %114 {strides = array<i32>} : memref<16x784xbf16, #tpu.memory_space<vmem>>, vector<16x676xbf16>,
    %c0_115 = arith.constant 0 : index
    %c0_116 = arith.constant 0 : index
    %116 = vector.load %arg8[%c0_115, %c0_116] : memref<16x784xbf16, #tpu.memory_space<vmem>>, vector<16x676xbf16>
    %c0_117 = arith.constant 0 : index
    %c1_118 = arith.constant 1 : index
    %117 = vector.load %arg8[%c0_117, %c1_118] : memref<16x784xbf16, #tpu.memory_space<vmem>>, vector<16x676xbf16>
    %118 = arith.maximumf %116, %117 : vector<16x676xbf16>
    %c0_119 = arith.constant 0 : index
    %c26 = arith.constant 26 : index
    %119 = vector.load %arg8[%c0_119, %c26] : memref<16x784xbf16, #tpu.memory_space<vmem>>, vector<16x676xbf16>
    %c0_120 = arith.constant 0 : index
    %c27_121 = arith.constant 27 : index
    %120 = vector.load %arg8[%c0_120, %c27_121] : memref<16x784xbf16, #tpu.memory_space<vmem>>, vector<16x676xbf16>
    %121 = arith.maximumf %119, %120 : vector<16x676xbf16>
    %122 = arith.maximumf %118, %121 : vector<16x676xbf16>
    %123 = arith.extf %122 : vector<16x676xbf16> to vector<16x676xf32>
    %c0_122 = arith.constant 0 : index
    %c0_123 = arith.constant 0 : index
    %c0_124 = arith.constant 0 : index
    %124 = vector.load %arg7[%c0_122, %c0_123, %c0_124] : memref<1x16x676xf32, #tpu.memory_space<vmem>>, vector<1x16x676xf32>
    %125 = vector.shape_cast %124 : vector<1x16x676xf32> to vector<16x676xf32>
    %126 = vector.shape_cast %123 : vector<16x676xf32> to vector<1x16x676xf32>
    tpu.vector_store %arg7[%c0_122, %c0_123, %c0_124], %126 {strides = array<i32>} : memref<1x16x676xf32, #tpu.memory_space<vmem>>, vector<1x16x676xf32>,
    return
  }
  func.func @transform_0(%arg0: i32) -> (i32, i32, i32) {
    %c0_i32 = arith.constant 0 : i32
    %c0_i32_0 = arith.constant 0 : i32
    %c0_i32_1 = arith.constant 0 : i32
    return %arg0, %c0_i32, %c0_i32_0 : i32, i32, i32
  }
  func.func @transform_1(%arg0: i32) -> (i32, i32, i32) {
    %c0_i32 = arith.constant 0 : i32
    %c0_i32_0 = arith.constant 0 : i32
    %c0_i32_1 = arith.constant 0 : i32
    %c0_i32_2 = arith.constant 0 : i32
    return %c0_i32, %c0_i32_0, %c0_i32_1 : i32, i32, i32
  }
  func.func @transform_2(%arg0: i32) -> (i32, i32) {
    %c0_i32 = arith.constant 0 : i32
    %c0_i32_0 = arith.constant 0 : i32
    %c0_i32_1 = arith.constant 0 : i32
    return %c0_i32, %c0_i32_0 : i32, i32
  }
  func.func @transform_3(%arg0: i32) -> (i32, i32, i32) {
    %c0_i32 = arith.constant 0 : i32
    %c0_i32_0 = arith.constant 0 : i32
    %c0_i32_1 = arith.constant 0 : i32
    %c0_i32_2 = arith.constant 0 : i32
    return %c0_i32, %c0_i32_0, %c0_i32_1 : i32, i32, i32
  }
  func.func @transform_4(%arg0: i32) -> (i32, i32) {
    %c0_i32 = arith.constant 0 : i32
    %c0_i32_0 = arith.constant 0 : i32
    %c0_i32_1 = arith.constant 0 : i32
    return %c0_i32, %c0_i32_0 : i32, i32
  }
  func.func @transform_5(%arg0: i32) -> (i32, i32) {
    %c0_i32 = arith.constant 0 : i32
    %c0_i32_0 = arith.constant 0 : i32
    %c0_i32_1 = arith.constant 0 : i32
    return %c0_i32, %c0_i32_0 : i32, i32
  }
  func.func @transform_6(%arg0: i32) -> (i32, i32, i32) {
    %c0_i32 = arith.constant 0 : i32
    %c0_i32_0 = arith.constant 0 : i32
    %c0_i32_1 = arith.constant 0 : i32
    return %arg0, %c0_i32, %c0_i32_0 : i32, i32, i32
  }
}

module attributes {stable_mosaic.version = 11 : i64} {
  func.func @_stage_kernel(%arg0: i32, %arg1: memref<1x16x222xbf16, #tpu.memory_space<vmem>>, %arg2: memref<9x32x16xbf16, #tpu.memory_space<vmem>>, %arg3: memref<32x1xf32, #tpu.memory_space<vmem>>, %arg4: memref<9x32x32xbf16, #tpu.memory_space<vmem>>, %arg5: memref<32x1xf32, #tpu.memory_space<vmem>>, %arg6: memref<1x144xf32, #tpu.memory_space<vmem>>, %arg7: memref<1x32x144xf32, #tpu.memory_space<vmem>>, %arg8: memref<32x222xbf16, #tpu.memory_space<vmem>>) attributes {dimension_semantics = [#tpu.dimension_semantics<parallel>], iteration_bounds = array<i64: 2>, scalar_prefetch = 0 : i64, scratch_operands = 1 : i64, tpu.core_type = #tpu.core_type<tc>, window_params = [{transform_indices = @transform_0, window_bounds = array<i64: 1, 16, 222>}, {pipeline_mode = #tpu.pipeline_mode<synchronous>, transform_indices = @transform_1, window_bounds = array<i64: 9, 32, 16>}, {pipeline_mode = #tpu.pipeline_mode<synchronous>, transform_indices = @transform_2, window_bounds = array<i64: 32, 1>}, {pipeline_mode = #tpu.pipeline_mode<synchronous>, transform_indices = @transform_3, window_bounds = array<i64: 9, 32, 32>}, {pipeline_mode = #tpu.pipeline_mode<synchronous>, transform_indices = @transform_4, window_bounds = array<i64: 32, 1>}, {pipeline_mode = #tpu.pipeline_mode<synchronous>, transform_indices = @transform_5, window_bounds = array<i64: 1, 144>}, {transform_indices = @transform_6, window_bounds = array<i64: 1, 32, 144>}]} {
    %c0 = arith.constant 0 : index
    %c0_0 = arith.constant 0 : index
    %c0_1 = arith.constant 0 : index
    %0 = vector.load %arg2[%c0, %c0_0, %c0_1] : memref<9x32x16xbf16, #tpu.memory_space<vmem>>, vector<1x32x16xbf16>
    %1 = vector.shape_cast %0 : vector<1x32x16xbf16> to vector<32x16xbf16>
    %c0_2 = arith.constant 0 : index
    %c0_3 = arith.constant 0 : index
    %c0_4 = arith.constant 0 : index
    %2 = vector.load %arg1[%c0_2, %c0_3, %c0_4] : memref<1x16x222xbf16, #tpu.memory_space<vmem>>, vector<1x16x144xbf16>
    %3 = vector.shape_cast %2 : vector<1x16x144xbf16> to vector<16x144xbf16>
    %cst = arith.constant dense<0.000000e+00> : vector<32x144xf32>
    %4 = tpu.matmul %1, %3, %cst {dimension_numbers = #tpu.dot_dimension_numbers<[1], [0], [0], [1], [0, 0, 1, 1], [], []>} : vector<32x16xbf16>, vector<16x144xbf16>, vector<32x144xf32> -> vector<32x144xf32>
    %c1 = arith.constant 1 : index
    %c0_5 = arith.constant 0 : index
    %c0_6 = arith.constant 0 : index
    %5 = vector.load %arg2[%c1, %c0_5, %c0_6] : memref<9x32x16xbf16, #tpu.memory_space<vmem>>, vector<1x32x16xbf16>
    %6 = vector.shape_cast %5 : vector<1x32x16xbf16> to vector<32x16xbf16>
    %c0_7 = arith.constant 0 : index
    %c0_8 = arith.constant 0 : index
    %c3 = arith.constant 3 : index
    %7 = vector.load %arg1[%c0_7, %c0_8, %c3] : memref<1x16x222xbf16, #tpu.memory_space<vmem>>, vector<1x16x144xbf16>
    %8 = vector.shape_cast %7 : vector<1x16x144xbf16> to vector<16x144xbf16>
    %cst_9 = arith.constant dense<0.000000e+00> : vector<32x144xf32>
    %9 = tpu.matmul %6, %8, %cst_9 {dimension_numbers = #tpu.dot_dimension_numbers<[1], [0], [0], [1], [0, 0, 1, 1], [], []>} : vector<32x16xbf16>, vector<16x144xbf16>, vector<32x144xf32> -> vector<32x144xf32>
    %10 = arith.addf %4, %9 : vector<32x144xf32>
    %c2 = arith.constant 2 : index
    %c0_10 = arith.constant 0 : index
    %c0_11 = arith.constant 0 : index
    %11 = vector.load %arg2[%c2, %c0_10, %c0_11] : memref<9x32x16xbf16, #tpu.memory_space<vmem>>, vector<1x32x16xbf16>
    %12 = vector.shape_cast %11 : vector<1x32x16xbf16> to vector<32x16xbf16>
    %c0_12 = arith.constant 0 : index
    %c0_13 = arith.constant 0 : index
    %c6 = arith.constant 6 : index
    %13 = vector.load %arg1[%c0_12, %c0_13, %c6] : memref<1x16x222xbf16, #tpu.memory_space<vmem>>, vector<1x16x144xbf16>
    %14 = vector.shape_cast %13 : vector<1x16x144xbf16> to vector<16x144xbf16>
    %cst_14 = arith.constant dense<0.000000e+00> : vector<32x144xf32>
    %15 = tpu.matmul %12, %14, %cst_14 {dimension_numbers = #tpu.dot_dimension_numbers<[1], [0], [0], [1], [0, 0, 1, 1], [], []>} : vector<32x16xbf16>, vector<16x144xbf16>, vector<32x144xf32> -> vector<32x144xf32>
    %16 = arith.addf %10, %15 : vector<32x144xf32>
    %c3_15 = arith.constant 3 : index
    %c0_16 = arith.constant 0 : index
    %c0_17 = arith.constant 0 : index
    %17 = vector.load %arg2[%c3_15, %c0_16, %c0_17] : memref<9x32x16xbf16, #tpu.memory_space<vmem>>, vector<1x32x16xbf16>
    %18 = vector.shape_cast %17 : vector<1x32x16xbf16> to vector<32x16xbf16>
    %c0_18 = arith.constant 0 : index
    %c0_19 = arith.constant 0 : index
    %c36 = arith.constant 36 : index
    %19 = vector.load %arg1[%c0_18, %c0_19, %c36] : memref<1x16x222xbf16, #tpu.memory_space<vmem>>, vector<1x16x144xbf16>
    %20 = vector.shape_cast %19 : vector<1x16x144xbf16> to vector<16x144xbf16>
    %cst_20 = arith.constant dense<0.000000e+00> : vector<32x144xf32>
    %21 = tpu.matmul %18, %20, %cst_20 {dimension_numbers = #tpu.dot_dimension_numbers<[1], [0], [0], [1], [0, 0, 1, 1], [], []>} : vector<32x16xbf16>, vector<16x144xbf16>, vector<32x144xf32> -> vector<32x144xf32>
    %22 = arith.addf %16, %21 : vector<32x144xf32>
    %c4 = arith.constant 4 : index
    %c0_21 = arith.constant 0 : index
    %c0_22 = arith.constant 0 : index
    %23 = vector.load %arg2[%c4, %c0_21, %c0_22] : memref<9x32x16xbf16, #tpu.memory_space<vmem>>, vector<1x32x16xbf16>
    %24 = vector.shape_cast %23 : vector<1x32x16xbf16> to vector<32x16xbf16>
    %c0_23 = arith.constant 0 : index
    %c0_24 = arith.constant 0 : index
    %c39 = arith.constant 39 : index
    %25 = vector.load %arg1[%c0_23, %c0_24, %c39] : memref<1x16x222xbf16, #tpu.memory_space<vmem>>, vector<1x16x144xbf16>
    %26 = vector.shape_cast %25 : vector<1x16x144xbf16> to vector<16x144xbf16>
    %cst_25 = arith.constant dense<0.000000e+00> : vector<32x144xf32>
    %27 = tpu.matmul %24, %26, %cst_25 {dimension_numbers = #tpu.dot_dimension_numbers<[1], [0], [0], [1], [0, 0, 1, 1], [], []>} : vector<32x16xbf16>, vector<16x144xbf16>, vector<32x144xf32> -> vector<32x144xf32>
    %28 = arith.addf %22, %27 : vector<32x144xf32>
    %c5 = arith.constant 5 : index
    %c0_26 = arith.constant 0 : index
    %c0_27 = arith.constant 0 : index
    %29 = vector.load %arg2[%c5, %c0_26, %c0_27] : memref<9x32x16xbf16, #tpu.memory_space<vmem>>, vector<1x32x16xbf16>
    %30 = vector.shape_cast %29 : vector<1x32x16xbf16> to vector<32x16xbf16>
    %c0_28 = arith.constant 0 : index
    %c0_29 = arith.constant 0 : index
    %c42 = arith.constant 42 : index
    %31 = vector.load %arg1[%c0_28, %c0_29, %c42] : memref<1x16x222xbf16, #tpu.memory_space<vmem>>, vector<1x16x144xbf16>
    %32 = vector.shape_cast %31 : vector<1x16x144xbf16> to vector<16x144xbf16>
    %cst_30 = arith.constant dense<0.000000e+00> : vector<32x144xf32>
    %33 = tpu.matmul %30, %32, %cst_30 {dimension_numbers = #tpu.dot_dimension_numbers<[1], [0], [0], [1], [0, 0, 1, 1], [], []>} : vector<32x16xbf16>, vector<16x144xbf16>, vector<32x144xf32> -> vector<32x144xf32>
    %34 = arith.addf %28, %33 : vector<32x144xf32>
    %c6_31 = arith.constant 6 : index
    %c0_32 = arith.constant 0 : index
    %c0_33 = arith.constant 0 : index
    %35 = vector.load %arg2[%c6_31, %c0_32, %c0_33] : memref<9x32x16xbf16, #tpu.memory_space<vmem>>, vector<1x32x16xbf16>
    %36 = vector.shape_cast %35 : vector<1x32x16xbf16> to vector<32x16xbf16>
    %c0_34 = arith.constant 0 : index
    %c0_35 = arith.constant 0 : index
    %c72 = arith.constant 72 : index
    %37 = vector.load %arg1[%c0_34, %c0_35, %c72] : memref<1x16x222xbf16, #tpu.memory_space<vmem>>, vector<1x16x144xbf16>
    %38 = vector.shape_cast %37 : vector<1x16x144xbf16> to vector<16x144xbf16>
    %cst_36 = arith.constant dense<0.000000e+00> : vector<32x144xf32>
    %39 = tpu.matmul %36, %38, %cst_36 {dimension_numbers = #tpu.dot_dimension_numbers<[1], [0], [0], [1], [0, 0, 1, 1], [], []>} : vector<32x16xbf16>, vector<16x144xbf16>, vector<32x144xf32> -> vector<32x144xf32>
    %40 = arith.addf %34, %39 : vector<32x144xf32>
    %c7 = arith.constant 7 : index
    %c0_37 = arith.constant 0 : index
    %c0_38 = arith.constant 0 : index
    %41 = vector.load %arg2[%c7, %c0_37, %c0_38] : memref<9x32x16xbf16, #tpu.memory_space<vmem>>, vector<1x32x16xbf16>
    %42 = vector.shape_cast %41 : vector<1x32x16xbf16> to vector<32x16xbf16>
    %c0_39 = arith.constant 0 : index
    %c0_40 = arith.constant 0 : index
    %c75 = arith.constant 75 : index
    %43 = vector.load %arg1[%c0_39, %c0_40, %c75] : memref<1x16x222xbf16, #tpu.memory_space<vmem>>, vector<1x16x144xbf16>
    %44 = vector.shape_cast %43 : vector<1x16x144xbf16> to vector<16x144xbf16>
    %cst_41 = arith.constant dense<0.000000e+00> : vector<32x144xf32>
    %45 = tpu.matmul %42, %44, %cst_41 {dimension_numbers = #tpu.dot_dimension_numbers<[1], [0], [0], [1], [0, 0, 1, 1], [], []>} : vector<32x16xbf16>, vector<16x144xbf16>, vector<32x144xf32> -> vector<32x144xf32>
    %46 = arith.addf %40, %45 : vector<32x144xf32>
    %c8 = arith.constant 8 : index
    %c0_42 = arith.constant 0 : index
    %c0_43 = arith.constant 0 : index
    %47 = vector.load %arg2[%c8, %c0_42, %c0_43] : memref<9x32x16xbf16, #tpu.memory_space<vmem>>, vector<1x32x16xbf16>
    %48 = vector.shape_cast %47 : vector<1x32x16xbf16> to vector<32x16xbf16>
    %c0_44 = arith.constant 0 : index
    %c0_45 = arith.constant 0 : index
    %c78 = arith.constant 78 : index
    %49 = vector.load %arg1[%c0_44, %c0_45, %c78] : memref<1x16x222xbf16, #tpu.memory_space<vmem>>, vector<1x16x144xbf16>
    %50 = vector.shape_cast %49 : vector<1x16x144xbf16> to vector<16x144xbf16>
    %cst_46 = arith.constant dense<0.000000e+00> : vector<32x144xf32>
    %51 = tpu.matmul %48, %50, %cst_46 {dimension_numbers = #tpu.dot_dimension_numbers<[1], [0], [0], [1], [0, 0, 1, 1], [], []>} : vector<32x16xbf16>, vector<16x144xbf16>, vector<32x144xf32> -> vector<32x144xf32>
    %52 = arith.addf %46, %51 : vector<32x144xf32>
    %c0_47 = arith.constant 0 : index
    %c0_48 = arith.constant 0 : index
    %53 = vector.load %arg3[%c0_47, %c0_48] : memref<32x1xf32, #tpu.memory_space<vmem>>, vector<32x1xf32>
    %54 = vector.broadcast %53 : vector<32x1xf32> to vector<32x144xf32>
    %55 = arith.addf %52, %54 : vector<32x144xf32>
    %cst_49 = arith.constant 0.000000e+00 : f32
    %56 = vector.broadcast %cst_49 : f32 to vector<32x144xf32>
    %57 = arith.maximumf %55, %56 : vector<32x144xf32>
    %cst_50 = arith.constant 0.000000e+00 : bf16
    %58 = vector.broadcast %cst_50 : bf16 to vector<32x222xbf16>
    %c0_51 = arith.constant 0 : index
    %c0_52 = arith.constant 0 : index
    %59 = vector.load %arg8[%c0_51, %c0_52] : memref<32x222xbf16, #tpu.memory_space<vmem>>, vector<32x222xbf16>
    tpu.vector_store %arg8[%c0_51, %c0_52], %58 {strides = array<i32>} : memref<32x222xbf16, #tpu.memory_space<vmem>>, vector<32x222xbf16>,
    %c0_53 = arith.constant 0 : index
    %c0_54 = arith.constant 0 : index
    %60 = vector.load %arg6[%c0_53, %c0_54] : memref<1x144xf32, #tpu.memory_space<vmem>>, vector<1x144xf32>
    %61 = vector.broadcast %60 : vector<1x144xf32> to vector<32x144xf32>
    %62 = arith.mulf %57, %61 : vector<32x144xf32>
    %63 = arith.truncf %62 : vector<32x144xf32> to vector<32x144xbf16>
    %c0_55 = arith.constant 0 : index
    %c13 = arith.constant 13 : index
    %64 = vector.load %arg8[%c0_55, %c13] : memref<32x222xbf16, #tpu.memory_space<vmem>>, vector<32x144xbf16>
    tpu.vector_store %arg8[%c0_55, %c13], %63 {strides = array<i32>} : memref<32x222xbf16, #tpu.memory_space<vmem>>, vector<32x144xbf16>,
    %c0_56 = arith.constant 0 : index
    %c0_57 = arith.constant 0 : index
    %c0_58 = arith.constant 0 : index
    %65 = vector.load %arg4[%c0_56, %c0_57, %c0_58] : memref<9x32x32xbf16, #tpu.memory_space<vmem>>, vector<1x32x32xbf16>
    %66 = vector.shape_cast %65 : vector<1x32x32xbf16> to vector<32x32xbf16>
    %c0_59 = arith.constant 0 : index
    %c0_60 = arith.constant 0 : index
    %67 = vector.load %arg8[%c0_59, %c0_60] : memref<32x222xbf16, #tpu.memory_space<vmem>>, vector<32x144xbf16>
    %cst_61 = arith.constant dense<0.000000e+00> : vector<32x144xf32>
    %68 = tpu.matmul %66, %67, %cst_61 {dimension_numbers = #tpu.dot_dimension_numbers<[1], [0], [0], [1], [0, 0, 1, 1], [], []>} : vector<32x32xbf16>, vector<32x144xbf16>, vector<32x144xf32> -> vector<32x144xf32>
    %c1_62 = arith.constant 1 : index
    %c0_63 = arith.constant 0 : index
    %c0_64 = arith.constant 0 : index
    %69 = vector.load %arg4[%c1_62, %c0_63, %c0_64] : memref<9x32x32xbf16, #tpu.memory_space<vmem>>, vector<1x32x32xbf16>
    %70 = vector.shape_cast %69 : vector<1x32x32xbf16> to vector<32x32xbf16>
    %c0_65 = arith.constant 0 : index
    %c3_66 = arith.constant 3 : index
    %71 = vector.load %arg8[%c0_65, %c3_66] : memref<32x222xbf16, #tpu.memory_space<vmem>>, vector<32x144xbf16>
    %cst_67 = arith.constant dense<0.000000e+00> : vector<32x144xf32>
    %72 = tpu.matmul %70, %71, %cst_67 {dimension_numbers = #tpu.dot_dimension_numbers<[1], [0], [0], [1], [0, 0, 1, 1], [], []>} : vector<32x32xbf16>, vector<32x144xbf16>, vector<32x144xf32> -> vector<32x144xf32>
    %73 = arith.addf %68, %72 : vector<32x144xf32>
    %c2_68 = arith.constant 2 : index
    %c0_69 = arith.constant 0 : index
    %c0_70 = arith.constant 0 : index
    %74 = vector.load %arg4[%c2_68, %c0_69, %c0_70] : memref<9x32x32xbf16, #tpu.memory_space<vmem>>, vector<1x32x32xbf16>
    %75 = vector.shape_cast %74 : vector<1x32x32xbf16> to vector<32x32xbf16>
    %c0_71 = arith.constant 0 : index
    %c6_72 = arith.constant 6 : index
    %76 = vector.load %arg8[%c0_71, %c6_72] : memref<32x222xbf16, #tpu.memory_space<vmem>>, vector<32x144xbf16>
    %cst_73 = arith.constant dense<0.000000e+00> : vector<32x144xf32>
    %77 = tpu.matmul %75, %76, %cst_73 {dimension_numbers = #tpu.dot_dimension_numbers<[1], [0], [0], [1], [0, 0, 1, 1], [], []>} : vector<32x32xbf16>, vector<32x144xbf16>, vector<32x144xf32> -> vector<32x144xf32>
    %78 = arith.addf %73, %77 : vector<32x144xf32>
    %c3_74 = arith.constant 3 : index
    %c0_75 = arith.constant 0 : index
    %c0_76 = arith.constant 0 : index
    %79 = vector.load %arg4[%c3_74, %c0_75, %c0_76] : memref<9x32x32xbf16, #tpu.memory_space<vmem>>, vector<1x32x32xbf16>
    %80 = vector.shape_cast %79 : vector<1x32x32xbf16> to vector<32x32xbf16>
    %c0_77 = arith.constant 0 : index
    %c36_78 = arith.constant 36 : index
    %81 = vector.load %arg8[%c0_77, %c36_78] : memref<32x222xbf16, #tpu.memory_space<vmem>>, vector<32x144xbf16>
    %cst_79 = arith.constant dense<0.000000e+00> : vector<32x144xf32>
    %82 = tpu.matmul %80, %81, %cst_79 {dimension_numbers = #tpu.dot_dimension_numbers<[1], [0], [0], [1], [0, 0, 1, 1], [], []>} : vector<32x32xbf16>, vector<32x144xbf16>, vector<32x144xf32> -> vector<32x144xf32>
    %83 = arith.addf %78, %82 : vector<32x144xf32>
    %c4_80 = arith.constant 4 : index
    %c0_81 = arith.constant 0 : index
    %c0_82 = arith.constant 0 : index
    %84 = vector.load %arg4[%c4_80, %c0_81, %c0_82] : memref<9x32x32xbf16, #tpu.memory_space<vmem>>, vector<1x32x32xbf16>
    %85 = vector.shape_cast %84 : vector<1x32x32xbf16> to vector<32x32xbf16>
    %c0_83 = arith.constant 0 : index
    %c39_84 = arith.constant 39 : index
    %86 = vector.load %arg8[%c0_83, %c39_84] : memref<32x222xbf16, #tpu.memory_space<vmem>>, vector<32x144xbf16>
    %cst_85 = arith.constant dense<0.000000e+00> : vector<32x144xf32>
    %87 = tpu.matmul %85, %86, %cst_85 {dimension_numbers = #tpu.dot_dimension_numbers<[1], [0], [0], [1], [0, 0, 1, 1], [], []>} : vector<32x32xbf16>, vector<32x144xbf16>, vector<32x144xf32> -> vector<32x144xf32>
    %88 = arith.addf %83, %87 : vector<32x144xf32>
    %c5_86 = arith.constant 5 : index
    %c0_87 = arith.constant 0 : index
    %c0_88 = arith.constant 0 : index
    %89 = vector.load %arg4[%c5_86, %c0_87, %c0_88] : memref<9x32x32xbf16, #tpu.memory_space<vmem>>, vector<1x32x32xbf16>
    %90 = vector.shape_cast %89 : vector<1x32x32xbf16> to vector<32x32xbf16>
    %c0_89 = arith.constant 0 : index
    %c42_90 = arith.constant 42 : index
    %91 = vector.load %arg8[%c0_89, %c42_90] : memref<32x222xbf16, #tpu.memory_space<vmem>>, vector<32x144xbf16>
    %cst_91 = arith.constant dense<0.000000e+00> : vector<32x144xf32>
    %92 = tpu.matmul %90, %91, %cst_91 {dimension_numbers = #tpu.dot_dimension_numbers<[1], [0], [0], [1], [0, 0, 1, 1], [], []>} : vector<32x32xbf16>, vector<32x144xbf16>, vector<32x144xf32> -> vector<32x144xf32>
    %93 = arith.addf %88, %92 : vector<32x144xf32>
    %c6_92 = arith.constant 6 : index
    %c0_93 = arith.constant 0 : index
    %c0_94 = arith.constant 0 : index
    %94 = vector.load %arg4[%c6_92, %c0_93, %c0_94] : memref<9x32x32xbf16, #tpu.memory_space<vmem>>, vector<1x32x32xbf16>
    %95 = vector.shape_cast %94 : vector<1x32x32xbf16> to vector<32x32xbf16>
    %c0_95 = arith.constant 0 : index
    %c72_96 = arith.constant 72 : index
    %96 = vector.load %arg8[%c0_95, %c72_96] : memref<32x222xbf16, #tpu.memory_space<vmem>>, vector<32x144xbf16>
    %cst_97 = arith.constant dense<0.000000e+00> : vector<32x144xf32>
    %97 = tpu.matmul %95, %96, %cst_97 {dimension_numbers = #tpu.dot_dimension_numbers<[1], [0], [0], [1], [0, 0, 1, 1], [], []>} : vector<32x32xbf16>, vector<32x144xbf16>, vector<32x144xf32> -> vector<32x144xf32>
    %98 = arith.addf %93, %97 : vector<32x144xf32>
    %c7_98 = arith.constant 7 : index
    %c0_99 = arith.constant 0 : index
    %c0_100 = arith.constant 0 : index
    %99 = vector.load %arg4[%c7_98, %c0_99, %c0_100] : memref<9x32x32xbf16, #tpu.memory_space<vmem>>, vector<1x32x32xbf16>
    %100 = vector.shape_cast %99 : vector<1x32x32xbf16> to vector<32x32xbf16>
    %c0_101 = arith.constant 0 : index
    %c75_102 = arith.constant 75 : index
    %101 = vector.load %arg8[%c0_101, %c75_102] : memref<32x222xbf16, #tpu.memory_space<vmem>>, vector<32x144xbf16>
    %cst_103 = arith.constant dense<0.000000e+00> : vector<32x144xf32>
    %102 = tpu.matmul %100, %101, %cst_103 {dimension_numbers = #tpu.dot_dimension_numbers<[1], [0], [0], [1], [0, 0, 1, 1], [], []>} : vector<32x32xbf16>, vector<32x144xbf16>, vector<32x144xf32> -> vector<32x144xf32>
    %103 = arith.addf %98, %102 : vector<32x144xf32>
    %c8_104 = arith.constant 8 : index
    %c0_105 = arith.constant 0 : index
    %c0_106 = arith.constant 0 : index
    %104 = vector.load %arg4[%c8_104, %c0_105, %c0_106] : memref<9x32x32xbf16, #tpu.memory_space<vmem>>, vector<1x32x32xbf16>
    %105 = vector.shape_cast %104 : vector<1x32x32xbf16> to vector<32x32xbf16>
    %c0_107 = arith.constant 0 : index
    %c78_108 = arith.constant 78 : index
    %106 = vector.load %arg8[%c0_107, %c78_108] : memref<32x222xbf16, #tpu.memory_space<vmem>>, vector<32x144xbf16>
    %cst_109 = arith.constant dense<0.000000e+00> : vector<32x144xf32>
    %107 = tpu.matmul %105, %106, %cst_109 {dimension_numbers = #tpu.dot_dimension_numbers<[1], [0], [0], [1], [0, 0, 1, 1], [], []>} : vector<32x32xbf16>, vector<32x144xbf16>, vector<32x144xf32> -> vector<32x144xf32>
    %108 = arith.addf %103, %107 : vector<32x144xf32>
    %c0_110 = arith.constant 0 : index
    %c0_111 = arith.constant 0 : index
    %109 = vector.load %arg5[%c0_110, %c0_111] : memref<32x1xf32, #tpu.memory_space<vmem>>, vector<32x1xf32>
    %110 = vector.broadcast %109 : vector<32x1xf32> to vector<32x144xf32>
    %111 = arith.addf %108, %110 : vector<32x144xf32>
    %cst_112 = arith.constant 0.000000e+00 : f32
    %112 = vector.broadcast %cst_112 : f32 to vector<32x144xf32>
    %113 = arith.maximumf %111, %112 : vector<32x144xf32>
    %114 = arith.truncf %113 : vector<32x144xf32> to vector<32x144xbf16>
    %c0_113 = arith.constant 0 : index
    %c0_114 = arith.constant 0 : index
    %115 = vector.load %arg8[%c0_113, %c0_114] : memref<32x222xbf16, #tpu.memory_space<vmem>>, vector<32x144xbf16>
    tpu.vector_store %arg8[%c0_113, %c0_114], %114 {strides = array<i32>} : memref<32x222xbf16, #tpu.memory_space<vmem>>, vector<32x144xbf16>,
    %c0_115 = arith.constant 0 : index
    %c0_116 = arith.constant 0 : index
    %116 = vector.load %arg8[%c0_115, %c0_116] : memref<32x222xbf16, #tpu.memory_space<vmem>>, vector<32x144xbf16>
    %c0_117 = arith.constant 0 : index
    %c1_118 = arith.constant 1 : index
    %117 = vector.load %arg8[%c0_117, %c1_118] : memref<32x222xbf16, #tpu.memory_space<vmem>>, vector<32x144xbf16>
    %118 = arith.maximumf %116, %117 : vector<32x144xbf16>
    %c0_119 = arith.constant 0 : index
    %c12 = arith.constant 12 : index
    %119 = vector.load %arg8[%c0_119, %c12] : memref<32x222xbf16, #tpu.memory_space<vmem>>, vector<32x144xbf16>
    %c0_120 = arith.constant 0 : index
    %c13_121 = arith.constant 13 : index
    %120 = vector.load %arg8[%c0_120, %c13_121] : memref<32x222xbf16, #tpu.memory_space<vmem>>, vector<32x144xbf16>
    %121 = arith.maximumf %119, %120 : vector<32x144xbf16>
    %122 = arith.maximumf %118, %121 : vector<32x144xbf16>
    %123 = arith.extf %122 : vector<32x144xbf16> to vector<32x144xf32>
    %c0_122 = arith.constant 0 : index
    %c0_123 = arith.constant 0 : index
    %c0_124 = arith.constant 0 : index
    %124 = vector.load %arg7[%c0_122, %c0_123, %c0_124] : memref<1x32x144xf32, #tpu.memory_space<vmem>>, vector<1x32x144xf32>
    %125 = vector.shape_cast %124 : vector<1x32x144xf32> to vector<32x144xf32>
    %126 = vector.shape_cast %123 : vector<32x144xf32> to vector<1x32x144xf32>
    tpu.vector_store %arg7[%c0_122, %c0_123, %c0_124], %126 {strides = array<i32>} : memref<1x32x144xf32, #tpu.memory_space<vmem>>, vector<1x32x144xf32>,
    return
  }
  func.func @transform_0(%arg0: i32) -> (i32, i32, i32) {
    %c0_i32 = arith.constant 0 : i32
    %c0_i32_0 = arith.constant 0 : i32
    %c0_i32_1 = arith.constant 0 : i32
    return %arg0, %c0_i32, %c0_i32_0 : i32, i32, i32
  }
  func.func @transform_1(%arg0: i32) -> (i32, i32, i32) {
    %c0_i32 = arith.constant 0 : i32
    %c0_i32_0 = arith.constant 0 : i32
    %c0_i32_1 = arith.constant 0 : i32
    %c0_i32_2 = arith.constant 0 : i32
    return %c0_i32, %c0_i32_0, %c0_i32_1 : i32, i32, i32
  }
  func.func @transform_2(%arg0: i32) -> (i32, i32) {
    %c0_i32 = arith.constant 0 : i32
    %c0_i32_0 = arith.constant 0 : i32
    %c0_i32_1 = arith.constant 0 : i32
    return %c0_i32, %c0_i32_0 : i32, i32
  }
  func.func @transform_3(%arg0: i32) -> (i32, i32, i32) {
    %c0_i32 = arith.constant 0 : i32
    %c0_i32_0 = arith.constant 0 : i32
    %c0_i32_1 = arith.constant 0 : i32
    %c0_i32_2 = arith.constant 0 : i32
    return %c0_i32, %c0_i32_0, %c0_i32_1 : i32, i32, i32
  }
  func.func @transform_4(%arg0: i32) -> (i32, i32) {
    %c0_i32 = arith.constant 0 : i32
    %c0_i32_0 = arith.constant 0 : i32
    %c0_i32_1 = arith.constant 0 : i32
    return %c0_i32, %c0_i32_0 : i32, i32
  }
  func.func @transform_5(%arg0: i32) -> (i32, i32) {
    %c0_i32 = arith.constant 0 : i32
    %c0_i32_0 = arith.constant 0 : i32
    %c0_i32_1 = arith.constant 0 : i32
    return %c0_i32, %c0_i32_0 : i32, i32
  }
  func.func @transform_6(%arg0: i32) -> (i32, i32, i32) {
    %c0_i32 = arith.constant 0 : i32
    %c0_i32_0 = arith.constant 0 : i32
    %c0_i32_1 = arith.constant 0 : i32
    return %arg0, %c0_i32, %c0_i32_0 : i32, i32, i32
  }
}

module attributes {stable_mosaic.version = 11 : i64} {
  func.func @_stage_kernel(%arg0: i32, %arg1: memref<1x32x17xbf16, #tpu.memory_space<vmem>>, %arg2: memref<9x64x32xbf16, #tpu.memory_space<vmem>>, %arg3: memref<64x1xf32, #tpu.memory_space<vmem>>, %arg4: memref<9x64x64xbf16, #tpu.memory_space<vmem>>, %arg5: memref<64x1xf32, #tpu.memory_space<vmem>>, %arg6: memref<1x9xf32, #tpu.memory_space<vmem>>, %arg7: memref<1x64x9xf32, #tpu.memory_space<vmem>>, %arg8: memref<64x17xbf16, #tpu.memory_space<vmem>>) attributes {dimension_semantics = [#tpu.dimension_semantics<parallel>], iteration_bounds = array<i64: 2>, scalar_prefetch = 0 : i64, scratch_operands = 1 : i64, tpu.core_type = #tpu.core_type<tc>, window_params = [{transform_indices = @transform_0, window_bounds = array<i64: 1, 32, 17>}, {pipeline_mode = #tpu.pipeline_mode<synchronous>, transform_indices = @transform_1, window_bounds = array<i64: 9, 64, 32>}, {pipeline_mode = #tpu.pipeline_mode<synchronous>, transform_indices = @transform_2, window_bounds = array<i64: 64, 1>}, {pipeline_mode = #tpu.pipeline_mode<synchronous>, transform_indices = @transform_3, window_bounds = array<i64: 9, 64, 64>}, {pipeline_mode = #tpu.pipeline_mode<synchronous>, transform_indices = @transform_4, window_bounds = array<i64: 64, 1>}, {pipeline_mode = #tpu.pipeline_mode<synchronous>, transform_indices = @transform_5, window_bounds = array<i64: 1, 9>}, {transform_indices = @transform_6, window_bounds = array<i64: 1, 64, 9>}]} {
    %c0 = arith.constant 0 : index
    %c0_0 = arith.constant 0 : index
    %c0_1 = arith.constant 0 : index
    %0 = vector.load %arg2[%c0, %c0_0, %c0_1] : memref<9x64x32xbf16, #tpu.memory_space<vmem>>, vector<1x64x32xbf16>
    %1 = vector.shape_cast %0 : vector<1x64x32xbf16> to vector<64x32xbf16>
    %c0_2 = arith.constant 0 : index
    %c0_3 = arith.constant 0 : index
    %c0_4 = arith.constant 0 : index
    %2 = vector.load %arg1[%c0_2, %c0_3, %c0_4] : memref<1x32x17xbf16, #tpu.memory_space<vmem>>, vector<1x32x9xbf16>
    %3 = vector.shape_cast %2 : vector<1x32x9xbf16> to vector<32x9xbf16>
    %cst = arith.constant dense<0.000000e+00> : vector<64x9xf32>
    %4 = tpu.matmul %1, %3, %cst {dimension_numbers = #tpu.dot_dimension_numbers<[1], [0], [0], [1], [0, 0, 1, 1], [], []>} : vector<64x32xbf16>, vector<32x9xbf16>, vector<64x9xf32> -> vector<64x9xf32>
    %c1 = arith.constant 1 : index
    %c0_5 = arith.constant 0 : index
    %c0_6 = arith.constant 0 : index
    %5 = vector.load %arg2[%c1, %c0_5, %c0_6] : memref<9x64x32xbf16, #tpu.memory_space<vmem>>, vector<1x64x32xbf16>
    %6 = vector.shape_cast %5 : vector<1x64x32xbf16> to vector<64x32xbf16>
    %c0_7 = arith.constant 0 : index
    %c0_8 = arith.constant 0 : index
    %c1_9 = arith.constant 1 : index
    %7 = vector.load %arg1[%c0_7, %c0_8, %c1_9] : memref<1x32x17xbf16, #tpu.memory_space<vmem>>, vector<1x32x9xbf16>
    %8 = vector.shape_cast %7 : vector<1x32x9xbf16> to vector<32x9xbf16>
    %cst_10 = arith.constant dense<0.000000e+00> : vector<64x9xf32>
    %9 = tpu.matmul %6, %8, %cst_10 {dimension_numbers = #tpu.dot_dimension_numbers<[1], [0], [0], [1], [0, 0, 1, 1], [], []>} : vector<64x32xbf16>, vector<32x9xbf16>, vector<64x9xf32> -> vector<64x9xf32>
    %10 = arith.addf %4, %9 : vector<64x9xf32>
    %c2 = arith.constant 2 : index
    %c0_11 = arith.constant 0 : index
    %c0_12 = arith.constant 0 : index
    %11 = vector.load %arg2[%c2, %c0_11, %c0_12] : memref<9x64x32xbf16, #tpu.memory_space<vmem>>, vector<1x64x32xbf16>
    %12 = vector.shape_cast %11 : vector<1x64x32xbf16> to vector<64x32xbf16>
    %c0_13 = arith.constant 0 : index
    %c0_14 = arith.constant 0 : index
    %c2_15 = arith.constant 2 : index
    %13 = vector.load %arg1[%c0_13, %c0_14, %c2_15] : memref<1x32x17xbf16, #tpu.memory_space<vmem>>, vector<1x32x9xbf16>
    %14 = vector.shape_cast %13 : vector<1x32x9xbf16> to vector<32x9xbf16>
    %cst_16 = arith.constant dense<0.000000e+00> : vector<64x9xf32>
    %15 = tpu.matmul %12, %14, %cst_16 {dimension_numbers = #tpu.dot_dimension_numbers<[1], [0], [0], [1], [0, 0, 1, 1], [], []>} : vector<64x32xbf16>, vector<32x9xbf16>, vector<64x9xf32> -> vector<64x9xf32>
    %16 = arith.addf %10, %15 : vector<64x9xf32>
    %c3 = arith.constant 3 : index
    %c0_17 = arith.constant 0 : index
    %c0_18 = arith.constant 0 : index
    %17 = vector.load %arg2[%c3, %c0_17, %c0_18] : memref<9x64x32xbf16, #tpu.memory_space<vmem>>, vector<1x64x32xbf16>
    %18 = vector.shape_cast %17 : vector<1x64x32xbf16> to vector<64x32xbf16>
    %c0_19 = arith.constant 0 : index
    %c0_20 = arith.constant 0 : index
    %c3_21 = arith.constant 3 : index
    %19 = vector.load %arg1[%c0_19, %c0_20, %c3_21] : memref<1x32x17xbf16, #tpu.memory_space<vmem>>, vector<1x32x9xbf16>
    %20 = vector.shape_cast %19 : vector<1x32x9xbf16> to vector<32x9xbf16>
    %cst_22 = arith.constant dense<0.000000e+00> : vector<64x9xf32>
    %21 = tpu.matmul %18, %20, %cst_22 {dimension_numbers = #tpu.dot_dimension_numbers<[1], [0], [0], [1], [0, 0, 1, 1], [], []>} : vector<64x32xbf16>, vector<32x9xbf16>, vector<64x9xf32> -> vector<64x9xf32>
    %22 = arith.addf %16, %21 : vector<64x9xf32>
    %c4 = arith.constant 4 : index
    %c0_23 = arith.constant 0 : index
    %c0_24 = arith.constant 0 : index
    %23 = vector.load %arg2[%c4, %c0_23, %c0_24] : memref<9x64x32xbf16, #tpu.memory_space<vmem>>, vector<1x64x32xbf16>
    %24 = vector.shape_cast %23 : vector<1x64x32xbf16> to vector<64x32xbf16>
    %c0_25 = arith.constant 0 : index
    %c0_26 = arith.constant 0 : index
    %c4_27 = arith.constant 4 : index
    %25 = vector.load %arg1[%c0_25, %c0_26, %c4_27] : memref<1x32x17xbf16, #tpu.memory_space<vmem>>, vector<1x32x9xbf16>
    %26 = vector.shape_cast %25 : vector<1x32x9xbf16> to vector<32x9xbf16>
    %cst_28 = arith.constant dense<0.000000e+00> : vector<64x9xf32>
    %27 = tpu.matmul %24, %26, %cst_28 {dimension_numbers = #tpu.dot_dimension_numbers<[1], [0], [0], [1], [0, 0, 1, 1], [], []>} : vector<64x32xbf16>, vector<32x9xbf16>, vector<64x9xf32> -> vector<64x9xf32>
    %28 = arith.addf %22, %27 : vector<64x9xf32>
    %c5 = arith.constant 5 : index
    %c0_29 = arith.constant 0 : index
    %c0_30 = arith.constant 0 : index
    %29 = vector.load %arg2[%c5, %c0_29, %c0_30] : memref<9x64x32xbf16, #tpu.memory_space<vmem>>, vector<1x64x32xbf16>
    %30 = vector.shape_cast %29 : vector<1x64x32xbf16> to vector<64x32xbf16>
    %c0_31 = arith.constant 0 : index
    %c0_32 = arith.constant 0 : index
    %c5_33 = arith.constant 5 : index
    %31 = vector.load %arg1[%c0_31, %c0_32, %c5_33] : memref<1x32x17xbf16, #tpu.memory_space<vmem>>, vector<1x32x9xbf16>
    %32 = vector.shape_cast %31 : vector<1x32x9xbf16> to vector<32x9xbf16>
    %cst_34 = arith.constant dense<0.000000e+00> : vector<64x9xf32>
    %33 = tpu.matmul %30, %32, %cst_34 {dimension_numbers = #tpu.dot_dimension_numbers<[1], [0], [0], [1], [0, 0, 1, 1], [], []>} : vector<64x32xbf16>, vector<32x9xbf16>, vector<64x9xf32> -> vector<64x9xf32>
    %34 = arith.addf %28, %33 : vector<64x9xf32>
    %c6 = arith.constant 6 : index
    %c0_35 = arith.constant 0 : index
    %c0_36 = arith.constant 0 : index
    %35 = vector.load %arg2[%c6, %c0_35, %c0_36] : memref<9x64x32xbf16, #tpu.memory_space<vmem>>, vector<1x64x32xbf16>
    %36 = vector.shape_cast %35 : vector<1x64x32xbf16> to vector<64x32xbf16>
    %c0_37 = arith.constant 0 : index
    %c0_38 = arith.constant 0 : index
    %c6_39 = arith.constant 6 : index
    %37 = vector.load %arg1[%c0_37, %c0_38, %c6_39] : memref<1x32x17xbf16, #tpu.memory_space<vmem>>, vector<1x32x9xbf16>
    %38 = vector.shape_cast %37 : vector<1x32x9xbf16> to vector<32x9xbf16>
    %cst_40 = arith.constant dense<0.000000e+00> : vector<64x9xf32>
    %39 = tpu.matmul %36, %38, %cst_40 {dimension_numbers = #tpu.dot_dimension_numbers<[1], [0], [0], [1], [0, 0, 1, 1], [], []>} : vector<64x32xbf16>, vector<32x9xbf16>, vector<64x9xf32> -> vector<64x9xf32>
    %40 = arith.addf %34, %39 : vector<64x9xf32>
    %c7 = arith.constant 7 : index
    %c0_41 = arith.constant 0 : index
    %c0_42 = arith.constant 0 : index
    %41 = vector.load %arg2[%c7, %c0_41, %c0_42] : memref<9x64x32xbf16, #tpu.memory_space<vmem>>, vector<1x64x32xbf16>
    %42 = vector.shape_cast %41 : vector<1x64x32xbf16> to vector<64x32xbf16>
    %c0_43 = arith.constant 0 : index
    %c0_44 = arith.constant 0 : index
    %c7_45 = arith.constant 7 : index
    %43 = vector.load %arg1[%c0_43, %c0_44, %c7_45] : memref<1x32x17xbf16, #tpu.memory_space<vmem>>, vector<1x32x9xbf16>
    %44 = vector.shape_cast %43 : vector<1x32x9xbf16> to vector<32x9xbf16>
    %cst_46 = arith.constant dense<0.000000e+00> : vector<64x9xf32>
    %45 = tpu.matmul %42, %44, %cst_46 {dimension_numbers = #tpu.dot_dimension_numbers<[1], [0], [0], [1], [0, 0, 1, 1], [], []>} : vector<64x32xbf16>, vector<32x9xbf16>, vector<64x9xf32> -> vector<64x9xf32>
    %46 = arith.addf %40, %45 : vector<64x9xf32>
    %c8 = arith.constant 8 : index
    %c0_47 = arith.constant 0 : index
    %c0_48 = arith.constant 0 : index
    %47 = vector.load %arg2[%c8, %c0_47, %c0_48] : memref<9x64x32xbf16, #tpu.memory_space<vmem>>, vector<1x64x32xbf16>
    %48 = vector.shape_cast %47 : vector<1x64x32xbf16> to vector<64x32xbf16>
    %c0_49 = arith.constant 0 : index
    %c0_50 = arith.constant 0 : index
    %c8_51 = arith.constant 8 : index
    %49 = vector.load %arg1[%c0_49, %c0_50, %c8_51] : memref<1x32x17xbf16, #tpu.memory_space<vmem>>, vector<1x32x9xbf16>
    %50 = vector.shape_cast %49 : vector<1x32x9xbf16> to vector<32x9xbf16>
    %cst_52 = arith.constant dense<0.000000e+00> : vector<64x9xf32>
    %51 = tpu.matmul %48, %50, %cst_52 {dimension_numbers = #tpu.dot_dimension_numbers<[1], [0], [0], [1], [0, 0, 1, 1], [], []>} : vector<64x32xbf16>, vector<32x9xbf16>, vector<64x9xf32> -> vector<64x9xf32>
    %52 = arith.addf %46, %51 : vector<64x9xf32>
    %c0_53 = arith.constant 0 : index
    %c0_54 = arith.constant 0 : index
    %53 = vector.load %arg3[%c0_53, %c0_54] : memref<64x1xf32, #tpu.memory_space<vmem>>, vector<64x1xf32>
    %54 = vector.broadcast %53 : vector<64x1xf32> to vector<64x9xf32>
    %55 = arith.addf %52, %54 : vector<64x9xf32>
    %cst_55 = arith.constant 0.000000e+00 : f32
    %56 = vector.broadcast %cst_55 : f32 to vector<64x9xf32>
    %57 = arith.maximumf %55, %56 : vector<64x9xf32>
    %cst_56 = arith.constant 0.000000e+00 : bf16
    %58 = vector.broadcast %cst_56 : bf16 to vector<64x17xbf16>
    %c0_57 = arith.constant 0 : index
    %c0_58 = arith.constant 0 : index
    %59 = vector.load %arg8[%c0_57, %c0_58] : memref<64x17xbf16, #tpu.memory_space<vmem>>, vector<64x17xbf16>
    tpu.vector_store %arg8[%c0_57, %c0_58], %58 {strides = array<i32>} : memref<64x17xbf16, #tpu.memory_space<vmem>>, vector<64x17xbf16>,
    %c0_59 = arith.constant 0 : index
    %c0_60 = arith.constant 0 : index
    %60 = vector.load %arg6[%c0_59, %c0_60] : memref<1x9xf32, #tpu.memory_space<vmem>>, vector<1x9xf32>
    %61 = vector.broadcast %60 : vector<1x9xf32> to vector<64x9xf32>
    %62 = arith.mulf %57, %61 : vector<64x9xf32>
    %63 = arith.truncf %62 : vector<64x9xf32> to vector<64x9xbf16>
    %c0_61 = arith.constant 0 : index
    %c4_62 = arith.constant 4 : index
    %64 = vector.load %arg8[%c0_61, %c4_62] : memref<64x17xbf16, #tpu.memory_space<vmem>>, vector<64x9xbf16>
    tpu.vector_store %arg8[%c0_61, %c4_62], %63 {strides = array<i32>} : memref<64x17xbf16, #tpu.memory_space<vmem>>, vector<64x9xbf16>,
    %c0_63 = arith.constant 0 : index
    %c0_64 = arith.constant 0 : index
    %c0_65 = arith.constant 0 : index
    %65 = vector.load %arg4[%c0_63, %c0_64, %c0_65] : memref<9x64x64xbf16, #tpu.memory_space<vmem>>, vector<1x64x64xbf16>
    %66 = vector.shape_cast %65 : vector<1x64x64xbf16> to vector<64x64xbf16>
    %c0_66 = arith.constant 0 : index
    %c0_67 = arith.constant 0 : index
    %67 = vector.load %arg8[%c0_66, %c0_67] : memref<64x17xbf16, #tpu.memory_space<vmem>>, vector<64x9xbf16>
    %cst_68 = arith.constant dense<0.000000e+00> : vector<64x9xf32>
    %68 = tpu.matmul %66, %67, %cst_68 {dimension_numbers = #tpu.dot_dimension_numbers<[1], [0], [0], [1], [0, 0, 1, 1], [], []>} : vector<64x64xbf16>, vector<64x9xbf16>, vector<64x9xf32> -> vector<64x9xf32>
    %c1_69 = arith.constant 1 : index
    %c0_70 = arith.constant 0 : index
    %c0_71 = arith.constant 0 : index
    %69 = vector.load %arg4[%c1_69, %c0_70, %c0_71] : memref<9x64x64xbf16, #tpu.memory_space<vmem>>, vector<1x64x64xbf16>
    %70 = vector.shape_cast %69 : vector<1x64x64xbf16> to vector<64x64xbf16>
    %c0_72 = arith.constant 0 : index
    %c1_73 = arith.constant 1 : index
    %71 = vector.load %arg8[%c0_72, %c1_73] : memref<64x17xbf16, #tpu.memory_space<vmem>>, vector<64x9xbf16>
    %cst_74 = arith.constant dense<0.000000e+00> : vector<64x9xf32>
    %72 = tpu.matmul %70, %71, %cst_74 {dimension_numbers = #tpu.dot_dimension_numbers<[1], [0], [0], [1], [0, 0, 1, 1], [], []>} : vector<64x64xbf16>, vector<64x9xbf16>, vector<64x9xf32> -> vector<64x9xf32>
    %73 = arith.addf %68, %72 : vector<64x9xf32>
    %c2_75 = arith.constant 2 : index
    %c0_76 = arith.constant 0 : index
    %c0_77 = arith.constant 0 : index
    %74 = vector.load %arg4[%c2_75, %c0_76, %c0_77] : memref<9x64x64xbf16, #tpu.memory_space<vmem>>, vector<1x64x64xbf16>
    %75 = vector.shape_cast %74 : vector<1x64x64xbf16> to vector<64x64xbf16>
    %c0_78 = arith.constant 0 : index
    %c2_79 = arith.constant 2 : index
    %76 = vector.load %arg8[%c0_78, %c2_79] : memref<64x17xbf16, #tpu.memory_space<vmem>>, vector<64x9xbf16>
    %cst_80 = arith.constant dense<0.000000e+00> : vector<64x9xf32>
    %77 = tpu.matmul %75, %76, %cst_80 {dimension_numbers = #tpu.dot_dimension_numbers<[1], [0], [0], [1], [0, 0, 1, 1], [], []>} : vector<64x64xbf16>, vector<64x9xbf16>, vector<64x9xf32> -> vector<64x9xf32>
    %78 = arith.addf %73, %77 : vector<64x9xf32>
    %c3_81 = arith.constant 3 : index
    %c0_82 = arith.constant 0 : index
    %c0_83 = arith.constant 0 : index
    %79 = vector.load %arg4[%c3_81, %c0_82, %c0_83] : memref<9x64x64xbf16, #tpu.memory_space<vmem>>, vector<1x64x64xbf16>
    %80 = vector.shape_cast %79 : vector<1x64x64xbf16> to vector<64x64xbf16>
    %c0_84 = arith.constant 0 : index
    %c3_85 = arith.constant 3 : index
    %81 = vector.load %arg8[%c0_84, %c3_85] : memref<64x17xbf16, #tpu.memory_space<vmem>>, vector<64x9xbf16>
    %cst_86 = arith.constant dense<0.000000e+00> : vector<64x9xf32>
    %82 = tpu.matmul %80, %81, %cst_86 {dimension_numbers = #tpu.dot_dimension_numbers<[1], [0], [0], [1], [0, 0, 1, 1], [], []>} : vector<64x64xbf16>, vector<64x9xbf16>, vector<64x9xf32> -> vector<64x9xf32>
    %83 = arith.addf %78, %82 : vector<64x9xf32>
    %c4_87 = arith.constant 4 : index
    %c0_88 = arith.constant 0 : index
    %c0_89 = arith.constant 0 : index
    %84 = vector.load %arg4[%c4_87, %c0_88, %c0_89] : memref<9x64x64xbf16, #tpu.memory_space<vmem>>, vector<1x64x64xbf16>
    %85 = vector.shape_cast %84 : vector<1x64x64xbf16> to vector<64x64xbf16>
    %c0_90 = arith.constant 0 : index
    %c4_91 = arith.constant 4 : index
    %86 = vector.load %arg8[%c0_90, %c4_91] : memref<64x17xbf16, #tpu.memory_space<vmem>>, vector<64x9xbf16>
    %cst_92 = arith.constant dense<0.000000e+00> : vector<64x9xf32>
    %87 = tpu.matmul %85, %86, %cst_92 {dimension_numbers = #tpu.dot_dimension_numbers<[1], [0], [0], [1], [0, 0, 1, 1], [], []>} : vector<64x64xbf16>, vector<64x9xbf16>, vector<64x9xf32> -> vector<64x9xf32>
    %88 = arith.addf %83, %87 : vector<64x9xf32>
    %c5_93 = arith.constant 5 : index
    %c0_94 = arith.constant 0 : index
    %c0_95 = arith.constant 0 : index
    %89 = vector.load %arg4[%c5_93, %c0_94, %c0_95] : memref<9x64x64xbf16, #tpu.memory_space<vmem>>, vector<1x64x64xbf16>
    %90 = vector.shape_cast %89 : vector<1x64x64xbf16> to vector<64x64xbf16>
    %c0_96 = arith.constant 0 : index
    %c5_97 = arith.constant 5 : index
    %91 = vector.load %arg8[%c0_96, %c5_97] : memref<64x17xbf16, #tpu.memory_space<vmem>>, vector<64x9xbf16>
    %cst_98 = arith.constant dense<0.000000e+00> : vector<64x9xf32>
    %92 = tpu.matmul %90, %91, %cst_98 {dimension_numbers = #tpu.dot_dimension_numbers<[1], [0], [0], [1], [0, 0, 1, 1], [], []>} : vector<64x64xbf16>, vector<64x9xbf16>, vector<64x9xf32> -> vector<64x9xf32>
    %93 = arith.addf %88, %92 : vector<64x9xf32>
    %c6_99 = arith.constant 6 : index
    %c0_100 = arith.constant 0 : index
    %c0_101 = arith.constant 0 : index
    %94 = vector.load %arg4[%c6_99, %c0_100, %c0_101] : memref<9x64x64xbf16, #tpu.memory_space<vmem>>, vector<1x64x64xbf16>
    %95 = vector.shape_cast %94 : vector<1x64x64xbf16> to vector<64x64xbf16>
    %c0_102 = arith.constant 0 : index
    %c6_103 = arith.constant 6 : index
    %96 = vector.load %arg8[%c0_102, %c6_103] : memref<64x17xbf16, #tpu.memory_space<vmem>>, vector<64x9xbf16>
    %cst_104 = arith.constant dense<0.000000e+00> : vector<64x9xf32>
    %97 = tpu.matmul %95, %96, %cst_104 {dimension_numbers = #tpu.dot_dimension_numbers<[1], [0], [0], [1], [0, 0, 1, 1], [], []>} : vector<64x64xbf16>, vector<64x9xbf16>, vector<64x9xf32> -> vector<64x9xf32>
    %98 = arith.addf %93, %97 : vector<64x9xf32>
    %c7_105 = arith.constant 7 : index
    %c0_106 = arith.constant 0 : index
    %c0_107 = arith.constant 0 : index
    %99 = vector.load %arg4[%c7_105, %c0_106, %c0_107] : memref<9x64x64xbf16, #tpu.memory_space<vmem>>, vector<1x64x64xbf16>
    %100 = vector.shape_cast %99 : vector<1x64x64xbf16> to vector<64x64xbf16>
    %c0_108 = arith.constant 0 : index
    %c7_109 = arith.constant 7 : index
    %101 = vector.load %arg8[%c0_108, %c7_109] : memref<64x17xbf16, #tpu.memory_space<vmem>>, vector<64x9xbf16>
    %cst_110 = arith.constant dense<0.000000e+00> : vector<64x9xf32>
    %102 = tpu.matmul %100, %101, %cst_110 {dimension_numbers = #tpu.dot_dimension_numbers<[1], [0], [0], [1], [0, 0, 1, 1], [], []>} : vector<64x64xbf16>, vector<64x9xbf16>, vector<64x9xf32> -> vector<64x9xf32>
    %103 = arith.addf %98, %102 : vector<64x9xf32>
    %c8_111 = arith.constant 8 : index
    %c0_112 = arith.constant 0 : index
    %c0_113 = arith.constant 0 : index
    %104 = vector.load %arg4[%c8_111, %c0_112, %c0_113] : memref<9x64x64xbf16, #tpu.memory_space<vmem>>, vector<1x64x64xbf16>
    %105 = vector.shape_cast %104 : vector<1x64x64xbf16> to vector<64x64xbf16>
    %c0_114 = arith.constant 0 : index
    %c8_115 = arith.constant 8 : index
    %106 = vector.load %arg8[%c0_114, %c8_115] : memref<64x17xbf16, #tpu.memory_space<vmem>>, vector<64x9xbf16>
    %cst_116 = arith.constant dense<0.000000e+00> : vector<64x9xf32>
    %107 = tpu.matmul %105, %106, %cst_116 {dimension_numbers = #tpu.dot_dimension_numbers<[1], [0], [0], [1], [0, 0, 1, 1], [], []>} : vector<64x64xbf16>, vector<64x9xbf16>, vector<64x9xf32> -> vector<64x9xf32>
    %108 = arith.addf %103, %107 : vector<64x9xf32>
    %c0_117 = arith.constant 0 : index
    %c0_118 = arith.constant 0 : index
    %109 = vector.load %arg5[%c0_117, %c0_118] : memref<64x1xf32, #tpu.memory_space<vmem>>, vector<64x1xf32>
    %110 = vector.broadcast %109 : vector<64x1xf32> to vector<64x9xf32>
    %111 = arith.addf %108, %110 : vector<64x9xf32>
    %cst_119 = arith.constant 0.000000e+00 : f32
    %112 = vector.broadcast %cst_119 : f32 to vector<64x9xf32>
    %113 = arith.maximumf %111, %112 : vector<64x9xf32>
    %c0_120 = arith.constant 0 : index
    %c0_121 = arith.constant 0 : index
    %c0_122 = arith.constant 0 : index
    %114 = vector.load %arg7[%c0_120, %c0_121, %c0_122] : memref<1x64x9xf32, #tpu.memory_space<vmem>>, vector<1x64x9xf32>
    %115 = vector.shape_cast %114 : vector<1x64x9xf32> to vector<64x9xf32>
    %116 = vector.shape_cast %113 : vector<64x9xf32> to vector<1x64x9xf32>
    tpu.vector_store %arg7[%c0_120, %c0_121, %c0_122], %116 {strides = array<i32>} : memref<1x64x9xf32, #tpu.memory_space<vmem>>, vector<1x64x9xf32>,
    return
  }
  func.func @transform_0(%arg0: i32) -> (i32, i32, i32) {
    %c0_i32 = arith.constant 0 : i32
    %c0_i32_0 = arith.constant 0 : i32
    %c0_i32_1 = arith.constant 0 : i32
    return %arg0, %c0_i32, %c0_i32_0 : i32, i32, i32
  }
  func.func @transform_1(%arg0: i32) -> (i32, i32, i32) {
    %c0_i32 = arith.constant 0 : i32
    %c0_i32_0 = arith.constant 0 : i32
    %c0_i32_1 = arith.constant 0 : i32
    %c0_i32_2 = arith.constant 0 : i32
    return %c0_i32, %c0_i32_0, %c0_i32_1 : i32, i32, i32
  }
  func.func @transform_2(%arg0: i32) -> (i32, i32) {
    %c0_i32 = arith.constant 0 : i32
    %c0_i32_0 = arith.constant 0 : i32
    %c0_i32_1 = arith.constant 0 : i32
    return %c0_i32, %c0_i32_0 : i32, i32
  }
  func.func @transform_3(%arg0: i32) -> (i32, i32, i32) {
    %c0_i32 = arith.constant 0 : i32
    %c0_i32_0 = arith.constant 0 : i32
    %c0_i32_1 = arith.constant 0 : i32
    %c0_i32_2 = arith.constant 0 : i32
    return %c0_i32, %c0_i32_0, %c0_i32_1 : i32, i32, i32
  }
  func.func @transform_4(%arg0: i32) -> (i32, i32) {
    %c0_i32 = arith.constant 0 : i32
    %c0_i32_0 = arith.constant 0 : i32
    %c0_i32_1 = arith.constant 0 : i32
    return %c0_i32, %c0_i32_0 : i32, i32
  }
  func.func @transform_5(%arg0: i32) -> (i32, i32) {
    %c0_i32 = arith.constant 0 : i32
    %c0_i32_0 = arith.constant 0 : i32
    %c0_i32_1 = arith.constant 0 : i32
    return %c0_i32, %c0_i32_0 : i32, i32
  }
  func.func @transform_6(%arg0: i32) -> (i32, i32, i32) {
    %c0_i32 = arith.constant 0 : i32
    %c0_i32_0 = arith.constant 0 : i32
    %c0_i32_1 = arith.constant 0 : i32
    return %arg0, %c0_i32, %c0_i32_0 : i32, i32, i32
  }
}

module attributes {stable_mosaic.version = 11 : i64} {
  func.func @_head_kernel(%arg0: memref<2x1x64xf32, #tpu.memory_space<vmem>>, %arg1: memref<64x256xf32, #tpu.memory_space<vmem>>, %arg2: memref<1x256xf32, #tpu.memory_space<vmem>>, %arg3: memref<256x256xf32, #tpu.memory_space<vmem>>, %arg4: memref<1x256xf32, #tpu.memory_space<vmem>>, %arg5: memref<256x10xf32, #tpu.memory_space<vmem>>, %arg6: memref<1x10xf32, #tpu.memory_space<vmem>>, %arg7: memref<2x10xf32, #tpu.memory_space<vmem>>) attributes {dimension_semantics = [], scalar_prefetch = 0 : i64, scratch_operands = 0 : i64, tpu.core_type = #tpu.core_type<tc>} {
    %c0 = arith.constant 0 : index
    %c0_0 = arith.constant 0 : index
    %c0_1 = arith.constant 0 : index
    %0 = vector.load %arg0[%c0, %c0_0, %c0_1] : memref<2x1x64xf32, #tpu.memory_space<vmem>>, vector<2x1x64xf32>
    %cst = arith.constant dense<0.000000e+00> : vector<2x64xf32>
    %1 = vector.multi_reduction <add>, %0, %cst [1] : vector<2x1x64xf32> to vector<2x64xf32>
    %cst_2 = arith.constant 1.000000e+00 : f32
    %2 = vector.broadcast %cst_2 : f32 to vector<2x64xf32>
    %3 = arith.divf %1, %2 : vector<2x64xf32>
    %c0_3 = arith.constant 0 : index
    %c0_4 = arith.constant 0 : index
    %4 = vector.load %arg1[%c0_3, %c0_4] : memref<64x256xf32, #tpu.memory_space<vmem>>, vector<64x256xf32>
    %cst_5 = arith.constant dense<0.000000e+00> : vector<2x256xf32>
    %5 = tpu.matmul %3, %4, %cst_5 {dimension_numbers = #tpu.dot_dimension_numbers<[1], [0], [0], [1], [0, 0, 1, 1], [], []>} : vector<2x64xf32>, vector<64x256xf32>, vector<2x256xf32> -> vector<2x256xf32>
    %c0_6 = arith.constant 0 : index
    %c0_7 = arith.constant 0 : index
    %6 = vector.load %arg2[%c0_6, %c0_7] : memref<1x256xf32, #tpu.memory_space<vmem>>, vector<1x256xf32>
    %7 = vector.broadcast %6 : vector<1x256xf32> to vector<2x256xf32>
    %8 = arith.addf %5, %7 : vector<2x256xf32>
    %cst_8 = arith.constant 0.000000e+00 : f32
    %9 = vector.broadcast %cst_8 : f32 to vector<2x256xf32>
    %10 = arith.maximumf %8, %9 : vector<2x256xf32>
    %c0_9 = arith.constant 0 : index
    %c0_10 = arith.constant 0 : index
    %11 = vector.load %arg3[%c0_9, %c0_10] : memref<256x256xf32, #tpu.memory_space<vmem>>, vector<256x256xf32>
    %cst_11 = arith.constant dense<0.000000e+00> : vector<2x256xf32>
    %12 = tpu.matmul %10, %11, %cst_11 {dimension_numbers = #tpu.dot_dimension_numbers<[1], [0], [0], [1], [0, 0, 1, 1], [], []>} : vector<2x256xf32>, vector<256x256xf32>, vector<2x256xf32> -> vector<2x256xf32>
    %c0_12 = arith.constant 0 : index
    %c0_13 = arith.constant 0 : index
    %13 = vector.load %arg4[%c0_12, %c0_13] : memref<1x256xf32, #tpu.memory_space<vmem>>, vector<1x256xf32>
    %14 = vector.broadcast %13 : vector<1x256xf32> to vector<2x256xf32>
    %15 = arith.addf %12, %14 : vector<2x256xf32>
    %cst_14 = arith.constant 0.000000e+00 : f32
    %16 = vector.broadcast %cst_14 : f32 to vector<2x256xf32>
    %17 = arith.maximumf %15, %16 : vector<2x256xf32>
    %c0_15 = arith.constant 0 : index
    %c0_16 = arith.constant 0 : index
    %18 = vector.load %arg5[%c0_15, %c0_16] : memref<256x10xf32, #tpu.memory_space<vmem>>, vector<256x10xf32>
    %cst_17 = arith.constant dense<0.000000e+00> : vector<2x10xf32>
    %19 = tpu.matmul %17, %18, %cst_17 {dimension_numbers = #tpu.dot_dimension_numbers<[1], [0], [0], [1], [0, 0, 1, 1], [], []>} : vector<2x256xf32>, vector<256x10xf32>, vector<2x10xf32> -> vector<2x10xf32>
    %c0_18 = arith.constant 0 : index
    %c0_19 = arith.constant 0 : index
    %20 = vector.load %arg6[%c0_18, %c0_19] : memref<1x10xf32, #tpu.memory_space<vmem>>, vector<1x10xf32>
    %21 = vector.broadcast %20 : vector<1x10xf32> to vector<2x10xf32>
    %22 = arith.addf %19, %21 : vector<2x10xf32>
    %c0_20 = arith.constant 0 : index
    %c0_21 = arith.constant 0 : index
    %23 = vector.load %arg7[%c0_20, %c0_21] : memref<2x10xf32, #tpu.memory_space<vmem>>, vector<2x10xf32>
    tpu.vector_store %arg7[%c0_20, %c0_21], %22 {strides = array<i32>} : memref<2x10xf32, #tpu.memory_space<vmem>>, vector<2x10xf32>,
    return
  }
}

</mosaic_0001>

<bundles_post_ra>
// kernel: forward.6
= control target key start
LH: loop header
LB: loop body
LE: loop exit
PB: predicated region body
PF: predicated region fallthrough
CT: control target
= control target key end

     0   :  { %s4302_s21 = smov 0   ;;  %s4938_s0 = inlined_call_operand.vmem [shape: bf16[2,8,784], index: 0, kind: input, shape index: {}]   ;;  %s4939_s1 = inlined_call_operand.vmem [shape: bf16[9,16,8], index: 1, kind: input, shape index: {}]   ;;  %s4940_s2 = inlined_call_operand.vmem [shape: f32[16,1], index: 2, kind: input, shape index: {}]   ;;  %s4941_s3 = inlined_call_operand.vmem [shape: bf16[9,16,16], index: 3, kind: input, shape index: {}]   ;;  %s4942_s4 = inlined_call_operand.vmem [shape: f32[16,1], index: 4, kind: input, shape index: {}]   ;;  %s4943_s5 = inlined_call_operand.vmem [shape: f32[1,676], index: 5, kind: input, shape index: {}]   ;;  %s4944_s6 = inlined_call_operand.vmem [shape: f32[2,16,676], index: 6, kind: output, shape index: {}]  }
   0x1 LB: > { %s3853_s22 = sadd.s32 4294967295, %s4253_s21   ;;  %p3857_p0 = scmp.ge.s32.totalorder %s4253_s21, 1  ;;  %s4253_s21 = sphi %s4302_s21, %s16_s21  }
   0x2   : > { %p212_p1 = scmp.lt.s32.totalorder %s4253_s21, 3 }
   0x4   : > { %p213_p2 = pnand %p3857_p0, %p212_p1 }
   0x5   : > { %p242_p3 = scmp.lt.s32.totalorder (!%p213_p2), %s3853_s22, 1  ;;  %v4255_v0 = vmov (!%p213_p2), 0   ;;  %s4256_s27 = smov (!%p213_p2), 126   ;;  %vm293_vm0 = vcmask (!%p213_p2), 1031168   ;;  %vm303_vm1 = vcmask (!%p213_p2), 1043456   ;;  %v4228_v18 = vld [vmem:[%s4939_s1 + $0x8] sm:$0xff] (!%p213_p2)  }
   0x6   : > { %216 = sbr.rel (%p213_p2) target bundleno = 1479 (0x5c7), region = 44  ;;  %354 = vmatprep.mubr.bf16.mxu0 (!%p213_p2), %v4255_v0  ;;  %1989 = vst [vmem:[#allocation2] sm:$0xff] (!%p213_p2), %v4255_v0  ;;  %1994 = vst [vmem:[#allocation2 + $0x28] sm:$0xff] (!%p213_p2), %v4255_v0  ;;  %4220 = vset.pattern.permute.xlu1 (!%p213_p2), %v4255_v0  ;;  %s4257_s28 = smov (!%p213_p2), 124   ;;  %vm299_vm2 = vcmask (!%p213_p2), 64512   ;;  %v4229_v27 = vld [vmem:[%s4939_s1] sm:$0xff] (!%p213_p2)  }
   0x7   : > { %4221 = vset.pattern.permute.xlu0 (!%p213_p2), %v4255_v0  ;;  %2165 = vmatprep.mubr.bf16.mxu1 (!%p213_p2), %v4255_v0  ;;  %s4258_s29 = smov (!%p213_p2), 76   ;;  %s4259_s30 = smov (!%p213_p2), 74   ;;  %vm626_vm3 = vcmask (!%p213_p2), 1014784   ;;  %v4231_v39 = vld [vmem:[%s4939_s1 + $0x10] sm:$0xff] (!%p213_p2)   ;;  %vm814_vm4 = vcmask (!%p213_p2), 621568   ;;  %v4232_v54 = vld [vmem:[%s4939_s1 + $0x18] sm:$0xff] (!%p213_p2)  }
   0x8   : > { %s4260_s7 = smov (!%p213_p2), 72   ;;  %s4261_s8 = smov (!%p213_p2), 24   ;;  %vm1002_vm5 = vcmask (!%p213_p2), 605184   ;;  %vm1190_vm6 = vcmask (!%p213_p2), 588800   ;;  %vm1402_vm7 = vcmask (!%p213_p2), 195584   ;;  %vm1593_vm8 = vcmask (!%p213_p2), 179200  }
   0x9   : > { %s4262_s9 = smov (!%p213_p2), 22   ;;  %s4263_s10 = smov (!%p213_p2), 20   ;;  %vm1784_vm9 = vcmask (!%p213_p2), 162816   ;;  %vm1995_vm10 = vcmask (!%p213_p2), 130048   ;;  %vm2077_vm11 = vcmask (!%p213_p2), 1047768   ;;  %vm2065_vm12 = vcmask (!%p213_p2), 220160  }
   0xa   : > { %1996 = vst.msk [vmem:[#allocation2 + $0x30] sm:$0xff] (!%p213_p2), %vm1995_vm10, %v4255_v0  ;;  %vm2083_vm13 = vcmask (!%p213_p2), 515072   ;;  %vm3694_vm14 = vcmask (!%p213_p2), 293888   ;;  %vm3720_vm15 = vcmask (!%p213_p2), 1039360  }
   0xd   : > { %s4946_s22 = smov (!%p242_p3, %s3853_s22), 1 }
   0xe   : > { %s4198_s23 = smul.u32 28, %s4946_s22 }
  0x10   : > { %s4320_s26 = scalar_lea.vmem %s4938_s0, %s4198_s23  ;;  %s4264_s23 = smov 27  }
  0x11   : > { %v256_v1 = vld [vmem:[%s4320_s26 + $0x8] sm:$0xff]  ;;  %v255_v2 = vld [vmem:[%s4320_s26] sm:$0xff]  ;;  %v257_v5 = vld [vmem:[%s4320_s26 + $0x10] sm:$0xff] }
  0x12   : > { %v4326_v3 = vcombine.low %v256_v1, %v256_v1  ;;  %v4328_v4 = vcombine.low %v255_v2, %v255_v2  ;;  %v4335_v6 = vcombine.high %v256_v1, %v256_v1  ;;  %v4337_v7 = vcombine.high %v255_v2, %v255_v2  ;;  %v4230_v10 = vld [vmem:[%s4320_s26 + $0x18] ss:$0 sps:$4 sm:$0xff]   ;;  %v1953_v1 = vld [vmem:[%s4940_s2] sm:$0xff]  ;;  %v1954_v2 = vld [vmem:[%s4940_s2 + $0x8] sm:$0xff] }
  0x13   : > { %v4343_v8 = vcombine.low %v257_v5, %v257_v5  ;;  %v4345_v9 = vcombine.high %v257_v5, %v257_v5 }
  0x14   : > { %285 = vrot.lane.b32.xlu1 %v4326_v3, %s4256_s27  ;;  %281 = vrot.lane.b32.xlu0 %v4328_v4, %s4256_s27  ;;  %v460_v26 = vsel %vm303_vm1, %v4328_v4, 0  ;;  %v466_v28 = vsel %vm303_vm1, %v4326_v3, 0 }
  0x15   : > { %v472_v32 = vsel %vm303_vm1, %v4343_v8, 0 }
  0x18   : > { %287 = vrot.lane.b32.xlu1 %v4335_v6, %s4256_s27  ;;  %283 = vrot.lane.b32.xlu0 %v4337_v7, %s4256_s27 }
  0x1c   : > { %289 = vrot.lane.b32.xlu0 %v4343_v8, %s4256_s27  ;;  %291 = vrot.lane.b32.xlu1 %v4345_v9, %s4256_s27 }
  0x20   : > { %614 = vrot.lane.b32.xlu0 %v4328_v4, %s4257_s28  ;;  %616 = vrot.lane.b32.xlu1 %v4337_v7, %s4257_s28 }
  0x24   : > { %618 = vrot.lane.b32.xlu0 %v4326_v3, %s4257_s28  ;;  %620 = vrot.lane.b32.xlu1 %v4335_v6, %s4257_s28 }
  0x28   : > { %622 = vrot.lane.b32.xlu0 %v4343_v8, %s4257_s28  ;;  %624 = vrot.lane.b32.xlu1 %v4345_v9, %s4257_s28 }
  0x2c   : > { %802 = vrot.lane.b32.xlu0 %v4328_v4, %s4258_s29  ;;  %804 = vrot.lane.b32.xlu1 %v4337_v7, %s4258_s29 }
  0x30   : > { %806 = vrot.lane.b32.xlu0 %v4326_v3, %s4258_s29  ;;  %808 = vrot.lane.b32.xlu1 %v4335_v6, %s4258_s29 }
  0x34   : > { %810 = vrot.lane.b32.xlu0 %v4343_v8, %s4258_s29  ;;  %812 = vrot.lane.b32.xlu1 %v4345_v9, %s4258_s29 }
  0x38   : > { %990 = vrot.lane.b32.xlu0 %v4328_v4, %s4259_s30  ;;  %992 = vrot.lane.b32.xlu1 %v4337_v7, %s4259_s30 }
  0x3c   : > { %994 = vrot.lane.b32.xlu0 %v4326_v3, %s4259_s30  ;;  %996 = vrot.lane.b32.xlu1 %v4335_v6, %s4259_s30 }
  0x40   : > { %998 = vrot.lane.b32.xlu0 %v4343_v8, %s4259_s30  ;;  %1000 = vrot.lane.b32.xlu1 %v4345_v9, %s4259_s30 }
  0x44   : > { %1178 = vrot.lane.b32.xlu0 %v4328_v4, %s4260_s7  ;;  %1180 = vrot.lane.b32.xlu1 %v4337_v7, %s4260_s7 }
  0x48   : > { %1182 = vrot.lane.b32.xlu0 %v4326_v3, %s4260_s7  ;;  %1184 = vrot.lane.b32.xlu1 %v4335_v6, %s4260_s7 }
  0x4c   : > { %1186 = vrot.lane.b32.xlu0 %v4343_v8, %s4260_s7  ;;  %1188 = vrot.lane.b32.xlu1 %v4345_v9, %s4260_s7 }
  0x50   : > { %1388 = vrot.lane.b32.xlu0 %v4328_v4, %s4261_s8  ;;  %1390 = vrot.lane.b32.xlu1 %v4337_v7, %s4261_s8 }
  0x54   : > { %1392 = vrot.lane.b32.xlu0 %v4326_v3, %s4261_s8  ;;  %1394 = vrot.lane.b32.xlu1 %v4335_v6, %s4261_s8 }
  0x58   : > { %1396 = vrot.lane.b32.xlu0 %v4343_v8, %s4261_s8  ;;  %1398 = vrot.lane.b32.xlu1 %v4345_v9, %s4261_s8 }
  0x5c   : > { %1400 = vrot.lane.b32.xlu0 %v4230_v10, %s4261_s8  ;;  %1579 = vrot.lane.b32.xlu1 %v4328_v4, %s4262_s9 }
  0x60   : > { %1583 = vrot.lane.b32.xlu1 %v4326_v3, %s4262_s9  ;;  %1581 = vrot.lane.b32.xlu0 %v4337_v7, %s4262_s9 }
  0x64   : > { %1585 = vrot.lane.b32.xlu0 %v4335_v6, %s4262_s9  ;;  %1587 = vrot.lane.b32.xlu1 %v4343_v8, %s4262_s9 }
  0x68   : > { %1589 = vrot.lane.b32.xlu0 %v4345_v9, %s4262_s9  ;;  %1591 = vrot.lane.b32.xlu1 %v4230_v10, %s4262_s9 }
  0x6c   : > { %1770 = vrot.lane.b32.xlu0 %v4328_v4, %s4263_s10  ;;  %1772 = vrot.lane.b32.xlu1 %v4337_v7, %s4263_s10 }
  0x70   : > { %1774 = vrot.lane.b32.xlu0 %v4326_v3, %s4263_s10  ;;  %1776 = vrot.lane.b32.xlu1 %v4335_v6, %s4263_s10 }
  0x74   : > { %1778 = vrot.lane.b32.xlu0 %v4343_v8, %s4263_s10  ;;  %1780 = vrot.lane.b32.xlu1 %v4345_v9, %s4263_s10  ;;  %v4233_v8 = vld [vmem:[%s4939_s1 + $0x20] sm:$0xff]  }
  0x78   : > { %1782 = vrot.lane.b32.xlu0 %v4230_v10, %s4263_s10  ;;  %1957 = vperm.xlu1 %4220, %v1953_v1  }
  0x7c   : > { %1962 = vperm.xlu0 %4221, %v1954_v2  }
  0x86   : > { %v286_v11 = vpop.permute.xlu1 %285  ;;  %v282_v12 = vpop.permute.xlu0 %281 }
  0x8a   : > { %v288_v13 = vpop.permute.xlu1 %287  ;;  %v284_v14 = vpop.permute.xlu0 %283 }
  0x8b   : > { %v295_v15 = vsel %vm293_vm0, %v284_v14, %v286_v11  ;;  %v294_v16 = vsel %vm293_vm0, %v282_v12, %v284_v14  ;;  %v296_v19 = vsel %vm293_vm0, %v286_v11, %v288_v13 }
  0x8c   : > { %3869 = vmatprep.subr.msk.bf16.mxu0 %vm303_vm1, %v295_v15  ;;  %v305_v17 = vsel %vm303_vm1, %v294_v16, 0  ;;  %v311_v22 = vsel %vm303_vm1, %v296_v19, 0 }
  0x8d   : > { %323 = vmatpush1.bf16.msra.mxu0 %v305_v17 }
  0x8e   : > { %v290_v20 = vpop.permute.xlu0 %289  ;;  %v292_v23 = vpop.permute.xlu1 %291 }
  0x8f   : > { %v297_v21 = vsel %vm293_vm0, %v288_v13, %v290_v20  ;;  %v298_v24 = vsel %vm293_vm0, %v290_v20, %v292_v23 }
  0x90   : > { %3870 = vmatmul.mubr.msk.bf16.vlgmr.msra.gmra.mrb[0].mxu0 %vm299_vm2, %v4228_v18  ;;  %3871 = vmatprep.subr.msk.bf16.mxu0 %vm303_vm1, %v297_v21  ;;  %v317_v25 = vsel %vm303_vm1, %v298_v24, 0 }
  0x91   : > { %366 = vmatpush1.bf16.msra.mxu0 %v311_v22  ;;  %397 = vmatprep.mubr.bf16.mxu0 %v4255_v0 }
  0x92   : > { %3873 = vmatprep.subr.msk.bf16.mxu0 %vm303_vm1, %v292_v23  ;;  %v615_v29 = vpop.permute.xlu0 %614  ;;  %v617_v30 = vpop.permute.xlu1 %616  ;;  %v4234_v23 = vld [vmem:[%s4939_s1 + $0x28] sm:$0xff]  }
  0x93   : > { %v627_v34 = vsel %vm626_vm3, %v615_v29, %v617_v30 }
  0x94   : > { %v636_v36 = vsel %vm303_vm1, %v627_v34, 0 }
  0x96   : > { %v619_v31 = vpop.permute.xlu0 %618  ;;  %v621_v37 = vpop.permute.xlu1 %620 }
  0x97   : > { %v628_v33 = vsel %vm626_vm3, %v617_v30, %v619_v31  ;;  %v629_v40 = vsel %vm626_vm3, %v619_v31, %v621_v37 }
  0x98   : > { %3872 = vmatmul.mubr.msk.bf16.vlgmr.msra.gmra.mrb[4].mxu0 %vm299_vm2, %v4228_v18  ;;  %v642_v42 = vsel %vm303_vm1, %v629_v40, 0 }
  0x99   : > { %409 = vmatpush1.bf16.msra.mxu0 %v317_v25  ;;  %440 = vmatprep.mubr.bf16.mxu0 %v4255_v0 }
  0x9a   : > { %3876 = vmatprep.subr.msk.bf16.mxu0 %vm303_vm1, %v4337_v7  ;;  %v623_v35 = vpop.permute.xlu0 %622  ;;  %v625_v43 = vpop.permute.xlu1 %624 }
  0x9b   : > { %v630_v38 = vsel %vm626_vm3, %v621_v37, %v623_v35  ;;  %v631_v46 = vsel %vm626_vm3, %v623_v35, %v625_v43 }
  0x9c   : > { %v648_v48 = vsel %vm303_vm1, %v631_v46, 0 }
  0x9e   : > { %v803_v41 = vpop.permute.xlu0 %802  ;;  %v805_v44 = vpop.permute.xlu1 %804 }
  0x9f   : > { %v815_v49 = vsel %vm814_vm4, %v803_v41, %v805_v44 }
  0xa0   : > { %3874 = vmatmul.mubr.msk.bf16.vlgmr.msra.gmra.mrb[8].mxu0 %vm299_vm2, %v4228_v18  ;;  %v824_v51 = vsel %vm303_vm1, %v815_v49, 0 }
  0xa1   : > { %478 = vmatpush1.bf16.msra.mxu0 %v460_v26  ;;  %509 = vmatprep.mubr.bf16.mxu0 %v4255_v0 }
  0xa2   : > { %3878 = vmatprep.subr.msk.bf16.mxu0 %vm303_vm1, %v4335_v6  ;;  %v807_v45 = vpop.permute.xlu0 %806  ;;  %v809_v52 = vpop.permute.xlu1 %808 }
  0xa3   : > { %v816_v47 = vsel %vm814_vm4, %v805_v44, %v807_v45  ;;  %v817_v55 = vsel %vm814_vm4, %v807_v45, %v809_v52 }
  0xa4   : > { %v830_v57 = vsel %vm303_vm1, %v817_v55, 0 }
  0xa6   : > { %v811_v50 = vpop.permute.xlu0 %810  ;;  %v813_v58 = vpop.permute.xlu1 %812 }
  0xa7   : > { %v818_v53 = vsel %vm814_vm4, %v809_v52, %v811_v50  ;;  %v819_v61 = vsel %vm814_vm4, %v811_v50, %v813_v58 }
  0xa8   : > { %3877 = vmatmul.mubr.msk.bf16.vlgmr.msra.gmra.mrb[0].mxu0 %vm299_vm2, %v4229_v27  ;;  %v836_v63 = vsel %vm303_vm1, %v819_v61, 0 }
  0xa9   : > { %521 = vmatpush1.bf16.msra.mxu0 %v466_v28  ;;  %552 = vmatprep.mubr.bf16.mxu0 %v4255_v0 }
  0xaa   : > { %3880 = vmatprep.subr.msk.bf16.mxu0 %vm303_vm1, %v4345_v9  ;;  %v991_v56 = vpop.permute.xlu0 %990  ;;  %v993_v59 = vpop.permute.xlu1 %992 }
  0xab   : > { %v1003_v3 = vsel %vm1002_vm5, %v991_v56, %v993_v59  ;;  %v4236_v56 = vld [vmem:[%s4939_s1 + $0x38] sm:$0xff]  }
  0xac   : > { %v1012_v5 = vsel %vm303_vm1, %v1003_v3, 0 }
  0xae   : > { %v995_v60 = vpop.permute.xlu0 %994  ;;  %v997_v6 = vpop.permute.xlu1 %996 }
  0xaf   : > { %v1004_v62 = vsel %vm1002_vm5, %v993_v59, %v995_v60  ;;  %v1005_v9 = vsel %vm1002_vm5, %v995_v60, %v997_v6 }
  0xb0   : > { %3879 = vmatmul.mubr.msk.bf16.vlgmr.msra.gmra.mrb[4].mxu0 %vm299_vm2, %v4229_v27  ;;  %v1018_v11 = vsel %vm303_vm1, %v1005_v9, 0  ;;  %v4237_v9 = vld [vmem:[%s4939_s1 + $0x40] sm:$0xff]  }
  0xb1   : > { %564 = vmatpush1.bf16.msra.mxu0 %v472_v32  ;;  %595 = vmatprep.mubr.bf16.mxu0 %v4255_v0 }
  0xb2   : > { %3885 = vmatprep.subr.msk.bf16.mxu0 %vm303_vm1, %v628_v33  ;;  %v999_v4 = vpop.permute.xlu0 %998  ;;  %v1001_v12 = vpop.permute.xlu1 %1000 }
  0xb3   : > { %v1006_v7 = vsel %vm1002_vm5, %v997_v6, %v999_v4  ;;  %v1007_v15 = vsel %vm1002_vm5, %v999_v4, %v1001_v12 }
  0xb4   : > { %v1024_v17 = vsel %vm303_vm1, %v1007_v15, 0 }
  0xb6   : > { %v1179_v10 = vpop.permute.xlu0 %1178  ;;  %v1181_v13 = vpop.permute.xlu1 %1180 }
  0xb7   : > { %v1191_v18 = vsel %vm1190_vm6, %v1179_v10, %v1181_v13 }
  0xb8   : > { %3881 = vmatmul.mubr.msk.bf16.vlgmr.msra.gmra.mrb[8].mxu0 %vm299_vm2, %v4229_v27  ;;  %v1200_v20 = vsel %vm303_vm1, %v1191_v18, 0 }
  0xb9   : > { %654 = vmatpush1.bf16.msra.mxu0 %v636_v36  ;;  %685 = vmatprep.mubr.bf16.mxu0 %v4255_v0 }
  0xba   : > { %3887 = vmatprep.subr.msk.bf16.mxu0 %vm303_vm1, %v630_v38  ;;  %v1183_v14 = vpop.permute.xlu0 %1182  ;;  %v1185_v21 = vpop.permute.xlu1 %1184 }
  0xbb   : > { %v1192_v16 = vsel %vm1190_vm6, %v1181_v13, %v1183_v14  ;;  %v1193_v24 = vsel %vm1190_vm6, %v1183_v14, %v1185_v21 }
  0xbc   : > { %v1206_v26 = vsel %vm303_vm1, %v1193_v24, 0 }
  0xbe   : > { %v1187_v19 = vpop.permute.xlu0 %1186  ;;  %v1189_v27 = vpop.permute.xlu1 %1188 }
  0xbf   : > { %v1194_v22 = vsel %vm1190_vm6, %v1185_v21, %v1187_v19  ;;  %v1195_v30 = vsel %vm1190_vm6, %v1187_v19, %v1189_v27 }
  0xc0   : > { %3886 = vmatmul.mubr.msk.bf16.vlgmr.msra.gmra.mrb[0].mxu0 %vm299_vm2, %v4231_v39  ;;  %v1212_v32 = vsel %vm303_vm1, %v1195_v30, 0 }
  0xc1   : > { %697 = vmatpush1.bf16.msra.mxu0 %v642_v42  ;;  %728 = vmatprep.mubr.bf16.mxu0 %v4255_v0 }
  0xc2   : > { %3889 = vmatprep.subr.msk.bf16.mxu0 %vm303_vm1, %v625_v43  ;;  %v1389_v25 = vpop.permute.xlu0 %1388  ;;  %v1391_v28 = vpop.permute.xlu1 %1390 }
  0xc3   : > { %v1403_v33 = vsel %vm1402_vm7, %v1389_v25, %v1391_v28 }
  0xc4   : > { %v1413_v35 = vsel %vm303_vm1, %v1403_v33, 0 }
  0xc6   : > { %v1393_v29 = vpop.permute.xlu0 %1392  ;;  %v1395_v36 = vpop.permute.xlu1 %1394 }
  0xc7   : > { %v1404_v31 = vsel %vm1402_vm7, %v1391_v28, %v1393_v29  ;;  %v1405_v41 = vsel %vm1402_vm7, %v1393_v29, %v1395_v36 }
  0xc8   : > { %3888 = vmatmul.mubr.msk.bf16.vlgmr.msra.gmra.mrb[4].mxu0 %vm299_vm2, %v4231_v39  ;;  %v1419_v44 = vsel %vm303_vm1, %v1405_v41, 0 }
  0xc9   : > { %740 = vmatpush1.bf16.msra.mxu0 %v648_v48  ;;  %771 = vmatprep.mubr.bf16.mxu0 %v4255_v0 }
  0xca   : > { %3894 = vmatprep.subr.msk.bf16.mxu0 %vm303_vm1, %v816_v47  ;;  %v1397_v34 = vpop.permute.xlu0 %1396  ;;  %v1399_v38 = vpop.permute.xlu1 %1398 }
  0xcb   : > { %v1406_v37 = vsel %vm1402_vm7, %v1395_v36, %v1397_v34  ;;  %v1407_v47 = vsel %vm1402_vm7, %v1397_v34, %v1399_v38 }
  0xcc   : > { %v1425_v49 = vsel %vm303_vm1, %v1407_v47, 0 }
  0xce   : > { %v1401_v40 = vpop.permute.xlu0 %1400  ;;  %v1580_v42 = vpop.permute.xlu1 %1579 }
  0xcf   : > { %v1408_v43 = vsel %vm1402_vm7, %v1399_v38, %v1401_v40 }
  0xd0   : > { %3890 = vmatmul.mubr.msk.bf16.vlgmr.msra.gmra.mrb[8].mxu0 %vm299_vm2, %v4231_v39  ;;  %v4235_v39 = vld [vmem:[%s4939_s1 + $0x30] sm:$0xff]  }
  0xd1   : > { %842 = vmatpush1.bf16.msra.mxu0 %v824_v51  ;;  %873 = vmatprep.mubr.bf16.mxu0 %v4255_v0 }
  0xd2   : > { %3896 = vmatprep.subr.msk.bf16.mxu0 %vm303_vm1, %v818_v53  ;;  %v1584_v45 = vpop.permute.xlu1 %1583  ;;  %v1582_v46 = vpop.permute.xlu0 %1581 }
  0xd3   : > { %v1595_v48 = vsel %vm1593_vm8, %v1582_v46, %v1584_v45  ;;  %v1594_v50 = vsel %vm1593_vm8, %v1580_v42, %v1582_v46 }
  0xd4   : > { %v1604_v52 = vsel %vm303_vm1, %v1594_v50, 0 }
  0xd6   : > { %v1588_v51 = vpop.permute.xlu1 %1587  ;;  %v1586_v53 = vpop.permute.xlu0 %1585 }
  0xd8   : > { %3895 = vmatmul.mubr.msk.bf16.vlgmr.msra.gmra.mrb[0].mxu0 %vm299_vm2, %v4232_v54 }
  0xd9   : > { %885 = vmatpush1.bf16.msra.mxu0 %v830_v57  ;;  %916 = vmatprep.mubr.bf16.mxu0 %v4255_v0 }
  0xda   : > { %3898 = vmatprep.subr.msk.bf16.mxu0 %vm303_vm1, %v813_v58  ;;  %v1590_v55 = vpop.permute.xlu0 %1589  ;;  %v1592_v57 = vpop.permute.xlu1 %1591  ;;  %v1596_v58 = vsel %vm1593_vm8, %v1584_v45, %v1586_v53 }
  0xdb   : > { %v1599_v60 = vsel %vm1593_vm8, %v1590_v55, %v1592_v57  ;;  %v1610_v61 = vsel %vm303_vm1, %v1596_v58, 0  ;;  %v1598_v1 = vsel %vm1593_vm8, %v1588_v51, %v1590_v55 }
  0xdc   : > { %v1616_v3 = vsel %vm303_vm1, %v1598_v1, 0 }
  0xde   : > { %v1771_v59 = vpop.permute.xlu0 %1770 }
  0xe0   : > { %3897 = vmatmul.mubr.msk.bf16.vlgmr.msra.gmra.mrb[4].mxu0 %vm299_vm2, %v4232_v54 }
  0xe1   : > { %928 = vmatpush1.bf16.msra.mxu0 %v836_v63  ;;  %959 = vmatprep.mubr.bf16.mxu0 %v4255_v0 }
  0xe2   : > { %3903 = vmatprep.subr.msk.bf16.mxu0 %vm303_vm1, %v1004_v62  ;;  %v1773_v62 = vpop.permute.xlu1 %1772  ;;  %v1775_v63 = vpop.permute.xlu0 %1774 }
  0xe3   : > { %v1786_v2 = vsel %vm1784_vm9, %v1773_v62, %v1775_v63  ;;  %v1785_v4 = vsel %vm1784_vm9, %v1771_v59, %v1773_v62 }
  0xe4   : > { %v1795_v6 = vsel %vm303_vm1, %v1785_v4, 0 }
  0xe8   : > { %3899 = vmatmul.mubr.msk.bf16.vlgmr.msra.gmra.mrb[8].mxu0 %vm299_vm2, %v4232_v54  ;;  %v1597_v54 = vsel %vm1593_vm8, %v1586_v53, %v1588_v51 }
  0xe9   : > { %1030 = vmatpush1.bf16.msra.mxu0 %v1012_v5  ;;  %1061 = vmatprep.mubr.bf16.mxu0 %v4255_v0  ;;  %v1779_v5 = vpop.permute.xlu0 %1778 }
  0xea   : > { %3905 = vmatprep.subr.msk.bf16.mxu0 %vm303_vm1, %v1006_v7  ;;  %v1777_v7 = vpop.permute.xlu1 %1776 }
  0xed   : > { %v1783_v10 = vpop.permute.xlu0 %1782 }
  0xf0   : > { %3904 = vmatmul.mubr.msk.bf16.vlgmr.msra.gmra.mrb[0].mxu0 %vm299_vm2, %v4233_v8 }
  0xf1   : > { %1073 = vmatpush1.bf16.msra.mxu0 %v1018_v11  ;;  %1104 = vmatprep.mubr.bf16.mxu0 %v4255_v0  ;;  %v1787_v11 = vsel %vm1784_vm9, %v1775_v63, %v1777_v7 }
  0xf2   : > { %3907 = vmatprep.subr.msk.bf16.mxu0 %vm303_vm1, %v1001_v12  ;;  %v1781_v12 = vpop.permute.xlu1 %1780  ;;  %v1801_v14 = vsel %vm303_vm1, %v1787_v11, 0 }
  0xf3   : > { %v1790_v13 = vsel %vm1784_vm9, %v1781_v12, %v1783_v10  ;;  %v1789_v15 = vsel %vm1784_vm9, %v1779_v5, %v1781_v12 }
  0xf7   : > { %v1958_v19 = vpop.permute.xlu1 %1957 }
  0xf8   : > { %3906 = vmatmul.mubr.msk.bf16.vlgmr.msra.gmra.mrb[4].mxu0 %vm299_vm2, %v4233_v8 }
  0xf9   : > { %1116 = vmatpush1.bf16.msra.mxu0 %v1024_v17  ;;  %1147 = vmatprep.mubr.bf16.mxu0 %v4255_v0  ;;  %v1999_v17 = vlaneseq }
  0xfa   : > { %3912 = vmatprep.subr.msk.bf16.mxu0 %vm303_vm1, %v1192_v16  ;;  %v1807_v16 = vsel %vm303_vm1, %v1789_v15, 0 }
  0xfb   : > { %v4628_v18 = vshrl.u32 %v1999_v17, 7  ;;  %v1963_v24 = vpop.permute.xlu0 %1962 }
  0xfd   : > { %v2009_v40 = vsub.s32 2, %v4628_v18  ;;  %v2017_v62 = vsub.s32 4, %v4628_v18 }
 0x100   : > { %3908 = vmatmul.mubr.msk.bf16.vlgmr.msra.gmra.mrb[8].mxu0 %vm299_vm2, %v4233_v8  ;;  %v1788_v8 = vsel %vm1784_vm9, %v1777_v7, %v1779_v5 }
 0x101   : > { %1218 = vmatpush1.bf16.msra.mxu0 %v1200_v20  ;;  %1249 = vmatprep.mubr.bf16.mxu0 %v4255_v0  ;;  %v2001_v20 = vsub.s32 0, %v4628_v18 }
 0x102   : > { %3914 = vmatprep.subr.msk.bf16.mxu0 %vm303_vm1, %v1194_v22  ;;  %v1997_v22 = vld [vmem:[%s4943_s5] sm:$0x3f] }
 0x103   : > { %v2002_v30 = vrot.slane %v1997_v22, %v2001_v20  ;;  %v2018_v11 = vrot.slane %v1997_v22, %v2017_v62  ;;  %v4240_v62 = vld [vmem:[%s4941_s3 + $0x10] sm:$0xff]  }
 0x108   : > { %3913 = vmatmul.mubr.msk.bf16.vlgmr.msra.gmra.mrb[0].mxu0 %vm299_vm2, %v4234_v23 }
 0x109   : > { %1261 = vmatpush1.bf16.msra.mxu0 %v1206_v26  ;;  %1292 = vmatprep.mubr.bf16.mxu0 %v4255_v0 }
 0x10a   : > { %3916 = vmatprep.subr.msk.bf16.mxu0 %vm303_vm1, %v1189_v27 }
 0x110   : > { %3915 = vmatmul.mubr.msk.bf16.vlgmr.msra.gmra.mrb[4].mxu0 %vm299_vm2, %v4234_v23 }
 0x111   : > { %1304 = vmatpush1.bf16.msra.mxu0 %v1212_v32  ;;  %1335 = vmatprep.mubr.bf16.mxu0 %v4255_v0 }
 0x112   : > { %3928 = vmatprep.subr.msk.bf16.mxu0 %vm303_vm1, %v1404_v31 }
 0x118   : > { %3917 = vmatmul.mubr.msk.bf16.vlgmr.msra.gmra.mrb[8].mxu0 %vm299_vm2, %v4234_v23  ;;  %v2005_v23 = vsub.s32 1, %v4628_v18 }
 0x119   : > { %1431 = vmatpush1.bf16.msra.mxu0 %v1413_v35  ;;  %1462 = vmatprep.mubr.bf16.mxu0 %v4255_v0 }
 0x11a   : > { %3930 = vmatprep.subr.msk.bf16.mxu0 %vm303_vm1, %v1406_v37  ;;  %v2006_v34 = vrot.slane %v1997_v22, %v2005_v23 }
 0x120   : > { %3929 = vmatmul.mubr.msk.bf16.vlgmr.msra.gmra.mrb[0].mxu0 %vm299_vm2, %v4235_v39 }
 0x121   : > { %1474 = vmatpush1.bf16.msra.mxu0 %v1419_v44  ;;  %1505 = vmatprep.mubr.bf16.mxu0 %v4255_v0  ;;  %v2013_v44 = vsub.s32 3, %v4628_v18 }
 0x122   : > { %3932 = vmatprep.subr.msk.bf16.mxu0 %vm303_vm1, %v1408_v43 }
 0x128   : > { %3931 = vmatmul.mubr.msk.bf16.vlgmr.msra.gmra.mrb[4].mxu0 %vm299_vm2, %v4235_v39 }
 0x129   : > { %1517 = vmatpush1.bf16.msra.mxu0 %v1425_v49  ;;  %1548 = vmatprep.mubr.bf16.mxu0 %v4255_v0 }
 0x12a   : > { %3937 = vmatprep.subr.msk.bf16.mxu0 %vm303_vm1, %v1595_v48 }
 0x130   : > { %3933 = vmatmul.mubr.msk.bf16.vlgmr.msra.gmra.mrb[8].mxu0 %vm299_vm2, %v4235_v39 }
 0x131   : > { %1622 = vmatpush1.bf16.msra.mxu0 %v1604_v52  ;;  %1653 = vmatprep.mubr.bf16.mxu0 %v4255_v0  ;;  %v2010_v52 = vrot.slane %v1997_v22, %v2009_v40  ;;  %v3647_v40 = vld [vmem:[%s4942_s4] sm:$0xff] }
 0x132   : > { %3939 = vmatprep.subr.msk.bf16.mxu0 %vm303_vm1, %v1597_v54 }
 0x138   : > { %3938 = vmatmul.mubr.msk.bf16.vlgmr.msra.gmra.mrb[0].mxu0 %vm299_vm2, %v4236_v56 }
 0x139   : > { %1665 = vmatpush1.bf16.msra.mxu0 %v1610_v61  ;;  %1696 = vmatprep.mubr.bf16.mxu0 %v4255_v0 }
 0x13a   : > { %3941 = vmatprep.subr.msk.bf16.mxu0 %vm303_vm1, %v1599_v60 }
 0x140   : > { %3940 = vmatmul.mubr.msk.bf16.vlgmr.msra.gmra.mrb[4].mxu0 %vm299_vm2, %v4236_v56 }
 0x141   : > { %1708 = vmatpush1.bf16.msra.mxu0 %v1616_v3  ;;  %1739 = vmatprep.mubr.bf16.mxu0 %v4255_v0  ;;  %v2021_v3 = vsub.s32 5, %v4628_v18 }
 0x142   : > { %3946 = vmatprep.subr.msk.bf16.mxu0 %vm303_vm1, %v1786_v2 }
 0x143   : > { %v2022_v15 = vrot.slane %v1997_v22, %v2021_v3 }
 0x148   : > { %3942 = vmatmul.mubr.msk.bf16.vlgmr.msra.gmra.mrb[8].mxu0 %vm299_vm2, %v4236_v56  ;;  %v2014_v56 = vrot.slane %v1997_v22, %v2013_v44 }
 0x149   : > { %1813 = vmatpush1.bf16.msra.mxu0 %v1795_v6  ;;  %1844 = vmatprep.mubr.bf16.mxu0 %v4255_v0 }
 0x14a   : > { %3948 = vmatprep.subr.msk.bf16.mxu0 %vm303_vm1, %v1788_v8 }
 0x150   : > { %3947 = vmatmul.mubr.msk.bf16.vlgmr.msra.gmra.mrb[0].mxu0 %vm299_vm2, %v4237_v9 }
 0x151   : > { %1856 = vmatpush1.bf16.msra.mxu0 %v1801_v14  ;;  %1887 = vmatprep.mubr.bf16.mxu0 %v4255_v0 }
 0x152   : > { %3950 = vmatprep.subr.msk.bf16.mxu0 %vm303_vm1, %v1790_v13 }
 0x158   : > { %3949 = vmatmul.mubr.msk.bf16.vlgmr.msra.gmra.mrb[4].mxu0 %vm299_vm2, %v4237_v9 }
 0x159   : > { %1899 = vmatpush1.bf16.msra.mxu0 %v1807_v16  ;;  %1930 = vmatprep.mubr.bf16.mxu0 %v4255_v0 }
 0x160   : > { %3951 = vmatmul.mubr.msk.bf16.vlgmr.msra.gmra.mrb[8].mxu0 %vm299_vm2, %v4237_v9 }
 0x223   : > { %v1846_v21 = vpop.f32.mrb[0].mxu0 }
 0x224   : > { %v1965_v25 = vadd.f32 %v1958_v19, %v1846_v21  ;;  %v1848_v26 = vpop.f32.mrb[1].mxu0 }
 0x225   : > { %v1966_v27 = vadd.f32 %v1958_v19, %v1848_v26  ;;  %v1850_v28 = vpop.f32.mrb[2].mxu0 }
 0x226   : > { %v1977_v29 = vmax.f32 %v1965_v25, 0.0  ;;  %v1971_v31 = vadd.f32 %v1963_v24, %v1850_v28  ;;  %v1852_v32 = vpop.f32.mrb[3].mxu0 }
 0x227   : > { %v1978_v33 = vmax.f32 %v1966_v27, 0.0  ;;  %v1972_v35 = vadd.f32 %v1963_v24, %v1852_v32 }
 0x228   : > { %v1983_v36 = vmax.f32 %v1971_v31, 0.0  ;;  %v2029_v38 = vmul.f32 %v2002_v30, %v1977_v29 }
 0x229   : > { %v1984_v37 = vmax.f32 %v1972_v35, 0.0  ;;  %v2030_v41 = vmul.f32 %v2006_v34, %v1978_v33 }
 0x22a   : > { %v2035_v39 = vmul.f32 %v2002_v30, %v1983_v36 }
 0x22b   : > { %v2036_v42 = vmul.f32 %v2006_v34, %v1984_v37  ;;  %v1889_v43 = vpop.f32.mrb[4].mxu0 }
 0x22c   : > { %v1967_v45 = vadd.f32 %v1958_v19, %v1889_v43  ;;  %v1891_v46 = vpop.f32.mrb[5].mxu0  ;;  %v2041_v47 = vpack.c.bf16 %v2035_v39, %v2029_v38  ;;  %v3108_v38 = vld [vmem:[#allocation2 + $0x30] sm:$0xff]  ;;  %v3648_v39 = vld [vmem:[%s4942_s4 + $0x8] sm:$0xff] }
 0x22d   : > { %v1968_v48 = vadd.f32 %v1958_v19, %v1891_v46  ;;  %v1893_v49 = vpop.f32.mrb[6].mxu0  ;;  %v2042_v50 = vpack.c.bf16 %v2036_v42, %v2030_v41  ;;  %v4238_v46 = vld [vmem:[%s4941_s3 + $0x8] sm:$0xff]  }
 0x22e   : > { %v1979_v51 = vmax.f32 %v1967_v45, 0.0  ;;  %v1973_v53 = vadd.f32 %v1963_v24, %v1893_v49  ;;  %2053 = vrot.lane.b32.xlu1 %v2041_v47, %s4264_s23  ;;  %v1895_v54 = vpop.f32.mrb[7].mxu0 }
 0x22f   : > { %v1980_v55 = vmax.f32 %v1968_v48, 0.0  ;;  %v1974_v57 = vadd.f32 %v1963_v24, %v1895_v54 }
 0x230   : > { %v1985_v58 = vmax.f32 %v1973_v53, 0.0  ;;  %v2031_v60 = vmul.f32 %v2010_v52, %v1979_v51  ;;  %v4239_v53 = vld [vmem:[%s4941_s3] sm:$0xff]  }
 0x231   : > { %v1986_v59 = vmax.f32 %v1974_v57, 0.0  ;;  %v2032_v63 = vmul.f32 %v2014_v56, %v1980_v55 }
 0x232   : > { %v2037_v61 = vmul.f32 %v2010_v52, %v1985_v58  ;;  %2055 = vrot.lane.b32.xlu1 %v2042_v50, %s4264_s23 }
 0x233   : > { %v2038_v1 = vmul.f32 %v2014_v56, %v1986_v59  ;;  %v1932_v2 = vpop.f32.mrb[8].mxu0 }
 0x234   : > { %v1969_v4 = vadd.f32 %v1958_v19, %v1932_v2  ;;  %v1934_v5 = vpop.f32.mrb[9].mxu0  ;;  %v2043_v6 = vpack.c.bf16 %v2037_v61, %v2031_v60 }
 0x235   : > { %v1970_v7 = vadd.f32 %v1958_v19, %v1934_v5  ;;  %v1936_v8 = vpop.f32.mrb[10].mxu0  ;;  %v2044_v9 = vpack.c.bf16 %v2038_v1, %v2032_v63 }
 0x236   : > { %v1981_v10 = vmax.f32 %v1969_v4, 0.0  ;;  %v1975_v12 = vadd.f32 %v1963_v24, %v1936_v8  ;;  %2057 = vrot.lane.b32.xlu0 %v2043_v6, %s4264_s23  ;;  %v1938_v13 = vpop.f32.mrb[11].mxu0 }
 0x237   : > { %v1982_v14 = vmax.f32 %v1970_v7, 0.0  ;;  %v1976_v16 = vadd.f32 %v1963_v24, %v1938_v13  ;;  %2059 = vrot.lane.b32.xlu1 %v2044_v9, %s4264_s23 }
 0x238   : > { %v1987_v17 = vmax.f32 %v1975_v12, 0.0  ;;  %v2033_v18 = vmul.f32 %v2018_v11, %v1981_v10 }
 0x239   : > { %v1988_v20 = vmax.f32 %v1976_v16, 0.0  ;;  %v2034_v23 = vmul.f32 %v2022_v15, %v1982_v14 }
 0x23a   : > { %v2039_v21 = vmul.f32 %v2018_v11, %v1987_v17  ;;  %v4241_v11 = vld [vmem:[%s4941_s3 + $0x18] sm:$0xff]  }
 0x23b   : > { %v2040_v25 = vmul.f32 %v2022_v15, %v1988_v20 }
 0x23c   : > { %v2045_v19 = vpack.c.bf16 %v2039_v21, %v2033_v18 }
 0x23d   : > { %v2046_v26 = vpack.c.bf16 %v2040_v25, %v2034_v23 }
 0x23e   : > { %2061 = vrot.lane.b32.xlu0 %v2045_v19, %s4264_s23  ;;  %v4242_v19 = vld [vmem:[%s4941_s3 + $0x20] sm:$0xff]  }
 0x23f   : > { %2063 = vrot.lane.b32.xlu1 %v2046_v26, %s4264_s23 }
 0x2a0   : > { %v2054_v22 = vpop.permute.xlu1 %2053 }
 0x2a1   : > { %2078 = vst.msk [vmem:[#allocation2] sm:$0xff] %vm2077_vm11, %v2054_v22 }
 0x2a4   : > { %v2056_v24 = vpop.permute.xlu1 %2055 }
 0x2a5   : > { %v4648_v27 = vsel %vm2065_vm12, %v2054_v22, %v2056_v24 }
 0x2a6   : > { %2109 = vrot.lane.b32.xlu0 %v4648_v27, %s4256_s27 }
 0x2a8   : > { %v2058_v28 = vpop.permute.xlu0 %2057  ;;  %v4652_v29 = vld [vmem:[#allocation2] sm:$0xff] }
 0x2a9   : > { %v4655_v30 = vsel %vm2065_vm12, %v2056_v24, %v2058_v28  ;;  %v2060_v31 = vpop.permute.xlu1 %2059 }
 0x2aa   : > { %2107 = vrot.lane.b32.xlu0 %v4652_v29, %s4256_s27  ;;  %2111 = vrot.lane.b32.xlu1 %v4655_v30, %s4256_s27  ;;  %v4662_v32 = vsel %vm2065_vm12, %v2058_v28, %v2060_v31 }
 0x2ae   : > { %2113 = vrot.lane.b32.xlu1 %v4662_v32, %s4256_s27 }
 0x2b0   : > { %v2062_v33 = vpop.permute.xlu0 %2061 }
 0x2b1   : > { %v4667_v34 = vsel %vm2065_vm12, %v2060_v31, %v2062_v33  ;;  %v2064_v35 = vpop.permute.xlu1 %2063 }
 0x2b2   : > { %v2070_v36 = vsel %vm2065_vm12, %v2062_v33, %v2064_v35  ;;  %2115 = vrot.lane.b32.xlu0 %v4667_v34, %s4256_s27  ;;  %v4243_v35 = vld [vmem:[%s4941_s3 + $0x28] sm:$0xff]  }
 0x2b3   : > { %2084 = vst.msk [vmem:[#allocation2 + $0x28] sm:$0xff] %vm2083_vm13, %v2070_v36 }
 0x2b6   : > { %2409 = vrot.lane.b32.xlu0 %v4648_v27, %s4257_s28 }
 0x2ba   : > { %v4674_v37 = vld [vmem:[#allocation2 + $0x28] sm:$0xff]  ;;  %2407 = vrot.lane.b32.xlu0 %v4652_v29, %s4257_s28 }
 0x2bb   : > { %2117 = vrot.lane.b32.xlu1 %v4674_v37, %s4256_s27  ;;  %s4265_s27 = smov 127  }
 0x2be   : > { %2415 = vrot.lane.b32.xlu0 %v4667_v34, %s4257_s28 }
 0x2bf   : > { %2411 = vrot.lane.b32.xlu1 %v4655_v30, %s4257_s28 }
 0x2c2   : > { %2584 = vrot.lane.b32.xlu0 %v4648_v27, %s4258_s29 }
 0x2c3   : > { %2413 = vrot.lane.b32.xlu1 %v4662_v32, %s4257_s28 }
 0x2c6   : > { %2582 = vrot.lane.b32.xlu0 %v4652_v29, %s4258_s29 }
 0x2c7   : > { %2417 = vrot.lane.b32.xlu1 %v4674_v37, %s4257_s28  ;;  %s4266_s28 = smov 102  }
 0x2ca   : > { %2590 = vrot.lane.b32.xlu0 %v4667_v34, %s4258_s29 }
 0x2cb   : > { %2586 = vrot.lane.b32.xlu1 %v4655_v30, %s4258_s29 }
 0x2ce   : > { %2759 = vrot.lane.b32.xlu0 %v4648_v27, %s4259_s30 }
 0x2cf   : > { %2588 = vrot.lane.b32.xlu1 %v4662_v32, %s4258_s29 }
 0x2d2   : > { %2757 = vrot.lane.b32.xlu0 %v4652_v29, %s4259_s30 }
 0x2d3   : > { %2592 = vrot.lane.b32.xlu1 %v4674_v37, %s4258_s29  ;;  %s4199_s29 = smul.u32 96, %s4946_s22 }
 0x2d6   : > { %2765 = vrot.lane.b32.xlu0 %v4667_v34, %s4259_s30 }
 0x2d7   : > { %2761 = vrot.lane.b32.xlu1 %v4655_v30, %s4259_s30 }
 0x2da   : > { %2934 = vrot.lane.b32.xlu0 %v4648_v27, %s4260_s7 }
 0x2db   : > { %2763 = vrot.lane.b32.xlu1 %v4662_v32, %s4259_s30 }
 0x2de   : > { %2932 = vrot.lane.b32.xlu0 %v4652_v29, %s4260_s7 }
 0x2df   : > { %2767 = vrot.lane.b32.xlu1 %v4674_v37, %s4259_s30 }
 0x2e2   : > { %2940 = vrot.lane.b32.xlu0 %v4667_v34, %s4260_s7 }
 0x2e3   : > { %2936 = vrot.lane.b32.xlu1 %v4655_v30, %s4260_s7 }
 0x2e6   : > { %3123 = vrot.lane.b32.xlu0 %v4648_v27, %s4261_s8 }
 0x2e7   : > { %2938 = vrot.lane.b32.xlu1 %v4662_v32, %s4260_s7 }
 0x2ea   : > { %3121 = vrot.lane.b32.xlu0 %v4652_v29, %s4261_s8 }
 0x2eb   : > { %2942 = vrot.lane.b32.xlu1 %v4674_v37, %s4260_s7 }
 0x2ee   : > { %3129 = vrot.lane.b32.xlu0 %v4667_v34, %s4261_s8 }
 0x2ef   : > { %3125 = vrot.lane.b32.xlu1 %v4655_v30, %s4261_s8 }
 0x2f2   : > { %3133 = vrot.lane.b32.xlu0 %v3108_v38, %s4261_s8 }
 0x2f3   : > { %3127 = vrot.lane.b32.xlu1 %v4662_v32, %s4261_s8 }
 0x2f6   : > { %3303 = vrot.lane.b32.xlu0 %v4655_v30, %s4262_s9 }
 0x2f7   : > { %3131 = vrot.lane.b32.xlu1 %v4674_v37, %s4261_s8  ;;  %s4916_s8 = scalar_lea.vmem %s4944_s6, %s4199_s29 }
 0x2fa   : > { %3305 = vrot.lane.b32.xlu0 %v4662_v32, %s4262_s9 }
 0x2fb   : > { %3301 = vrot.lane.b32.xlu1 %v4648_v27, %s4262_s9 }
 0x2fe   : > { %3309 = vrot.lane.b32.xlu0 %v4674_v37, %s4262_s9 }
 0x2ff   : > { %3299 = vrot.lane.b32.xlu1 %v4652_v29, %s4262_s9 }
 0x302   : > { %3479 = vrot.lane.b32.xlu0 %v4648_v27, %s4263_s10 }
 0x303   : > { %3307 = vrot.lane.b32.xlu1 %v4667_v34, %s4262_s9 }
 0x306   : > { %3477 = vrot.lane.b32.xlu0 %v4652_v29, %s4263_s10 }
 0x307   : > { %3311 = vrot.lane.b32.xlu1 %v3108_v38, %s4262_s9 }
 0x30a   : > { %3485 = vrot.lane.b32.xlu0 %v4667_v34, %s4263_s10 }
 0x30b   : > { %3481 = vrot.lane.b32.xlu1 %v4655_v30, %s4263_s10 }
 0x30e   : > { %3489 = vrot.lane.b32.xlu0 %v3108_v38, %s4263_s10 }
 0x30f   : > { %3483 = vrot.lane.b32.xlu1 %v4662_v32, %s4263_s10 }
 0x312   : > { %3656 = vperm.xlu0 %4221, %v3648_v39  }
 0x313   : > { %3487 = vrot.lane.b32.xlu1 %v4674_v37, %s4263_s10 }
 0x317   : > { %3651 = vperm.xlu1 %4220, %v3647_v40  }
 0x318   : > { %v2110_v41 = vpop.permute.xlu0 %2109 }
 0x31c   : > { %v2108_v42 = vpop.permute.xlu0 %2107  ;;  %v2112_v43 = vpop.permute.xlu1 %2111 }
 0x31d   : > { %v2120_v44 = vsel %vm293_vm0, %v2110_v41, %v2112_v43  ;;  %v2119_v45 = vsel %vm293_vm0, %v2108_v42, %v2110_v41 }
 0x31e   : > { %2133 = vmatprep.subr.bf16.mxu1 %v2120_v44 }
 0x31f   : > { %2134 = vmatpush1.bf16.msra.mxu1 %v2119_v45 }
 0x320   : > { %v2114_v47 = vpop.permute.xlu1 %2113 }
 0x321   : > { %v2121_v50 = vsel %vm293_vm0, %v2112_v43, %v2114_v47 }
 0x322   : > { %3955 = vmatmul.mubr.msk.bf16.vlgmr.msra.gmra.mrb[0].mxu1 %vm1995_vm10, %v4238_v46 }
 0x323   : > { %2208 = vmatprep.mubr.bf16.mxu1 %v4255_v0 }
 0x324   : > { %v2116_v48 = vpop.permute.xlu0 %2115 }
 0x325   : > { %v2122_v49 = vsel %vm293_vm0, %v2114_v47, %v2116_v48 }
 0x326   : > { %2176 = vmatprep.subr.bf16.mxu1 %v2122_v49 }
 0x327   : > { %2177 = vmatpush1.bf16.msra.mxu1 %v2121_v50 }
 0x328   : > { %v2410_v54 = vpop.permute.xlu0 %2409 }
 0x32a   : > { %3956 = vmatmul.mubr.msk.bf16.vlgmr.msra.gmra.mrb[4].mxu1 %vm1995_vm10, %v4238_v46 }
 0x32b   : > { %2251 = vmatprep.mubr.bf16.mxu1 %v4255_v0 }
 0x32c   : > { %v2408_v57 = vpop.permute.xlu0 %2407 }
 0x32d   : > { %v2118_v51 = vpop.permute.xlu1 %2117  ;;  %v2419_v59 = vsel %vm626_vm3, %v2408_v57, %v2410_v54 }
 0x32e   : > { %v2123_v52 = vsel %vm293_vm0, %v2116_v48, %v2118_v51  ;;  %2219 = vmatprep.subr.bf16.mxu1 %v2118_v51  ;;  %v4244_v48 = vld [vmem:[%s4941_s3 + $0x30] sm:$0xff]   ;;  %vm3756_vm0 = vcmask 834560  }
 0x32f   : > { %2220 = vmatpush1.bf16.msra.mxu1 %v2123_v52 }
 0x330   : > { %2270 = vmatprep.subr.bf16.mxu1 %v4648_v27  ;;  %v2416_v60 = vpop.permute.xlu0 %2415 }
 0x331   : > { %v2412_v55 = vpop.permute.xlu1 %2411 }
 0x332   : > { %3957 = vmatmul.mubr.msk.bf16.vlgmr.msra.gmra.mrb[8].mxu1 %vm1995_vm10, %v4238_v46  ;;  %v2420_v56 = vsel %vm626_vm3, %v2410_v54, %v2412_v55 }
 0x333   : > { %2271 = vmatpush1.bf16.msra.mxu1 %v4652_v29  ;;  %2302 = vmatprep.mubr.bf16.mxu1 %v4255_v0 }
 0x334   : > { %2313 = vmatprep.subr.bf16.mxu1 %v4662_v32  ;;  %v2585_v2 = vpop.permute.xlu0 %2584 }
 0x335   : > { %v2414_v58 = vpop.permute.xlu1 %2413 }
 0x336   : > { %v2422_v61 = vsel %vm626_vm3, %v2414_v58, %v2416_v60  ;;  %v2421_v63 = vsel %vm626_vm3, %v2412_v55, %v2414_v58 }
 0x338   : > { %v2583_v6 = vpop.permute.xlu0 %2582 }
 0x339   : > { %v2418_v1 = vpop.permute.xlu1 %2417  ;;  %v2594_v8 = vsel %vm814_vm4, %v2583_v6, %v2585_v2 }
 0x33a   : > { %3959 = vmatmul.mubr.msk.bf16.vlgmr.msra.gmra.mrb[0].mxu1 %vm1995_vm10, %v4239_v53  ;;  %v2423_v4 = vsel %vm626_vm3, %v2416_v60, %v2418_v1 }
 0x33b   : > { %2314 = vmatpush1.bf16.msra.mxu1 %v4655_v30  ;;  %2345 = vmatprep.mubr.bf16.mxu1 %v4255_v0 }
 0x33c   : > { %2356 = vmatprep.subr.bf16.mxu1 %v4674_v37  ;;  %v2591_v9 = vpop.permute.xlu0 %2590 }
 0x33d   : > { %v2587_v3 = vpop.permute.xlu1 %2586 }
 0x33e   : > { %v2595_v5 = vsel %vm814_vm4, %v2585_v2, %v2587_v3 }
 0x340   : > { %v2760_v14 = vpop.permute.xlu0 %2759 }
 0x341   : > { %v2589_v7 = vpop.permute.xlu1 %2588 }
 0x342   : > { %3960 = vmatmul.mubr.msk.bf16.vlgmr.msra.gmra.mrb[4].mxu1 %vm1995_vm10, %v4239_v53  ;;  %v2597_v10 = vsel %vm814_vm4, %v2589_v7, %v2591_v9  ;;  %v2596_v12 = vsel %vm814_vm4, %v2587_v3, %v2589_v7 }
 0x343   : > { %2357 = vmatpush1.bf16.msra.mxu1 %v4667_v34  ;;  %2388 = vmatprep.mubr.bf16.mxu1 %v4255_v0 }
 0x344   : > { %2433 = vmatprep.subr.bf16.mxu1 %v2420_v56  ;;  %v2758_v20 = vpop.permute.xlu0 %2757 }
 0x345   : > { %v2593_v13 = vpop.permute.xlu1 %2592  ;;  %v2769_v21 = vsel %vm1002_vm5, %v2758_v20, %v2760_v14 }
 0x346   : > { %v2598_v16 = vsel %vm814_vm4, %v2591_v9, %v2593_v13 }
 0x348   : > { %v2766_v23 = vpop.permute.xlu0 %2765 }
 0x349   : > { %v2762_v15 = vpop.permute.xlu1 %2761 }
 0x34a   : > { %3961 = vmatmul.mubr.msk.bf16.vlgmr.msra.gmra.mrb[8].mxu1 %vm1995_vm10, %v4239_v53  ;;  %v2770_v17 = vsel %vm1002_vm5, %v2760_v14, %v2762_v15 }
 0x34b   : > { %2434 = vmatpush1.bf16.msra.mxu1 %v2419_v59  ;;  %2465 = vmatprep.mubr.bf16.mxu1 %v4255_v0 }
 0x34c   : > { %2476 = vmatprep.subr.bf16.mxu1 %v2422_v61  ;;  %v2935_v24 = vpop.permute.xlu0 %2934  ;;  %v4245_v61 = vld [vmem:[%s4941_s3 + $0x38] sm:$0xff]  }
 0x34d   : > { %v2764_v18 = vpop.permute.xlu1 %2763 }
 0x34e   : > { %v2772_v25 = vsel %vm1002_vm5, %v2764_v18, %v2766_v23  ;;  %v2771_v26 = vsel %vm1002_vm5, %v2762_v15, %v2764_v18 }
 0x350   : > { %v2933_v30 = vpop.permute.xlu0 %2932 }
 0x351   : > { %v2768_v22 = vpop.permute.xlu1 %2767  ;;  %v2944_v32 = vsel %vm1190_vm6, %v2933_v30, %v2935_v24 }
 0x352   : > { %3965 = vmatmul.mubr.msk.bf16.vlgmr.msra.gmra.mrb[0].mxu1 %vm1995_vm10, %v4240_v62  ;;  %v2773_v28 = vsel %vm1002_vm5, %v2766_v23, %v2768_v22 }
 0x353   : > { %2477 = vmatpush1.bf16.msra.mxu1 %v2421_v63  ;;  %2508 = vmatprep.mubr.bf16.mxu1 %v4255_v0 }
 0x354   : > { %2519 = vmatprep.subr.bf16.mxu1 %v2418_v1  ;;  %v2941_v33 = vpop.permute.xlu0 %2940 }
 0x355   : > { %v2937_v27 = vpop.permute.xlu1 %2936 }
 0x356   : > { %v2945_v29 = vsel %vm1190_vm6, %v2935_v24, %v2937_v27 }
 0x358   : > { %v3124_v38 = vpop.permute.xlu0 %3123 }
 0x359   : > { %v2939_v31 = vpop.permute.xlu1 %2938 }
 0x35a   : > { %3966 = vmatmul.mubr.msk.bf16.vlgmr.msra.gmra.mrb[4].mxu1 %vm1995_vm10, %v4240_v62  ;;  %v2947_v34 = vsel %vm1190_vm6, %v2939_v31, %v2941_v33  ;;  %v2946_v36 = vsel %vm1190_vm6, %v2937_v27, %v2939_v31 }
 0x35b   : > { %2520 = vmatpush1.bf16.msra.mxu1 %v2423_v4  ;;  %2551 = vmatprep.mubr.bf16.mxu1 %v4255_v0 }
 0x35c   : > { %2608 = vmatprep.subr.bf16.mxu1 %v2595_v5  ;;  %v3122_v42 = vpop.permute.xlu0 %3121 }
 0x35d   : > { %v2943_v37 = vpop.permute.xlu1 %2942  ;;  %v3135_v44 = vsel %vm1402_vm7, %v3122_v42, %v3124_v38 }
 0x35e   : > { %v2948_v40 = vsel %vm1190_vm6, %v2941_v33, %v2943_v37 }
 0x360   : > { %v3130_v45 = vpop.permute.xlu0 %3129 }
 0x361   : > { %v3126_v39 = vpop.permute.xlu1 %3125 }
 0x362   : > { %3967 = vmatmul.mubr.msk.bf16.vlgmr.msra.gmra.mrb[8].mxu1 %vm1995_vm10, %v4240_v62  ;;  %v3136_v41 = vsel %vm1402_vm7, %v3124_v38, %v3126_v39 }
 0x363   : > { %2609 = vmatpush1.bf16.msra.mxu1 %v2594_v8  ;;  %2640 = vmatprep.mubr.bf16.mxu1 %v4255_v0 }
 0x364   : > { %2651 = vmatprep.subr.bf16.mxu1 %v2597_v10  ;;  %v3134_v50 = vpop.permute.xlu0 %3133 }
 0x365   : > { %v3128_v43 = vpop.permute.xlu1 %3127 }
 0x366   : > { %v3138_v46 = vsel %vm1402_vm7, %v3128_v43, %v3130_v45  ;;  %v3137_v49 = vsel %vm1402_vm7, %v3126_v39, %v3128_v43 }
 0x368   : > { %v3304_v54 = vpop.permute.xlu0 %3303 }
 0x369   : > { %v3132_v47 = vpop.permute.xlu1 %3131 }
 0x36a   : > { %3971 = vmatmul.mubr.msk.bf16.vlgmr.msra.gmra.mrb[0].mxu1 %vm1995_vm10, %v4241_v11  ;;  %v3140_v51 = vsel %vm1402_vm7, %v3132_v47, %v3134_v50  ;;  %v3139_v53 = vsel %vm1402_vm7, %v3130_v45, %v3132_v47 }
 0x36b   : > { %2652 = vmatpush1.bf16.msra.mxu1 %v2596_v12  ;;  %2683 = vmatprep.mubr.bf16.mxu1 %v4255_v0  ;;  %v4246_v12 = vld [vmem:[%s4941_s3 + $0x40] sm:$0xff]  }
 0x36c   : > { %2694 = vmatprep.subr.bf16.mxu1 %v2593_v13  ;;  %v3306_v59 = vpop.permute.xlu0 %3305 }
 0x36d   : > { %v3302_v52 = vpop.permute.xlu1 %3301  ;;  %v3315_v1 = vsel %vm1593_vm8, %v3304_v54, %v3306_v59 }
 0x36e   : > { %v3314_v56 = vsel %vm1593_vm8, %v3302_v52, %v3304_v54 }
 0x370   : > { %v3310_v62 = vpop.permute.xlu0 %3309 }
 0x371   : > { %v3300_v55 = vpop.permute.xlu1 %3299 }
 0x372   : > { %3972 = vmatmul.mubr.msk.bf16.vlgmr.msra.gmra.mrb[4].mxu1 %vm1995_vm10, %v4241_v11  ;;  %v3313_v58 = vsel %vm1593_vm8, %v3300_v55, %v3302_v52 }
 0x373   : > { %2695 = vmatpush1.bf16.msra.mxu1 %v2598_v16  ;;  %2726 = vmatprep.mubr.bf16.mxu1 %v4255_v0 }
 0x374   : > { %2783 = vmatprep.subr.bf16.mxu1 %v2770_v17  ;;  %v3480_v3 = vpop.permute.xlu0 %3479 }
 0x375   : > { %v3308_v57 = vpop.permute.xlu1 %3307 }
 0x376   : > { %v3316_v60 = vsel %vm1593_vm8, %v3306_v59, %v3308_v57  ;;  %v3317_v5 = vsel %vm1593_vm8, %v3308_v57, %v3310_v62 }
 0x378   : > { %v3478_v7 = vpop.permute.xlu0 %3477 }
 0x379   : > { %v3312_v63 = vpop.permute.xlu1 %3311  ;;  %v3491_v9 = vsel %vm1784_vm9, %v3478_v7, %v3480_v3 }
 0x37a   : > { %3973 = vmatmul.mubr.msk.bf16.vlgmr.msra.gmra.mrb[8].mxu1 %vm1995_vm10, %v4241_v11  ;;  %v3318_v2 = vsel %vm1593_vm8, %v3310_v62, %v3312_v63 }
 0x37b   : > { %2784 = vmatpush1.bf16.msra.mxu1 %v2769_v21  ;;  %2815 = vmatprep.mubr.bf16.mxu1 %v4255_v0 }
 0x37c   : > { %2826 = vmatprep.subr.bf16.mxu1 %v2772_v25  ;;  %v3486_v10 = vpop.permute.xlu0 %3485 }
 0x37d   : > { %v3482_v4 = vpop.permute.xlu1 %3481 }
 0x37e   : > { %v3492_v6 = vsel %vm1784_vm9, %v3480_v3, %v3482_v4 }
 0x380   : > { %v3490_v14 = vpop.permute.xlu0 %3489 }
 0x381   : > { %v3484_v8 = vpop.permute.xlu1 %3483 }
 0x382   : > { %3977 = vmatmul.mubr.msk.bf16.vlgmr.msra.gmra.mrb[0].mxu1 %vm1995_vm10, %v4242_v19  ;;  %v3494_v11 = vsel %vm1784_vm9, %v3484_v8, %v3486_v10  ;;  %v3493_v15 = vsel %vm1784_vm9, %v3482_v4, %v3484_v8 }
 0x383   : > { %2827 = vmatpush1.bf16.msra.mxu1 %v2771_v26  ;;  %2858 = vmatprep.mubr.bf16.mxu1 %v4255_v0 }
 0x384   : > { %2869 = vmatprep.subr.bf16.mxu1 %v2768_v22 }
 0x385   : > { %v3488_v13 = vpop.permute.xlu1 %3487 }
 0x386   : > { %v3496_v16 = vsel %vm1784_vm9, %v3488_v13, %v3490_v14  ;;  %v3495_v17 = vsel %vm1784_vm9, %v3486_v10, %v3488_v13 }
 0x38a   : > { %3978 = vmatmul.mubr.msk.bf16.vlgmr.msra.gmra.mrb[4].mxu1 %vm1995_vm10, %v4242_v19 }
 0x38b   : > { %2870 = vmatpush1.bf16.msra.mxu1 %v2773_v28  ;;  %2901 = vmatprep.mubr.bf16.mxu1 %v4255_v0 }
 0x38c   : > { %2958 = vmatprep.subr.bf16.mxu1 %v2945_v29 }
 0x391   : > { %v3657_v25 = vpop.permute.xlu0 %3656 }
 0x392   : > { %3979 = vmatmul.mubr.msk.bf16.vlgmr.msra.gmra.mrb[8].mxu1 %vm1995_vm10, %v4242_v19 }
 0x393   : > { %2959 = vmatpush1.bf16.msra.mxu1 %v2944_v32  ;;  %2990 = vmatprep.mubr.bf16.mxu1 %v4255_v0 }
 0x394   : > { %3001 = vmatprep.subr.bf16.mxu1 %v2947_v34 }
 0x396   : > { %v3652_v20 = vpop.permute.xlu1 %3651 }
 0x39a   : > { %3983 = vmatmul.mubr.msk.bf16.vlgmr.msra.gmra.mrb[0].mxu1 %vm1995_vm10, %v4243_v35 }
 0x39b   : > { %3002 = vmatpush1.bf16.msra.mxu1 %v2946_v36  ;;  %3033 = vmatprep.mubr.bf16.mxu1 %v4255_v0 }
 0x39c   : > { %3044 = vmatprep.subr.bf16.mxu1 %v2943_v37 }
 0x3a2   : > { %3984 = vmatmul.mubr.msk.bf16.vlgmr.msra.gmra.mrb[4].mxu1 %vm1995_vm10, %v4243_v35 }
 0x3a3   : > { %3045 = vmatpush1.bf16.msra.mxu1 %v2948_v40  ;;  %3076 = vmatprep.mubr.bf16.mxu1 %v4255_v0 }
 0x3a4   : > { %3150 = vmatprep.subr.bf16.mxu1 %v3136_v41 }
 0x3aa   : > { %3985 = vmatmul.mubr.msk.bf16.vlgmr.msra.gmra.mrb[8].mxu1 %vm1995_vm10, %v4243_v35 }
 0x3ab   : > { %3151 = vmatpush1.bf16.msra.mxu1 %v3135_v44  ;;  %3182 = vmatprep.mubr.bf16.mxu1 %v4255_v0 }
 0x3ac   : > { %3193 = vmatprep.subr.bf16.mxu1 %v3138_v46 }
 0x3b2   : > { %3989 = vmatmul.mubr.msk.bf16.vlgmr.msra.gmra.mrb[0].mxu1 %vm1995_vm10, %v4244_v48 }
 0x3b3   : > { %3194 = vmatpush1.bf16.msra.mxu1 %v3137_v49  ;;  %3225 = vmatprep.mubr.bf16.mxu1 %v4255_v0 }
 0x3b4   : > { %3236 = vmatprep.subr.bf16.mxu1 %v3140_v51 }
 0x3ba   : > { %3990 = vmatmul.mubr.msk.bf16.vlgmr.msra.gmra.mrb[4].mxu1 %vm1995_vm10, %v4244_v48 }
 0x3bb   : > { %3237 = vmatpush1.bf16.msra.mxu1 %v3139_v53  ;;  %3268 = vmatprep.mubr.bf16.mxu1 %v4255_v0 }
 0x3bc   : > { %3328 = vmatprep.subr.bf16.mxu1 %v3314_v56 }
 0x3c2   : > { %3991 = vmatmul.mubr.msk.bf16.vlgmr.msra.gmra.mrb[8].mxu1 %vm1995_vm10, %v4244_v48 }
 0x3c3   : > { %3329 = vmatpush1.bf16.msra.mxu1 %v3313_v58  ;;  %3360 = vmatprep.mubr.bf16.mxu1 %v4255_v0 }
 0x3c4   : > { %3371 = vmatprep.subr.bf16.mxu1 %v3316_v60 }
 0x3ca   : > { %3995 = vmatmul.mubr.msk.bf16.vlgmr.msra.gmra.mrb[0].mxu1 %vm1995_vm10, %v4245_v61 }
 0x3cb   : > { %3372 = vmatpush1.bf16.msra.mxu1 %v3315_v1  ;;  %3403 = vmatprep.mubr.bf16.mxu1 %v4255_v0 }
 0x3cc   : > { %3414 = vmatprep.subr.bf16.mxu1 %v3318_v2 }
 0x3d2   : > { %3996 = vmatmul.mubr.msk.bf16.vlgmr.msra.gmra.mrb[4].mxu1 %vm1995_vm10, %v4245_v61 }
 0x3d3   : > { %3415 = vmatpush1.bf16.msra.mxu1 %v3317_v5  ;;  %3446 = vmatprep.mubr.bf16.mxu1 %v4255_v0 }
 0x3d4   : > { %3506 = vmatprep.subr.bf16.mxu1 %v3492_v6 }
 0x3da   : > { %3997 = vmatmul.mubr.msk.bf16.vlgmr.msra.gmra.mrb[8].mxu1 %vm1995_vm10, %v4245_v61 }
 0x3db   : > { %3507 = vmatpush1.bf16.msra.mxu1 %v3491_v9  ;;  %3538 = vmatprep.mubr.bf16.mxu1 %v4255_v0 }
 0x3dc   : > { %3549 = vmatprep.subr.bf16.mxu1 %v3494_v11 }
 0x3e2   : > { %4001 = vmatmul.mubr.msk.bf16.vlgmr.msra.gmra.mrb[0].mxu1 %vm1995_vm10, %v4246_v12 }
 0x3e3   : > { %3550 = vmatpush1.bf16.msra.mxu1 %v3493_v15  ;;  %3581 = vmatprep.mubr.bf16.mxu1 %v4255_v0 }
 0x3e4   : > { %3592 = vmatprep.subr.bf16.mxu1 %v3496_v16 }
 0x3ea   : > { %4002 = vmatmul.mubr.msk.bf16.vlgmr.msra.gmra.mrb[4].mxu1 %vm1995_vm10, %v4246_v12 }
 0x3eb   : > { %3593 = vmatpush1.bf16.msra.mxu1 %v3495_v17  ;;  %3624 = vmatprep.mubr.bf16.mxu1 %v4255_v0 }
 0x3f2   : > { %4003 = vmatmul.mubr.msk.bf16.vlgmr.msra.gmra.mrb[8].mxu1 %vm1995_vm10, %v4246_v12 }
 0x4b5   : > { %v3540_v18 = vpop.f32.mrb[0].mxu1 }
 0x4b6   : > { %v3659_v21 = vadd.f32 %v3652_v20, %v3540_v18  ;;  %v3542_v23 = vpop.f32.mrb[1].mxu1 }
 0x4b7   : > { %v3660_v19 = vadd.f32 %v3652_v20, %v3542_v23  ;;  %v3544_v26 = vpop.f32.mrb[2].mxu1 }
 0x4b8   : > { %v3665_v22 = vadd.f32 %v3657_v25, %v3544_v26  ;;  %v3546_v24 = vpop.f32.mrb[3].mxu1  ;;  %v3671_v28 = vmax.f32 %v3659_v21, 0.0 }
 0x4b9   : > { %v3666_v27 = vadd.f32 %v3657_v25, %v3546_v24  ;;  %v3672_v30 = vmax.f32 %v3660_v19, 0.0 }
 0x4ba   : > { %v3677_v29 = vmax.f32 %v3665_v22, 0.0 }
 0x4bb   : > { %v3678_v31 = vmax.f32 %v3666_v27, 0.0 }
 0x4bc   : > { %v3683_v32 = vpack.c.bf16 %v3677_v29, %v3671_v28 }
 0x4bd   : > { %v3684_v33 = vpack.c.bf16 %v3678_v31, %v3672_v30  ;;  %v3583_v34 = vpop.f32.mrb[4].mxu1 }
 0x4be   : > { %3689 = vst [vmem:[#allocation2] sm:$0xff] %v3683_v32  ;;  %v3661_v0 = vadd.f32 %v3652_v20, %v3583_v34  ;;  %v3585_v35 = vpop.f32.mrb[5].mxu1  ;;  %3708 = vrot.lane.b32.xlu1 %v3683_v32, %s4265_s27 }
 0x4bf   : > { %v3662_v36 = vadd.f32 %v3652_v20, %v3585_v35  ;;  %v3587_v37 = vpop.f32.mrb[6].mxu1  ;;  %3710 = vrot.lane.b32.xlu0 %v3684_v33, %s4265_s27 }
 0x4c0   : > { %v3667_v38 = vadd.f32 %v3657_v25, %v3587_v37  ;;  %v3589_v39 = vpop.f32.mrb[7].mxu1  ;;  %v3673_v41 = vmax.f32 %v3661_v0, 0.0 }
 0x4c1   : > { %v3668_v40 = vadd.f32 %v3657_v25, %v3589_v39  ;;  %v3674_v43 = vmax.f32 %v3662_v36, 0.0 }
 0x4c2   : > { %v3679_v42 = vmax.f32 %v3667_v38, 0.0 }
 0x4c3   : > { %v3680_v44 = vmax.f32 %v3668_v40, 0.0 }
 0x4c4   : > { %v3685_v45 = vpack.c.bf16 %v3679_v42, %v3673_v41 }
 0x4c5   : > { %v3686_v46 = vpack.c.bf16 %v3680_v44, %v3674_v43  ;;  %v3626_v47 = vpop.f32.mrb[8].mxu1 }
 0x4c6   : > { %v3663_v48 = vadd.f32 %v3652_v20, %v3626_v47  ;;  %v3628_v49 = vpop.f32.mrb[9].mxu1  ;;  %3712 = vrot.lane.b32.xlu1 %v3685_v45, %s4265_s27 }
 0x4c7   : > { %v3664_v50 = vadd.f32 %v3652_v20, %v3628_v49  ;;  %v3630_v51 = vpop.f32.mrb[10].mxu1  ;;  %3714 = vrot.lane.b32.xlu0 %v3686_v46, %s4265_s27 }
 0x4c8   : > { %v3669_v52 = vadd.f32 %v3657_v25, %v3630_v51  ;;  %v3632_v53 = vpop.f32.mrb[11].mxu1  ;;  %v3675_v55 = vmax.f32 %v3663_v48, 0.0 }
 0x4c9   : > { %v3670_v54 = vadd.f32 %v3657_v25, %v3632_v53  ;;  %v3676_v57 = vmax.f32 %v3664_v50, 0.0 }
 0x4ca   : > { %v3681_v56 = vmax.f32 %v3669_v52, 0.0 }
 0x4cb   : > { %v3682_v58 = vmax.f32 %v3670_v54, 0.0 }
 0x4cc   : > { %v3687_v59 = vpack.c.bf16 %v3681_v56, %v3675_v55 }
 0x4cd   : > { %v3688_v60 = vpack.c.bf16 %v3682_v58, %v3676_v57 }
 0x4ce   : > { %3716 = vrot.lane.b32.xlu1 %v3687_v59, %s4265_s27 }
 0x4cf   : > { %3695 = vst.msk [vmem:[#allocation2 + $0x28] sm:$0xff] %vm3694_vm14, %v3688_v60 }
 0x4d6   : > { %v3701_v61 = vld [vmem:[#allocation2 + $0x28] sm:$0xff] }
 0x4d7   : > { %3718 = vrot.lane.b32.xlu0 %v3701_v61, %s4265_s27 }
 0x530   : > { %v3709_v62 = vpop.permute.xlu1 %3708 }
 0x531   : > { %v3711_v63 = vpop.permute.xlu0 %3710 }
 0x532   : > { %v3721_v1 = vsel %vm3720_vm15, %v3709_v62, %v3711_v63 }
 0x533   : > { %v3732_v2 = vmax.bf16 %v3721_v1, %v3683_v32 }
 0x535   : > { %3744 = vrot.lane.b32.xlu1 %v3732_v2, %s4266_s28 }
 0x538   : > { %v3713_v3 = vpop.permute.xlu1 %3712 }
 0x539   : > { %v3722_v4 = vsel %vm3720_vm15, %v3711_v63, %v3713_v3  ;;  %v3715_v5 = vpop.permute.xlu0 %3714 }
 0x53a   : > { %v3733_v6 = vmax.bf16 %v3722_v4, %v3684_v33  ;;  %v3723_v7 = vsel %vm3720_vm15, %v3713_v3, %v3715_v5 }
 0x53b   : > { %v3734_v8 = vmax.bf16 %v3723_v7, %v3685_v45 }
 0x53c   : > { %3746 = vrot.lane.b32.xlu0 %v3733_v6, %s4266_s28 }
 0x53d   : > { %3748 = vrot.lane.b32.xlu1 %v3734_v8, %s4266_s28 }
 0x540   : > { %v3717_v9 = vpop.permute.xlu1 %3716 }
 0x541   : > { %v3724_v10 = vsel %vm3720_vm15, %v3715_v5, %v3717_v9 }
 0x542   : > { %v3735_v11 = vmax.bf16 %v3724_v10, %v3686_v46 }
 0x544   : > { %3750 = vrot.lane.b32.xlu0 %v3735_v11, %s4266_s28 }
 0x549   : > { %v3719_v12 = vpop.permute.xlu0 %3718 }
 0x54a   : > { %v3725_v13 = vsel %vm3720_vm15, %v3717_v9, %v3719_v12  ;;  %v3737_v14 = vmax.bf16 %v3719_v12, %v3701_v61 }
 0x54b   : > { %v3736_v15 = vmax.bf16 %v3725_v13, %v3687_v59 }
 0x54c   : > { %3754 = vrot.lane.b32.xlu0 %v3737_v14, %s4266_s28 }
 0x54d   : > { %3752 = vrot.lane.b32.xlu1 %v3736_v15, %s4266_s28 }
 0x5a7   : > { %v3745_v16 = vpop.permute.xlu1 %3744 }
 0x5ae   : > { %v3747_v17 = vpop.permute.xlu0 %3746 }
 0x5af   : > { %v3757_v20 = vsel %vm3756_vm0, %v3745_v16, %v3747_v17  ;;  %v3749_v18 = vpop.permute.xlu1 %3748 }
 0x5b0   : > { %v3768_v21 = vmax.bf16 %v3757_v20, %v3732_v2  ;;  %v3758_v23 = vsel %vm3756_vm0, %v3747_v17, %v3749_v18 }
 0x5b1   : > { %v3769_v25 = vmax.bf16 %v3758_v23, %v3733_v6 }
 0x5b2   : > { %v3774_v19 = vunpack.c.l.bf16 %v3768_v21  ;;  %v3780_v26 = vunpack.c.h.bf16 %v3768_v21 }
 0x5b3   : > { %v3775_v22 = vunpack.c.l.bf16 %v3769_v25  ;;  %v3781_v24 = vunpack.c.h.bf16 %v3769_v25 }
 0x5b4   : > { %3786 = vst [vmem:[%s4916_s8] sm:$0xff] %v3774_v19  ;;  %3792 = vst [vmem:[%s4916_s8 + $0x30] sm:$0xff] %v3780_v26 }
 0x5b5   : > { %3787 = vst [vmem:[%s4916_s8 + $0x8] sm:$0xff] %v3775_v22  ;;  %3793 = vst [vmem:[%s4916_s8 + $0x38] sm:$0xff] %v3781_v24 }
 0x5b6   : > { %v3751_v27 = vpop.permute.xlu0 %3750 }
 0x5b7   : > { %v3759_v28 = vsel %vm3756_vm0, %v3749_v18, %v3751_v27 }
 0x5b8   : > { %v3770_v29 = vmax.bf16 %v3759_v28, %v3734_v8 }
 0x5ba   : > { %v3776_v30 = vunpack.c.l.bf16 %v3770_v29  ;;  %v3782_v31 = vunpack.c.h.bf16 %v3770_v29 }
 0x5bc   : > { %3788 = vst [vmem:[%s4916_s8 + $0x10] sm:$0xff] %v3776_v30  ;;  %3794 = vst [vmem:[%s4916_s8 + $0x40] sm:$0xff] %v3782_v31 }
 0x5be   : > { %v3755_v32 = vpop.permute.xlu0 %3754 }
 0x5bf   : > { %v3753_v33 = vpop.permute.xlu1 %3752  ;;  %v3773_v34 = vmax.bf16 %v3755_v32, %v3737_v14 }
 0x5c0   : > { %v3760_v0 = vsel %vm3756_vm0, %v3751_v27, %v3753_v33  ;;  %v3761_v35 = vsel %vm3756_vm0, %v3753_v33, %v3755_v32 }
 0x5c1   : > { %v3771_v36 = vmax.bf16 %v3760_v0, %v3735_v11  ;;  %v3772_v37 = vmax.bf16 %v3761_v35, %v3736_v15  ;;  %v3779_v38 = vunpack.c.l.bf16 %v3773_v34  ;;  %v3785_v39 = vunpack.c.h.bf16 %v3773_v34 }
 0x5c3   : > { %v3777_v40 = vunpack.c.l.bf16 %v3771_v36  ;;  %v3783_v41 = vunpack.c.h.bf16 %v3771_v36  ;;  %v3778_v42 = vunpack.c.l.bf16 %v3772_v37  ;;  %v3784_v43 = vunpack.c.h.bf16 %v3772_v37  ;;  %3791 = vst.msk [vmem:[%s4916_s8 + $0x28] sm:$0xff] %vm3694_vm14, %v3779_v38  ;;  %3797 = vst.msk [vmem:[%s4916_s8 + $0x58] sm:$0xff] %vm3694_vm14, %v3785_v39 }
 0x5c5   : > { %3789 = vst [vmem:[%s4916_s8 + $0x18] sm:$0xff] %v3777_v40  ;;  %3795 = vst [vmem:[%s4916_s8 + $0x48] sm:$0xff] %v3783_v41 }
 0x5c6   : > { %3790 = vst [vmem:[%s4916_s8 + $0x20] sm:$0xff] %v3778_v42  ;;  %3796 = vst [vmem:[%s4916_s8 + $0x50] sm:$0xff] %v3784_v43 }
 0x5c7 PF: > { %s16_s21 = sadd.s32 1, %s4253_s21  }
 0x5c8   : > { %p13_p4 = scmp.ge.s32.totalorder %s16_s21, 4  }
 0x5ca   :  { %15 = sbr.rel (!%p13_p4) target bundleno = 1 (0x1), region = 90 }

// kernel: forward.5
= control target key start
LH: loop header
LB: loop body
LE: loop exit
PB: predicated region body
PF: predicated region fallthrough
CT: control target
= control target key end

     0   :  { %s12176_s21 = smov 0   ;;  %s16308_s0 = inlined_call_operand.vmem [shape: bf16[2,3,2602], index: 0, kind: input, shape index: {}]   ;;  %s16309_s1 = inlined_call_operand.vmem [shape: bf16[9,8,3], index: 1, kind: input, shape index: {}]   ;;  %s16310_s2 = inlined_call_operand.vmem [shape: f32[8,1], index: 2, kind: input, shape index: {}]   ;;  %s16311_s3 = inlined_call_operand.vmem [shape: bf16[9,8,8], index: 3, kind: input, shape index: {}]   ;;  %s16312_s4 = inlined_call_operand.vmem [shape: f32[8,1], index: 4, kind: input, shape index: {}]   ;;  %s16313_s5 = inlined_call_operand.vmem [shape: f32[1,2500], index: 5, kind: input, shape index: {}]   ;;  %s16314_s6 = inlined_call_operand.vmem [shape: f32[2,8,2500], index: 6, kind: output, shape index: {}]  }
   0x1 LB: > { %s11701_s22 = sadd.s32 4294967295, %s12127_s21   ;;  %p11705_p0 = scmp.ge.s32.totalorder %s12127_s21, 1  ;;  %s12127_s21 = sphi %s12176_s21, %s16_s21  }
   0x2   : > { %p212_p1 = scmp.lt.s32.totalorder %s12127_s21, 3 }
   0x4   : > { %p213_p2 = pnand %p11705_p0, %p212_p1 }
   0x5   : > { %p242_p3 = scmp.lt.s32.totalorder (!%p213_p2), %s11701_s22, 1  ;;  %v270_v0 = vlaneseq (!%p213_p2)  ;;  %v12129_v1 = vmov (!%p213_p2), 1983009808   ;;  %s12130_s27 = smov (!%p213_p2), 127   ;;  %v12131_v17 = vmov (!%p213_p2), 0   ;;  %vm415_vm0 = vcmask (!%p213_p2), 1040384  }
   0x6   : > { %216 = sbr.rel (%p213_p2) target bundleno = 1776 (0x6f0), region = 44  ;;  %v268_v2 = vunpack.c.l.s4 (!%p213_p2), %v12129_v1  ;;  %511 = vmatprep.mubr.bf16.mxu0 (!%p213_p2), %v12131_v17  ;;  %5994 = vst [vmem:[#allocation2] sm:$0xff] (!%p213_p2), %v12131_v17  ;;  %6003 = vst [vmem:[#allocation2 + $0x48] sm:$0xff] (!%p213_p2), %v12131_v17  ;;  %552 = vmatprep.mubr.bf16.mxu1 (!%p213_p2), %v12131_v17  ;;  %s12132_s28 = smov (!%p213_p2), 126   ;;  %vm416_vm1 = vcmask (!%p213_p2), 1041408   ;;  %v12135_v39 = vmov (!%p213_p2), 65535  }
   0x7   : > { %v12186_v3 = vshrl.u32 (!%p213_p2), %v270_v0, 7  ;;  %12102 = vset.pattern.permute.xlu1 (!%p213_p2), %v12131_v17  ;;  %12103 = vset.pattern.permute.xlu0 (!%p213_p2), %v12131_v17  ;;  %s12133_s29 = smov (!%p213_p2), 78   ;;  %s12134_s30 = smov (!%p213_p2), 77   ;;  %v417_v40 = vsel (!%p213_p2), %vm415_vm0, 4294967295, %v12135_v39  ;;  %vm391_vm2 = vcmask (!%p213_p2), 1039360   ;;  %vm411_vm3 = vcmask (!%p213_p2), 23552  }
   0x8   : > { %v269_v4 = vunpack.c.0.s8 (!%p213_p2), %v268_v2  ;;  %v12398_v42 = vsel (!%p213_p2), %vm416_vm1, %v417_v40, 0  ;;  %v12414_v51 = vld [vmem:[%s16309_s1 + $0x4] sm:$0xf] (!%p213_p2)  ;;  %s12136_s9 = smov (!%p213_p2), 76   ;;  %vm1499_vm4 = vcmask (!%p213_p2), 1031168   ;;  %s12137_s12 = smov (!%p213_p2), 28  }
   0x9   : > { %vm2149_vm5 = vcmask (!%p213_p2), 637952   ;;  %s12138_s15 = smov (!%p213_p2), 27   ;;  %vm2799_vm6 = vcmask (!%p213_p2), 629760   ;;  %s12139_s20 = smov (!%p213_p2), 26   ;;  %vm3449_vm7 = vcmask (!%p213_p2), 621568   ;;  %vm4110_vm8 = vcmask (!%p213_p2), 228352  }
   0xa   : > { %v12190_v5 = vsub.s32 (!%p213_p2), %v269_v4, %v12186_v3  ;;  %vm4772_vm9 = vcmask (!%p213_p2), 220160   ;;  %vm5434_vm10 = vcmask (!%p213_p2), 211968   ;;  %s12140_s18 = smov (!%p213_p2), 51   ;;  %vm6263_vm11 = vcmask (!%p213_p2), 1043864  }
   0xb   : > { %vm6264_vm12 = vcmask (!%p213_p2), 1047556   ;;  %vm6232_vm13 = vcmask (!%p213_p2), 416768   ;;  %vm6234_vm15 = vcmask (!%p213_p2), 1043456   ;;  %vm6276_vm0 = vcmask (!%p213_p2), 973828  }
   0xc   : > { %vm6265_vm14 = vmor (!%p213_p2), %vm6264_vm12, %vm6263_vm11  ;;  %vm6401_vm11 = vcmask (!%p213_p2), 64512  }
   0xd   : > { %s16316_s22 = smov (!%p242_p3, %s11701_s22), 1  ;;  %vm6277_vm1 = vmor %vm6276_vm0, %vm6234_vm15 }
   0xe   : > { %s12080_s23 = smul.u32 42, %s16316_s22 }
  0x10   : > { %s12195_s26 = scalar_lea.vmem %s16308_s0, %s12080_s23 }
  0x11   : > { %v254_v6 = vld [vmem:[%s12195_s26] sm:$0xff]  ;;  %v255_v7 = vld [vmem:[%s12195_s26 + $0x8] sm:$0xff]  ;;  %v256_v18 = vld [vmem:[%s12195_s26 + $0x10] sm:$0xff] }
  0x12   : > { %v12200_v8 = vrot.slane %v254_v6, %v12190_v5  ;;  %v12203_v9 = vrot.slane %v255_v7, %v12190_v5  ;;  %v266_v10 = vcombine.high %v254_v6, %v254_v6  ;;  %v283_v14 = vcombine.high %v255_v7, %v255_v7  ;;  %v257_v24 = vld [vmem:[%s12195_s26 + $0x18] sm:$0xff]  ;;  %v258_v30 = vld [vmem:[%s12195_s26 + $0x20] sm:$0xff] }
  0x13   : > { %v12245_v20 = vrot.slane %v256_v18, %v12190_v5  ;;  %v300_v21 = vcombine.high %v256_v18, %v256_v18  ;;  %v12268_v26 = vrot.slane %v257_v24, %v12190_v5  ;;  %v317_v27 = vcombine.high %v257_v24, %v257_v24 }
  0x14   : > { %351 = vrot.lane.b32.xlu1 %v12200_v8, %s12130_s27  ;;  %v12209_v11 = vcombine.high %v12200_v8, %v12200_v8  ;;  %v12213_v12 = vcombine.high %v12203_v9, %v12203_v9  ;;  %v12216_v13 = vrot.slane %v266_v10, %v12190_v5  ;;  %v12227_v16 = vrot.slane %v283_v14, %v12190_v5 }
  0x15   : > { %v12253_v22 = vcombine.high %v12245_v20, %v12245_v20  ;;  %v12256_v23 = vrot.slane %v300_v21, %v12190_v5  ;;  %v12276_v28 = vcombine.high %v12268_v26, %v12268_v26  ;;  %v12279_v29 = vrot.slane %v317_v27, %v12190_v5 }
  0x16   : > { %353 = vrot.lane.b32.xlu0 %v12209_v11, %s12130_s27  ;;  %v12224_v15 = vcombine.high %v12216_v13, %v12216_v13  ;;  %v12242_v19 = vcombine.high %v12227_v16, %v12227_v16  ;;  %v12291_v32 = vrot.slane %v258_v30, %v12190_v5  ;;  %v334_v33 = vcombine.high %v258_v30, %v258_v30 }
  0x17   : > { %v12265_v25 = vcombine.high %v12256_v23, %v12256_v23  ;;  %v12288_v31 = vcombine.high %v12279_v29, %v12279_v29 }
  0x18   : > { %361 = vrot.lane.b32.xlu1 %v12213_v12, %s12130_s27  ;;  %v12299_v34 = vcombine.high %v12291_v32, %v12291_v32  ;;  %v12302_v35 = vrot.slane %v334_v33, %v12190_v5 }
  0x1a   : > { %355 = vrot.lane.b32.xlu0 %v12216_v13, %s12130_s27  ;;  %v12310_v36 = vcombine.high %v12302_v35, %v12302_v35 }
  0x1c   : > { %357 = vrot.lane.b32.xlu1 %v12224_v15, %s12130_s27 }
  0x1e   : > { %359 = vrot.lane.b32.xlu0 %v12203_v9, %s12130_s27 }
  0x20   : > { %365 = vrot.lane.b32.xlu1 %v12242_v19, %s12130_s27 }
  0x22   : > { %363 = vrot.lane.b32.xlu0 %v12227_v16, %s12130_s27 }
  0x24   : > { %369 = vrot.lane.b32.xlu1 %v12253_v22, %s12130_s27 }
  0x26   : > { %367 = vrot.lane.b32.xlu0 %v12245_v20, %s12130_s27 }
  0x28   : > { %373 = vrot.lane.b32.xlu1 %v12265_v25, %s12130_s27 }
  0x2a   : > { %371 = vrot.lane.b32.xlu0 %v12256_v23, %s12130_s27 }
  0x2c   : > { %377 = vrot.lane.b32.xlu1 %v12276_v28, %s12130_s27 }
  0x2e   : > { %375 = vrot.lane.b32.xlu0 %v12268_v26, %s12130_s27 }
  0x30   : > { %381 = vrot.lane.b32.xlu1 %v12288_v31, %s12130_s27 }
  0x32   : > { %379 = vrot.lane.b32.xlu0 %v12279_v29, %s12130_s27 }
  0x34   : > { %385 = vrot.lane.b32.xlu1 %v12299_v34, %s12130_s27 }
  0x36   : > { %383 = vrot.lane.b32.xlu0 %v12291_v32, %s12130_s27 }
  0x38   : > { %389 = vrot.lane.b32.xlu1 %v12310_v36, %s12130_s27 }
  0x3a   : > { %387 = vrot.lane.b32.xlu0 %v12302_v35, %s12130_s27 }
  0x3c   : > { %1463 = vrot.lane.b32.xlu1 %v12216_v13, %s12132_s28 }
  0x3e   : > { %1461 = vrot.lane.b32.xlu0 %v12209_v11, %s12132_s28 }
  0x40   : > { %1465 = vrot.lane.b32.xlu1 %v12224_v15, %s12132_s28 }
  0x42   : > { %1459 = vrot.lane.b32.xlu0 %v12200_v8, %s12132_s28 }
  0x44   : > { %1469 = vrot.lane.b32.xlu1 %v12213_v12, %s12132_s28 }
  0x46   : > { %1467 = vrot.lane.b32.xlu0 %v12203_v9, %s12132_s28 }
  0x48   : > { %1473 = vrot.lane.b32.xlu1 %v12242_v19, %s12132_s28 }
  0x4a   : > { %1471 = vrot.lane.b32.xlu0 %v12227_v16, %s12132_s28 }
  0x4c   : > { %1477 = vrot.lane.b32.xlu1 %v12253_v22, %s12132_s28 }
  0x4e   : > { %1475 = vrot.lane.b32.xlu0 %v12245_v20, %s12132_s28 }
  0x50   : > { %1481 = vrot.lane.b32.xlu1 %v12265_v25, %s12132_s28 }
  0x52   : > { %1479 = vrot.lane.b32.xlu0 %v12256_v23, %s12132_s28 }
  0x54   : > { %1485 = vrot.lane.b32.xlu1 %v12276_v28, %s12132_s28 }
  0x56   : > { %1483 = vrot.lane.b32.xlu0 %v12268_v26, %s12132_s28 }
  0x58   : > { %1489 = vrot.lane.b32.xlu1 %v12288_v31, %s12132_s28 }
  0x5a   : > { %1487 = vrot.lane.b32.xlu0 %v12279_v29, %s12132_s28 }
  0x5c   : > { %1493 = vrot.lane.b32.xlu1 %v12299_v34, %s12132_s28 }
  0x5e   : > { %1491 = vrot.lane.b32.xlu0 %v12291_v32, %s12132_s28 }
  0x60   : > { %2111 = vrot.lane.b32.xlu1 %v12209_v11, %s12133_s29 }
  0x62   : > { %1495 = vrot.lane.b32.xlu0 %v12302_v35, %s12132_s28 }
  0x64   : > { %1497 = vrot.lane.b32.xlu1 %v12310_v36, %s12132_s28 }
  0x66   : > { %2113 = vrot.lane.b32.xlu0 %v12216_v13, %s12133_s29 }
  0x68   : > { %2115 = vrot.lane.b32.xlu1 %v12224_v15, %s12133_s29 }
  0x6a   : > { %2109 = vrot.lane.b32.xlu0 %v12200_v8, %s12133_s29 }
  0x6c   : > { %2119 = vrot.lane.b32.xlu1 %v12213_v12, %s12133_s29 }
  0x6e   : > { %2117 = vrot.lane.b32.xlu0 %v12203_v9, %s12133_s29 }
  0x70   : > { %2123 = vrot.lane.b32.xlu1 %v12242_v19, %s12133_s29 }
  0x72   : > { %2121 = vrot.lane.b32.xlu0 %v12227_v16, %s12133_s29 }
  0x74   : > { %2127 = vrot.lane.b32.xlu1 %v12253_v22, %s12133_s29 }
  0x76   : > { %2125 = vrot.lane.b32.xlu0 %v12245_v20, %s12133_s29 }
  0x78   : > { %2131 = vrot.lane.b32.xlu1 %v12265_v25, %s12133_s29 }
  0x7a   : > { %2129 = vrot.lane.b32.xlu0 %v12256_v23, %s12133_s29 }
  0x7c   : > { %2135 = vrot.lane.b32.xlu1 %v12276_v28, %s12133_s29 }
  0x7e   : > { %2133 = vrot.lane.b32.xlu0 %v12268_v26, %s12133_s29 }
  0x80   : > { %2139 = vrot.lane.b32.xlu1 %v12288_v31, %s12133_s29 }
  0x82   : > { %2137 = vrot.lane.b32.xlu0 %v12279_v29, %s12133_s29 }
  0x84   : > { %2143 = vrot.lane.b32.xlu1 %v12299_v34, %s12133_s29 }
  0x86   : > { %v352_v37 = vpop.permute.xlu1 %351  ;;  %2141 = vrot.lane.b32.xlu0 %v12291_v32, %s12133_s29 }
  0x88   : > { %v354_v38 = vpop.permute.xlu0 %353  ;;  %2761 = vrot.lane.b32.xlu1 %v12209_v11, %s12134_s30 }
  0x89   : > { %v392_v44 = vsel %vm391_vm2, %v352_v37, %v354_v38 }
  0x8a   : > { %v362_v41 = vpop.permute.xlu1 %361  ;;  %2145 = vrot.lane.b32.xlu0 %v12302_v35, %s12133_s29  ;;  %v420_v48 = vand.u32 %v12398_v42, %v392_v44 }
  0x8c   : > { %v356_v43 = vpop.permute.xlu0 %355  ;;  %2147 = vrot.lane.b32.xlu1 %v12310_v36, %s12133_s29 }
  0x8d   : > { %v393_v45 = vsel %vm391_vm2, %v354_v38, %v356_v43 }
  0x8e   : > { %v358_v46 = vpop.permute.xlu1 %357  ;;  %v423_v47 = vand.u32 %v12398_v42, %v393_v45  ;;  %2763 = vrot.lane.b32.xlu0 %v12216_v13, %s12134_s30 }
  0x8f   : > { %v394_v50 = vsel %vm391_vm2, %v356_v43, %v358_v46 }
  0x90   : > { %479 = vmatprep.subr.bf16.mxu0 %v423_v47  ;;  %v360_v49 = vpop.permute.xlu0 %359  ;;  %2765 = vrot.lane.b32.xlu1 %v12224_v15, %s12134_s30  ;;  %v426_v55 = vand.u32 %v12398_v42, %v394_v50 }
  0x91   : > { %480 = vmatpush1.bf16.msra.mxu0 %v420_v48  ;;  %v395_v52 = vsel %vm391_vm2, %v358_v46, %v360_v49  ;;  %v396_v56 = vsel %vm391_vm2, %v360_v49, %v362_v41 }
  0x92   : > { %v429_v53 = vand.u32 %v12398_v42, %v395_v52  ;;  %v366_v54 = vpop.permute.xlu1 %365  ;;  %2759 = vrot.lane.b32.xlu0 %v12200_v8, %s12134_s30  ;;  %v432_v61 = vand.u32 %v12398_v42, %v396_v56 }
  0x94   : > { %11709 = vmatmul.mubr.msk.bf16.vlgmr.msra.gmra.mrb[0].mxu0 %vm411_vm3, %v12414_v51  ;;  %v364_v57 = vpop.permute.xlu0 %363  ;;  %520 = vmatprep.subr.bf16.mxu1 %v429_v53 }
  0x95   : > { %v397_v58 = vsel %vm391_vm2, %v362_v41, %v364_v57  ;;  %521 = vmatpush1.bf16.msra.mxu1 %v426_v55  ;;  %593 = vmatprep.mubr.bf16.mxu0 %v12131_v17  ;;  %v398_v62 = vsel %vm391_vm2, %v364_v57, %v366_v54 }
  0x96   : > { %v435_v59 = vand.u32 %v12398_v42, %v397_v58  ;;  %v370_v60 = vpop.permute.xlu1 %369  ;;  %2767 = vrot.lane.b32.xlu0 %v12203_v9, %s12134_s30  ;;  %2769 = vrot.lane.b32.xlu1 %v12213_v12, %s12134_s30  ;;  %v438_v4 = vand.u32 %v12398_v42, %v398_v62  ;;  %v896_v58 = vand.u32 %v12398_v42, %v12209_v11 }
  0x98   : > { %561 = vmatprep.subr.bf16.mxu0 %v435_v59  ;;  %v368_v63 = vpop.permute.xlu0 %367  ;;  %11710 = vmatmul.mubr.msk.bf16.vlgmr.msra.gmra.mrb[0].mxu1 %vm411_vm3, %v12414_v51 }
  0x99   : > { %v399_v0 = vsel %vm391_vm2, %v366_v54, %v368_v63  ;;  %562 = vmatpush1.bf16.msra.mxu0 %v432_v61  ;;  %634 = vmatprep.mubr.bf16.mxu1 %v12131_v17  ;;  %v400_v6 = vsel %vm391_vm2, %v368_v63, %v370_v60  ;;  %v902_v63 = vand.u32 %v12398_v42, %v12224_v15 }
  0x9a   : > { %v441_v1 = vand.u32 %v12398_v42, %v399_v0  ;;  %v374_v2 = vpop.permute.xlu1 %373  ;;  %2771 = vrot.lane.b32.xlu0 %v12227_v16, %s12134_s30  ;;  %2773 = vrot.lane.b32.xlu1 %v12242_v19, %s12134_s30  ;;  %v444_v21 = vand.u32 %v12398_v42, %v400_v6 }
  0x9c   : > { %11711 = vmatmul.mubr.msk.bf16.vlgmr.msra.gmra.mrb[4].mxu0 %vm411_vm3, %v12414_v51  ;;  %v372_v7 = vpop.permute.xlu0 %371  ;;  %602 = vmatprep.subr.bf16.mxu1 %v441_v1  ;;  %v893_v1 = vand.u32 %v12398_v42, %v12200_v8 }
  0x9d   : > { %v401_v10 = vsel %vm391_vm2, %v370_v60, %v372_v7  ;;  %603 = vmatpush1.bf16.msra.mxu1 %v438_v4  ;;  %675 = vmatprep.mubr.bf16.mxu0 %v12131_v17  ;;  %v402_v24 = vsel %vm391_vm2, %v372_v7, %v374_v2  ;;  %v899_v7 = vand.u32 %v12398_v42, %v12216_v13 }
  0x9e   : > { %v447_v14 = vand.u32 %v12398_v42, %v401_v10  ;;  %v378_v18 = vpop.permute.xlu1 %377  ;;  %2775 = vrot.lane.b32.xlu0 %v12245_v20, %s12134_s30  ;;  %2777 = vrot.lane.b32.xlu1 %v12253_v22, %s12134_s30  ;;  %v450_v38 = vand.u32 %v12398_v42, %v402_v24  ;;  %v914_v10 = vand.u32 %v12398_v42, %v12242_v19 }
  0xa0   : > { %v376_v27 = vpop.permute.xlu0 %375  ;;  %11712 = vmatmul.mubr.msk.bf16.vlgmr.msra.gmra.mrb[4].mxu1 %vm411_vm3, %v12414_v51  ;;  %643 = vmatprep.subr.bf16.mxu0 %v447_v14 }
  0xa1   : > { %v403_v30 = vsel %vm391_vm2, %v374_v2, %v376_v27  ;;  %644 = vmatpush1.bf16.msra.mxu0 %v444_v21  ;;  %716 = vmatprep.mubr.bf16.mxu1 %v12131_v17  ;;  %v404_v39 = vsel %vm391_vm2, %v376_v27, %v378_v18  ;;  %v908_v2 = vand.u32 %v12398_v42, %v12213_v12 }
  0xa2   : > { %v453_v33 = vand.u32 %v12398_v42, %v403_v30  ;;  %v382_v37 = vpop.permute.xlu1 %381  ;;  %2779 = vrot.lane.b32.xlu0 %v12256_v23, %s12134_s30  ;;  %2781 = vrot.lane.b32.xlu1 %v12265_v25, %s12134_s30  ;;  %v456_v45 = vand.u32 %v12398_v42, %v404_v39  ;;  %v905_v21 = vand.u32 %v12398_v42, %v12203_v9 }
  0xa3   : > { %v911_v27 = vand.u32 %v12398_v42, %v12227_v16  ;;  %v926_v30 = vand.u32 %v12398_v42, %v12265_v25  ;;  %v938_v39 = vand.u32 %v12398_v42, %v12288_v31 }
  0xa4   : > { %v380_v40 = vpop.permute.xlu0 %379  ;;  %11713 = vmatmul.mubr.msk.bf16.vlgmr.msra.gmra.mrb[8].mxu0 %vm411_vm3, %v12414_v51  ;;  %684 = vmatprep.subr.bf16.mxu1 %v453_v33 }
  0xa5   : > { %v405_v41 = vsel %vm391_vm2, %v378_v18, %v380_v40  ;;  %685 = vmatpush1.bf16.msra.mxu1 %v450_v38  ;;  %757 = vmatprep.mubr.bf16.mxu0 %v12131_v17  ;;  %v406_v46 = vsel %vm391_vm2, %v380_v40, %v382_v37  ;;  %v12544_v18 = vld [vmem:[%s16309_s1] sm:$0xf] }
  0xa6   : > { %v459_v43 = vand.u32 %v12398_v42, %v405_v41  ;;  %v386_v44 = vpop.permute.xlu1 %385  ;;  %2783 = vrot.lane.b32.xlu0 %v12268_v26, %s12134_s30  ;;  %2785 = vrot.lane.b32.xlu1 %v12276_v28, %s12134_s30  ;;  %v462_v52 = vand.u32 %v12398_v42, %v406_v46  ;;  %v944_v41 = vand.u32 %v12398_v42, %v12299_v34 }
  0xa7   : > { %v941_v46 = vand.u32 %v12398_v42, %v12291_v32 }
  0xa8   : > { %v384_v47 = vpop.permute.xlu0 %383  ;;  %11714 = vmatmul.mubr.msk.bf16.vlgmr.msra.gmra.mrb[8].mxu1 %vm411_vm3, %v12414_v51  ;;  %725 = vmatprep.subr.bf16.mxu0 %v459_v43 }
  0xa9   : > { %v407_v48 = vsel %vm391_vm2, %v382_v37, %v384_v47  ;;  %726 = vmatpush1.bf16.msra.mxu0 %v456_v45  ;;  %798 = vmatprep.mubr.bf16.mxu1 %v12131_v17  ;;  %v408_v54 = vsel %vm391_vm2, %v384_v47, %v386_v44  ;;  %v932_v37 = vand.u32 %v12398_v42, %v12276_v28  ;;  %v3964_v47 = vld [vmem:[%s12195_s26] sm:$0xff] }
  0xaa   : > { %v465_v49 = vand.u32 %v12398_v42, %v407_v48  ;;  %v390_v50 = vpop.permute.xlu1 %389  ;;  %2787 = vrot.lane.b32.xlu0 %v12279_v29, %s12134_s30  ;;  %2789 = vrot.lane.b32.xlu1 %v12288_v31, %s12134_s30  ;;  %v468_v62 = vand.u32 %v12398_v42, %v408_v54  ;;  %v3976_v54 = vcombine.high %v3964_v47, %v3964_v47 }
  0xab   : > { %v477_v53 = vand.u32 %v12398_v42, %v390_v50 }
  0xac   : > { %v388_v55 = vpop.permute.xlu0 %387  ;;  %11715 = vmatmul.mubr.msk.bf16.vlgmr.msra.gmra.mrb[12].mxu0 %vm411_vm3, %v12414_v51  ;;  %766 = vmatprep.subr.bf16.mxu1 %v465_v49 }
  0xad   : > { %v409_v56 = vsel %vm391_vm2, %v386_v44, %v388_v55  ;;  %v410_v57 = vsel %vm391_vm2, %v388_v55, %v390_v50  ;;  %767 = vmatpush1.bf16.msra.mxu1 %v462_v52  ;;  %839 = vmatprep.mubr.bf16.mxu0 %v12131_v17  ;;  %v12658_v50 = vrot.slane %v3964_v47, %v12190_v5 }
  0xae   : > { %v474_v59 = vand.u32 %v12398_v42, %v410_v57  ;;  %v471_v60 = vand.u32 %v12398_v42, %v409_v56  ;;  %848 = vmatprep.subr.bf16.mxu1 %v477_v53  ;;  %2791 = vrot.lane.b32.xlu0 %v12291_v32, %s12134_s30  ;;  %v12500_v61 = vpop.permute.xlu1 %1463  ;;  %v947_v52 = vand.u32 %v12398_v42, %v12302_v35 }
  0xaf   : > { %2793 = vrot.lane.b32.xlu1 %v12299_v34, %s12134_s30  ;;  %v12682_v57 = vcombine.high %v12658_v50, %v12658_v50 }
  0xb0   : > { %11716 = vmatmul.mubr.msk.bf16.vlgmr.msra.gmra.mrb[12].mxu1 %vm411_vm3, %v12414_v51  ;;  %807 = vmatprep.subr.bf16.mxu0 %v471_v60  ;;  %v12509_v0 = vpop.permute.xlu0 %1461  ;;  %v12695_v60 = vrot.slane %v3976_v54, %v12190_v5 }
  0xb1   : > { %808 = vmatpush1.bf16.msra.mxu0 %v468_v62  ;;  %849 = vmatpush1.bf16.msra.mxu1 %v474_v59  ;;  %v1501_v45 = vsel %vm1499_vm4, %v12509_v0, %v12500_v61 }
  0xb2   : > { %880 = vmatprep.mubr.bf16.mxu1 %v12131_v17  ;;  %952 = vmatprep.subr.bf16.mxu0 %v896_v58  ;;  %v12516_v4 = vpop.permute.xlu1 %1465  ;;  %v1526_v48 = vand.u32 %v1501_v45, %v12398_v42 }
  0xb3   : > { %993 = vmatprep.subr.bf16.mxu1 %v902_v63  ;;  %2795 = vrot.lane.b32.xlu0 %v12302_v35, %s12134_s30  ;;  %v1502_v62 = vsel %vm1499_vm4, %v12500_v61, %v12516_v4 }
  0xb4   : > { %11717 = vmatmul.mubr.msk.bf16.vlgmr.msra.gmra.mrb[16].mxu0 %vm411_vm3, %v12414_v51  ;;  %3411 = vrot.lane.b32.xlu1 %v12209_v11, %s12136_s9  ;;  %v12524_v6 = vpop.permute.xlu0 %1459 }
  0xb5   : > { %953 = vmatpush1.bf16.msra.mxu0 %v893_v1  ;;  %984 = vmatprep.mubr.bf16.mxu0 %v12131_v17  ;;  %v1500_v55 = vsel %vm1499_vm4, %v12524_v6, %v12509_v0  ;;  %v1529_v1 = vand.u32 %v1502_v62, %v12398_v42 }
  0xb6   : > { %1034 = vmatprep.subr.bf16.mxu0 %v908_v2  ;;  %v12531_v14 = vpop.permute.xlu1 %1469  ;;  %v1523_v59 = vand.u32 %v1500_v55, %v12398_v42  ;;  %v3965_v2 = vld [vmem:[%s12195_s26 + $0x8] sm:$0xff] }
  0xb7   : > { %3413 = vrot.lane.b32.xlu0 %v12216_v13, %s12136_s9  ;;  %v920_v13 = vand.u32 %v12398_v42, %v12253_v22 }
  0xb8   : > { %11718 = vmatmul.mubr.msk.bf16.vlgmr.msra.gmra.mrb[16].mxu1 %vm411_vm3, %v12414_v51  ;;  %2797 = vrot.lane.b32.xlu1 %v12310_v36, %s12134_s30  ;;  %v12539_v11 = vpop.permute.xlu0 %1467 }
  0xb9   : > { %994 = vmatpush1.bf16.msra.mxu1 %v899_v7  ;;  %1025 = vmatprep.mubr.bf16.mxu1 %v12131_v17  ;;  %v12728_v7 = vcombine.high %v12695_v60, %v12695_v60 }
  0xba   : > { %1075 = vmatprep.subr.bf16.mxu1 %v914_v10  ;;  %v12551_v51 = vpop.permute.xlu1 %1473  ;;  %v12733_v10 = vld [vmem:[%s16309_s1 + $0x8] sm:$0xf] }
  0xbb   : > { %3409 = vrot.lane.b32.xlu0 %v12200_v8, %s12136_s9 }
  0xbc   : > { %11719 = vmatmul.mubr.msk.bf16.vlgmr.msra.gmra.mrb[20].mxu0 %vm411_vm3, %v12544_v18  ;;  %3415 = vrot.lane.b32.xlu1 %v12224_v15, %s12136_s9  ;;  %v12559_v24 = vpop.permute.xlu0 %1471  ;;  %v917_v15 = vand.u32 %v12398_v42, %v12245_v20 }
  0xbd   : > { %1035 = vmatpush1.bf16.msra.mxu0 %v905_v21  ;;  %1066 = vmatprep.mubr.bf16.mxu0 %v12131_v17 }
  0xbe   : > { %1116 = vmatprep.subr.bf16.mxu0 %v920_v13  ;;  %v12566_v33 = vpop.permute.xlu1 %1477 }
  0xbf   : > { %3417 = vrot.lane.b32.xlu0 %v12203_v9, %s12136_s9 }
  0xc0   : > { %11720 = vmatmul.mubr.msk.bf16.vlgmr.msra.gmra.mrb[20].mxu1 %vm411_vm3, %v12544_v18  ;;  %3419 = vrot.lane.b32.xlu1 %v12213_v12, %s12136_s9  ;;  %v12574_v8 = vpop.permute.xlu0 %1475  ;;  %v923_v12 = vand.u32 %v12398_v42, %v12256_v23 }
  0xc1   : > { %1076 = vmatpush1.bf16.msra.mxu1 %v911_v27  ;;  %1107 = vmatprep.mubr.bf16.mxu1 %v12131_v17  ;;  %v1506_v27 = vsel %vm1499_vm4, %v12559_v24, %v12551_v51 }
  0xc2   : > { %1157 = vmatprep.subr.bf16.mxu1 %v926_v30  ;;  %v12581_v38 = vpop.permute.xlu1 %1481 }
  0xc3   : > { %3421 = vrot.lane.b32.xlu0 %v12227_v16, %s12136_s9 }
  0xc4   : > { %11721 = vmatmul.mubr.msk.bf16.vlgmr.msra.gmra.mrb[24].mxu0 %vm411_vm3, %v12544_v18  ;;  %3423 = vrot.lane.b32.xlu1 %v12242_v19, %s12136_s9  ;;  %v12589_v9 = vpop.permute.xlu0 %1479  ;;  %v929_v19 = vand.u32 %v12398_v42, %v12268_v26 }
  0xc5   : > { %1117 = vmatpush1.bf16.msra.mxu0 %v917_v15  ;;  %1148 = vmatprep.mubr.bf16.mxu0 %v12131_v17  ;;  %v1509_v61 = vsel %vm1499_vm4, %v12566_v33, %v12589_v9 }
  0xc6   : > { %1198 = vmatprep.subr.bf16.mxu0 %v932_v37  ;;  %v12596_v40 = vpop.permute.xlu1 %1485 }
  0xc7   : > { %3425 = vrot.lane.b32.xlu0 %v12245_v20, %s12136_s9 }
  0xc8   : > { %11722 = vmatmul.mubr.msk.bf16.vlgmr.msra.gmra.mrb[24].mxu1 %vm411_vm3, %v12544_v18  ;;  %3427 = vrot.lane.b32.xlu1 %v12253_v22, %s12136_s9  ;;  %v12604_v16 = vpop.permute.xlu0 %1483  ;;  %v935_v22 = vand.u32 %v12398_v42, %v12279_v29 }
  0xc9   : > { %1158 = vmatpush1.bf16.msra.mxu1 %v923_v12  ;;  %1189 = vmatprep.mubr.bf16.mxu1 %v12131_v17  ;;  %v1511_v13 = vsel %vm1499_vm4, %v12581_v38, %v12604_v16 }
  0xca   : > { %1239 = vmatprep.subr.bf16.mxu1 %v938_v39  ;;  %v12611_v43 = vpop.permute.xlu1 %1489  ;;  %v1556_v37 = vand.u32 %v1511_v13, %v12398_v42 }
  0xcb   : > { %3429 = vrot.lane.b32.xlu0 %v12256_v23, %s12136_s9  ;;  %v950_v23 = vand.u32 %v12398_v42, %v12310_v36 }
  0xcc   : > { %11723 = vmatmul.mubr.msk.bf16.vlgmr.msra.gmra.mrb[28].mxu0 %vm411_vm3, %v12544_v18  ;;  %3431 = vrot.lane.b32.xlu1 %v12265_v25, %s12136_s9  ;;  %v12619_v20 = vpop.permute.xlu0 %1487 }
  0xcd   : > { %1199 = vmatpush1.bf16.msra.mxu0 %v929_v19  ;;  %1230 = vmatprep.mubr.bf16.mxu0 %v12131_v17  ;;  %v1513_v39 = vsel %vm1499_vm4, %v12596_v40, %v12619_v20  ;;  %v3966_v19 = vld [vmem:[%s12195_s26 + $0x10] sm:$0xff] }
  0xce   : > { %1280 = vmatprep.subr.bf16.mxu0 %v944_v41  ;;  %v12626_v44 = vpop.permute.xlu1 %1493  ;;  %v1508_v41 = vsel %vm1499_vm4, %v12574_v8, %v12566_v33  ;;  %v1562_v45 = vand.u32 %v1513_v39, %v12398_v42  ;;  %v12793_v33 = vrot.slane %v3966_v19, %v12190_v5 }
  0xcf   : > { %3433 = vrot.lane.b32.xlu0 %v12268_v26, %s12136_s9  ;;  %v1503_v26 = vsel %vm1499_vm4, %v12516_v4, %v12539_v11  ;;  %v1504_v4 = vsel %vm1499_vm4, %v12539_v11, %v12531_v14  ;;  %v1547_v47 = vand.u32 %v1508_v41, %v12398_v42 }
  0xd0   : > { %11724 = vmatmul.mubr.msk.bf16.vlgmr.msra.gmra.mrb[28].mxu1 %vm411_vm3, %v12544_v18  ;;  %3435 = vrot.lane.b32.xlu1 %v12276_v28, %s12136_s9  ;;  %v12637_v25 = vpop.permute.xlu0 %1491  ;;  %v1535_v21 = vand.u32 %v1504_v4, %v12398_v42 }
  0xd1   : > { %1240 = vmatpush1.bf16.msra.mxu1 %v935_v22  ;;  %1271 = vmatprep.mubr.bf16.mxu1 %v12131_v17 }
  0xd2   : > { %1321 = vmatprep.subr.bf16.mxu1 %v950_v23  ;;  %v12644_v49 = vpop.permute.xlu1 %2111 }
  0xd3   : > { %3437 = vrot.lane.b32.xlu0 %v12279_v29, %s12136_s9  ;;  %v1532_v29 = vand.u32 %v1503_v26, %v12398_v42  ;;  %v1510_v26 = vsel %vm1499_vm4, %v12589_v9, %v12581_v38 }
  0xd4   : > { %11725 = vmatmul.mubr.msk.bf16.vlgmr.msra.gmra.mrb[32].mxu0 %vm411_vm3, %v12544_v18  ;;  %3439 = vrot.lane.b32.xlu1 %v12288_v31, %s12136_s9  ;;  %v12655_v28 = vpop.permute.xlu0 %1495  ;;  %v1505_v31 = vsel %vm1499_vm4, %v12531_v14, %v12559_v24  ;;  %v1550_v14 = vand.u32 %v1509_v61, %v12398_v42  ;;  %v1541_v24 = vand.u32 %v1506_v27, %v12398_v42  ;;  %v3968_v27 = vld [vmem:[%s12195_s26 + $0x20] sm:$0xff] }
  0xd5   : > { %1281 = vmatpush1.bf16.msra.mxu0 %v941_v46  ;;  %1312 = vmatprep.mubr.bf16.mxu0 %v12131_v17  ;;  %v1553_v9 = vand.u32 %v1510_v26, %v12398_v42  ;;  %v1517_v55 = vsel %vm1499_vm4, %v12626_v44, %v12655_v28 }
  0xd6   : > { %1582 = vmatprep.subr.bf16.mxu0 %v1526_v48  ;;  %v12664_v53 = vpop.permute.xlu1 %1497  ;;  %v1515_v48 = vsel %vm1499_vm4, %v12611_v43, %v12637_v25 }
  0xd7   : > { %3441 = vrot.lane.b32.xlu0 %v12291_v32, %s12136_s9  ;;  %v1538_v32 = vand.u32 %v1505_v31, %v12398_v42  ;;  %v1568_v31 = vand.u32 %v1515_v48, %v12398_v42 }
  0xd8   : > { %11726 = vmatmul.mubr.msk.bf16.vlgmr.msra.gmra.mrb[32].mxu1 %vm411_vm3, %v12544_v18  ;;  %3443 = vrot.lane.b32.xlu1 %v12299_v34, %s12136_s9  ;;  %v12678_v56 = vpop.permute.xlu0 %2113  ;;  %v1507_v34 = vsel %vm1499_vm4, %v12551_v51, %v12574_v8  ;;  %v4010_v8 = vcombine.high %v3966_v19, %v3966_v19 }
  0xd9   : > { %1322 = vmatpush1.bf16.msra.mxu1 %v947_v52  ;;  %1353 = vmatprep.mubr.bf16.mxu1 %v12131_v17  ;;  %v2151_v13 = vsel %vm2149_vm5, %v12644_v49, %v12678_v56 }
  0xda   : > { %1623 = vmatprep.subr.bf16.mxu1 %v1532_v29  ;;  %v12686_v58 = vpop.permute.xlu1 %2115  ;;  %v12812_v29 = vcombine.high %v12793_v33, %v12793_v33  ;;  %v12819_v38 = vrot.slane %v4010_v8, %v12190_v5  ;;  %v2176_v19 = vand.u32 %v2151_v13, %v12398_v42 }
  0xdb   : > { %3445 = vrot.lane.b32.xlu0 %v12302_v35, %s12136_s9  ;;  %v1544_v35 = vand.u32 %v1507_v34, %v12398_v42 }
  0xdc   : > { %11727 = vmatmul.mubr.msk.bf16.vlgmr.msra.gmra.mrb[36].mxu0 %vm411_vm3, %v12544_v18  ;;  %4070 = vrot.lane.b32.xlu1 %v12682_v57, %s12137_s12  ;;  %v12704_v63 = vpop.permute.xlu0 %2109  ;;  %v12839_v62 = vcombine.high %v12819_v38, %v12819_v38 }
  0xdd   : > { %1583 = vmatpush1.bf16.msra.mxu0 %v1523_v59  ;;  %1614 = vmatprep.mubr.bf16.mxu0 %v12131_v17  ;;  %v1512_v59 = vsel %vm1499_vm4, %v12604_v16, %v12596_v40 }
  0xde   : > { %1664 = vmatprep.subr.bf16.mxu0 %v1538_v32  ;;  %v12708_v0 = vpop.permute.xlu1 %2119  ;;  %v3967_v32 = vld [vmem:[%s12195_s26 + $0x18] sm:$0xff]  ;;  %v1559_v61 = vand.u32 %v1512_v59, %v12398_v42 }
  0xdf   : > { %4072 = vrot.lane.b32.xlu0 %v12695_v60, %s12137_s12  ;;  %v12846_v40 = vrot.slane %v3967_v32, %v12190_v5  ;;  %v4027_v16 = vcombine.high %v3967_v32, %v3967_v32  ;;  %v2150_v32 = vsel %vm2149_vm5, %v12704_v63, %v12644_v49 }
  0xe0   : > { %11728 = vmatmul.mubr.msk.bf16.vlgmr.msra.gmra.mrb[36].mxu1 %vm411_vm3, %v12544_v18  ;;  %3447 = vrot.lane.b32.xlu1 %v12310_v36, %s12136_s9  ;;  %v12724_v6 = vpop.permute.xlu0 %2117  ;;  %v12740_v36 = vrot.slane %v3965_v2, %v12190_v5  ;;  %v3993_v18 = vcombine.high %v3965_v2, %v3965_v2  ;;  %v1514_v2 = vsel %vm1499_vm4, %v12619_v20, %v12611_v43 }
  0xe1   : > { %1624 = vmatpush1.bf16.msra.mxu1 %v1529_v1  ;;  %1655 = vmatprep.mubr.bf16.mxu1 %v12131_v17  ;;  %v12870_v20 = vrot.slane %v4027_v16, %v12190_v5  ;;  %v2153_v8 = vsel %vm2149_vm5, %v12686_v58, %v12724_v6  ;;  %v2173_v63 = vand.u32 %v2150_v32, %v12398_v42 }
  0xe2   : > { %1705 = vmatprep.subr.bf16.mxu1 %v1544_v35  ;;  %v12737_v11 = vpop.permute.xlu1 %2123  ;;  %v12759_v15 = vcombine.high %v12740_v36, %v12740_v36  ;;  %v12766_v51 = vrot.slane %v3993_v18, %v12190_v5  ;;  %v1574_v35 = vand.u32 %v1517_v55, %v12398_v42  ;;  %v1580_v18 = vand.u32 %v12664_v53, %v12398_v42 }
  0xe3   : > { %4068 = vrot.lane.b32.xlu0 %v12658_v50, %s12137_s12  ;;  %v12890_v39 = vcombine.high %v12870_v20, %v12870_v20 }
  0xe4   : > { %11730 = vmatmul.mubr.msk.bf16.vlgmr.msra.gmra.mrb[40].mxu0 %vm411_vm3, %v12733_v10  ;;  %4074 = vrot.lane.b32.xlu1 %v12728_v7, %s12137_s12  ;;  %v12755_v30 = vpop.permute.xlu0 %2121  ;;  %v12786_v23 = vcombine.high %v12766_v51, %v12766_v51 }
  0xe5   : > { %1665 = vmatpush1.bf16.msra.mxu0 %v1535_v21  ;;  %1696 = vmatprep.mubr.bf16.mxu0 %v12131_v17  ;;  %v1565_v21 = vand.u32 %v1514_v2, %v12398_v42  ;;  %v2155_v55 = vsel %vm2149_vm5, %v12708_v0, %v12755_v30 }
  0xe6   : > { %1746 = vmatprep.subr.bf16.mxu0 %v1550_v14  ;;  %v12763_v12 = vpop.permute.xlu1 %2127  ;;  %v12862_v14 = vcombine.high %v12846_v40, %v12846_v40 }
  0xe7   : > { %4076 = vrot.lane.b32.xlu0 %v12740_v36, %s12137_s12 }
  0xe8   : > { %11731 = vmatmul.mubr.msk.bf16.vlgmr.msra.gmra.mrb[40].mxu1 %vm411_vm3, %v12733_v10  ;;  %v12780_v22 = vpop.permute.xlu0 %2125  ;;  %4078 = vrot.lane.b32.xlu1 %v12759_v15, %s12137_s12 }
  0xe9   : > { %1706 = vmatpush1.bf16.msra.mxu1 %v1541_v24  ;;  %1737 = vmatprep.mubr.bf16.mxu1 %v12131_v17  ;;  %v2157_v16 = vsel %vm2149_vm5, %v12737_v11, %v12780_v22 }
  0xea   : > { %1787 = vmatprep.subr.bf16.mxu1 %v1556_v37  ;;  %v12790_v46 = vpop.permute.xlu1 %2131  ;;  %v1516_v37 = vsel %vm1499_vm4, %v12637_v25, %v12626_v44  ;;  %v12897_v44 = vrot.slane %v3968_v27, %v12190_v5  ;;  %v4044_v25 = vcombine.high %v3968_v27, %v3968_v27 }
  0xeb   : > { %4080 = vrot.lane.b32.xlu0 %v12766_v51, %s12137_s12 }
  0xec   : > { %11732 = vmatmul.mubr.msk.bf16.vlgmr.msra.gmra.mrb[44].mxu0 %vm411_vm3, %v12733_v10  ;;  %v12806_v52 = vpop.permute.xlu0 %2129  ;;  %4082 = vrot.lane.b32.xlu1 %v12786_v23, %s12137_s12  ;;  %v12916_v26 = vcombine.high %v12897_v44, %v12897_v44 }
  0xed   : > { %1747 = vmatpush1.bf16.msra.mxu0 %v1547_v47  ;;  %1778 = vmatprep.mubr.bf16.mxu0 %v12131_v17  ;;  %v1518_v47 = vsel %vm1499_vm4, %v12655_v28, %v12664_v53  ;;  %v12923_v28 = vrot.slane %v4044_v25, %v12190_v5  ;;  %v2156_v25 = vsel %vm2149_vm5, %v12755_v30, %v12737_v11 }
  0xee   : > { %1828 = vmatprep.subr.bf16.mxu0 %v1562_v45  ;;  %v12816_v54 = vpop.permute.xlu1 %2135  ;;  %v1571_v45 = vand.u32 %v1516_v37, %v12398_v42  ;;  %v1577_v53 = vand.u32 %v1518_v47, %v12398_v42  ;;  %v2158_v30 = vsel %vm2149_vm5, %v12780_v22, %v12763_v12 }
  0xef   : > { %4084 = vrot.lane.b32.xlu0 %v12793_v33, %s12137_s12  ;;  %v12942_v5 = vcombine.high %v12923_v28, %v12923_v28 }
  0xf0   : > { %11733 = vmatmul.mubr.msk.bf16.vlgmr.msra.gmra.mrb[44].mxu1 %vm411_vm3, %v12733_v10  ;;  %v12833_v34 = vpop.permute.xlu0 %2133  ;;  %4086 = vrot.lane.b32.xlu1 %v12812_v29, %s12137_s12 }
  0xf1   : > { %1788 = vmatpush1.bf16.msra.mxu1 %v1553_v9  ;;  %1819 = vmatprep.mubr.bf16.mxu1 %v12131_v17 }
  0xf2   : > { %1869 = vmatprep.subr.bf16.mxu1 %v1568_v31  ;;  %v12843_v1 = vpop.permute.xlu1 %2139  ;;  %v2182_v31 = vand.u32 %v2153_v8, %v12398_v42 }
  0xf3   : > { %4088 = vrot.lane.b32.xlu0 %v12819_v38, %s12137_s12 }
  0xf4   : > { %11734 = vmatmul.mubr.msk.bf16.vlgmr.msra.gmra.mrb[48].mxu0 %vm411_vm3, %v12733_v10  ;;  %v12856_v4 = vpop.permute.xlu0 %2137  ;;  %4090 = vrot.lane.b32.xlu1 %v12839_v62, %s12137_s12 }
  0xf5   : > { %1829 = vmatpush1.bf16.msra.mxu0 %v1559_v61  ;;  %1860 = vmatprep.mubr.bf16.mxu0 %v12131_v17  ;;  %v2152_v61 = vsel %vm2149_vm5, %v12678_v56, %v12686_v58  ;;  %v2159_v56 = vsel %vm2149_vm5, %v12763_v12, %v12806_v52  ;;  %v2154_v58 = vsel %vm2149_vm5, %v12724_v6, %v12708_v0 }
  0xf6   : > { %1910 = vmatprep.subr.bf16.mxu0 %v1574_v35  ;;  %v12867_v43 = vpop.permute.xlu1 %2143  ;;  %v2188_v35 = vand.u32 %v2155_v55, %v12398_v42  ;;  %v2179_v13 = vand.u32 %v2152_v61, %v12398_v42  ;;  %v2200_v0 = vand.u32 %v2159_v56, %v12398_v42  ;;  %v2185_v6 = vand.u32 %v2154_v58, %v12398_v42  ;;  %v13028_v55 = vld [vmem:[#allocation2] sm:$0xff] }
  0xf7   : > { %4092 = vrot.lane.b32.xlu0 %v12846_v40, %s12137_s12  ;;  %v2163_v11 = vsel %vm2149_vm5, %v12816_v54, %v12856_v4  ;;  %v2197_v12 = vand.u32 %v2158_v30, %v12398_v42 }
  0xf8   : > { %11735 = vmatmul.mubr.msk.bf16.vlgmr.msra.gmra.mrb[48].mxu1 %vm411_vm3, %v12733_v10  ;;  %v12884_v24 = vpop.permute.xlu0 %2141  ;;  %4094 = vrot.lane.b32.xlu1 %v12862_v14, %s12137_s12  ;;  %v2212_v32 = vand.u32 %v2163_v11, %v12398_v42 }
  0xf9   : > { %1870 = vmatpush1.bf16.msra.mxu1 %v1565_v21  ;;  %1901 = vmatprep.mubr.bf16.mxu1 %v12131_v17  ;;  %v2194_v21 = vand.u32 %v2157_v16, %v12398_v42  ;;  %v2165_v22 = vsel %vm2149_vm5, %v12843_v1, %v12884_v24 }
  0xfa   : > { %1951 = vmatprep.subr.bf16.mxu1 %v1580_v18  ;;  %v12894_v41 = vpop.permute.xlu1 %2761  ;;  %v12962_v18 = vld.sshfl [vmem:[%s12195_s26 + $0x28] sm:$0x3 pattern:$0x76325410]  ;;  %v2218_v61 = vand.u32 %v2165_v22, %v12398_v42 }
  0xfb   : > { %4096 = vrot.lane.b32.xlu0 %v12870_v20, %s12137_s12 }
  0xfc   : > { %11736 = vmatmul.mubr.msk.bf16.vlgmr.msra.gmra.mrb[52].mxu0 %vm411_vm3, %v12733_v10  ;;  %v12910_v48 = vpop.permute.xlu0 %2145  ;;  %4098 = vrot.lane.b32.xlu1 %v12890_v39, %s12137_s12 }
  0xfd   : > { %1911 = vmatpush1.bf16.msra.mxu0 %v1571_v45  ;;  %1942 = vmatprep.mubr.bf16.mxu0 %v12131_v17 }
  0xfe   : > { %2232 = vmatprep.subr.bf16.mxu0 %v2176_v19  ;;  %v12920_v9 = vpop.permute.xlu1 %2147  ;;  %v12988_v19 = vld [vmem:[%s16309_s1 + $0xc] sm:$0xf] }
  0xff   : > { %4100 = vrot.lane.b32.xlu0 %v12897_v44, %s12137_s12 }
 0x100   : > { %11737 = vmatmul.mubr.msk.bf16.vlgmr.msra.gmra.mrb[52].mxu1 %vm411_vm3, %v12733_v10  ;;  %v12936_v59 = vpop.permute.xlu0 %2763  ;;  %4102 = vrot.lane.b32.xlu1 %v12916_v26, %s12137_s12 }
 0x101   : > { %1952 = vmatpush1.bf16.msra.mxu1 %v1577_v53  ;;  %1983 = vmatprep.mubr.bf16.mxu1 %v12131_v17 }
 0x102   : > { %2273 = vmatprep.subr.bf16.mxu1 %v2182_v31  ;;  %v12946_v49 = vpop.permute.xlu1 %2765  ;;  %v2191_v31 = vand.u32 %v2156_v25, %v12398_v42  ;;  %v2166_v25 = vsel %vm2149_vm5, %v12884_v24, %v12867_v43  ;;  %v2168_v24 = vsel %vm2149_vm5, %v12910_v48, %v12920_v9 }
 0x103   : > { %4104 = vrot.lane.b32.xlu0 %v12923_v28, %s12137_s12  ;;  %v2221_v30 = vand.u32 %v2166_v25, %v12398_v42 }
 0x104   : > { %11738 = vmatmul.mubr.msk.bf16.vlgmr.msra.gmra.mrb[56].mxu0 %vm411_vm3, %v12733_v10  ;;  %v12959_v2 = vpop.permute.xlu0 %2759  ;;  %4106 = vrot.lane.b32.xlu1 %v12942_v5, %s12137_s12 }
 0x105   : > { %2233 = vmatpush1.bf16.msra.mxu0 %v2173_v63  ;;  %2264 = vmatprep.mubr.bf16.mxu0 %v12131_v17 }
 0x106   : > { %2314 = vmatprep.subr.bf16.mxu0 %v2188_v35  ;;  %v2160_v35 = vsel %vm2149_vm5, %v12806_v52, %v12790_v46  ;;  %v2162_v52 = vsel %vm2149_vm5, %v12833_v34, %v12816_v54  ;;  %v2164_v54 = vsel %vm2149_vm5, %v12856_v4, %v12843_v1  ;;  %v2801_v4 = vsel %vm2799_vm6, %v12894_v41, %v12936_v59 }
 0x107   : > { %4108 = vrot.lane.b32.xlu0 %v12962_v18, %s12137_s12  ;;  %v2215_v1 = vand.u32 %v2164_v54, %v12398_v42  ;;  %v2826_v11 = vand.u32 %v2801_v4, %v12398_v42 }
 0x108   : > { %11739 = vmatmul.mubr.msk.bf16.vlgmr.msra.gmra.mrb[56].mxu1 %vm411_vm3, %v12733_v10  ;;  %v12979_v27 = vpop.permute.xlu0 %2767  ;;  %v12981_v37 = vpop.permute.xlu1 %2769  ;;  %4732 = vrot.lane.b32.xlu1 %v12682_v57, %s12138_s15  ;;  %v2161_v10 = vsel %vm2149_vm5, %v12790_v46, %v12833_v34  ;;  %v2167_v46 = vsel %vm2149_vm5, %v12867_v43, %v12910_v48 }
 0x109   : > { %2274 = vmatpush1.bf16.msra.mxu1 %v2179_v13  ;;  %2305 = vmatprep.mubr.bf16.mxu1 %v12131_v17  ;;  %v2206_v47 = vand.u32 %v2161_v10, %v12398_v42  ;;  %v2224_v58 = vand.u32 %v2167_v46, %v12398_v42  ;;  %v2230_v10 = vand.u32 %v12920_v9, %v12398_v42 }
 0x10a   : > { %2355 = vmatprep.subr.bf16.mxu1 %v2194_v21  ;;  %v2203_v21 = vand.u32 %v2160_v35, %v12398_v42  ;;  %v2803_v43 = vsel %vm2799_vm6, %v12946_v49, %v12979_v27  ;;  %v2227_v35 = vand.u32 %v2168_v24, %v12398_v42  ;;  %v2800_v9 = vsel %vm2799_vm6, %v12959_v2, %v12894_v41 }
 0x10b   : > { %4734 = vrot.lane.b32.xlu0 %v12695_v60, %s12138_s15  ;;  %v2802_v2 = vsel %vm2799_vm6, %v12936_v59, %v12946_v49  ;;  %v2804_v49 = vsel %vm2799_vm6, %v12979_v27, %v12981_v37 }
 0x10c   : > { %11741 = vmatmul.mubr.msk.bf16.vlgmr.msra.gmra.mrb[60].mxu0 %vm411_vm3, %v12988_v19  ;;  %v13003_v45 = vpop.permute.xlu0 %2771  ;;  %v13005_v8 = vpop.permute.xlu1 %2773  ;;  %4730 = vrot.lane.b32.xlu1 %v12658_v50, %s12138_s15 }
 0x10d   : > { %2315 = vmatpush1.bf16.msra.mxu0 %v2185_v6  ;;  %2346 = vmatprep.mubr.bf16.mxu0 %v12131_v17  ;;  %v2805_v48 = vsel %vm2799_vm6, %v12981_v37, %v13003_v45  ;;  %v2835_v37 = vand.u32 %v2804_v49, %v12398_v42 }
 0x10e   : > { %2396 = vmatprep.subr.bf16.mxu0 %v2200_v0  ;;  %v2209_v0 = vand.u32 %v2162_v52, %v12398_v42  ;;  %v2823_v52 = vand.u32 %v2800_v9, %v12398_v42 }
 0x10f   : > { %4736 = vrot.lane.b32.xlu0 %v12728_v7, %s12138_s15 }
 0x110   : > { %11742 = vmatmul.mubr.msk.bf16.vlgmr.msra.gmra.mrb[60].mxu1 %vm411_vm3, %v12988_v19  ;;  %v13022_v17 = vpop.permute.xlu0 %2775  ;;  %v13024_v53 = vpop.permute.xlu1 %2777  ;;  %4738 = vrot.lane.b32.xlu1 %v12740_v36, %s12138_s15 }
 0x111   : > { %2356 = vmatpush1.bf16.msra.mxu1 %v2191_v31  ;;  %2387 = vmatprep.mubr.bf16.mxu1 %v13028_v55  ;;  %v2807_v41 = vsel %vm2799_vm6, %v13005_v8, %v13022_v17 }
 0x112   : > { %2437 = vmatprep.subr.bf16.mxu1 %v2206_v47 }
 0x113   : > { %4740 = vrot.lane.b32.xlu0 %v12759_v15, %s12138_s15 }
 0x114   : > { %11743 = vmatmul.mubr.msk.bf16.vlgmr.msra.gmra.mrb[64].mxu0 %vm411_vm3, %v12988_v19  ;;  %v13043_v63 = vpop.permute.xlu0 %2779  ;;  %v13045_v16 = vpop.permute.xlu1 %2781  ;;  %4742 = vrot.lane.b32.xlu1 %v12766_v51, %s12138_s15 }
 0x115   : > { %2397 = vmatpush1.bf16.msra.mxu0 %v2197_v12  ;;  %2428 = vmatprep.mubr.bf16.mxu0 %v13028_v55  ;;  %v2832_v12 = vand.u32 %v2803_v43, %v12398_v42  ;;  %v2809_v59 = vsel %vm2799_vm6, %v13024_v53, %v13043_v63 }
 0x116   : > { %2478 = vmatprep.subr.bf16.mxu0 %v2212_v32  ;;  %v2850_v25 = vand.u32 %v2809_v59, %v12398_v42 }
 0x117   : > { %4744 = vrot.lane.b32.xlu0 %v12786_v23, %s12138_s15 }
 0x118   : > { %11744 = vmatmul.mubr.msk.bf16.vlgmr.msra.gmra.mrb[64].mxu1 %vm411_vm3, %v12988_v19  ;;  %v13062_v13 = vpop.permute.xlu0 %2783  ;;  %v13064_v56 = vpop.permute.xlu1 %2785  ;;  %4746 = vrot.lane.b32.xlu1 %v12793_v33, %s12138_s15 }
 0x119   : > { %2438 = vmatpush1.bf16.msra.mxu1 %v2203_v21  ;;  %2469 = vmatprep.mubr.bf16.mxu1 %v13028_v55  ;;  %v2838_v21 = vand.u32 %v2805_v48, %v12398_v42 }
 0x11a   : > { %2519 = vmatprep.subr.bf16.mxu1 %v2218_v61 }
 0x11b   : > { %4748 = vrot.lane.b32.xlu0 %v12812_v29, %s12138_s15 }
 0x11c   : > { %11745 = vmatmul.mubr.msk.bf16.vlgmr.msra.gmra.mrb[68].mxu0 %vm411_vm3, %v12988_v19  ;;  %v13078_v34 = vpop.permute.xlu0 %2787  ;;  %v13080_v6 = vpop.permute.xlu1 %2789  ;;  %4750 = vrot.lane.b32.xlu1 %v12819_v38, %s12138_s15 }
 0x11d   : > { %2479 = vmatpush1.bf16.msra.mxu0 %v2209_v0  ;;  %2510 = vmatprep.mubr.bf16.mxu0 %v13028_v55  ;;  %v2844_v0 = vand.u32 %v2807_v41, %v12398_v42 }
 0x11e   : > { %2560 = vmatprep.subr.bf16.mxu0 %v2224_v58 }
 0x11f   : > { %4752 = vrot.lane.b32.xlu0 %v12839_v62, %s12138_s15 }
 0x120   : > { %11746 = vmatmul.mubr.msk.bf16.vlgmr.msra.gmra.mrb[68].mxu1 %vm411_vm3, %v12988_v19  ;;  %v13098_v47 = vpop.permute.xlu0 %2791  ;;  %4754 = vrot.lane.b32.xlu1 %v12846_v40, %s12138_s15 }
 0x121   : > { %2520 = vmatpush1.bf16.msra.mxu1 %v2215_v1  ;;  %2551 = vmatprep.mubr.bf16.mxu1 %v13028_v55  ;;  %v13103_v31 = vpop.permute.xlu1 %2793  ;;  %v13179_v1 = vld [vmem:[%s16309_s1 + $0x10] sm:$0xf] }
 0x122   : > { %2601 = vmatprep.subr.bf16.mxu1 %v2230_v10  ;;  %v2829_v10 = vand.u32 %v2802_v2, %v12398_v42 }
 0x123   : > { %4756 = vrot.lane.b32.xlu0 %v12862_v14, %s12138_s15 }
 0x124   : > { %11747 = vmatmul.mubr.msk.bf16.vlgmr.msra.gmra.mrb[72].mxu0 %vm411_vm3, %v12988_v19  ;;  %4758 = vrot.lane.b32.xlu1 %v12870_v20, %s12138_s15 }
 0x125   : > { %2561 = vmatpush1.bf16.msra.mxu0 %v2221_v30  ;;  %2592 = vmatprep.mubr.bf16.mxu0 %v13028_v55  ;;  %v13120_v32 = vpop.permute.xlu0 %2795 }
 0x126   : > { %2882 = vmatprep.subr.bf16.mxu0 %v2826_v11  ;;  %v13123_v22 = vpop.permute.xlu1 %3411  ;;  %v2806_v11 = vsel %vm2799_vm6, %v13003_v45, %v13005_v8  ;;  %v2813_v45 = vsel %vm2799_vm6, %v13064_v56, %v13078_v34 }
 0x127   : > { %4760 = vrot.lane.b32.xlu0 %v12890_v39, %s12138_s15 }
 0x128   : > { %11748 = vmatmul.mubr.msk.bf16.vlgmr.msra.gmra.mrb[72].mxu1 %vm411_vm3, %v12988_v19  ;;  %4762 = vrot.lane.b32.xlu1 %v12897_v44, %s12138_s15 }
 0x129   : > { %2602 = vmatpush1.bf16.msra.mxu1 %v2227_v35  ;;  %2633 = vmatprep.mubr.bf16.mxu1 %v13028_v55  ;;  %v13139_v61 = vpop.permute.xlu0 %3413 }
 0x12a   : > { %2923 = vmatprep.subr.bf16.mxu1 %v2832_v12  ;;  %v13142_v46 = vpop.permute.xlu1 %2797  ;;  %v2862_v12 = vand.u32 %v2813_v45, %v12398_v42 }
 0x12b   : > { %4764 = vrot.lane.b32.xlu0 %v12916_v26, %s12138_s15 }
 0x12c   : > { %11749 = vmatmul.mubr.msk.bf16.vlgmr.msra.gmra.mrb[76].mxu0 %vm411_vm3, %v12988_v19  ;;  %4766 = vrot.lane.b32.xlu1 %v12923_v28, %s12138_s15 }
 0x12d   : > { %2883 = vmatpush1.bf16.msra.mxu0 %v2823_v52  ;;  %2914 = vmatprep.mubr.bf16.mxu0 %v13028_v55  ;;  %v13158_v58 = vpop.permute.xlu0 %3409 }
 0x12e   : > { %2964 = vmatprep.subr.bf16.mxu0 %v2838_v21  ;;  %v13161_v54 = vpop.permute.xlu1 %3415 }
 0x12f   : > { %4768 = vrot.lane.b32.xlu0 %v12942_v5, %s12138_s15 }
 0x130   : > { %11750 = vmatmul.mubr.msk.bf16.vlgmr.msra.gmra.mrb[76].mxu1 %vm411_vm3, %v12988_v19  ;;  %4770 = vrot.lane.b32.xlu1 %v12962_v18, %s12138_s15  ;;  %v2811_v19 = vsel %vm2799_vm6, %v13045_v16, %v13062_v13 }
 0x131   : > { %2924 = vmatpush1.bf16.msra.mxu1 %v2829_v10  ;;  %2955 = vmatprep.mubr.bf16.mxu1 %v13028_v55  ;;  %v13182_v4 = vpop.permute.xlu0 %3417  ;;  %v2856_v43 = vand.u32 %v2811_v19, %v12398_v42 }
 0x132   : > { %3005 = vmatprep.subr.bf16.mxu1 %v2844_v0  ;;  %v13185_v27 = vpop.permute.xlu1 %3419 }
 0x133   : > { %5394 = vrot.lane.b32.xlu0 %v12682_v57, %s12139_s20  ;;  %v2841_v57 = vand.u32 %v2806_v11, %v12398_v42 }
 0x134   : > { %11752 = vmatmul.mubr.msk.bf16.vlgmr.msra.gmra.mrb[80].mxu0 %vm411_vm3, %v13179_v1  ;;  %5396 = vrot.lane.b32.xlu1 %v12695_v60, %s12139_s20  ;;  %v2808_v60 = vsel %vm2799_vm6, %v13022_v17, %v13024_v53  ;;  %v2815_v17 = vsel %vm2799_vm6, %v13080_v6, %v13098_v47 }
 0x135   : > { %2965 = vmatpush1.bf16.msra.mxu0 %v2835_v37  ;;  %2996 = vmatprep.mubr.bf16.mxu0 %v13028_v55  ;;  %v13201_v30 = vpop.permute.xlu0 %3421  ;;  %v2868_v48 = vand.u32 %v2815_v17, %v12398_v42 }
 0x136   : > { %3046 = vmatprep.subr.bf16.mxu0 %v2850_v25  ;;  %v13204_v24 = vpop.permute.xlu1 %3423 }
 0x137   : > { %5392 = vrot.lane.b32.xlu0 %v12658_v50, %s12139_s20  ;;  %v2847_v50 = vand.u32 %v2808_v60, %v12398_v42 }
 0x138   : > { %11753 = vmatmul.mubr.msk.bf16.vlgmr.msra.gmra.mrb[80].mxu1 %vm411_vm3, %v13179_v1  ;;  %5398 = vrot.lane.b32.xlu1 %v12728_v7, %s12139_s20  ;;  %v2810_v7 = vsel %vm2799_vm6, %v13043_v63, %v13045_v16  ;;  %v2817_v63 = vsel %vm2799_vm6, %v13103_v31, %v13120_v32 }
 0x139   : > { %3006 = vmatpush1.bf16.msra.mxu1 %v2841_v57  ;;  %3037 = vmatprep.mubr.bf16.mxu1 %v13028_v55  ;;  %v13220_v8 = vpop.permute.xlu0 %3425  ;;  %v2874_v21 = vand.u32 %v2817_v63, %v12398_v42 }
 0x13a   : > { %3087 = vmatprep.subr.bf16.mxu1 %v2856_v43  ;;  %v13223_v35 = vpop.permute.xlu1 %3427 }
 0x13b   : > { %5400 = vrot.lane.b32.xlu0 %v12740_v36, %s12139_s20  ;;  %v2853_v36 = vand.u32 %v2810_v7, %v12398_v42 }
 0x13c   : > { %11754 = vmatmul.mubr.msk.bf16.vlgmr.msra.gmra.mrb[84].mxu0 %vm411_vm3, %v13179_v1  ;;  %5402 = vrot.lane.b32.xlu1 %v12759_v15, %s12139_s20  ;;  %v2812_v15 = vsel %vm2799_vm6, %v13062_v13, %v13064_v56  ;;  %v2814_v13 = vsel %vm2799_vm6, %v13078_v34, %v13080_v6  ;;  %v2880_v56 = vand.u32 %v13142_v46, %v12398_v42 }
 0x13d   : > { %3047 = vmatpush1.bf16.msra.mxu0 %v2847_v50  ;;  %3078 = vmatprep.mubr.bf16.mxu0 %v13028_v55  ;;  %v13239_v53 = vpop.permute.xlu0 %3429  ;;  %v2865_v34 = vand.u32 %v2814_v13, %v12398_v42  ;;  %v3451_v6 = vsel %vm3449_vm7, %v13123_v22, %v13139_v61 }
 0x13e   : > { %3128 = vmatprep.subr.bf16.mxu0 %v2862_v12  ;;  %v13242_v9 = vpop.permute.xlu1 %3431  ;;  %v3476_v2 = vand.u32 %v3451_v6, %v12398_v42 }
 0x13f   : > { %5404 = vrot.lane.b32.xlu0 %v12766_v51, %s12139_s20  ;;  %v2859_v51 = vand.u32 %v2812_v15, %v12398_v42 }
 0x140   : > { %11755 = vmatmul.mubr.msk.bf16.vlgmr.msra.gmra.mrb[84].mxu1 %vm411_vm3, %v13179_v1  ;;  %5406 = vrot.lane.b32.xlu1 %v12786_v23, %s12139_s20 }
 0x141   : > { %3088 = vmatpush1.bf16.msra.mxu1 %v2853_v36  ;;  %3119 = vmatprep.mubr.bf16.mxu1 %v13028_v55  ;;  %v13258_v16 = vpop.permute.xlu0 %3433 }
 0x142   : > { %3169 = vmatprep.subr.bf16.mxu1 %v2868_v48  ;;  %v13261_v52 = vpop.permute.xlu1 %3435 }
 0x143   : > { %5408 = vrot.lane.b32.xlu0 %v12793_v33, %s12139_s20 }
 0x144   : > { %11756 = vmatmul.mubr.msk.bf16.vlgmr.msra.gmra.mrb[88].mxu0 %vm411_vm3, %v13179_v1  ;;  %5410 = vrot.lane.b32.xlu1 %v12812_v29, %s12139_s20  ;;  %v2816_v29 = vsel %vm2799_vm6, %v13098_v47, %v13103_v31  ;;  %v3453_v47 = vsel %vm3449_vm7, %v13161_v54, %v13182_v4 }
 0x145   : > { %3129 = vmatpush1.bf16.msra.mxu0 %v2859_v51  ;;  %3160 = vmatprep.mubr.bf16.mxu0 %v13028_v55  ;;  %v13274_v23 = vpop.permute.xlu0 %3437  ;;  %v3482_v10 = vand.u32 %v3453_v47, %v12398_v42 }
 0x146   : > { %3210 = vmatprep.subr.bf16.mxu0 %v2874_v21  ;;  %v13278_v33 = vpop.permute.xlu1 %3439 }
 0x147   : > { %5412 = vrot.lane.b32.xlu0 %v12819_v38, %s12139_s20  ;;  %v2871_v38 = vand.u32 %v2816_v29, %v12398_v42 }
 0x148   : > { %11757 = vmatmul.mubr.msk.bf16.vlgmr.msra.gmra.mrb[88].mxu1 %vm411_vm3, %v13179_v1  ;;  %5414 = vrot.lane.b32.xlu1 %v12839_v62, %s12139_s20  ;;  %v2818_v62 = vsel %vm2799_vm6, %v13120_v32, %v13142_v46  ;;  %v3455_v32 = vsel %vm3449_vm7, %v13185_v27, %v13201_v30 }
 0x149   : > { %3170 = vmatpush1.bf16.msra.mxu1 %v2865_v34  ;;  %3201 = vmatprep.mubr.bf16.mxu1 %v13028_v55  ;;  %v13294_v41 = vpop.permute.xlu0 %3441  ;;  %v3488_v49 = vand.u32 %v3455_v32, %v12398_v42 }
 0x14a   : > { %3251 = vmatprep.subr.bf16.mxu1 %v2880_v56  ;;  %v13297_v0 = vpop.permute.xlu1 %3443  ;;  %v3465_v7 = vsel %vm3449_vm7, %v13278_v33, %v13294_v41 }
 0x14b   : > { %5416 = vrot.lane.b32.xlu0 %v12846_v40, %s12139_s20  ;;  %v2877_v40 = vand.u32 %v2818_v62, %v12398_v42  ;;  %v3518_v48 = vand.u32 %v3465_v7, %v12398_v42 }
 0x14c   : > { %11758 = vmatmul.mubr.msk.bf16.vlgmr.msra.gmra.mrb[92].mxu0 %vm411_vm3, %v13179_v1  ;;  %5418 = vrot.lane.b32.xlu1 %v12862_v14, %s12139_s20  ;;  %v3450_v14 = vsel %vm3449_vm7, %v13158_v58, %v13123_v22  ;;  %v3457_v22 = vsel %vm3449_vm7, %v13204_v24, %v13220_v8 }
 0x14d   : > { %3211 = vmatpush1.bf16.msra.mxu0 %v2871_v38  ;;  %3242 = vmatprep.mubr.bf16.mxu0 %v13028_v55  ;;  %v13313_v31 = vpop.permute.xlu0 %3445  ;;  %v3494_v37 = vand.u32 %v3457_v22, %v12398_v42 }
 0x14e   : > { %3532 = vmatprep.subr.bf16.mxu0 %v3476_v2  ;;  %v13316_v59 = vpop.permute.xlu1 %4070 }
 0x14f   : > { %5420 = vrot.lane.b32.xlu0 %v12870_v20, %s12139_s20  ;;  %v3473_v20 = vand.u32 %v3450_v14, %v12398_v42  ;;  %v3466_v14 = vsel %vm3449_vm7, %v13294_v41, %v13297_v0 }
 0x150   : > { %11759 = vmatmul.mubr.msk.bf16.vlgmr.msra.gmra.mrb[92].mxu1 %vm411_vm3, %v13179_v1  ;;  %5422 = vrot.lane.b32.xlu1 %v12890_v39, %s12139_s20  ;;  %v3452_v39 = vsel %vm3449_vm7, %v13139_v61, %v13161_v54  ;;  %v3459_v61 = vsel %vm3449_vm7, %v13223_v35, %v13239_v53  ;;  %v13372_v54 = vld [vmem:[%s16309_s1 + $0x14] sm:$0xf] }
 0x151   : > { %3252 = vmatpush1.bf16.msra.mxu1 %v2877_v40  ;;  %3283 = vmatprep.mubr.bf16.mxu1 %v13028_v55  ;;  %v13332_v46 = vpop.permute.xlu0 %4072 }
 0x152   : > { %3573 = vmatprep.subr.bf16.mxu1 %v3482_v10  ;;  %v13335_v25 = vpop.permute.xlu1 %3447  ;;  %v4112_v32 = vsel %vm4110_vm8, %v13316_v59, %v13332_v46 }
 0x153   : > { %5424 = vrot.lane.b32.xlu0 %v12897_v44, %s12139_s20  ;;  %v3479_v44 = vand.u32 %v3452_v39, %v12398_v42  ;;  %v3530_v10 = vand.u32 %v13335_v25, %v12398_v42 }
 0x154   : > { %11760 = vmatmul.mubr.msk.bf16.vlgmr.msra.gmra.mrb[96].mxu0 %vm411_vm3, %v13179_v1  ;;  %5426 = vrot.lane.b32.xlu1 %v12916_v26, %s12139_s20  ;;  %v3454_v26 = vsel %vm3449_vm7, %v13182_v4, %v13185_v27  ;;  %v3456_v27 = vsel %vm3449_vm7, %v13201_v30, %v13204_v24  ;;  %v3458_v30 = vsel %vm3449_vm7, %v13220_v8, %v13223_v35 }
 0x155   : > { %3533 = vmatpush1.bf16.msra.mxu0 %v3473_v20  ;;  %3564 = vmatprep.mubr.bf16.mxu0 %v13028_v55  ;;  %v13351_v58 = vpop.permute.xlu0 %4068  ;;  %v3491_v60 = vand.u32 %v3456_v27, %v12398_v42  ;;  %v3497_v17 = vand.u32 %v3458_v30, %v12398_v42  ;;  %v3460_v8 = vsel %vm3449_vm7, %v13239_v53, %v13242_v9 }
 0x156   : > { %3614 = vmatprep.subr.bf16.mxu0 %v3488_v49  ;;  %v13354_v19 = vpop.permute.xlu1 %4074  ;;  %v3503_v63 = vand.u32 %v3460_v8, %v12398_v42  ;;  %v3467_v53 = vsel %vm3449_vm7, %v13297_v0, %v13313_v31  ;;  %v4111_v30 = vsel %vm4110_vm8, %v13351_v58, %v13316_v59 }
 0x157   : > { %5428 = vrot.lane.b32.xlu0 %v12923_v28, %s12139_s20  ;;  %v3500_v28 = vand.u32 %v3459_v61, %v12398_v42  ;;  %v3524_v34 = vand.u32 %v3467_v53, %v12398_v42  ;;  %v3521_v61 = vand.u32 %v3466_v14, %v12398_v42  ;;  %v4135_v53 = vand.u32 %v4111_v30, %v12398_v42  ;;  %v13555_v14 = vld [vmem:[%s16309_s1 + $0x18] sm:$0xf] }
 0x158   : > { %11761 = vmatmul.mubr.msk.bf16.vlgmr.msra.gmra.mrb[96].mxu1 %vm411_vm3, %v13179_v1  ;;  %5430 = vrot.lane.b32.xlu1 %v12942_v5, %s12139_s20  ;;  %v3485_v1 = vand.u32 %v3454_v26, %v12398_v42  ;;  %v3461_v5 = vsel %vm3449_vm7, %v13242_v9, %v13258_v16  ;;  %v3462_v9 = vsel %vm3449_vm7, %v13258_v16, %v13261_v52 }
 0x159   : > { %3574 = vmatpush1.bf16.msra.mxu1 %v3479_v44  ;;  %3605 = vmatprep.mubr.bf16.mxu1 %v13028_v55  ;;  %v13375_v11 = vpop.permute.xlu0 %4076  ;;  %v3506_v57 = vand.u32 %v3461_v5, %v12398_v42  ;;  %v3509_v29 = vand.u32 %v3462_v9, %v12398_v42  ;;  %v3468_v26 = vsel %vm3449_vm7, %v13313_v31, %v13335_v25 }
 0x15a   : > { %3655 = vmatprep.subr.bf16.mxu1 %v3494_v37  ;;  %v13378_v4 = vpop.permute.xlu1 %4078  ;;  %v4138_v37 = vand.u32 %v4112_v32, %v12398_v42  ;;  %v4114_v0 = vsel %vm4110_vm8, %v13354_v19, %v13375_v11  ;;  %v4113_v9 = vsel %vm4110_vm8, %v13332_v46, %v13354_v19 }
 0x15b   : > { %5432 = vrot.lane.b32.xlu0 %v12962_v18, %s12139_s20  ;;  %v3463_v18 = vsel %vm3449_vm7, %v13261_v52, %v13274_v23  ;;  %v3464_v52 = vsel %vm3449_vm7, %v13274_v23, %v13278_v33 }
 0x15c   : > { %11763 = vmatmul.mubr.msk.bf16.vlgmr.msra.gmra.mrb[100].mxu0 %vm411_vm3, %v13372_v54  ;;  %v3512_v12 = vand.u32 %v3463_v18, %v12398_v42  ;;  %v3515_v23 = vand.u32 %v3464_v52, %v12398_v42  ;;  %v3527_v18 = vand.u32 %v3468_v26, %v12398_v42 }
 0x15d   : > { %3615 = vmatpush1.bf16.msra.mxu0 %v3485_v1  ;;  %3646 = vmatprep.mubr.bf16.mxu0 %v13028_v55  ;;  %v13392_v43 = vpop.permute.xlu0 %4080 }
 0x15e   : > { %3696 = vmatprep.subr.bf16.mxu0 %v3500_v28  ;;  %v13395_v45 = vpop.permute.xlu1 %4082  ;;  %v4116_v25 = vsel %vm4110_vm8, %v13378_v4, %v13392_v43 }
 0x160   : > { %11764 = vmatmul.mubr.msk.bf16.vlgmr.msra.gmra.mrb[100].mxu1 %vm411_vm3, %v13372_v54 }
 0x161   : > { %3656 = vmatpush1.bf16.msra.mxu1 %v3491_v60  ;;  %3687 = vmatprep.mubr.bf16.mxu1 %v13028_v55  ;;  %v13407_v24 = vpop.permute.xlu0 %4084 }
 0x162   : > { %3737 = vmatprep.subr.bf16.mxu1 %v3506_v57  ;;  %v13410_v50 = vpop.permute.xlu1 %4086  ;;  %v4144_v57 = vand.u32 %v4114_v0, %v12398_v42  ;;  %v4118_v58 = vsel %vm4110_vm8, %v13395_v45, %v13407_v24  ;;  %v4117_v0 = vsel %vm4110_vm8, %v13392_v43, %v13395_v45 }
 0x163   : > { %v4156_v52 = vand.u32 %v4118_v58, %v12398_v42  ;;  %v4153_v30 = vand.u32 %v4117_v0, %v12398_v42 }
 0x164   : > { %11765 = vmatmul.mubr.msk.bf16.vlgmr.msra.gmra.mrb[104].mxu0 %vm411_vm3, %v13372_v54 }
 0x165   : > { %3697 = vmatpush1.bf16.msra.mxu0 %v3497_v17  ;;  %3728 = vmatprep.mubr.bf16.mxu0 %v13028_v55  ;;  %v13422_v35 = vpop.permute.xlu0 %4088 }
 0x166   : > { %3778 = vmatprep.subr.bf16.mxu0 %v3512_v12  ;;  %v13425_v36 = vpop.permute.xlu1 %4090  ;;  %v4120_v19 = vsel %vm4110_vm8, %v13410_v50, %v13422_v35 }
 0x167   : > { %v13428_v15 = vpop.f32.mrb[0].mxu0 }
 0x168   : > { %v13436_v21 = vpop.f32.mrb[1].mxu0  ;;  %11766 = vmatmul.mubr.msk.bf16.vlgmr.msra.gmra.mrb[104].mxu1 %vm411_vm3, %v13372_v54 }
 0x169   : > { %3738 = vmatpush1.bf16.msra.mxu1 %v3503_v63  ;;  %v517_v51 = vpop.f32.mrb[2].mxu0  ;;  %3769 = vmatprep.mubr.bf16.mxu1 %v13028_v55  ;;  %v13441_v13 = vpop.permute.xlu0 %4092 }
 0x16a   : > { %v518_v56 = vpop.f32.mrb[3].mxu0  ;;  %3819 = vmatprep.subr.bf16.mxu1 %v3518_v48  ;;  %v13444_v6 = vpop.permute.xlu1 %4094  ;;  %v4150_v48 = vand.u32 %v4116_v25, %v12398_v42 }
 0x16b   : > { %v13447_v16 = vpop.f32.mrb[0].mxu1 }
 0x16c   : > { %v13452_v2 = vpop.f32.mrb[1].mxu1  ;;  %11767 = vmatmul.mubr.msk.bf16.vlgmr.msra.gmra.mrb[108].mxu0 %vm411_vm3, %v13372_v54 }
 0x16d   : > { %3779 = vmatpush1.bf16.msra.mxu0 %v3509_v29  ;;  %v558_v38 = vpop.f32.mrb[2].mxu1  ;;  %3810 = vmatprep.mubr.bf16.mxu0 %v13028_v55  ;;  %v13457_v47 = vpop.permute.xlu0 %4096 }
 0x16e   : > { %v559_v62 = vpop.f32.mrb[3].mxu1  ;;  %3860 = vmatprep.subr.bf16.mxu0 %v3524_v34  ;;  %v13461_v40 = vpop.permute.xlu1 %4098  ;;  %v4124_v45 = vsel %vm4110_vm8, %v13444_v6, %v13457_v47 }
 0x16f   : > { %v13464_v33 = vpop.f32.mrb[4].mxu0  ;;  %v4141_v62 = vand.u32 %v4113_v9, %v12398_v42  ;;  %v4174_v9 = vand.u32 %v4124_v45, %v12398_v42 }
 0x170   : > { %v13472_v49 = vpop.f32.mrb[5].mxu0  ;;  %11768 = vmatmul.mubr.msk.bf16.vlgmr.msra.gmra.mrb[108].mxu1 %vm411_vm3, %v13372_v54 }
 0x171   : > { %3820 = vmatpush1.bf16.msra.mxu1 %v3515_v23  ;;  %v599_v20 = vpop.f32.mrb[6].mxu0  ;;  %3851 = vmatprep.mubr.bf16.mxu1 %v13028_v55  ;;  %v13477_v22 = vpop.permute.xlu0 %4100 }
 0x172   : > { %v600_v39 = vpop.f32.mrb[7].mxu0  ;;  %3901 = vmatprep.subr.bf16.mxu1 %v3530_v10  ;;  %v13480_v44 = vpop.permute.xlu1 %4102  ;;  %v4115_v10 = vsel %vm4110_vm8, %v13375_v11, %v13378_v4  ;;  %v4162_v11 = vand.u32 %v4120_v19, %v12398_v42 }
 0x173   : > { %v13483_v41 = vpop.f32.mrb[4].mxu1 }
 0x174   : > { %v13491_v28 = vpop.f32.mrb[5].mxu1  ;;  %11769 = vmatmul.mubr.msk.bf16.vlgmr.msra.gmra.mrb[112].mxu0 %vm411_vm3, %v13372_v54 }
 0x175   : > { %3861 = vmatpush1.bf16.msra.mxu0 %v3521_v61  ;;  %v640_v1 = vpop.f32.mrb[6].mxu1  ;;  %3892 = vmatprep.mubr.bf16.mxu0 %v13028_v55  ;;  %v13496_v5 = vpop.permute.xlu0 %4104  ;;  %v4122_v61 = vsel %vm4110_vm8, %v13425_v36, %v13441_v13 }
 0x176   : > { %v641_v27 = vpop.f32.mrb[7].mxu1  ;;  %4194 = vmatprep.subr.bf16.mxu0 %v4138_v37  ;;  %v13499_v60 = vpop.permute.xlu1 %4106  ;;  %v4147_v37 = vand.u32 %v4115_v10, %v12398_v42 }
 0x177   : > { %v13502_v31 = vpop.f32.mrb[8].mxu0 }
 0x178   : > { %v13510_v12 = vpop.f32.mrb[9].mxu0  ;;  %11770 = vmatmul.mubr.msk.bf16.vlgmr.msra.gmra.mrb[112].mxu1 %vm411_vm3, %v13372_v54 }
 0x179   : > { %3902 = vmatpush1.bf16.msra.mxu1 %v3527_v18  ;;  %v681_v17 = vpop.f32.mrb[10].mxu0  ;;  %3933 = vmatprep.mubr.bf16.mxu1 %v13028_v55  ;;  %v13515_v7 = vpop.permute.xlu0 %4108  ;;  %v4168_v18 = vand.u32 %v4122_v61, %v12398_v42  ;;  %v4123_v61 = vsel %vm4110_vm8, %v13441_v13, %v13444_v6 }
 0x17a   : > { %v682_v8 = vpop.f32.mrb[11].mxu0  ;;  %4235 = vmatprep.subr.bf16.mxu1 %v4144_v57  ;;  %v13518_v63 = vpop.permute.xlu1 %4732  ;;  %v4119_v17 = vsel %vm4110_vm8, %v13407_v24, %v13410_v50  ;;  %v4126_v50 = vsel %vm4110_vm8, %v13461_v40, %v13477_v22 }
 0x17b   : > { %v13521_v59 = vpop.f32.mrb[8].mxu1 }
 0x17c   : > { %v13529_v51 = vpop.f32.mrb[9].mxu1  ;;  %11771 = vmatmul.mubr.msk.bf16.vlgmr.msra.gmra.mrb[116].mxu0 %vm411_vm3, %v13372_v54 }
 0x17d   : > { %4195 = vmatpush1.bf16.msra.mxu0 %v4135_v53  ;;  %v722_v56 = vpop.f32.mrb[10].mxu1  ;;  %4226 = vmatprep.mubr.bf16.mxu0 %v13028_v55  ;;  %v13534_v34 = vpop.permute.xlu0 %4734 }
 0x17e   : > { %v723_v29 = vpop.f32.mrb[11].mxu1  ;;  %4276 = vmatprep.subr.bf16.mxu0 %v4150_v48  ;;  %v13537_v38 = vpop.permute.xlu1 %4730 }
 0x17f   : > { %v13540_v46 = vpop.f32.mrb[12].mxu0  ;;  %v4159_v29 = vand.u32 %v4119_v17, %v12398_v42 }
 0x180   : > { %v13548_v23 = vpop.f32.mrb[13].mxu0  ;;  %11772 = vmatmul.mubr.msk.bf16.vlgmr.msra.gmra.mrb[116].mxu1 %vm411_vm3, %v13372_v54 }
 0x181   : > { %4236 = vmatpush1.bf16.msra.mxu1 %v4141_v62  ;;  %v763_v32 = vpop.f32.mrb[14].mxu0  ;;  %4267 = vmatprep.mubr.bf16.mxu1 %v13028_v55  ;;  %v13558_v20 = vpop.permute.xlu0 %4736 }
 0x182   : > { %v764_v39 = vpop.f32.mrb[15].mxu0  ;;  %4317 = vmatprep.subr.bf16.mxu1 %v4156_v52  ;;  %v13561_v4 = vpop.permute.xlu1 %4738  ;;  %v4121_v52 = vsel %vm4110_vm8, %v13422_v35, %v13425_v36  ;;  %v4128_v36 = vsel %vm4110_vm8, %v13480_v44, %v13496_v5 }
 0x183   : > { %v13564_v54 = vpop.f32.mrb[12].mxu1  ;;  %v4180_v39 = vand.u32 %v4126_v50, %v12398_v42  ;;  %v4186_v13 = vand.u32 %v4128_v36, %v12398_v42 }
 0x184   : > { %v13572_v26 = vpop.f32.mrb[13].mxu1  ;;  %11775 = vmatmul.mubr.msk.bf16.vlgmr.msra.gmra.mrb[120].mxu0 %vm411_vm3, %v13555_v14 }
 0x185   : > { %4277 = vmatpush1.bf16.msra.mxu0 %v4147_v37  ;;  %v804_v1 = vpop.f32.mrb[14].mxu1  ;;  %4308 = vmatprep.mubr.bf16.mxu0 %v13028_v55  ;;  %v13577_v27 = vpop.permute.xlu0 %4740  ;;  %v4165_v37 = vand.u32 %v4121_v52, %v12398_v42 }
 0x186   : > { %v805_v57 = vpop.f32.mrb[15].mxu1  ;;  %4358 = vmatprep.subr.bf16.mxu0 %v4162_v11  ;;  %v13580_v25 = vpop.permute.xlu1 %4742 }
 0x187   : > { %v13583_v43 = vpop.f32.mrb[16].mxu0 }
 0x188   : > { %v13591_v8 = vpop.f32.mrb[17].mxu0  ;;  %11776 = vmatmul.mubr.msk.bf16.vlgmr.msra.gmra.mrb[120].mxu1 %vm411_vm3, %v13555_v14 }
 0x189   : > { %4318 = vmatpush1.bf16.msra.mxu1 %v4153_v30  ;;  %v845_v48 = vpop.f32.mrb[18].mxu0  ;;  %4349 = vmatprep.mubr.bf16.mxu1 %v13028_v55  ;;  %v13596_v53 = vpop.permute.xlu0 %4744 }
 0x18a   : > { %v846_v58 = vpop.f32.mrb[19].mxu0  ;;  %4399 = vmatprep.subr.bf16.mxu1 %v4168_v18  ;;  %v13599_v56 = vpop.permute.xlu1 %4746  ;;  %v4125_v48 = vsel %vm4110_vm8, %v13457_v47, %v13461_v40 }
 0x18b   : > { %v13602_v24 = vpop.f32.mrb[16].mxu1  ;;  %v4177_v40 = vand.u32 %v4125_v48, %v12398_v42 }
 0x18c   : > { %v13610_v62 = vpop.f32.mrb[17].mxu1  ;;  %11777 = vmatmul.mubr.msk.bf16.vlgmr.msra.gmra.mrb[124].mxu0 %vm411_vm3, %v13555_v14 }
 0x18d   : > { %4359 = vmatpush1.bf16.msra.mxu0 %v4159_v29  ;;  %v886_v19 = vpop.f32.mrb[18].mxu1  ;;  %4390 = vmatprep.mubr.bf16.mxu0 %v13028_v55  ;;  %v13615_v10 = vpop.permute.xlu0 %4748 }
 0x18e   : > { %v887_v32 = vpop.f32.mrb[19].mxu1  ;;  %4440 = vmatprep.subr.bf16.mxu0 %v4174_v9  ;;  %v13618_v11 = vpop.permute.xlu1 %4750 }
 0x18f   : > { %v986_v35 = vpop.f32.mrb[20].mxu0  ;;  %v4127_v32 = vsel %vm4110_vm8, %v13477_v22, %v13480_v44 }
 0x190   : > { %v13628_v0 = vadd.f32 %v986_v35, %v13428_v15  ;;  %v988_v1 = vpop.f32.mrb[21].mxu0  ;;  %11778 = vmatmul.mubr.msk.bf16.vlgmr.msra.gmra.mrb[124].mxu1 %vm411_vm3, %v13555_v14  ;;  %v4171_v15 = vand.u32 %v4123_v61, %v12398_v42 }
 0x191   : > { %v13633_v57 = vadd.f32 %v988_v1, %v13436_v21  ;;  %4400 = vmatpush1.bf16.msra.mxu1 %v4165_v37  ;;  %v990_v18 = vpop.f32.mrb[22].mxu0  ;;  %4431 = vmatprep.mubr.bf16.mxu1 %v13028_v55  ;;  %v13636_v30 = vpop.permute.xlu0 %4752  ;;  %v4130_v21 = vsel %vm4110_vm8, %v13499_v60, %v13515_v7 }
 0x192   : > { %v991_v45 = vpop.f32.mrb[23].mxu0  ;;  %4481 = vmatprep.subr.bf16.mxu1 %v4180_v39  ;;  %v13639_v6 = vpop.permute.xlu1 %4754  ;;  %v4192_v47 = vand.u32 %v4130_v21, %v12398_v42 }
 0x193   : > { %v1027_v17 = vpop.f32.mrb[20].mxu1  ;;  %v4129_v45 = vsel %vm4110_vm8, %v13496_v5, %v13499_v60  ;;  %v4773_v5 = vsel %vm4772_vm9, %v13537_v38, %v13518_v63 }
 0x194   : > { %v13649_v58 = vadd.f32 %v1027_v17, %v13447_v16  ;;  %v1029_v9 = vpop.f32.mrb[21].mxu1  ;;  %11779 = vmatmul.mubr.msk.bf16.vlgmr.msra.gmra.mrb[128].mxu0 %vm411_vm3, %v13555_v14  ;;  %v4189_v60 = vand.u32 %v4129_v45, %v12398_v42 }
 0x195   : > { %v13654_v29 = vadd.f32 %v1029_v9, %v13452_v2  ;;  %4441 = vmatpush1.bf16.msra.mxu0 %v4171_v15  ;;  %v1031_v50 = vpop.f32.mrb[22].mxu1  ;;  %4472 = vmatprep.mubr.bf16.mxu0 %v13028_v55  ;;  %v13657_v7 = vpop.permute.xlu0 %4756  ;;  %v4774_v2 = vsel %vm4772_vm9, %v13518_v63, %v13534_v34  ;;  %v4797_v63 = vand.u32 %v4773_v5, %v12398_v42 }
 0x196   : > { %v1032_v52 = vpop.f32.mrb[23].mxu1  ;;  %4522 = vmatprep.subr.bf16.mxu0 %v4186_v13  ;;  %v13660_v16 = vpop.permute.xlu1 %4758  ;;  %v4800_v22 = vand.u32 %v4774_v2, %v12398_v42 }
 0x197   : > { %v1068_v19 = vpop.f32.mrb[24].mxu0 }
 0x198   : > { %v13670_v39 = vadd.f32 %v1068_v19, %v13464_v33  ;;  %v1070_v37 = vpop.f32.mrb[25].mxu0  ;;  %11780 = vmatmul.mubr.msk.bf16.vlgmr.msra.gmra.mrb[128].mxu1 %vm411_vm3, %v13555_v14  ;;  %v4183_v33 = vand.u32 %v4127_v32, %v12398_v42 }
 0x199   : > { %v13675_v35 = vadd.f32 %v1070_v37, %v13472_v49  ;;  %4482 = vmatpush1.bf16.msra.mxu1 %v4177_v40  ;;  %v1072_v36 = vpop.f32.mrb[26].mxu0  ;;  %4513 = vmatprep.mubr.bf16.mxu1 %v13028_v55  ;;  %v13678_v61 = vpop.permute.xlu0 %4760  ;;  %v4776_v49 = vsel %vm4772_vm9, %v13558_v20, %v13561_v4 }
 0x19a   : > { %v1073_v1 = vpop.f32.mrb[27].mxu0  ;;  %4563 = vmatprep.subr.bf16.mxu1 %v4192_v47  ;;  %v13681_v44 = vpop.permute.xlu1 %4762  ;;  %v4780_v36 = vsel %vm4772_vm9, %v13596_v53, %v13599_v56 }
 0x19b   : > { %v1109_v18 = vpop.f32.mrb[24].mxu1 }
 0x19c   : > { %v13691_v13 = vadd.f32 %v1109_v18, %v13483_v41  ;;  %v1111_v15 = vpop.f32.mrb[25].mxu1  ;;  %11781 = vmatmul.mubr.msk.bf16.vlgmr.msra.gmra.mrb[132].mxu0 %vm411_vm3, %v13555_v14  ;;  %v4806_v41 = vand.u32 %v4776_v49, %v12398_v42 }
 0x19d   : > { %v13696_v17 = vadd.f32 %v1111_v15, %v13491_v28  ;;  %4523 = vmatpush1.bf16.msra.mxu0 %v4183_v33  ;;  %v1113_v21 = vpop.f32.mrb[26].mxu1  ;;  %4554 = vmatprep.mubr.bf16.mxu0 %v13028_v55  ;;  %v13699_v48 = vpop.permute.xlu0 %4764  ;;  %v4778_v28 = vsel %vm4772_vm9, %v13577_v27, %v13580_v25 }
 0x19e   : > { %v1114_v9 = vpop.f32.mrb[27].mxu1  ;;  %4856 = vmatprep.subr.bf16.mxu0 %v4800_v22  ;;  %v13709_v52 = vpop.permute.xlu1 %4766  ;;  %v4782_v21 = vsel %vm4772_vm9, %v13615_v10, %v13618_v11 }
 0x19f   : > { %v1150_v50 = vpop.f32.mrb[28].mxu0 }
 0x1a0   : > { %v13712_v47 = vadd.f32 %v1150_v50, %v13502_v31  ;;  %v1152_v40 = vpop.f32.mrb[29].mxu0  ;;  %11782 = vmatmul.mubr.msk.bf16.vlgmr.msra.gmra.mrb[132].mxu1 %vm411_vm3, %v13555_v14  ;;  %v4812_v31 = vand.u32 %v4778_v28, %v12398_v42 }
 0x1a1   : > { %v13718_v38 = vadd.f32 %v1152_v40, %v13510_v12  ;;  %4564 = vmatpush1.bf16.msra.mxu1 %v4189_v60  ;;  %v1154_v19 = vpop.f32.mrb[30].mxu0  ;;  %4595 = vmatprep.mubr.bf16.mxu1 %v13028_v55  ;;  %v13721_v2 = vpop.permute.xlu0 %4768  ;;  %v4775_v12 = vsel %vm4772_vm9, %v13534_v34, %v13558_v20  ;;  %v4777_v34 = vsel %vm4772_vm9, %v13561_v4, %v13577_v27  ;;  %v13763_v60 = vld [vmem:[%s16309_s1 + $0x1c] sm:$0xf] }
 0x1a2   : > { %v1155_v32 = vpop.f32.mrb[31].mxu0  ;;  %4897 = vmatprep.subr.bf16.mxu1 %v4806_v41  ;;  %v13739_v49 = vpop.permute.xlu1 %4770  ;;  %v4803_v15 = vand.u32 %v4775_v12, %v12398_v42  ;;  %v4809_v4 = vand.u32 %v4777_v34, %v12398_v42  ;;  %v4784_v40 = vsel %vm4772_vm9, %v13636_v30, %v13639_v6 }
 0x1a3   : > { %v1191_v37 = vpop.f32.mrb[28].mxu1  ;;  %v4830_v12 = vand.u32 %v4784_v40, %v12398_v42 }
 0x1a4   : > { %v13731_v1 = vadd.f32 %v1191_v37, %v13521_v59  ;;  %v1193_v22 = vpop.f32.mrb[29].mxu1  ;;  %11783 = vmatmul.mubr.msk.bf16.vlgmr.msra.gmra.mrb[136].mxu0 %vm411_vm3, %v13555_v14  ;;  %v4818_v59 = vand.u32 %v4780_v36, %v12398_v42  ;;  %v13789_v37 = vld [vmem:[#allocation2] sm:$0xff] }
 0x1a5   : > { %v13736_v33 = vadd.f32 %v1193_v22, %v13529_v51  ;;  %4857 = vmatpush1.bf16.msra.mxu0 %v4797_v63  ;;  %v1195_v18 = vpop.f32.mrb[30].mxu1  ;;  %4888 = vmatprep.mubr.bf16.mxu0 %v13028_v55  ;;  %v13745_v45 = vpop.permute.xlu0 %5394 }
 0x1a6   : > { %v1196_v20 = vpop.f32.mrb[31].mxu1  ;;  %4938 = vmatprep.subr.bf16.mxu0 %v4812_v31  ;;  %v13776_v63 = vpop.permute.xlu1 %5396 }
 0x1a7   : > { %v1232_v51 = vpop.f32.mrb[32].mxu0 }
 0x1a8   : > { %v13752_v9 = vadd.f32 %v1232_v51, %v13540_v46  ;;  %v1234_v5 = vpop.f32.mrb[33].mxu0  ;;  %11784 = vmatmul.mubr.msk.bf16.vlgmr.msra.gmra.mrb[136].mxu1 %vm411_vm3, %v13555_v14  ;;  %v5948_v46 = vld [vmem:[%s16310_s2] sm:$0xff]  ;;  %v4779_v14 = vsel %vm4772_vm9, %v13580_v25, %v13596_v53 }
 0x1a9   : > { %v13758_v27 = vadd.f32 %v1234_v5, %v13548_v23  ;;  %4898 = vmatpush1.bf16.msra.mxu1 %v4803_v15  ;;  %v1236_v41 = vpop.f32.mrb[34].mxu0  ;;  %4929 = vmatprep.mubr.bf16.mxu1 %v13028_v55  ;;  %v4824_v23 = vand.u32 %v4782_v21, %v12398_v42  ;;  %v13783_v25 = vpop.permute.xlu0 %5392  ;;  %v4815_v53 = vand.u32 %v4779_v14, %v12398_v42 }
 0x1aa   : > { %v1237_v50 = vpop.f32.mrb[35].mxu0  ;;  %4979 = vmatprep.subr.bf16.mxu1 %v4818_v59  ;;  %5951 = vperm.xlu1 %12102, %v5948_v46   ;;  %v13809_v59 = vpop.permute.xlu1 %5398 }
 0x1ab   : > { %v1273_v28 = vpop.f32.mrb[32].mxu1 }
 0x1ac   : > { %v13779_v55 = vadd.f32 %v1273_v28, %v13564_v54  ;;  %v1275_v19 = vpop.f32.mrb[33].mxu1  ;;  %11787 = vmatmul.mubr.msk.bf16.vlgmr.msra.gmra.mrb[140].mxu0 %vm411_vm3, %v13763_v60  ;;  %v4781_v54 = vsel %vm4772_vm9, %v13599_v56, %v13615_v10 }
 0x1ad   : > { %v13787_v32 = vadd.f32 %v1275_v19, %v13572_v26  ;;  %4939 = vmatpush1.bf16.msra.mxu0 %v4809_v4  ;;  %v1277_v31 = vpop.f32.mrb[34].mxu1  ;;  %4970 = vmatprep.mubr.bf16.mxu0 %v13789_v37  ;;  %v4786_v26 = vsel %vm4772_vm9, %v13657_v7, %v13660_v16  ;;  %v4821_v20 = vand.u32 %v4781_v54, %v12398_v42  ;;  %v13815_v21 = vpop.permute.xlu0 %5400 }
 0x1ae   : > { %v1278_v36 = vpop.f32.mrb[35].mxu1  ;;  %5020 = vmatprep.subr.bf16.mxu0 %v4824_v23  ;;  %v4836_v51 = vand.u32 %v4786_v26, %v12398_v42  ;;  %v13830_v14 = vpop.permute.xlu1 %5402  ;;  %v4787_v54 = vsel %vm4772_vm9, %v13660_v16, %v13678_v61 }
 0x1af   : > { %v1314_v22 = vpop.f32.mrb[36].mxu0 }
 0x1b0   : > { %v13800_v18 = vadd.f32 %v1314_v22, %v13583_v43  ;;  %v1316_v34 = vpop.f32.mrb[37].mxu0  ;;  %11788 = vmatmul.mubr.msk.bf16.vlgmr.msra.gmra.mrb[140].mxu1 %vm411_vm3, %v13763_v60  ;;  %v4783_v43 = vsel %vm4772_vm9, %v13618_v11, %v13636_v30  ;;  %v4792_v22 = vsel %vm4772_vm9, %v13721_v2, %v13739_v49 }
 0x1b1   : > { %v13806_v56 = vadd.f32 %v1316_v34, %v13591_v8  ;;  %4980 = vmatpush1.bf16.msra.mxu1 %v4815_v53  ;;  %v1318_v10 = vpop.f32.mrb[38].mxu0  ;;  %5011 = vmatprep.mubr.bf16.mxu1 %v13789_v37  ;;  %v4788_v8 = vsel %vm4772_vm9, %v13678_v61, %v13681_v44  ;;  %v4827_v11 = vand.u32 %v4783_v43, %v12398_v42  ;;  %v13836_v28 = vpop.permute.xlu0 %5404 }
 0x1b2   : > { %v1319_v15 = vpop.f32.mrb[39].mxu0  ;;  %5061 = vmatprep.subr.bf16.mxu1 %v4830_v12  ;;  %v4842_v23 = vand.u32 %v4788_v8, %v12398_v42  ;;  %v13858_v26 = vpop.permute.xlu1 %5406  ;;  %v4839_v61 = vand.u32 %v4787_v54, %v12398_v42  ;;  %v4854_v43 = vand.u32 %v4792_v22, %v12398_v42  ;;  %v5440_v54 = vsel %vm5434_vm10, %v13830_v14, %v13836_v28 }
 0x1b3   : > { %v1355_v5 = vpop.f32.mrb[36].mxu1 }
 0x1b4   : > { %v13821_v4 = vadd.f32 %v1355_v5, %v13602_v24  ;;  %v1357_v41 = vpop.f32.mrb[37].mxu1  ;;  %11789 = vmatmul.mubr.msk.bf16.vlgmr.msra.gmra.mrb[144].mxu0 %vm411_vm3, %v13763_v60  ;;  %v4785_v24 = vsel %vm4772_vm9, %v13639_v6, %v13657_v7 }
 0x1b5   : > { %v13827_v30 = vadd.f32 %v1357_v41, %v13610_v62  ;;  %5021 = vmatpush1.bf16.msra.mxu0 %v4821_v20  ;;  %v1359_v46 = vpop.f32.mrb[38].mxu1  ;;  %5052 = vmatprep.mubr.bf16.mxu0 %v13789_v37  ;;  %v4790_v62 = vsel %vm4772_vm9, %v13699_v48, %v13709_v52  ;;  %v4833_v6 = vand.u32 %v4785_v24, %v12398_v42  ;;  %v13865_v16 = vpop.permute.xlu0 %5408 }
 0x1b6   : > { %v1360_v50 = vpop.f32.mrb[39].mxu1  ;;  %5102 = vmatprep.subr.bf16.mxu0 %v4836_v51  ;;  %v5436_v51 = vsel %vm5434_vm10, %v13745_v45, %v13776_v63  ;;  %v13889_v41 = vpop.permute.xlu1 %5410 }
 0x1b7   : > { %v1616_v40 = vpop.f32.mrb[40].mxu0  ;;  %v5462_v46 = vand.u32 %v5436_v51, %v12398_v42 }
 0x1b8   : > { %v13842_v19 = vadd.f32 %v1616_v40, %v13628_v0  ;;  %v1618_v53 = vpop.f32.mrb[41].mxu0  ;;  %11790 = vmatmul.mubr.msk.bf16.vlgmr.msra.gmra.mrb[144].mxu1 %vm411_vm3, %v13763_v60  ;;  %v4848_v0 = vand.u32 %v4790_v62, %v12398_v42 }
 0x1b9   : > { %v13848_v7 = vadd.f32 %v1618_v53, %v13633_v57  ;;  %5062 = vmatpush1.bf16.msra.mxu1 %v4827_v11  ;;  %v1620_v31 = vpop.f32.mrb[42].mxu0  ;;  %5093 = vmatprep.mubr.bf16.mxu1 %v13789_v37  ;;  %v13895_v24 = vpop.permute.xlu0 %5412 }
 0x1ba   : > { %v1621_v36 = vpop.f32.mrb[43].mxu0  ;;  %5143 = vmatprep.subr.bf16.mxu1 %v4842_v23 }
 0x1bb   : > { %v1657_v12 = vpop.f32.mrb[40].mxu1  ;;  %v13917_v36 = vpop.permute.xlu1 %5414 }
 0x1bc   : > { %v13861_v57 = vadd.f32 %v1657_v12, %v13649_v58  ;;  %v1659_v34 = vpop.f32.mrb[41].mxu1  ;;  %11791 = vmatmul.mubr.msk.bf16.vlgmr.msra.gmra.mrb[148].mxu0 %vm411_vm3, %v13763_v60  ;;  %v4789_v58 = vsel %vm4772_vm9, %v13681_v44, %v13699_v48 }
 0x1bd   : > { %v13869_v20 = vadd.f32 %v1659_v34, %v13654_v29  ;;  %5103 = vmatpush1.bf16.msra.mxu0 %v4833_v6  ;;  %v1661_v10 = vpop.f32.mrb[42].mxu1  ;;  %5134 = vmatprep.mubr.bf16.mxu0 %v13789_v37  ;;  %v4845_v8 = vand.u32 %v4789_v58, %v12398_v42  ;;  %v5435_v6 = vsel %vm5434_vm10, %v13783_v25, %v13745_v45  ;;  %v13924_v12 = vpop.permute.xlu0 %5416 }
 0x1be   : > { %v1662_v49 = vpop.f32.mrb[43].mxu1  ;;  %5184 = vmatprep.subr.bf16.mxu0 %v4848_v0  ;;  %v5459_v45 = vand.u32 %v5435_v6, %v12398_v42  ;;  %v5442_v58 = vsel %vm5434_vm10, %v13858_v26, %v13865_v16 }
 0x1bf   : > { %v1698_v15 = vpop.f32.mrb[44].mxu0 }
 0x1c0   : > { %v13880_v29 = vadd.f32 %v1698_v15, %v13670_v39  ;;  %v1700_v5 = vpop.f32.mrb[45].mxu0  ;;  %11792 = vmatmul.mubr.msk.bf16.vlgmr.msra.gmra.mrb[148].mxu1 %vm411_vm3, %v13763_v60  ;;  %v4791_v39 = vsel %vm4772_vm9, %v13709_v52, %v13721_v2 }
 0x1c1   : > { %v13886_v44 = vadd.f32 %v1700_v5, %v13675_v35  ;;  %5144 = vmatpush1.bf16.msra.mxu1 %v4839_v61  ;;  %v1702_v48 = vpop.f32.mrb[46].mxu0  ;;  %5175 = vmatprep.mubr.bf16.mxu1 %v13789_v37  ;;  %v5438_v35 = vsel %vm5434_vm10, %v13809_v59, %v13815_v21  ;;  %v4851_v52 = vand.u32 %v4791_v39, %v12398_v42 }
 0x1c2   : > { %v1703_v11 = vpop.f32.mrb[47].mxu0  ;;  %5225 = vmatprep.subr.bf16.mxu1 %v4854_v43  ;;  %v5474_v61 = vand.u32 %v5440_v54, %v12398_v42  ;;  %v5480_v5 = vand.u32 %v5442_v58, %v12398_v42 }
 0x1c3   : > { %v1739_v50 = vpop.f32.mrb[44].mxu1 }
 0x1c4   : > { %v13901_v23 = vadd.f32 %v1739_v50, %v13691_v13  ;;  %v1741_v40 = vpop.f32.mrb[45].mxu1  ;;  %11793 = vmatmul.mubr.msk.bf16.vlgmr.msra.gmra.mrb[152].mxu0 %vm411_vm3, %v13763_v60  ;;  %v5468_v13 = vand.u32 %v5438_v35, %v12398_v42  ;;  %v13971_v50 = vld [vmem:[%s16309_s1 + $0x20] sm:$0xf]  ;;  %v5441_v35 = vsel %vm5434_vm10, %v13836_v28, %v13858_v26 }
 0x1c5   : > { %v13907_v2 = vadd.f32 %v1741_v40, %v13696_v17  ;;  %5185 = vmatpush1.bf16.msra.mxu0 %v4845_v8  ;;  %v1743_v62 = vpop.f32.mrb[46].mxu1  ;;  %5216 = vmatprep.mubr.bf16.mxu0 %v13789_v37  ;;  %v13954_v8 = vpop.permute.xlu0 %5420  ;;  %v5477_v28 = vand.u32 %v5441_v35, %v12398_v42 }
 0x1c6   : > { %v1744_v53 = vpop.f32.mrb[47].mxu1  ;;  %5518 = vmatprep.subr.bf16.mxu0 %v5462_v46 }
 0x1c7   : > { %v1780_v31 = vpop.f32.mrb[48].mxu0 }
 0x1c8   : > { %v13920_v17 = vadd.f32 %v1780_v31, %v13712_v47  ;;  %v1782_v0 = vpop.f32.mrb[49].mxu0  ;;  %11794 = vmatmul.mubr.msk.bf16.vlgmr.msra.gmra.mrb[152].mxu1 %vm411_vm3, %v13763_v60  ;;  %v5437_v47 = vsel %vm5434_vm10, %v13776_v63, %v13809_v59  ;;  %v13948_v59 = vpop.permute.xlu1 %5418 }
 0x1c9   : > { %v13928_v25 = vadd.f32 %v1782_v0, %v13718_v38  ;;  %5226 = vmatpush1.bf16.msra.mxu1 %v4851_v52  ;;  %v1784_v22 = vpop.f32.mrb[50].mxu0  ;;  %5257 = vmatprep.mubr.bf16.mxu1 %v13789_v37  ;;  %v5465_v43 = vand.u32 %v5437_v47, %v12398_v42  ;;  %v13986_v6 = vpop.permute.xlu0 %5424 }
 0x1ca   : > { %v1785_v34 = vpop.f32.mrb[51].mxu0  ;;  %5559 = vmatprep.subr.bf16.mxu1 %v5468_v13 }
 0x1cb   : > { %v1821_v10 = vpop.f32.mrb[48].mxu1 }
 0x1cc   : > { %v13939_v38 = vadd.f32 %v1821_v10, %v13731_v1  ;;  %v1823_v49 = vpop.f32.mrb[49].mxu1  ;;  %11795 = vmatmul.mubr.msk.bf16.vlgmr.msra.gmra.mrb[156].mxu0 %vm411_vm3, %v13763_v60  ;;  %v5439_v1 = vsel %vm5434_vm10, %v13815_v21, %v13830_v14  ;;  %v5423_v52 = vpop.permute.xlu1 %5422 }
 0x1cd   : > { %v13945_v15 = vadd.f32 %v1823_v49, %v13736_v33  ;;  %5519 = vmatpush1.bf16.msra.mxu0 %v5459_v45  ;;  %v1825_v63 = vpop.f32.mrb[50].mxu1  ;;  %5550 = vmatprep.mubr.bf16.mxu0 %v13789_v37  ;;  %v5444_v33 = vsel %vm5434_vm10, %v13889_v41, %v13895_v24  ;;  %v5471_v46 = vand.u32 %v5439_v1, %v12398_v42  ;;  %v5429_v58 = vpop.permute.xlu0 %5428 }
 0x1ce   : > { %v1826_v51 = vpop.f32.mrb[51].mxu1  ;;  %5600 = vmatprep.subr.bf16.mxu0 %v5474_v61  ;;  %v5448_v45 = vsel %vm5434_vm10, %v13948_v59, %v13954_v8 }
 0x1cf   : > { %v1862_v48 = vpop.f32.mrb[52].mxu0  ;;  %v5498_v10 = vand.u32 %v5448_v45, %v12398_v42 }
 0x1d0   : > { %v13960_v39 = vadd.f32 %v1862_v48, %v13752_v9  ;;  %v1864_v11 = vpop.f32.mrb[53].mxu0  ;;  %11796 = vmatmul.mubr.msk.bf16.vlgmr.msra.gmra.mrb[156].mxu1 %vm411_vm3, %v13763_v60  ;;  %v5486_v60 = vand.u32 %v5444_v33, %v12398_v42 }
 0x1d1   : > { %v13966_v21 = vadd.f32 %v1864_v11, %v13758_v27  ;;  %5560 = vmatpush1.bf16.msra.mxu1 %v5465_v43  ;;  %v1866_v14 = vpop.f32.mrb[54].mxu0  ;;  %5591 = vmatprep.mubr.bf16.mxu1 %v13789_v37  ;;  %v5446_v27 = vsel %vm5434_vm10, %v13917_v36, %v13924_v12  ;;  %v5450_v43 = vsel %vm5434_vm10, %v5423_v52, %v13986_v6 }
 0x1d2   : > { %v1867_v9 = vpop.f32.mrb[55].mxu0  ;;  %5641 = vmatprep.subr.bf16.mxu1 %v5480_v5  ;;  %v5492_v54 = vand.u32 %v5446_v27, %v12398_v42  ;;  %v5447_v5 = vsel %vm5434_vm10, %v13924_v12, %v13948_v59  ;;  %v5433_v14 = vpop.permute.xlu0 %5432 }
 0x1d3   : > { %v1903_v40 = vpop.f32.mrb[52].mxu1  ;;  %v5495_v9 = vand.u32 %v5447_v5, %v12398_v42 }
 0x1d4   : > { %v13982_v62 = vadd.f32 %v1903_v40, %v13779_v55  ;;  %v1905_v53 = vpop.f32.mrb[53].mxu1  ;;  %11799 = vmatmul.mubr.msk.bf16.vlgmr.msra.gmra.mrb[160].mxu0 %vm411_vm3, %v13971_v50  ;;  %v5443_v55 = vsel %vm5434_vm10, %v13865_v16, %v13889_v41  ;;  %v5427_v41 = vpop.permute.xlu1 %5426 }
 0x1d5   : > { %v13990_v26 = vadd.f32 %v1905_v53, %v13787_v32  ;;  %5601 = vmatpush1.bf16.msra.mxu0 %v5471_v46  ;;  %v1907_v13 = vpop.f32.mrb[54].mxu1  ;;  %5632 = vmatprep.mubr.bf16.mxu0 %v13789_v37  ;;  %v5483_v34 = vand.u32 %v5443_v55, %v12398_v42  ;;  %v5452_v33 = vsel %vm5434_vm10, %v5427_v41, %v5429_v58 }
 0x1d6   : > { %v1908_v31 = vpop.f32.mrb[55].mxu1  ;;  %5682 = vmatprep.subr.bf16.mxu0 %v5486_v60  ;;  %v5449_v60 = vsel %vm5434_vm10, %v13954_v8, %v5423_v52 }
 0x1d7   : > { %v1944_v0 = vpop.f32.mrb[56].mxu0  ;;  %v5451_v31 = vsel %vm5434_vm10, %v13986_v6, %v5427_v41 }
 0x1d8   : > { %v14001_v32 = vadd.f32 %v1944_v0, %v13800_v18  ;;  %v1946_v22 = vpop.f32.mrb[57].mxu0  ;;  %11800 = vmatmul.mubr.msk.bf16.vlgmr.msra.gmra.mrb[160].mxu1 %vm411_vm3, %v13971_v50  ;;  %v5445_v18 = vsel %vm5434_vm10, %v13895_v24, %v13917_v36  ;;  %v5431_v11 = vpop.permute.xlu1 %5430 }
 0x1d9   : > { %v14007_v47 = vadd.f32 %v1946_v22, %v13806_v56  ;;  %5642 = vmatpush1.bf16.msra.mxu1 %v5477_v28  ;;  %v1948_v16 = vpop.f32.mrb[58].mxu0  ;;  %5673 = vmatprep.mubr.bf16.mxu1 %v13789_v37  ;;  %v5489_v51 = vand.u32 %v5445_v18, %v12398_v42  ;;  %v5454_v27 = vsel %vm5434_vm10, %v5431_v11, %v5433_v14 }
 0x1da   : > { %v1949_v61 = vpop.f32.mrb[59].mxu0  ;;  %5723 = vmatprep.subr.bf16.mxu1 %v5492_v54 }
 0x1db   : > { %v1985_v49 = vpop.f32.mrb[56].mxu1 }
 0x1dc   : > { %v14017_v56 = vadd.f32 %v1985_v49, %v13821_v4  ;;  %v1987_v63 = vpop.f32.mrb[57].mxu1  ;;  %11801 = vmatmul.mubr.msk.bf16.vlgmr.msra.gmra.mrb[164].mxu0 %vm411_vm3, %v13971_v50  ;;  %v5504_v4 = vand.u32 %v5450_v43, %v12398_v42 }
 0x1dd   : > { %v14023_v1 = vadd.f32 %v1987_v63, %v13827_v30  ;;  %5683 = vmatpush1.bf16.msra.mxu0 %v5483_v34  ;;  %v1989_v24 = vpop.f32.mrb[58].mxu1  ;;  %5714 = vmatprep.mubr.bf16.mxu0 %v13789_v37  ;;  %v5453_v34 = vsel %vm5434_vm10, %v5429_v58, %v5431_v11 }
 0x1de   : > { %v1990_v36 = vpop.f32.mrb[59].mxu1  ;;  %5764 = vmatprep.subr.bf16.mxu0 %v5498_v10  ;;  %v5513_v61 = vand.u32 %v5453_v34, %v12398_v42 }
 0x1df   : > { %v2266_v48 = vpop.f32.mrb[60].mxu0 }
 0x1e0   : > { %v14032_v46 = vadd.f32 %v2266_v48, %v13842_v19  ;;  %v2268_v30 = vpop.f32.mrb[61].mxu0  ;;  %11802 = vmatmul.mubr.msk.bf16.vlgmr.msra.gmra.mrb[164].mxu1 %vm411_vm3, %v13971_v50  ;;  %v5510_v19 = vand.u32 %v5452_v33, %v12398_v42 }
 0x1e1   : > { %v14038_v35 = vadd.f32 %v2268_v30, %v13848_v7  ;;  %5724 = vmatpush1.bf16.msra.mxu1 %v5489_v51  ;;  %v2270_v12 = vpop.f32.mrb[62].mxu0  ;;  %5755 = vmatprep.mubr.bf16.mxu1 %v13789_v37  ;;  %v5501_v7 = vand.u32 %v5449_v60, %v12398_v42 }
 0x1e2   : > { %v2271_v59 = vpop.f32.mrb[63].mxu0  ;;  %5805 = vmatprep.subr.bf16.mxu1 %v5504_v4 }
 0x1e3   : > { %v2307_v40 = vpop.f32.mrb[60].mxu1 }
 0x1e4   : > { %v14046_v53 = vadd.f32 %v2307_v40, %v13861_v57  ;;  %v2309_v28 = vpop.f32.mrb[61].mxu1  ;;  %11803 = vmatmul.mubr.msk.bf16.vlgmr.msra.gmra.mrb[168].mxu0 %vm411_vm3, %v13971_v50  ;;  %v5516_v57 = vand.u32 %v5454_v27, %v12398_v42 }
 0x1e5   : > { %v14052_v13 = vadd.f32 %v2309_v28, %v13869_v20  ;;  %5765 = vmatpush1.bf16.msra.mxu0 %v5495_v9  ;;  %v2311_v8 = vpop.f32.mrb[62].mxu1  ;;  %5796 = vmatprep.mubr.bf16.mxu0 %v13789_v37  ;;  %v5507_v20 = vand.u32 %v5451_v31, %v12398_v42 }
 0x1e6   : > { %v2312_v52 = vpop.f32.mrb[63].mxu1  ;;  %5846 = vmatprep.subr.bf16.mxu0 %v5510_v19 }
 0x1e7   : > { %v2348_v55 = vpop.f32.mrb[64].mxu0 }
 0x1e8   : > { %v14059_v54 = vadd.f32 %v2348_v55, %v13880_v29  ;;  %v2350_v0 = vpop.f32.mrb[65].mxu0  ;;  %11804 = vmatmul.mubr.msk.bf16.vlgmr.msra.gmra.mrb[168].mxu1 %vm411_vm3, %v13971_v50 }
 0x1e9   : > { %v14065_v45 = vadd.f32 %v2350_v0, %v13886_v44  ;;  %5806 = vmatpush1.bf16.msra.mxu1 %v5501_v7  ;;  %v2352_v22 = vpop.f32.mrb[66].mxu0  ;;  %5837 = vmatprep.mubr.bf16.mxu1 %v13789_v37 }
 0x1ea   : > { %v2353_v6 = vpop.f32.mrb[67].mxu0  ;;  %5887 = vmatprep.subr.bf16.mxu1 %v5516_v57 }
 0x1eb   : > { %v2389_v16 = vpop.f32.mrb[64].mxu1 }
 0x1ec   : > { %v14070_v29 = vadd.f32 %v2389_v16, %v13901_v23  ;;  %v2391_v41 = vpop.f32.mrb[65].mxu1  ;;  %11805 = vmatmul.mubr.msk.bf16.vlgmr.msra.gmra.mrb[172].mxu0 %vm411_vm3, %v13971_v50 }
 0x1ed   : > { %v14076_v44 = vadd.f32 %v2391_v41, %v13907_v2  ;;  %5847 = vmatpush1.bf16.msra.mxu0 %v5507_v20  ;;  %v2393_v18 = vpop.f32.mrb[66].mxu1  ;;  %5878 = vmatprep.mubr.bf16.mxu0 %v13789_v37 }
 0x1ee   : > { %v2394_v10 = vpop.f32.mrb[67].mxu1 }
 0x1ef   : > { %v2430_v58 = vpop.f32.mrb[68].mxu0 }
 0x1f0   : > { %v14080_v49 = vadd.f32 %v2430_v58, %v13920_v17  ;;  %v2432_v23 = vpop.f32.mrb[69].mxu0  ;;  %11806 = vmatmul.mubr.msk.bf16.vlgmr.msra.gmra.mrb[172].mxu1 %vm411_vm3, %v13971_v50 }
 0x1f1   : > { %v14085_v43 = vadd.f32 %v2432_v23, %v13928_v25  ;;  %5888 = vmatpush1.bf16.msra.mxu1 %v5513_v61  ;;  %v2434_v42 = vpop.f32.mrb[70].mxu0  ;;  %5919 = vmatprep.mubr.bf16.mxu1 %v13789_v37 }
 0x1f2   : > { %v2435_v2 = vpop.f32.mrb[71].mxu0 }
 0x1f3   : > { %v2471_v63 = vpop.f32.mrb[68].mxu1 }
 0x1f4   : > { %v14089_v51 = vadd.f32 %v2471_v63, %v13939_v38  ;;  %v2473_v24 = vpop.f32.mrb[69].mxu1  ;;  %11807 = vmatmul.mubr.msk.bf16.vlgmr.msra.gmra.mrb[176].mxu0 %vm411_vm3, %v13971_v50 }
 0x1f5   : > { %v14094_v17 = vadd.f32 %v2473_v24, %v13945_v15  ;;  %v2475_v36 = vpop.f32.mrb[70].mxu1  ;;  %6497 = vmatprep.mubr.bf16.mxu0 %v13789_v37 }
 0x1f6   : > { %v2476_v25 = vpop.f32.mrb[71].mxu1 }
 0x1f7   : > { %v2512_v5 = vpop.f32.mrb[72].mxu0 }
 0x1f8   : > { %v14098_v4 = vadd.f32 %v2512_v5, %v13960_v39  ;;  %v2514_v48 = vpop.f32.mrb[73].mxu0  ;;  %11808 = vmatmul.mubr.msk.bf16.vlgmr.msra.gmra.mrb[176].mxu1 %vm411_vm3, %v13971_v50  ;;  %vm6004_vm3 = vcmask 338944  }
 0x1f9   : > { %v2655_v38 = vadd.f32 %v2514_v48, %v13966_v21  ;;  %v2516_v33 = vpop.f32.mrb[74].mxu0  ;;  %6538 = vmatprep.mubr.bf16.mxu1 %v13789_v37  ;;  %6005 = vst.msk [vmem:[#allocation2 + $0x50] sm:$0xf] %vm6004_vm3, %v13789_v37 }
 0x1fa   : > { %v2517_v11 = vpop.f32.mrb[75].mxu0 }
 0x1fb   : > { %v2553_v15 = vpop.f32.mrb[72].mxu1 }
 0x1fc   : > { %v2656_v30 = vadd.f32 %v2553_v15, %v13982_v62  ;;  %v2555_v14 = vpop.f32.mrb[73].mxu1 }
 0x1fd   : > { %v2657_v9 = vadd.f32 %v2555_v14, %v13990_v26  ;;  %v2557_v12 = vpop.f32.mrb[74].mxu1 }
 0x1fe   : > { %v2558_v59 = vpop.f32.mrb[75].mxu1 }
 0x1ff   : > { %v2594_v39 = vpop.f32.mrb[76].mxu0 }
 0x200   : > { %v2658_v60 = vadd.f32 %v2594_v39, %v14001_v32  ;;  %v2596_v19 = vpop.f32.mrb[77].mxu0 }
 0x201   : > { %v2659_v50 = vadd.f32 %v2596_v19, %v14007_v47  ;;  %v2598_v40 = vpop.f32.mrb[78].mxu0 }
 0x202   : > { %v2599_v21 = vpop.f32.mrb[79].mxu0 }
 0x203   : > { %v2635_v27 = vpop.f32.mrb[76].mxu1 }
 0x204   : > { %v2660_v28 = vadd.f32 %v2635_v27, %v14017_v56  ;;  %v2637_v7 = vpop.f32.mrb[77].mxu1 }
 0x205   : > { %v2661_v8 = vadd.f32 %v2637_v7, %v14023_v1  ;;  %v2639_v62 = vpop.f32.mrb[78].mxu1 }
 0x206   : > { %v2640_v52 = vpop.f32.mrb[79].mxu1 }
 0x207   : > { %v2916_v31 = vpop.f32.mrb[80].mxu0 }
 0x208   : > { %v3292_v26 = vadd.f32 %v2916_v31, %v14032_v46  ;;  %v2918_v57 = vpop.f32.mrb[81].mxu0 }
 0x209   : > { %v3293_v55 = vadd.f32 %v2918_v57, %v14038_v35  ;;  %v2920_v32 = vpop.f32.mrb[82].mxu0 }
 0x20a   : > { %v2921_v0 = vpop.f32.mrb[83].mxu0 }
 0x20b   : > { %v2957_v20 = vpop.f32.mrb[80].mxu1 }
 0x20c   : > { %v3294_v47 = vadd.f32 %v2957_v20, %v14046_v53  ;;  %v2959_v22 = vpop.f32.mrb[81].mxu1 }
 0x20d   : > { %v3295_v6 = vadd.f32 %v2959_v22, %v14052_v13  ;;  %v2961_v56 = vpop.f32.mrb[82].mxu1 }
 0x20e   : > { %v2962_v34 = vpop.f32.mrb[83].mxu1 }
 0x20f   : > { %v2998_v16 = vpop.f32.mrb[84].mxu0 }
 0x210   : > { %v3000_v1 = vpop.f32.mrb[85].mxu0  ;;  %v3296_v41 = vadd.f32 %v2998_v16, %v14059_v54 }
 0x211   : > { %v3002_v61 = vpop.f32.mrb[86].mxu0  ;;  %v3297_v46 = vadd.f32 %v3000_v1, %v14065_v45 }
 0x212   : > { %v3003_v18 = vpop.f32.mrb[87].mxu0 }
 0x213   : > { %v3039_v10 = vpop.f32.mrb[84].mxu1 }
 0x214   : > { %v3041_v35 = vpop.f32.mrb[85].mxu1  ;;  %v3298_v58 = vadd.f32 %v3039_v10, %v14070_v29 }
 0x215   : > { %v3043_v23 = vpop.f32.mrb[86].mxu1  ;;  %v3299_v53 = vadd.f32 %v3041_v35, %v14076_v44 }
 0x216   : > { %v3044_v42 = vpop.f32.mrb[87].mxu1 }
 0x217   : > { %v3080_v2 = vpop.f32.mrb[88].mxu0 }
 0x218   : > { %v3082_v13 = vpop.f32.mrb[89].mxu0  ;;  %v3300_v63 = vadd.f32 %v3080_v2, %v14080_v49 }
 0x219   : > { %v3084_v24 = vpop.f32.mrb[90].mxu0  ;;  %v3301_v36 = vadd.f32 %v3082_v13, %v14085_v43 }
 0x21a   : > { %v3085_v54 = vpop.f32.mrb[91].mxu0 }
 0x21b   : > { %v3121_v25 = vpop.f32.mrb[88].mxu1 }
 0x21c   : > { %v3123_v5 = vpop.f32.mrb[89].mxu1  ;;  %v3302_v45 = vadd.f32 %v3121_v25, %v14089_v51 }
 0x21d   : > { %v3125_v48 = vpop.f32.mrb[90].mxu1  ;;  %v3303_v33 = vadd.f32 %v3123_v5, %v14094_v17 }
 0x21e   : > { %v3126_v29 = vpop.f32.mrb[91].mxu1 }
 0x21f   : > { %v3162_v11 = vpop.f32.mrb[92].mxu0 }
 0x220   : > { %v3164_v15 = vpop.f32.mrb[93].mxu0  ;;  %v3304_v44 = vadd.f32 %v3162_v11, %v14098_v4 }
 0x221   : > { %v3166_v14 = vpop.f32.mrb[94].mxu0  ;;  %v3305_v12 = vadd.f32 %v3164_v15, %v2655_v38 }
 0x222   : > { %v3167_v59 = vpop.f32.mrb[95].mxu0 }
 0x223   : > { %v3203_v49 = vpop.f32.mrb[92].mxu1 }
 0x224   : > { %v3205_v39 = vpop.f32.mrb[93].mxu1  ;;  %v3306_v19 = vadd.f32 %v3203_v49, %v2656_v30 }
 0x225   : > { %v3207_v43 = vpop.f32.mrb[94].mxu1  ;;  %v3307_v40 = vadd.f32 %v3205_v39, %v2657_v9 }
 0x226   : > { %v3208_v21 = vpop.f32.mrb[95].mxu1 }
 0x227   : > { %v3244_v27 = vpop.f32.mrb[96].mxu0 }
 0x228   : > { %v3246_v7 = vpop.f32.mrb[97].mxu0  ;;  %v3308_v51 = vadd.f32 %v3244_v27, %v2658_v60 }
 0x229   : > { %v3248_v62 = vpop.f32.mrb[98].mxu0  ;;  %v3309_v52 = vadd.f32 %v3246_v7, %v2659_v50 }
 0x22a   : > { %v3249_v17 = vpop.f32.mrb[99].mxu0 }
 0x22b   : > { %v3285_v31 = vpop.f32.mrb[96].mxu1 }
 0x22c   : > { %v3287_v57 = vpop.f32.mrb[97].mxu1  ;;  %v3310_v32 = vadd.f32 %v3285_v31, %v2660_v28 }
 0x22d   : > { %v3289_v0 = vpop.f32.mrb[98].mxu1  ;;  %v3311_v4 = vadd.f32 %v3287_v57, %v2661_v8 }
 0x22e   : > { %v3290_v20 = vpop.f32.mrb[99].mxu1 }
 0x22f   : > { %v3566_v38 = vpop.f32.mrb[100].mxu0 }
 0x230   : > { %v3568_v22 = vpop.f32.mrb[101].mxu0  ;;  %v3942_v56 = vadd.f32 %v3566_v38, %v3292_v26 }
 0x231   : > { %v3570_v34 = vpop.f32.mrb[102].mxu0  ;;  %v3943_v30 = vadd.f32 %v3568_v22, %v3293_v55 }
 0x232   : > { %v3571_v16 = vpop.f32.mrb[103].mxu0 }
 0x233   : > { %v3607_v9 = vpop.f32.mrb[100].mxu1 }
 0x234   : > { %v3609_v1 = vpop.f32.mrb[101].mxu1  ;;  %v3944_v61 = vadd.f32 %v3607_v9, %v3294_v47 }
 0x235   : > { %v3611_v18 = vpop.f32.mrb[102].mxu1  ;;  %v3945_v60 = vadd.f32 %v3609_v1, %v3295_v6 }
 0x236   : > { %v3612_v10 = vpop.f32.mrb[103].mxu1 }
 0x237   : > { %v3648_v50 = vpop.f32.mrb[104].mxu0 }
 0x238   : > { %v3946_v35 = vadd.f32 %v3648_v50, %v3296_v41  ;;  %v3650_v23 = vpop.f32.mrb[105].mxu0 }
 0x239   : > { %v3947_v42 = vadd.f32 %v3650_v23, %v3297_v46  ;;  %v3652_v28 = vpop.f32.mrb[106].mxu0 }
 0x23a   : > { %v3653_v2 = vpop.f32.mrb[107].mxu0 }
 0x23b   : > { %v3689_v8 = vpop.f32.mrb[104].mxu1 }
 0x23c   : > { %v3948_v13 = vadd.f32 %v3689_v8, %v3298_v58  ;;  %v3691_v24 = vpop.f32.mrb[105].mxu1 }
 0x23d   : > { %v3949_v54 = vadd.f32 %v3691_v24, %v3299_v53  ;;  %v3693_v26 = vpop.f32.mrb[106].mxu1 }
 0x23e   : > { %v3694_v25 = vpop.f32.mrb[107].mxu1 }
 0x23f   : > { %v3730_v55 = vpop.f32.mrb[108].mxu0 }
 0x240   : > { %v3950_v5 = vadd.f32 %v3730_v55, %v3300_v63  ;;  %v3732_v48 = vpop.f32.mrb[109].mxu0 }
 0x241   : > { %v3951_v29 = vadd.f32 %v3732_v48, %v3301_v36  ;;  %v3734_v47 = vpop.f32.mrb[110].mxu0 }
 0x242   : > { %v3735_v11 = vpop.f32.mrb[111].mxu0 }
 0x243   : > { %v3771_v6 = vpop.f32.mrb[108].mxu1 }
 0x244   : > { %v3952_v15 = vadd.f32 %v3771_v6, %v3302_v45  ;;  %v3773_v14 = vpop.f32.mrb[109].mxu1 }
 0x245   : > { %v3953_v41 = vadd.f32 %v3773_v14, %v3303_v33  ;;  %v3775_v59 = vpop.f32.mrb[110].mxu1 }
 0x246   : > { %v3776_v46 = vpop.f32.mrb[111].mxu1 }
 0x247   : > { %v3812_v49 = vpop.f32.mrb[112].mxu0 }
 0x248   : > { %v3954_v39 = vadd.f32 %v3812_v49, %v3304_v44  ;;  %v3814_v43 = vpop.f32.mrb[113].mxu0 }
 0x249   : > { %v3955_v58 = vadd.f32 %v3814_v43, %v3305_v12  ;;  %v3816_v21 = vpop.f32.mrb[114].mxu0 }
 0x24a   : > { %v3817_v53 = vpop.f32.mrb[115].mxu0 }
 0x24b   : > { %v3853_v27 = vpop.f32.mrb[112].mxu1 }
 0x24c   : > { %v3956_v7 = vadd.f32 %v3853_v27, %v3306_v19  ;;  %v3855_v62 = vpop.f32.mrb[113].mxu1 }
 0x24d   : > { %v3957_v63 = vadd.f32 %v3855_v62, %v3307_v40  ;;  %v3857_v17 = vpop.f32.mrb[114].mxu1 }
 0x24e   : > { %v3858_v36 = vpop.f32.mrb[115].mxu1 }
 0x24f   : > { %v3894_v31 = vpop.f32.mrb[116].mxu0 }
 0x250   : > { %v3958_v57 = vadd.f32 %v3894_v31, %v3308_v51  ;;  %v3896_v0 = vpop.f32.mrb[117].mxu0 }
 0x251   : > { %v3959_v45 = vadd.f32 %v3896_v0, %v3309_v52  ;;  %v3898_v20 = vpop.f32.mrb[118].mxu0 }
 0x252   : > { %v3899_v33 = vpop.f32.mrb[119].mxu0 }
 0x253   : > { %v3935_v38 = vpop.f32.mrb[116].mxu1 }
 0x254   : > { %v3960_v22 = vadd.f32 %v3935_v38, %v3310_v32  ;;  %v3937_v34 = vpop.f32.mrb[117].mxu1 }
 0x255   : > { %v3961_v44 = vadd.f32 %v3937_v34, %v3311_v4  ;;  %v3939_v16 = vpop.f32.mrb[118].mxu1 }
 0x256   : > { %v3940_v12 = vpop.f32.mrb[119].mxu1 }
 0x257   : > { %v4228_v9 = vpop.f32.mrb[120].mxu0 }
 0x258   : > { %v4604_v1 = vadd.f32 %v4228_v9, %v3942_v56  ;;  %v4230_v18 = vpop.f32.mrb[121].mxu0 }
 0x259   : > { %v4605_v19 = vadd.f32 %v4230_v18, %v3943_v30  ;;  %v4232_v10 = vpop.f32.mrb[122].mxu0 }
 0x25a   : > { %v4233_v40 = vpop.f32.mrb[123].mxu0 }
 0x25b   : > { %v4269_v50 = vpop.f32.mrb[120].mxu1 }
 0x25c   : > { %v4606_v23 = vadd.f32 %v4269_v50, %v3944_v61  ;;  %v4271_v28 = vpop.f32.mrb[121].mxu1 }
 0x25d   : > { %v4607_v51 = vadd.f32 %v4271_v28, %v3945_v60  ;;  %v4273_v2 = vpop.f32.mrb[122].mxu1 }
 0x25e   : > { %v4274_v52 = vpop.f32.mrb[123].mxu1 }
 0x25f   : > { %v4310_v8 = vpop.f32.mrb[124].mxu0 }
 0x260   : > { %v4608_v24 = vadd.f32 %v4310_v8, %v3946_v35  ;;  %v4312_v26 = vpop.f32.mrb[125].mxu0 }
 0x261   : > { %v4609_v32 = vadd.f32 %v4312_v26, %v3947_v42  ;;  %v4314_v25 = vpop.f32.mrb[126].mxu0 }
 0x262   : > { %v4315_v4 = vpop.f32.mrb[127].mxu0 }
 0x263   : > { %v4351_v55 = vpop.f32.mrb[124].mxu1 }
 0x264   : > { %v4610_v48 = vadd.f32 %v4351_v55, %v3948_v13  ;;  %v4353_v47 = vpop.f32.mrb[125].mxu1 }
 0x265   : > { %v4611_v56 = vadd.f32 %v4353_v47, %v3949_v54  ;;  %v4355_v11 = vpop.f32.mrb[126].mxu1 }
 0x266   : > { %v4356_v30 = vpop.f32.mrb[127].mxu1 }
 0x267   : > { %v4392_v6 = vpop.f32.mrb[128].mxu0 }
 0x268   : > { %v4612_v14 = vadd.f32 %v4392_v6, %v3950_v5  ;;  %v4394_v59 = vpop.f32.mrb[129].mxu0 }
 0x269   : > { %v4613_v61 = vadd.f32 %v4394_v59, %v3951_v29  ;;  %v4396_v46 = vpop.f32.mrb[130].mxu0 }
 0x26a   : > { %v4397_v60 = vpop.f32.mrb[131].mxu0 }
 0x26b   : > { %v4433_v49 = vpop.f32.mrb[128].mxu1 }
 0x26c   : > { %v4614_v43 = vadd.f32 %v4433_v49, %v3952_v15  ;;  %v4435_v21 = vpop.f32.mrb[129].mxu1 }
 0x26d   : > { %v4615_v35 = vadd.f32 %v4435_v21, %v3953_v41  ;;  %v4437_v53 = vpop.f32.mrb[130].mxu1 }
 0x26e   : > { %v4438_v42 = vpop.f32.mrb[131].mxu1 }
 0x26f   : > { %v4474_v27 = vpop.f32.mrb[132].mxu0 }
 0x270   : > { %v4616_v62 = vadd.f32 %v4474_v27, %v3954_v39  ;;  %v4476_v17 = vpop.f32.mrb[133].mxu0 }
 0x271   : > { %v4617_v13 = vadd.f32 %v4476_v17, %v3955_v58  ;;  %v4478_v36 = vpop.f32.mrb[134].mxu0 }
 0x272   : > { %v4479_v54 = vpop.f32.mrb[135].mxu0 }
 0x273   : > { %v4515_v31 = vpop.f32.mrb[132].mxu1 }
 0x274   : > { %v4618_v0 = vadd.f32 %v4515_v31, %v3956_v7  ;;  %v4517_v20 = vpop.f32.mrb[133].mxu1 }
 0x275   : > { %v4619_v5 = vadd.f32 %v4517_v20, %v3957_v63  ;;  %v4519_v33 = vpop.f32.mrb[134].mxu1 }
 0x276   : > { %v4520_v29 = vpop.f32.mrb[135].mxu1 }
 0x277   : > { %v4556_v38 = vpop.f32.mrb[136].mxu0 }
 0x278   : > { %v4620_v34 = vadd.f32 %v4556_v38, %v3958_v57  ;;  %v4558_v16 = vpop.f32.mrb[137].mxu0 }
 0x279   : > { %v4621_v15 = vadd.f32 %v4558_v16, %v3959_v45  ;;  %v4560_v12 = vpop.f32.mrb[138].mxu0 }
 0x27a   : > { %v4561_v41 = vpop.f32.mrb[139].mxu0 }
 0x27b   : > { %v4597_v9 = vpop.f32.mrb[136].mxu1 }
 0x27c   : > { %v4622_v18 = vadd.f32 %v4597_v9, %v3960_v22  ;;  %v4599_v10 = vpop.f32.mrb[137].mxu1 }
 0x27d   : > { %v4623_v39 = vadd.f32 %v4599_v10, %v3961_v44  ;;  %v4601_v40 = vpop.f32.mrb[138].mxu1 }
 0x27e   : > { %v4602_v58 = vpop.f32.mrb[139].mxu1 }
 0x27f   : > { %v4890_v50 = vpop.f32.mrb[140].mxu0 }
 0x280   : > { %v14123_v28 = vadd.f32 %v4890_v50, %v4604_v1  ;;  %v4892_v7 = vpop.f32.mrb[141].mxu0 }
 0x281   : > { %v14125_v2 = vadd.f32 %v4892_v7, %v4605_v19  ;;  %v4894_v63 = vpop.f32.mrb[142].mxu0 }
 0x282   : > { %v4895_v52 = vpop.f32.mrb[143].mxu0 }
 0x283   : > { %v4931_v8 = vpop.f32.mrb[140].mxu1 }
 0x284   : > { %v14127_v57 = vadd.f32 %v4931_v8, %v4606_v23  ;;  %v4933_v45 = vpop.f32.mrb[141].mxu1  ;;  %v14166_v8 = vpop.permute.xlu1 %5951 }
 0x285   : > { %v14129_v26 = vadd.f32 %v4933_v45, %v4607_v51  ;;  %v4935_v25 = vpop.f32.mrb[142].mxu1 }
 0x286   : > { %v4936_v22 = vpop.f32.mrb[143].mxu1 }
 0x287   : > { %v4972_v4 = vpop.f32.mrb[144].mxu0 }
 0x288   : > { %v14131_v44 = vadd.f32 %v4972_v4, %v4608_v24  ;;  %v4974_v55 = vpop.f32.mrb[145].mxu0  ;;  %v14177_v4 = vsub.s32 2, %v12186_v3 }
 0x289   : > { %v14133_v47 = vadd.f32 %v4974_v55, %v4609_v32  ;;  %v4976_v1 = vpop.f32.mrb[146].mxu0 }
 0x28a   : > { %v4977_v11 = vpop.f32.mrb[147].mxu0 }
 0x28b   : > { %v5013_v19 = vpop.f32.mrb[144].mxu1 }
 0x28c   : > { %v14135_v30 = vadd.f32 %v5013_v19, %v4610_v48  ;;  %v5015_v6 = vpop.f32.mrb[145].mxu1  ;;  %v14182_v19 = vsub.s32 3, %v12186_v3 }
 0x28d   : > { %v14137_v59 = vadd.f32 %v5015_v6, %v4611_v56  ;;  %v5017_v23 = vpop.f32.mrb[146].mxu1 }
 0x28e   : > { %v5018_v46 = vpop.f32.mrb[147].mxu1 }
 0x28f   : > { %v5054_v51 = vpop.f32.mrb[148].mxu0 }
 0x290   : > { %v14139_v60 = vadd.f32 %v5054_v51, %v4612_v14  ;;  %v5056_v49 = vpop.f32.mrb[149].mxu0 }
 0x291   : > { %v14141_v21 = vadd.f32 %v5056_v49, %v4613_v61  ;;  %v5058_v24 = vpop.f32.mrb[150].mxu0 }
 0x292   : > { %v5059_v53 = vpop.f32.mrb[151].mxu0 }
 0x293   : > { %v5095_v32 = vpop.f32.mrb[148].mxu1 }
 0x294   : > { %v14143_v42 = vadd.f32 %v5095_v32, %v4614_v43  ;;  %v5097_v27 = vpop.f32.mrb[149].mxu1 }
 0x295   : > { %v14145_v17 = vadd.f32 %v5097_v27, %v4615_v35  ;;  %v5099_v48 = vpop.f32.mrb[150].mxu1 }
 0x296   : > { %v5100_v36 = vpop.f32.mrb[151].mxu1  ;;  %v6030_v48 = vsub.s32 4, %v12186_v3 }
 0x297   : > { %v5136_v56 = vpop.f32.mrb[152].mxu0 }
 0x298   : > { %v14147_v54 = vadd.f32 %v5136_v56, %v4616_v62  ;;  %v5138_v31 = vpop.f32.mrb[153].mxu0 }
 0x299   : > { %v14149_v20 = vadd.f32 %v5138_v31, %v4617_v13  ;;  %v5140_v14 = vpop.f32.mrb[154].mxu0 }
 0x29a   : > { %v5141_v33 = vpop.f32.mrb[155].mxu0 }
 0x29b   : > { %v5177_v61 = vpop.f32.mrb[152].mxu1 }
 0x29c   : > { %v14151_v29 = vadd.f32 %v5177_v61, %v4618_v0  ;;  %v5179_v38 = vpop.f32.mrb[153].mxu1 }
 0x29d   : > { %v14153_v16 = vadd.f32 %v5179_v38, %v4619_v5  ;;  %v5181_v43 = vpop.f32.mrb[154].mxu1  ;;  %v14164_v5 = vsub.s32 0, %v12186_v3 }
 0x29e   : > { %v5182_v12 = vpop.f32.mrb[155].mxu1 }
 0x29f   : > { %v5218_v35 = vpop.f32.mrb[156].mxu0 }
 0x2a0   : > { %v14155_v41 = vadd.f32 %v5218_v35, %v4620_v34  ;;  %v5220_v9 = vpop.f32.mrb[157].mxu0  ;;  %v6006_v34 = vld [vmem:[%s16313_s5] sm:$0xff] }
 0x2a1   : > { %v14157_v10 = vadd.f32 %v5220_v9, %v4621_v15  ;;  %v5222_v62 = vpop.f32.mrb[158].mxu0  ;;  %v14172_v15 = vsub.s32 1, %v12186_v3  ;;  %v6015_v1 = vrot.slane %v6006_v34, %v14164_v5  ;;  %v6023_v32 = vrot.slane %v6006_v34, %v14177_v4 }
 0x2a2   : > { %v5223_v40 = vpop.f32.mrb[159].mxu0  ;;  %v6027_v31 = vrot.slane %v6006_v34, %v14182_v19 }
 0x2a3   : > { %v5259_v13 = vpop.f32.mrb[156].mxu1 }
 0x2a4   : > { %v14159_v58 = vadd.f32 %v5259_v13, %v4622_v18  ;;  %v5261_v50 = vpop.f32.mrb[157].mxu1  ;;  %v6031_v13 = vrot.slane %v6006_v34, %v6030_v48 }
 0x2a5   : > { %v14161_v7 = vadd.f32 %v5261_v50, %v4623_v39  ;;  %v5263_v0 = vpop.f32.mrb[158].mxu1 }
 0x2a6   : > { %v5264_v63 = vpop.f32.mrb[159].mxu1  ;;  %v6038_v0 = vsub.s32 6, %v12186_v3 }
 0x2a7   : > { %v5552_v52 = vpop.f32.mrb[160].mxu0 }
 0x2a8   : > { %v5928_v18 = vadd.f32 %v5552_v52, %v14123_v28  ;;  %v5554_v45 = vpop.f32.mrb[161].mxu0  ;;  %v6019_v28 = vrot.slane %v6006_v34, %v14172_v15 }
 0x2a9   : > { %v5929_v39 = vadd.f32 %v5554_v45, %v14125_v2  ;;  %v5556_v25 = vpop.f32.mrb[162].mxu0 }
 0x2aa   : > { %v5557_v22 = vpop.f32.mrb[163].mxu0  ;;  %v5954_v55 = vadd.f32 %v14166_v8, %v5928_v18  ;;  %v6042_v18 = vsub.s32 7, %v12186_v3 }
 0x2ab   : > { %v5593_v11 = vpop.f32.mrb[160].mxu1  ;;  %v5955_v6 = vadd.f32 %v14166_v8, %v5929_v39 }
 0x2ac   : > { %v5930_v23 = vadd.f32 %v5593_v11, %v14127_v57  ;;  %v5595_v2 = vpop.f32.mrb[161].mxu1  ;;  %v5974_v46 = vmax.f32 %v5954_v55, 0.0  ;;  %v6034_v57 = vsub.s32 5, %v12186_v3 }
 0x2ad   : > { %v5931_v51 = vadd.f32 %v5595_v2, %v14129_v26  ;;  %v5597_v49 = vpop.f32.mrb[162].mxu1  ;;  %v5975_v24 = vmax.f32 %v5955_v6, 0.0 }
 0x2ae   : > { %v5956_v53 = vadd.f32 %v14166_v8, %v5930_v23  ;;  %v5598_v27 = vpop.f32.mrb[163].mxu1  ;;  %v6112_v36 = vmul.f32 %v6015_v1, %v5974_v46  ;;  %v6039_v23 = vrot.slane %v6006_v34, %v6038_v0  ;;  %v6043_v49 = vrot.slane %v6006_v34, %v6042_v18 }
 0x2af   : > { %v5957_v56 = vadd.f32 %v14166_v8, %v5931_v51  ;;  %v5634_v14 = vpop.f32.mrb[164].mxu0  ;;  %v6113_v33 = vmul.f32 %v6019_v28, %v5975_v24  ;;  %v14216_v24 = vld [vmem:[%s16313_s5 + $0x8] sm:$0xff] }
 0x2b0   : > { %v5976_v61 = vmax.f32 %v5956_v53, 0.0  ;;  %v5932_v26 = vadd.f32 %v5634_v14, %v14131_v44  ;;  %v5636_v38 = vpop.f32.mrb[165].mxu0  ;;  %v6035_v44 = vrot.slane %v6006_v34, %v6034_v57 }
 0x2b1   : > { %v5977_v43 = vmax.f32 %v5957_v56, 0.0  ;;  %v5933_v12 = vadd.f32 %v5636_v38, %v14133_v47  ;;  %v5638_v35 = vpop.f32.mrb[166].mxu0  ;;  %v12060_v9 = vpack.c.bf16 %v6113_v33, %v6112_v36  ;;  %v6047_v33 = vrot.slane %v14216_v24, %v14164_v5 }
 0x2b2   : > { %v6114_v62 = vmul.f32 %v6023_v32, %v5976_v61  ;;  %v5958_v40 = vadd.f32 %v14166_v8, %v5932_v26  ;;  %v5639_v50 = vpop.f32.mrb[167].mxu0 }
 0x2b3   : > { %v6115_v63 = vmul.f32 %v6027_v31, %v5977_v43  ;;  %v5959_v52 = vadd.f32 %v14166_v8, %v5933_v12  ;;  %6202 = vrot.lane.b32.xlu0 %v12060_v9, %s12140_s18  ;;  %v5675_v47 = vpop.f32.mrb[164].mxu1  ;;  %v6051_v43 = vrot.slane %v14216_v24, %v14172_v15 }
 0x2b4   : > { %v5978_v45 = vmax.f32 %v5958_v40, 0.0  ;;  %v5934_v39 = vadd.f32 %v5675_v47, %v14135_v30  ;;  %v5677_v25 = vpop.f32.mrb[165].mxu1 }
 0x2b5   : > { %v12061_v22 = vpack.c.bf16 %v6115_v63, %v6114_v62  ;;  %v5979_v55 = vmax.f32 %v5959_v52, 0.0  ;;  %v5935_v1 = vadd.f32 %v5677_v25, %v14137_v59  ;;  %v5679_v11 = vpop.f32.mrb[166].mxu1  ;;  %v6055_v52 = vrot.slane %v14216_v24, %v14177_v4 }
 0x2b6   : > { %v6116_v6 = vmul.f32 %v6031_v13, %v5978_v45  ;;  %v5960_v28 = vadd.f32 %v14166_v8, %v5934_v39  ;;  %v5680_v2 = vpop.f32.mrb[167].mxu1  ;;  %v6059_v39 = vrot.slane %v14216_v24, %v14182_v19 }
 0x2b7   : > { %v6117_v46 = vmul.f32 %v6035_v44, %v5979_v55  ;;  %v5961_v51 = vadd.f32 %v14166_v8, %v5935_v1  ;;  %v5716_v30 = vpop.f32.mrb[168].mxu0  ;;  %6204 = vrot.lane.b32.xlu1 %v12061_v22, %s12140_s18  ;;  %v6063_v2 = vrot.slane %v14216_v24, %v6030_v48 }
 0x2b8   : > { %v5980_v59 = vmax.f32 %v5960_v28, 0.0  ;;  %v5936_v53 = vadd.f32 %v5716_v30, %v14139_v60  ;;  %v5718_v32 = vpop.f32.mrb[169].mxu0 }
 0x2b9   : > { %v12062_v27 = vpack.c.bf16 %v6117_v46, %v6116_v6  ;;  %v5981_v36 = vmax.f32 %v5961_v51, 0.0  ;;  %v5937_v56 = vadd.f32 %v5718_v32, %v14141_v21  ;;  %v5720_v31 = vpop.f32.mrb[170].mxu0 }
 0x2ba   : > { %v6118_v14 = vmul.f32 %v6039_v23, %v5980_v59  ;;  %v5962_v34 = vadd.f32 %v14166_v8, %v5936_v53  ;;  %v5721_v61 = vpop.f32.mrb[171].mxu0 }
 0x2bb   : > { %v6119_v26 = vmul.f32 %v6043_v49, %v5981_v36  ;;  %v5963_v38 = vadd.f32 %v14166_v8, %v5937_v56  ;;  %6206 = vrot.lane.b32.xlu0 %v12062_v27, %s12140_s18  ;;  %v5757_v60 = vpop.f32.mrb[168].mxu1 }
 0x2bc   : > { %v5982_v12 = vmax.f32 %v5962_v34, 0.0  ;;  %v5938_v21 = vadd.f32 %v5757_v60, %v14143_v42  ;;  %v5759_v35 = vpop.f32.mrb[169].mxu1 }
 0x2bd   : > { %v12063_v9 = vpack.c.bf16 %v6119_v26, %v6118_v14  ;;  %v5983_v62 = vmax.f32 %v5963_v38, 0.0  ;;  %v5939_v40 = vadd.f32 %v5759_v35, %v14145_v17  ;;  %v5761_v13 = vpop.f32.mrb[170].mxu1  ;;  %v6071_v14 = vrot.slane %v14216_v24, %v6038_v0 }
 0x2be   : > { %v6120_v50 = vmul.f32 %v6047_v33, %v5982_v12  ;;  %v5964_v63 = vadd.f32 %v14166_v8, %v5938_v21  ;;  %v5762_v44 = vpop.f32.mrb[171].mxu1 }
 0x2bf   : > { %v6121_v47 = vmul.f32 %v6051_v43, %v5983_v62  ;;  %v5965_v45 = vadd.f32 %v14166_v8, %v5939_v40  ;;  %v5798_v42 = vpop.f32.mrb[172].mxu0  ;;  %6208 = vrot.lane.b32.xlu1 %v12063_v9, %s12140_s18 }
 0x2c0   : > { %v5984_v25 = vmax.f32 %v5964_v63, 0.0  ;;  %v5940_v17 = vadd.f32 %v5798_v42, %v14147_v54  ;;  %v5800_v22 = vpop.f32.mrb[173].mxu0  ;;  %v6067_v54 = vrot.slane %v14216_v24, %v6034_v57 }
 0x2c1   : > { %v12064_v55 = vpack.c.bf16 %v6121_v47, %v6120_v50  ;;  %v5985_v1 = vmax.f32 %v5965_v45, 0.0  ;;  %v5941_v11 = vadd.f32 %v5800_v22, %v14149_v20  ;;  %v5802_v6 = vpop.f32.mrb[174].mxu0 }
 0x2c2   : > { %v6122_v28 = vmul.f32 %v6055_v52, %v5984_v25  ;;  %v5966_v23 = vadd.f32 %v14166_v8, %v5940_v17  ;;  %v5803_v46 = vpop.f32.mrb[175].mxu0 }
 0x2c3   : > { %v6123_v51 = vmul.f32 %v6059_v39, %v5985_v1  ;;  %v5967_v49 = vadd.f32 %v14166_v8, %v5941_v11  ;;  %6210 = vrot.lane.b32.xlu0 %v12064_v55, %s12140_s18  ;;  %v5839_v30 = vpop.f32.mrb[172].mxu1 }
 0x2c4   : > { %v5986_v20 = vmax.f32 %v5966_v23, 0.0  ;;  %v5942_v59 = vadd.f32 %v5839_v30, %v14151_v29  ;;  %v5841_v53 = vpop.f32.mrb[173].mxu1  ;;  %v6075_v29 = vrot.slane %v14216_v24, %v6042_v18 }
 0x2c5   : > { %v12065_v32 = vpack.c.bf16 %v6123_v51, %v6122_v28  ;;  %v5987_v27 = vmax.f32 %v5967_v49, 0.0  ;;  %v5943_v36 = vadd.f32 %v5841_v53, %v14153_v16  ;;  %v5843_v48 = vpop.f32.mrb[174].mxu1  ;;  %v6008_v16 = vld [vmem:[%s16313_s5 + $0x10] sm:$0xf] }
 0x2c6   : > { %v6124_v56 = vmul.f32 %v6063_v2, %v5986_v20  ;;  %v5968_v31 = vadd.f32 %v14166_v8, %v5942_v59  ;;  %v5844_v57 = vpop.f32.mrb[175].mxu1  ;;  %v6079_v18 = vrot.slane %v6008_v16, %v14164_v5  ;;  %v6083_v40 = vrot.slane %v6008_v16, %v14172_v15 }
 0x2c7   : > { %v6125_v34 = vmul.f32 %v6067_v54, %v5987_v27  ;;  %v5969_v33 = vadd.f32 %v14166_v8, %v5943_v36  ;;  %v5880_v61 = vpop.f32.mrb[176].mxu0  ;;  %6212 = vrot.lane.b32.xlu1 %v12065_v32, %s12140_s18  ;;  %v6087_v39 = vrot.slane %v6008_v16, %v14177_v4  ;;  %v6091_v17 = vrot.slane %v6008_v16, %v14182_v19 }
 0x2c8   : > { %v5988_v26 = vmax.f32 %v5968_v31, 0.0  ;;  %v5944_v38 = vadd.f32 %v5880_v61, %v14155_v41  ;;  %v5882_v43 = vpop.f32.mrb[177].mxu0 }
 0x2c9   : > { %v12066_v0 = vpack.c.bf16 %v6125_v34, %v6124_v56  ;;  %v5989_v60 = vmax.f32 %v5969_v33, 0.0  ;;  %v5945_v12 = vadd.f32 %v5882_v43, %v14157_v10  ;;  %v5884_v21 = vpop.f32.mrb[178].mxu0 }
 0x2ca   : > { %v6126_v35 = vmul.f32 %v6071_v14, %v5988_v26  ;;  %v5970_v3 = vadd.f32 %v14166_v8, %v5944_v38  ;;  %v5885_v24 = vpop.f32.mrb[179].mxu0 }
 0x2cb   : > { %v6127_v9 = vmul.f32 %v6075_v29, %v5989_v60  ;;  %v5971_v62 = vadd.f32 %v14166_v8, %v5945_v12  ;;  %6214 = vrot.lane.b32.xlu0 %v12066_v0, %s12140_s18  ;;  %v5921_v41 = vpop.f32.mrb[176].mxu1 }
 0x2cc   : > { %v5990_v13 = vmax.f32 %v5970_v3, 0.0  ;;  %v5946_v50 = vadd.f32 %v5921_v41, %v14159_v58  ;;  %v5923_v63 = vpop.f32.mrb[177].mxu1 }
 0x2cd   : > { %v12067_v10 = vpack.c.bf16 %v6127_v9, %v6126_v35  ;;  %v5991_v52 = vmax.f32 %v5971_v62, 0.0  ;;  %v5947_v44 = vadd.f32 %v5923_v63, %v14161_v7  ;;  %v5925_v47 = vpop.f32.mrb[178].mxu1 }
 0x2ce   : > { %v6128_v45 = vmul.f32 %v6079_v18, %v5990_v13  ;;  %v5972_v5 = vadd.f32 %v14166_v8, %v5946_v50  ;;  %v5926_v42 = vpop.f32.mrb[179].mxu1 }
 0x2cf   : > { %v6129_v25 = vmul.f32 %v6083_v40, %v5991_v52  ;;  %v5973_v15 = vadd.f32 %v14166_v8, %v5947_v44  ;;  %6216 = vrot.lane.b32.xlu1 %v12067_v10, %s12140_s18 }
 0x2d0   : > { %v5992_v58 = vmax.f32 %v5972_v5, 0.0 }
 0x2d1   : > { %v12068_v22 = vpack.c.bf16 %v6129_v25, %v6128_v45  ;;  %v5993_v55 = vmax.f32 %v5973_v15, 0.0 }
 0x2d2   : > { %v6130_v1 = vmul.f32 %v6087_v39, %v5992_v58 }
 0x2d3   : > { %v6131_v11 = vmul.f32 %v6091_v17, %v5993_v55  ;;  %6218 = vrot.lane.b32.xlu0 %v12068_v22, %s12140_s18 }
 0x2d5   : > { %v12069_v7 = vpack.c.bf16 %v6131_v11, %v6130_v1 }
 0x2d7   : > { %6220 = vrot.lane.b32.xlu1 %v12069_v7, %s12140_s18 }
 0x325   : > { %v6203_v4 = vpop.permute.xlu0 %6202 }
 0x326   : > { %v6222_v8 = vrot.slane %v6203_v4, 4 }
 0x328   : > { %v6233_v19 = vsel %vm6232_vm13, %v6222_v8, %v6203_v4 }
 0x329   : > { %6266 = vst.msk [vmem:[#allocation2] sm:$0xff] %vm6265_vm14, %v6233_v19  ;;  %v6205_v6 = vpop.permute.xlu1 %6204 }
 0x32a   : > { %v6223_v28 = vrot.slane %v6205_v6, 4 }
 0x32c   : > { %v6235_v2 = vsel %vm6234_vm15, %v6222_v8, %v6223_v28 }
 0x32d   : > { %v6207_v23 = vpop.permute.xlu0 %6206  ;;  %v6236_v20 = vsel %vm6232_vm13, %v6235_v2, %v6205_v6 }
 0x32e   : > { %v6224_v46 = vrot.slane %v6207_v23, 4  ;;  %v14290_v27 = vcombine.high %v6236_v20, %v6236_v20  ;;  %v14292_v36 = vcombine.low %v6236_v20, %v6236_v20 }
 0x330   : > { %v6280_v51 = vld [vmem:[#allocation2] sm:$0xff]  ;;  %v6237_v59 = vsel %vm6234_vm15, %v6223_v28, %v6224_v46 }
 0x331   : > { %v6209_v49 = vpop.permute.xlu1 %6208  ;;  %v14280_v54 = vcombine.low %v6280_v51, %v6280_v51  ;;  %v14282_v30 = vcombine.high %v6280_v51, %v6280_v51  ;;  %v6238_v48 = vsel %vm6232_vm13, %v6237_v59, %v6207_v23  ;;  %v14471_v51 = vld [vmem:[%s16311_s3 + $0x4] sm:$0xf] }
 0x332   : > { %v6225_v53 = vrot.slane %v6209_v49, 4  ;;  %v14300_v57 = vcombine.high %v6238_v48, %v6238_v48  ;;  %v14302_v34 = vcombine.low %v6238_v48, %v6238_v48 }
 0x333   : > { %6342 = vrot.lane.b32.xlu0 %v14280_v54, %s12130_s27  ;;  %6344 = vrot.lane.b32.xlu1 %v14282_v30, %s12130_s27 }
 0x334   : > { %v6239_v56 = vsel %vm6234_vm15, %v6224_v46, %v6225_v53 }
 0x335   : > { %v6211_v32 = vpop.permute.xlu0 %6210  ;;  %v6240_v33 = vsel %vm6232_vm13, %v6239_v56, %v6209_v49 }
 0x336   : > { %v6226_v31 = vrot.slane %v6211_v32, 4  ;;  %v14310_v26 = vcombine.high %v6240_v33, %v6240_v33  ;;  %v14312_v38 = vcombine.low %v6240_v33, %v6240_v33 }
 0x337   : > { %6348 = vrot.lane.b32.xlu1 %v14290_v27, %s12130_s27  ;;  %6346 = vrot.lane.b32.xlu0 %v14292_v36, %s12130_s27 }
 0x338   : > { %v6241_v29 = vsel %vm6234_vm15, %v6225_v53, %v6226_v31 }
 0x339   : > { %v6213_v14 = vpop.permute.xlu1 %6212  ;;  %v6242_v43 = vsel %vm6232_vm13, %v6241_v29, %v6211_v32 }
 0x33a   : > { %v6227_v61 = vrot.slane %v6213_v14, 4  ;;  %v14320_v21 = vcombine.high %v6242_v43, %v6242_v43  ;;  %v14322_v35 = vcombine.low %v6242_v43, %v6242_v43 }
 0x33b   : > { %6352 = vrot.lane.b32.xlu1 %v14300_v57, %s12130_s27  ;;  %6350 = vrot.lane.b32.xlu0 %v14302_v34, %s12130_s27 }
 0x33c   : > { %v6243_v0 = vsel %vm6234_vm15, %v6226_v31, %v6227_v61 }
 0x33d   : > { %v6215_v16 = vpop.permute.xlu0 %6214  ;;  %v6244_v3 = vsel %vm6232_vm13, %v6243_v0, %v6213_v14 }
 0x33e   : > { %v6228_v60 = vrot.slane %v6215_v16, 4  ;;  %v14330_v62 = vcombine.high %v6244_v3, %v6244_v3  ;;  %v14332_v40 = vcombine.low %v6244_v3, %v6244_v3 }
 0x33f   : > { %6356 = vrot.lane.b32.xlu1 %v14310_v26, %s12130_s27  ;;  %6354 = vrot.lane.b32.xlu0 %v14312_v38, %s12130_s27 }
 0x340   : > { %v6245_v18 = vsel %vm6234_vm15, %v6227_v61, %v6228_v60 }
 0x341   : > { %v6217_v12 = vpop.permute.xlu1 %6216  ;;  %v6246_v41 = vsel %vm6232_vm13, %v6245_v18, %v6215_v16 }
 0x342   : > { %v6229_v24 = vrot.slane %v6217_v12, 4  ;;  %v14340_v10 = vcombine.high %v6246_v41, %v6246_v41  ;;  %v14342_v52 = vcombine.low %v6246_v41, %v6246_v41 }
 0x343   : > { %6360 = vrot.lane.b32.xlu1 %v14320_v21, %s12130_s27  ;;  %6358 = vrot.lane.b32.xlu0 %v14322_v35, %s12130_s27 }
 0x344   : > { %v6247_v13 = vsel %vm6234_vm15, %v6228_v60, %v6229_v24 }
 0x345   : > { %v6219_v9 = vpop.permute.xlu0 %6218  ;;  %v6248_v44 = vsel %vm6232_vm13, %v6247_v13, %v6217_v12 }
 0x346   : > { %v6230_v50 = vrot.slane %v6219_v9, 4  ;;  %v14353_v42 = vcombine.high %v6248_v44, %v6248_v44  ;;  %v14355_v25 = vcombine.low %v6248_v44, %v6248_v44 }
 0x347   : > { %6364 = vrot.lane.b32.xlu1 %v14330_v62, %s12130_s27  ;;  %6362 = vrot.lane.b32.xlu0 %v14332_v40, %s12130_s27 }
 0x348   : > { %v6249_v45 = vsel %vm6234_vm15, %v6229_v24, %v6230_v50 }
 0x349   : > { %v6221_v63 = vpop.permute.xlu1 %6220  ;;  %v6250_v15 = vsel %vm6232_vm13, %v6249_v45, %v6219_v9 }
 0x34a   : > { %v6231_v47 = vrot.slane %v6221_v63, 4  ;;  %v14362_v17 = vcombine.high %v6250_v15, %v6250_v15  ;;  %v14364_v58 = vcombine.low %v6250_v15, %v6250_v15 }
 0x34b   : > { %6368 = vrot.lane.b32.xlu1 %v14340_v10, %s12130_s27  ;;  %6366 = vrot.lane.b32.xlu0 %v14342_v52, %s12130_s27 }
 0x34c   : > { %v6251_v5 = vsel %vm6234_vm15, %v6230_v50, %v6231_v47 }
 0x34d   : > { %v6252_v39 = vsel %vm6232_vm13, %v6251_v5, %v6221_v63 }
 0x34e   : > { %6278 = vst.msk [vmem:[#allocation2 + $0x48] sm:$0xff] %vm6277_vm1, %v6252_v39 }
 0x34f   : > { %6372 = vrot.lane.b32.xlu1 %v14353_v42, %s12130_s27  ;;  %6370 = vrot.lane.b32.xlu0 %v14355_v25, %s12130_s27 }
 0x353   : > { %6376 = vrot.lane.b32.xlu1 %v14362_v17, %s12130_s27  ;;  %6374 = vrot.lane.b32.xlu0 %v14364_v58, %s12130_s27 }
 0x355   : > { %v6289_v22 = vld [vmem:[#allocation2 + $0x48] sm:$0xff] }
 0x356   : > { %v14370_v55 = vcombine.high %v6289_v22, %v6289_v22  ;;  %v14372_v1 = vcombine.low %v6289_v22, %v6289_v22 }
 0x358   : > { %6380 = vrot.lane.b32.xlu1 %v14370_v55, %s12130_s27  ;;  %6378 = vrot.lane.b32.xlu0 %v14372_v1, %s12130_s27 }
 0x35c   : > { %7352 = vrot.lane.b32.xlu1 %v14282_v30, %s12132_s28  ;;  %7350 = vrot.lane.b32.xlu0 %v14280_v54, %s12132_s28 }
 0x360   : > { %7356 = vrot.lane.b32.xlu1 %v14290_v27, %s12132_s28  ;;  %7354 = vrot.lane.b32.xlu0 %v14292_v36, %s12132_s28 }
 0x364   : > { %7360 = vrot.lane.b32.xlu1 %v14300_v57, %s12132_s28  ;;  %7358 = vrot.lane.b32.xlu0 %v14302_v34, %s12132_s28 }
 0x368   : > { %7364 = vrot.lane.b32.xlu1 %v14310_v26, %s12132_s28  ;;  %7362 = vrot.lane.b32.xlu0 %v14312_v38, %s12132_s28 }
 0x36c   : > { %7368 = vrot.lane.b32.xlu1 %v14320_v21, %s12132_s28  ;;  %7366 = vrot.lane.b32.xlu0 %v14322_v35, %s12132_s28 }
 0x370   : > { %7372 = vrot.lane.b32.xlu1 %v14330_v62, %s12132_s28  ;;  %7370 = vrot.lane.b32.xlu0 %v14332_v40, %s12132_s28 }
 0x374   : > { %7376 = vrot.lane.b32.xlu1 %v14340_v10, %s12132_s28  ;;  %7374 = vrot.lane.b32.xlu0 %v14342_v52, %s12132_s28 }
 0x378   : > { %7380 = vrot.lane.b32.xlu1 %v14353_v42, %s12132_s28  ;;  %7378 = vrot.lane.b32.xlu0 %v14355_v25, %s12132_s28 }
 0x37c   : > { %7384 = vrot.lane.b32.xlu1 %v14362_v17, %s12132_s28  ;;  %7382 = vrot.lane.b32.xlu0 %v14364_v58, %s12132_s28 }
 0x380   : > { %7906 = vrot.lane.b32.xlu1 %v14282_v30, %s12133_s29  ;;  %7904 = vrot.lane.b32.xlu0 %v14280_v54, %s12133_s29 }
 0x384   : > { %7388 = vrot.lane.b32.xlu1 %v14370_v55, %s12132_s28  ;;  %7908 = vrot.lane.b32.xlu0 %v14292_v36, %s12133_s29 }
 0x388   : > { %7910 = vrot.lane.b32.xlu1 %v14290_v27, %s12133_s29  ;;  %7386 = vrot.lane.b32.xlu0 %v14372_v1, %s12132_s28 }
 0x38c   : > { %7914 = vrot.lane.b32.xlu1 %v14300_v57, %s12133_s29  ;;  %7912 = vrot.lane.b32.xlu0 %v14302_v34, %s12133_s29 }
 0x390   : > { %7918 = vrot.lane.b32.xlu1 %v14310_v26, %s12133_s29  ;;  %7916 = vrot.lane.b32.xlu0 %v14312_v38, %s12133_s29 }
 0x394   : > { %7922 = vrot.lane.b32.xlu1 %v14320_v21, %s12133_s29  ;;  %7920 = vrot.lane.b32.xlu0 %v14322_v35, %s12133_s29 }
 0x398   : > { %7926 = vrot.lane.b32.xlu1 %v14330_v62, %s12133_s29  ;;  %7924 = vrot.lane.b32.xlu0 %v14332_v40, %s12133_s29 }
 0x39c   : > { %7930 = vrot.lane.b32.xlu1 %v14340_v10, %s12133_s29  ;;  %7928 = vrot.lane.b32.xlu0 %v14342_v52, %s12133_s29 }
 0x3a0   : > { %7934 = vrot.lane.b32.xlu1 %v14353_v42, %s12133_s29  ;;  %7932 = vrot.lane.b32.xlu0 %v14355_v25, %s12133_s29 }
 0x3a4   : > { %7938 = vrot.lane.b32.xlu1 %v14362_v17, %s12133_s29  ;;  %7936 = vrot.lane.b32.xlu0 %v14364_v58, %s12133_s29 }
 0x3a5   : > { %v6343_v11 = vpop.permute.xlu0 %6342  ;;  %v6345_v7 = vpop.permute.xlu1 %6344 }
 0x3a6   : > { %v6382_v4 = vsel %vm391_vm2, %v6343_v11, %v6345_v7 }
 0x3a7   : > { %v6406_v28 = vsel %vm6234_vm15, %v6382_v4, 0 }
 0x3a8   : > { %8460 = vrot.lane.b32.xlu1 %v14282_v30, %s12134_s30  ;;  %8458 = vrot.lane.b32.xlu0 %v14280_v54, %s12134_s30 }
 0x3a9   : > { %v6347_v8 = vpop.permute.xlu0 %6346  ;;  %v6349_v19 = vpop.permute.xlu1 %6348 }
 0x3aa   : > { %v6383_v6 = vsel %vm391_vm2, %v6345_v7, %v6347_v8  ;;  %v6384_v23 = vsel %vm391_vm2, %v6347_v8, %v6349_v19 }
 0x3ab   : > { %11840 = vmatprep.subr.msk.bf16.mxu0 %vm6234_vm15, %v6383_v6  ;;  %v6412_v20 = vsel %vm6234_vm15, %v6384_v23, 0 }
 0x3ac   : > { %7942 = vrot.lane.b32.xlu1 %v14370_v55, %s12133_s29  ;;  %8462 = vrot.lane.b32.xlu0 %v14292_v36, %s12134_s30 }
 0x3ad   : > { %6466 = vmatpush1.bf16.msra.mxu0 %v6406_v28  ;;  %v6351_v2 = vpop.permute.xlu0 %6350  ;;  %v6353_v46 = vpop.permute.xlu1 %6352 }
 0x3ae   : > { %v6385_v49 = vsel %vm391_vm2, %v6349_v19, %v6351_v2  ;;  %v6386_v59 = vsel %vm391_vm2, %v6351_v2, %v6353_v46 }
 0x3af   : > { %11842 = vmatprep.subr.msk.bf16.mxu1 %vm6234_vm15, %v6385_v49  ;;  %v6418_v56 = vsel %vm6234_vm15, %v6386_v59, 0  ;;  %v6885_v59 = vsel %vm6234_vm15, %v14292_v36, 0 }
 0x3b0   : > { %8464 = vrot.lane.b32.xlu1 %v14290_v27, %s12134_s30  ;;  %7940 = vrot.lane.b32.xlu0 %v14372_v1, %s12133_s29 }
 0x3b1   : > { %11841 = vmatmul.mubr.msk.bf16.vlgmr.msra.gmra.mrb[180].mxu0 %vm6401_vm11, %v14471_v51  ;;  %6507 = vmatpush1.bf16.msra.mxu1 %v6412_v20  ;;  %v6355_v53 = vpop.permute.xlu0 %6354  ;;  %v6357_v32 = vpop.permute.xlu1 %6356 }
 0x3b2   : > { %v6387_v48 = vsel %vm391_vm2, %v6353_v46, %v6355_v53  ;;  %6579 = vmatprep.mubr.bf16.mxu0 %v13789_v37  ;;  %v6388_v31 = vsel %vm391_vm2, %v6355_v53, %v6357_v32  ;;  %v6879_v46 = vsel %vm6234_vm15, %v14280_v54, 0 }
 0x3b3   : > { %11844 = vmatprep.subr.msk.bf16.mxu0 %vm6234_vm15, %v6387_v48  ;;  %v6424_v61 = vsel %vm6234_vm15, %v6388_v31, 0  ;;  %v14601_v48 = vld [vmem:[%s16311_s3] sm:$0xf] }
 0x3b4   : > { %8468 = vrot.lane.b32.xlu1 %v14300_v57, %s12134_s30  ;;  %8466 = vrot.lane.b32.xlu0 %v14302_v34, %s12134_s30 }
 0x3b5   : > { %11843 = vmatmul.mubr.msk.bf16.vlgmr.msra.gmra.mrb[180].mxu1 %vm6401_vm11, %v14471_v51  ;;  %6548 = vmatpush1.bf16.msra.mxu0 %v6418_v56  ;;  %v6359_v14 = vpop.permute.xlu0 %6358  ;;  %v6361_v33 = vpop.permute.xlu1 %6360 }
 0x3b6   : > { %v6389_v29 = vsel %vm391_vm2, %v6357_v32, %v6359_v14  ;;  %6620 = vmatprep.mubr.bf16.mxu1 %v13789_v37  ;;  %v6390_v16 = vsel %vm391_vm2, %v6359_v14, %v6361_v33  ;;  %v6897_v14 = vsel %vm6234_vm15, %v14312_v38, 0 }
 0x3b7   : > { %11846 = vmatprep.subr.msk.bf16.mxu1 %vm6234_vm15, %v6389_v29  ;;  %v6430_v12 = vsel %vm6234_vm15, %v6390_v16, 0 }
 0x3b8   : > { %8472 = vrot.lane.b32.xlu1 %v14310_v26, %s12134_s30  ;;  %8470 = vrot.lane.b32.xlu0 %v14312_v38, %s12134_s30 }
 0x3b9   : > { %11845 = vmatmul.mubr.msk.bf16.vlgmr.msra.gmra.mrb[184].mxu0 %vm6401_vm11, %v14471_v51  ;;  %6589 = vmatpush1.bf16.msra.mxu1 %v6424_v61  ;;  %v6363_v43 = vpop.permute.xlu0 %6362  ;;  %v6365_v0 = vpop.permute.xlu1 %6364  ;;  %v6903_v61 = vsel %vm6234_vm15, %v14322_v35, 0 }
 0x3ba   : > { %v6391_v60 = vsel %vm391_vm2, %v6361_v33, %v6363_v43  ;;  %6661 = vmatprep.mubr.bf16.mxu0 %v13789_v37  ;;  %v6392_v3 = vsel %vm391_vm2, %v6363_v43, %v6365_v0 }
 0x3bb   : > { %11848 = vmatprep.subr.msk.bf16.mxu0 %vm6234_vm15, %v6391_v60  ;;  %v6436_v41 = vsel %vm6234_vm15, %v6392_v3, 0  ;;  %v6915_v3 = vsel %vm6234_vm15, %v14342_v52, 0 }
 0x3bc   : > { %8476 = vrot.lane.b32.xlu1 %v14320_v21, %s12134_s30  ;;  %8474 = vrot.lane.b32.xlu0 %v14322_v35, %s12134_s30 }
 0x3bd   : > { %11847 = vmatmul.mubr.msk.bf16.vlgmr.msra.gmra.mrb[184].mxu1 %vm6401_vm11, %v14471_v51  ;;  %6630 = vmatpush1.bf16.msra.mxu0 %v6430_v12  ;;  %v6367_v18 = vpop.permute.xlu0 %6366  ;;  %v6369_v24 = vpop.permute.xlu1 %6368 }
 0x3be   : > { %v6393_v9 = vsel %vm391_vm2, %v6365_v0, %v6367_v18  ;;  %6702 = vmatprep.mubr.bf16.mxu1 %v13789_v37  ;;  %v6394_v13 = vsel %vm391_vm2, %v6367_v18, %v6369_v24  ;;  %v6909_v0 = vsel %vm6234_vm15, %v14332_v40, 0 }
 0x3bf   : > { %11850 = vmatprep.subr.msk.bf16.mxu1 %vm6234_vm15, %v6393_v9  ;;  %v6442_v47 = vsel %vm6234_vm15, %v6394_v13, 0  ;;  %v6921_v9 = vsel %vm6234_vm15, %v14355_v25, 0 }
 0x3c0   : > { %8480 = vrot.lane.b32.xlu1 %v14330_v62, %s12134_s30  ;;  %8478 = vrot.lane.b32.xlu0 %v14332_v40, %s12134_s30 }
 0x3c1   : > { %11849 = vmatmul.mubr.msk.bf16.vlgmr.msra.gmra.mrb[188].mxu0 %vm6401_vm11, %v14471_v51  ;;  %6671 = vmatpush1.bf16.msra.mxu1 %v6436_v41  ;;  %v6371_v50 = vpop.permute.xlu0 %6370  ;;  %v6373_v63 = vpop.permute.xlu1 %6372 }
 0x3c2   : > { %v6395_v44 = vsel %vm391_vm2, %v6369_v24, %v6371_v50  ;;  %6743 = vmatprep.mubr.bf16.mxu0 %v13789_v37  ;;  %v6396_v45 = vsel %vm391_vm2, %v6371_v50, %v6373_v63  ;;  %v6927_v50 = vsel %vm6234_vm15, %v14364_v58, 0 }
 0x3c3   : > { %11852 = vmatprep.subr.msk.bf16.mxu0 %vm6234_vm15, %v6395_v44  ;;  %v6448_v22 = vsel %vm6234_vm15, %v6396_v45, 0  ;;  %v6933_v45 = vsel %vm6234_vm15, %v14372_v1, 0 }
 0x3c4   : > { %8484 = vrot.lane.b32.xlu1 %v14340_v10, %s12134_s30  ;;  %8482 = vrot.lane.b32.xlu0 %v14342_v52, %s12134_s30 }
 0x3c5   : > { %11851 = vmatmul.mubr.msk.bf16.vlgmr.msra.gmra.mrb[188].mxu1 %vm6401_vm11, %v14471_v51  ;;  %6712 = vmatpush1.bf16.msra.mxu0 %v6442_v47  ;;  %v6375_v5 = vpop.permute.xlu0 %6374  ;;  %v6377_v39 = vpop.permute.xlu1 %6376 }
 0x3c6   : > { %v6397_v15 = vsel %vm391_vm2, %v6373_v63, %v6375_v5  ;;  %6784 = vmatprep.mubr.bf16.mxu1 %v13789_v37  ;;  %v6398_v11 = vsel %vm391_vm2, %v6375_v5, %v6377_v39 }
 0x3c7   : > { %11854 = vmatprep.subr.msk.bf16.mxu1 %vm6234_vm15, %v6397_v15  ;;  %v6454_v28 = vsel %vm6234_vm15, %v6398_v11, 0 }
 0x3c8   : > { %8488 = vrot.lane.b32.xlu1 %v14353_v42, %s12134_s30  ;;  %8486 = vrot.lane.b32.xlu0 %v14355_v25, %s12134_s30 }
 0x3c9   : > { %11853 = vmatmul.mubr.msk.bf16.vlgmr.msra.gmra.mrb[192].mxu0 %vm6401_vm11, %v14471_v51  ;;  %6753 = vmatpush1.bf16.msra.mxu1 %v6448_v22 }
 0x3ca   : > { %v6379_v7 = vpop.permute.xlu0 %6378  ;;  %v6381_v4 = vpop.permute.xlu1 %6380  ;;  %6825 = vmatprep.mubr.bf16.mxu0 %v13789_v37 }
 0x3cb   : > { %v6400_v8 = vsel %vm391_vm2, %v6379_v7, %v6381_v4  ;;  %11858 = vmatprep.subr.msk.bf16.mxu1 %vm6234_vm15, %v6381_v4  ;;  %v6399_v19 = vsel %vm391_vm2, %v6377_v39, %v6379_v7 }
 0x3cc   : > { %8492 = vrot.lane.b32.xlu1 %v14362_v17, %s12134_s30  ;;  %8490 = vrot.lane.b32.xlu0 %v14364_v58, %s12134_s30  ;;  %v6460_v6 = vsel %vm6234_vm15, %v6400_v8, 0 }
 0x3cd   : > { %11855 = vmatmul.mubr.msk.bf16.vlgmr.msra.gmra.mrb[192].mxu1 %vm6401_vm11, %v14471_v51  ;;  %11856 = vmatprep.subr.msk.bf16.mxu0 %vm6234_vm15, %v6399_v19 }
 0x3ce   : > { %6794 = vmatpush1.bf16.msra.mxu0 %v6454_v28  ;;  %6835 = vmatpush1.bf16.msra.mxu1 %v6460_v6  ;;  %v14562_v23 = vpop.permute.xlu0 %7350  ;;  %v14564_v2 = vpop.permute.xlu1 %7352 }
 0x3cf   : > { %11860 = vmatprep.subr.msk.bf16.mxu0 %vm6234_vm15, %v14282_v30  ;;  %11862 = vmatprep.subr.msk.bf16.mxu1 %vm6234_vm15, %v14290_v27  ;;  %v7390_v5 = vsel %vm1499_vm4, %v14562_v23, %v14564_v2 }
 0x3d0   : > { %9014 = vrot.lane.b32.xlu1 %v14282_v30, %s12136_s9  ;;  %9012 = vrot.lane.b32.xlu0 %v14280_v54, %s12136_s9  ;;  %v7413_v11 = vsel %vm6234_vm15, %v7390_v5, 0 }
 0x3d1   : > { %11857 = vmatmul.mubr.msk.bf16.vlgmr.msra.gmra.mrb[196].mxu0 %vm6401_vm11, %v14471_v51  ;;  %6866 = vmatprep.mubr.bf16.mxu1 %v13789_v37 }
 0x3d2   : > { %6939 = vmatpush1.bf16.msra.mxu0 %v6879_v46  ;;  %v14579_v49 = vpop.permute.xlu0 %7354  ;;  %v14581_v20 = vpop.permute.xlu1 %7356  ;;  %6970 = vmatprep.mubr.bf16.mxu0 %v13789_v37 }
 0x3d3   : > { %11864 = vmatprep.subr.msk.bf16.mxu0 %vm6234_vm15, %v14300_v57  ;;  %v7391_v63 = vsel %vm1499_vm4, %v14564_v2, %v14579_v49  ;;  %v7392_v7 = vsel %vm1499_vm4, %v14579_v49, %v14581_v20  ;;  %v14772_v49 = vld [vmem:[%s16311_s3 + $0x8] sm:$0xf] }
 0x3d4   : > { %8496 = vrot.lane.b32.xlu1 %v14370_v55, %s12134_s30  ;;  %9016 = vrot.lane.b32.xlu0 %v14292_v36, %s12136_s9  ;;  %v7419_v6 = vsel %vm6234_vm15, %v7392_v7, 0 }
 0x3d5   : > { %11859 = vmatmul.mubr.msk.bf16.vlgmr.msra.gmra.mrb[196].mxu1 %vm6401_vm11, %v14471_v51  ;;  %v6891_v51 = vsel %vm6234_vm15, %v14302_v34, 0 }
 0x3d6   : > { %6980 = vmatpush1.bf16.msra.mxu1 %v6885_v59  ;;  %v14594_v53 = vpop.permute.xlu0 %7358  ;;  %v14596_v32 = vpop.permute.xlu1 %7360  ;;  %7011 = vmatprep.mubr.bf16.mxu1 %v13789_v37 }
 0x3d7   : > { %11866 = vmatprep.subr.msk.bf16.mxu1 %vm6234_vm15, %v14310_v26  ;;  %v7393_v39 = vsel %vm1499_vm4, %v14581_v20, %v14594_v53  ;;  %v7394_v28 = vsel %vm1499_vm4, %v14594_v53, %v14596_v32 }
 0x3d8   : > { %9018 = vrot.lane.b32.xlu1 %v14290_v27, %s12136_s9  ;;  %8494 = vrot.lane.b32.xlu0 %v14372_v1, %s12134_s30  ;;  %v7425_v20 = vsel %vm6234_vm15, %v7394_v28, 0 }
 0x3d9   : > { %11861 = vmatmul.mubr.msk.bf16.vlgmr.msra.gmra.mrb[200].mxu0 %vm6401_vm11, %v14601_v48 }
 0x3da   : > { %7021 = vmatpush1.bf16.msra.mxu0 %v6891_v51  ;;  %v14614_v56 = vpop.permute.xlu0 %7362  ;;  %v14616_v31 = vpop.permute.xlu1 %7364  ;;  %7052 = vmatprep.mubr.bf16.mxu0 %v13789_v37 }
 0x3db   : > { %11868 = vmatprep.subr.msk.bf16.mxu0 %vm6234_vm15, %v14320_v21  ;;  %v7395_v4 = vsel %vm1499_vm4, %v14596_v32, %v14614_v56  ;;  %v7396_v59 = vsel %vm1499_vm4, %v14614_v56, %v14616_v31 }
 0x3dc   : > { %9022 = vrot.lane.b32.xlu1 %v14300_v57, %s12136_s9  ;;  %9020 = vrot.lane.b32.xlu0 %v14302_v34, %s12136_s9  ;;  %v7431_v51 = vsel %vm6234_vm15, %v7396_v59, 0 }
 0x3dd   : > { %11863 = vmatmul.mubr.msk.bf16.vlgmr.msra.gmra.mrb[200].mxu1 %vm6401_vm11, %v14601_v48 }
 0x3de   : > { %7062 = vmatpush1.bf16.msra.mxu1 %v6897_v14  ;;  %v14629_v33 = vpop.permute.xlu0 %7366  ;;  %v14631_v29 = vpop.permute.xlu1 %7368  ;;  %7093 = vmatprep.mubr.bf16.mxu1 %v13789_v37 }
 0x3df   : > { %11870 = vmatprep.subr.msk.bf16.mxu1 %vm6234_vm15, %v14330_v62  ;;  %v7397_v23 = vsel %vm1499_vm4, %v14616_v31, %v14629_v33  ;;  %v7398_v56 = vsel %vm1499_vm4, %v14629_v33, %v14631_v29 }
 0x3e0   : > { %9026 = vrot.lane.b32.xlu1 %v14310_v26, %s12136_s9  ;;  %9024 = vrot.lane.b32.xlu0 %v14312_v38, %s12136_s9  ;;  %v7437_v33 = vsel %vm6234_vm15, %v7398_v56, 0 }
 0x3e1   : > { %11865 = vmatmul.mubr.msk.bf16.vlgmr.msra.gmra.mrb[204].mxu0 %vm6401_vm11, %v14601_v48 }
 0x3e2   : > { %7103 = vmatpush1.bf16.msra.mxu0 %v6903_v61  ;;  %v14644_v16 = vpop.permute.xlu0 %7370  ;;  %v14646_v43 = vpop.permute.xlu1 %7372  ;;  %7134 = vmatprep.mubr.bf16.mxu0 %v13789_v37 }
 0x3e3   : > { %11872 = vmatprep.subr.msk.bf16.mxu0 %vm6234_vm15, %v14340_v10  ;;  %v7399_v53 = vsel %vm1499_vm4, %v14631_v29, %v14644_v16  ;;  %v7400_v29 = vsel %vm1499_vm4, %v14644_v16, %v14646_v43 }
 0x3e4   : > { %9030 = vrot.lane.b32.xlu1 %v14320_v21, %s12136_s9  ;;  %9028 = vrot.lane.b32.xlu0 %v14322_v35, %s12136_s9  ;;  %v7443_v16 = vsel %vm6234_vm15, %v7400_v29, 0 }
 0x3e5   : > { %11867 = vmatmul.mubr.msk.bf16.vlgmr.msra.gmra.mrb[204].mxu1 %vm6401_vm11, %v14601_v48 }
 0x3e6   : > { %7144 = vmatpush1.bf16.msra.mxu1 %v6909_v0  ;;  %v14659_v60 = vpop.permute.xlu0 %7374  ;;  %v14661_v12 = vpop.permute.xlu1 %7376  ;;  %7175 = vmatprep.mubr.bf16.mxu1 %v13789_v37 }
 0x3e7   : > { %11874 = vmatprep.subr.msk.bf16.mxu1 %vm6234_vm15, %v14353_v42  ;;  %v7401_v31 = vsel %vm1499_vm4, %v14646_v43, %v14659_v60  ;;  %v7402_v43 = vsel %vm1499_vm4, %v14659_v60, %v14661_v12 }
 0x3e8   : > { %9034 = vrot.lane.b32.xlu1 %v14330_v62, %s12136_s9  ;;  %9032 = vrot.lane.b32.xlu0 %v14332_v40, %s12136_s9  ;;  %v7449_v60 = vsel %vm6234_vm15, %v7402_v43, 0  ;;  %v14967_v43 = vld [vmem:[%s16311_s3 + $0xc] sm:$0xf] }
 0x3e9   : > { %11869 = vmatmul.mubr.msk.bf16.vlgmr.msra.gmra.mrb[208].mxu0 %vm6401_vm11, %v14601_v48 }
 0x3ea   : > { %7185 = vmatpush1.bf16.msra.mxu0 %v6915_v3  ;;  %v14674_v18 = vpop.permute.xlu0 %7378  ;;  %v14676_v24 = vpop.permute.xlu1 %7380  ;;  %7216 = vmatprep.mubr.bf16.mxu0 %v13789_v37 }
 0x3eb   : > { %11876 = vmatprep.subr.msk.bf16.mxu0 %vm6234_vm15, %v14362_v17  ;;  %v7403_v0 = vsel %vm1499_vm4, %v14661_v12, %v14674_v18  ;;  %v7404_v12 = vsel %vm1499_vm4, %v14674_v18, %v14676_v24 }
 0x3ec   : > { %9038 = vrot.lane.b32.xlu1 %v14340_v10, %s12136_s9  ;;  %9036 = vrot.lane.b32.xlu0 %v14342_v52, %s12136_s9  ;;  %v7455_v18 = vsel %vm6234_vm15, %v7404_v12, 0 }
 0x3ed   : > { %11871 = vmatmul.mubr.msk.bf16.vlgmr.msra.gmra.mrb[208].mxu1 %vm6401_vm11, %v14601_v48 }
 0x3ee   : > { %7226 = vmatpush1.bf16.msra.mxu1 %v6921_v9  ;;  %v14689_v41 = vpop.permute.xlu0 %7382  ;;  %v14691_v13 = vpop.permute.xlu1 %7384  ;;  %7257 = vmatprep.mubr.bf16.mxu1 %v13789_v37 }
 0x3ef   : > { %11878 = vmatprep.subr.msk.bf16.mxu1 %vm6234_vm15, %v14370_v55 }
 0x3f0   : > { %9042 = vrot.lane.b32.xlu1 %v14353_v42, %s12136_s9  ;;  %9040 = vrot.lane.b32.xlu0 %v14355_v25, %s12136_s9 }
 0x3f1   : > { %11873 = vmatmul.mubr.msk.bf16.vlgmr.msra.gmra.mrb[212].mxu0 %vm6401_vm11, %v14601_v48 }
 0x3f2   : > { %7267 = vmatpush1.bf16.msra.mxu0 %v6927_v50  ;;  %v14707_v44 = vpop.permute.xlu0 %7904  ;;  %v14709_v47 = vpop.permute.xlu1 %7906  ;;  %7298 = vmatprep.mubr.bf16.mxu0 %v13789_v37  ;;  %v7405_v50 = vsel %vm1499_vm4, %v14676_v24, %v14689_v41  ;;  %v7406_v24 = vsel %vm1499_vm4, %v14689_v41, %v14691_v13 }
 0x3f3   : > { %11881 = vmatprep.subr.msk.bf16.mxu0 %vm6234_vm15, %v7391_v63  ;;  %v7461_v41 = vsel %vm6234_vm15, %v7406_v24, 0 }
 0x3f4   : > { %9046 = vrot.lane.b32.xlu1 %v14362_v17, %s12136_s9  ;;  %9044 = vrot.lane.b32.xlu0 %v14364_v58, %s12136_s9 }
 0x3f5   : > { %11875 = vmatmul.mubr.msk.bf16.vlgmr.msra.gmra.mrb[212].mxu1 %vm6401_vm11, %v14601_v48 }
 0x3f6   : > { %7308 = vmatpush1.bf16.msra.mxu1 %v6933_v45  ;;  %v14727_v15 = vpop.permute.xlu0 %7908  ;;  %v14729_v22 = vpop.permute.xlu1 %7388  ;;  %7339 = vmatprep.mubr.bf16.mxu1 %v13789_v37 }
 0x3f7   : > { %11883 = vmatprep.subr.msk.bf16.mxu1 %vm6234_vm15, %v7393_v39 }
 0x3f8   : > { %9630 = vrot.lane.b32.xlu0 %v14280_v54, %s12137_s12  ;;  %9632 = vrot.lane.b32.xlu1 %v14282_v30, %s12137_s12 }
 0x3f9   : > { %11877 = vmatmul.mubr.msk.bf16.vlgmr.msra.gmra.mrb[216].mxu0 %vm6401_vm11, %v14601_v48 }
 0x3fa   : > { %7473 = vmatpush1.bf16.msra.mxu0 %v7413_v11  ;;  %v14746_v8 = vpop.permute.xlu0 %7386  ;;  %v14748_v19 = vpop.permute.xlu1 %7910  ;;  %7504 = vmatprep.mubr.bf16.mxu0 %v13789_v37 }
 0x3fb   : > { %11885 = vmatprep.subr.msk.bf16.mxu0 %vm6234_vm15, %v7395_v4  ;;  %v7407_v5 = vsel %vm1499_vm4, %v14691_v13, %v14746_v8  ;;  %v7408_v13 = vsel %vm1499_vm4, %v14746_v8, %v14729_v22  ;;  %vm11434_vm4 = vcmask 556036  }
 0x3fc   : > { %9634 = vrot.lane.b32.xlu0 %v14292_v36, %s12137_s12  ;;  %9050 = vrot.lane.b32.xlu1 %v14370_v55, %s12136_s9  ;;  %v7467_v8 = vsel %vm6234_vm15, %v7408_v13, 0 }
 0x3fd   : > { %11879 = vmatmul.mubr.msk.bf16.vlgmr.msra.gmra.mrb[216].mxu1 %vm6401_vm11, %v14601_v48 }
 0x3fe   : > { %7514 = vmatpush1.bf16.msra.mxu1 %v7419_v6  ;;  %v14765_v2 = vpop.permute.xlu0 %7912  ;;  %v14767_v46 = vpop.permute.xlu1 %7914  ;;  %7545 = vmatprep.mubr.bf16.mxu1 %v13789_v37  ;;  %v7945_v6 = vsel %vm2149_vm5, %v14709_v47, %v14727_v15 }
 0x3ff   : > { %11887 = vmatprep.subr.msk.bf16.mxu1 %vm6234_vm15, %v7397_v23  ;;  %v7947_v59 = vsel %vm2149_vm5, %v14748_v19, %v14765_v2 }
 0x400   : > { %9048 = vrot.lane.b32.xlu0 %v14372_v1, %s12136_s9  ;;  %9636 = vrot.lane.b32.xlu1 %v14290_v27, %s12137_s12 }
 0x401   : > { %11882 = vmatmul.mubr.msk.bf16.vlgmr.msra.gmra.mrb[220].mxu0 %vm6401_vm11, %v14772_v49 }
 0x402   : > { %7555 = vmatpush1.bf16.msra.mxu0 %v7425_v20  ;;  %v14789_v32 = vpop.permute.xlu0 %7916  ;;  %v14791_v48 = vpop.permute.xlu1 %7918  ;;  %7586 = vmatprep.mubr.bf16.mxu0 %v13789_v37  ;;  %v7944_v20 = vsel %vm2149_vm5, %v14707_v44, %v14709_v47  ;;  %v7946_v47 = vsel %vm2149_vm5, %v14727_v15, %v14748_v19  ;;  %v7948_v19 = vsel %vm2149_vm5, %v14765_v2, %v14767_v46 }
 0x403   : > { %11889 = vmatprep.subr.msk.bf16.mxu0 %vm6234_vm15, %v7399_v53  ;;  %v7967_v44 = vsel %vm6234_vm15, %v7944_v20, 0  ;;  %v7949_v56 = vsel %vm2149_vm5, %v14767_v46, %v14789_v32  ;;  %v7973_v15 = vsel %vm6234_vm15, %v7946_v47, 0  ;;  %v7979_v2 = vsel %vm6234_vm15, %v7948_v19, 0 }
 0x404   : > { %9638 = vrot.lane.b32.xlu0 %v14302_v34, %s12137_s12  ;;  %9640 = vrot.lane.b32.xlu1 %v14300_v57, %s12137_s12  ;;  %v7950_v46 = vsel %vm2149_vm5, %v14789_v32, %v14791_v48 }
 0x405   : > { %11884 = vmatmul.mubr.msk.bf16.vlgmr.msra.gmra.mrb[220].mxu1 %vm6401_vm11, %v14772_v49  ;;  %v7985_v32 = vsel %vm6234_vm15, %v7950_v46, 0 }
 0x406   : > { %7596 = vmatpush1.bf16.msra.mxu1 %v7431_v51  ;;  %v14808_v14 = vpop.permute.xlu0 %7920  ;;  %v14810_v61 = vpop.permute.xlu1 %7922  ;;  %7627 = vmatprep.mubr.bf16.mxu1 %v13789_v37 }
 0x407   : > { %11891 = vmatprep.subr.msk.bf16.mxu1 %vm6234_vm15, %v7401_v31  ;;  %v7951_v29 = vsel %vm2149_vm5, %v14791_v48, %v14808_v14  ;;  %v7952_v48 = vsel %vm2149_vm5, %v14808_v14, %v14810_v61 }
 0x408   : > { %9642 = vrot.lane.b32.xlu0 %v14312_v38, %s12137_s12  ;;  %9644 = vrot.lane.b32.xlu1 %v14310_v26, %s12137_s12  ;;  %v7991_v14 = vsel %vm6234_vm15, %v7952_v48, 0 }
 0x409   : > { %11886 = vmatmul.mubr.msk.bf16.vlgmr.msra.gmra.mrb[224].mxu0 %vm6401_vm11, %v14772_v49 }
 0x40a   : > { %7637 = vmatpush1.bf16.msra.mxu0 %v7437_v33  ;;  %v14827_v3 = vpop.permute.xlu0 %7924  ;;  %v14829_v9 = vpop.permute.xlu1 %7926  ;;  %7668 = vmatprep.mubr.bf16.mxu0 %v13789_v37 }
 0x40b   : > { %11893 = vmatprep.subr.msk.bf16.mxu0 %vm6234_vm15, %v7403_v0 }
 0x40c   : > { %9646 = vrot.lane.b32.xlu0 %v14322_v35, %s12137_s12  ;;  %9648 = vrot.lane.b32.xlu1 %v14320_v21, %s12137_s12 }
 0x40d   : > { %11888 = vmatmul.mubr.msk.bf16.vlgmr.msra.gmra.mrb[224].mxu1 %vm6401_vm11, %v14772_v49 }
 0x40e   : > { %7678 = vmatpush1.bf16.msra.mxu1 %v7443_v16  ;;  %v14846_v63 = vpop.permute.xlu0 %7928  ;;  %v14848_v45 = vpop.permute.xlu1 %7930  ;;  %7709 = vmatprep.mubr.bf16.mxu1 %v13789_v37 }
 0x40f   : > { %11895 = vmatprep.subr.msk.bf16.mxu1 %vm6234_vm15, %v7405_v50  ;;  %v7955_v12 = vsel %vm2149_vm5, %v14829_v9, %v14846_v63 }
 0x410   : > { %9650 = vrot.lane.b32.xlu0 %v14332_v40, %s12137_s12  ;;  %9652 = vrot.lane.b32.xlu1 %v14330_v62, %s12137_s12 }
 0x411   : > { %11890 = vmatmul.mubr.msk.bf16.vlgmr.msra.gmra.mrb[228].mxu0 %vm6401_vm11, %v14772_v49 }
 0x412   : > { %7719 = vmatpush1.bf16.msra.mxu0 %v7449_v60  ;;  %v14865_v39 = vpop.permute.xlu0 %7932  ;;  %v14867_v11 = vpop.permute.xlu1 %7934  ;;  %7750 = vmatprep.mubr.bf16.mxu0 %v13789_v37 }
 0x413   : > { %11897 = vmatprep.subr.msk.bf16.mxu0 %vm6234_vm15, %v7407_v5  ;;  %v7957_v24 = vsel %vm2149_vm5, %v14848_v45, %v14865_v39 }
 0x414   : > { %9654 = vrot.lane.b32.xlu0 %v14342_v52, %s12137_s12  ;;  %9656 = vrot.lane.b32.xlu1 %v14340_v10, %s12137_s12 }
 0x415   : > { %11892 = vmatmul.mubr.msk.bf16.vlgmr.msra.gmra.mrb[228].mxu1 %vm6401_vm11, %v14772_v49 }
 0x416   : > { %7760 = vmatpush1.bf16.msra.mxu1 %v7455_v18  ;;  %v14881_v7 = vpop.permute.xlu0 %7936  ;;  %v14883_v4 = vpop.permute.xlu1 %7938  ;;  %7791 = vmatprep.mubr.bf16.mxu1 %v13789_v37 }
 0x417   : > { %11899 = vmatprep.subr.msk.bf16.mxu1 %vm6234_vm15, %v14729_v22  ;;  %v14911_v22 = vld [vmem:[#allocation2 + $0x50] ss:$0 sps:$4 sm:$0xff]  }
 0x418   : > { %9658 = vrot.lane.b32.xlu0 %v14355_v25, %s12137_s12  ;;  %9660 = vrot.lane.b32.xlu1 %v14353_v42, %s12137_s12 }
 0x419   : > { %11894 = vmatmul.mubr.msk.bf16.vlgmr.msra.gmra.mrb[232].mxu0 %vm6401_vm11, %v14772_v49 }
 0x41a   : > { %7801 = vmatpush1.bf16.msra.mxu0 %v7461_v41  ;;  %v14901_v28 = vpop.permute.xlu0 %8458  ;;  %v14903_v23 = vpop.permute.xlu1 %8460  ;;  %7832 = vmatprep.mubr.bf16.mxu0 %v13789_v37 }
 0x41b   : > { %11902 = vmatprep.subr.msk.bf16.mxu0 %vm6234_vm15, %v7945_v6  ;;  %v7959_v6 = vsel %vm2149_vm5, %v14867_v11, %v14881_v7 }
 0x41c   : > { %9662 = vrot.lane.b32.xlu0 %v14364_v58, %s12137_s12  ;;  %9664 = vrot.lane.b32.xlu1 %v14362_v17, %s12137_s12 }
 0x41d   : > { %11896 = vmatmul.mubr.msk.bf16.vlgmr.msra.gmra.mrb[232].mxu1 %vm6401_vm11, %v14772_v49 }
 0x41e   : > { %7842 = vmatpush1.bf16.msra.mxu1 %v7467_v8  ;;  %v14922_v53 = vpop.permute.xlu0 %8462  ;;  %v14924_v51 = vpop.permute.xlu1 %7942  ;;  %7873 = vmatprep.mubr.bf16.mxu1 %v13789_v37 }
 0x41f   : > { %11904 = vmatprep.subr.msk.bf16.mxu1 %vm6234_vm15, %v7947_v59  ;;  %v8499_v19 = vsel %vm2799_vm6, %v14903_v23, %v14922_v53 }
 0x420   : > { %9670 = vrot.lane.b32.xlu0 %v14911_v22, %s12137_s12  ;;  %10187 = vrot.lane.b32.xlu1 %v14280_v54, %s12138_s15 }
 0x421   : > { %11898 = vmatmul.mubr.msk.bf16.vlgmr.msra.gmra.mrb[236].mxu0 %vm6401_vm11, %v14772_v49 }
 0x422   : > { %8027 = vmatpush1.bf16.msra.mxu0 %v7967_v44  ;;  %v14941_v31 = vpop.permute.xlu0 %7940  ;;  %v14943_v33 = vpop.permute.xlu1 %8464  ;;  %8058 = vmatprep.mubr.bf16.mxu0 %v13789_v37 }
 0x423   : > { %11906 = vmatprep.subr.msk.bf16.mxu0 %vm6234_vm15, %v7949_v56  ;;  %v7961_v59 = vsel %vm2149_vm5, %v14883_v4, %v14941_v31 }
 0x424   : > { %10189 = vrot.lane.b32.xlu0 %v14282_v30, %s12138_s15  ;;  %9668 = vrot.lane.b32.xlu1 %v14370_v55, %s12137_s12 }
 0x425   : > { %11900 = vmatmul.mubr.msk.bf16.vlgmr.msra.gmra.mrb[236].mxu1 %vm6401_vm11, %v14772_v49  ;;  %v7953_v49 = vsel %vm2149_vm5, %v14810_v61, %v14827_v3  ;;  %v7954_v61 = vsel %vm2149_vm5, %v14827_v3, %v14829_v9  ;;  %v7956_v9 = vsel %vm2149_vm5, %v14846_v63, %v14848_v45  ;;  %v7958_v45 = vsel %vm2149_vm5, %v14865_v39, %v14867_v11 }
 0x426   : > { %8068 = vmatpush1.bf16.msra.mxu1 %v7973_v15  ;;  %v14960_v0 = vpop.permute.xlu0 %8466  ;;  %v14962_v16 = vpop.permute.xlu1 %8468  ;;  %8099 = vmatprep.mubr.bf16.mxu1 %v13789_v37  ;;  %v7997_v3 = vsel %vm6234_vm15, %v7954_v61, 0  ;;  %v8003_v63 = vsel %vm6234_vm15, %v7956_v9, 0  ;;  %v8009_v39 = vsel %vm6234_vm15, %v7958_v45, 0  ;;  %v7960_v11 = vsel %vm2149_vm5, %v14881_v7, %v14883_v4 }
 0x427   : > { %11908 = vmatprep.subr.msk.bf16.mxu1 %vm6234_vm15, %v7951_v29  ;;  %v8015_v7 = vsel %vm6234_vm15, %v7960_v11, 0  ;;  %v7962_v4 = vsel %vm2149_vm5, %v14941_v31, %v14924_v51  ;;  %v8498_v31 = vsel %vm2799_vm6, %v14901_v28, %v14903_v23  ;;  %v8501_v46 = vsel %vm2799_vm6, %v14943_v33, %v14960_v0 }
 0x428   : > { %9666 = vrot.lane.b32.xlu0 %v14372_v1, %s12137_s12  ;;  %10191 = vrot.lane.b32.xlu1 %v14292_v36, %s12138_s15  ;;  %v8521_v28 = vsel %vm6234_vm15, %v8498_v31, 0  ;;  %v8500_v23 = vsel %vm2799_vm6, %v14922_v53, %v14943_v33  ;;  %v8502_v33 = vsel %vm2799_vm6, %v14960_v0, %v14962_v16  ;;  %v11299_v31 = vld [vmem:[%s16312_s4] sm:$0xff] }
 0x429   : > { %11903 = vmatmul.mubr.msk.bf16.vlgmr.msra.gmra.mrb[240].mxu0 %vm6401_vm11, %v14967_v43  ;;  %v8527_v53 = vsel %vm6234_vm15, %v8500_v23, 0  ;;  %v8533_v0 = vsel %vm6234_vm15, %v8502_v33, 0 }
 0x42a   : > { %8109 = vmatpush1.bf16.msra.mxu0 %v7979_v2  ;;  %v14984_v50 = vpop.permute.xlu0 %8470  ;;  %v14986_v60 = vpop.permute.xlu1 %8472  ;;  %8140 = vmatprep.mubr.bf16.mxu0 %v13789_v37 }
 0x42b   : > { %11910 = vmatprep.subr.msk.bf16.mxu0 %vm6234_vm15, %v7953_v49  ;;  %v8503_v48 = vsel %vm2799_vm6, %v14962_v16, %v14984_v50  ;;  %v8504_v16 = vsel %vm2799_vm6, %v14984_v50, %v14986_v60 }
 0x42c   : > { %10193 = vrot.lane.b32.xlu0 %v14290_v27, %s12138_s15  ;;  %10195 = vrot.lane.b32.xlu1 %v14302_v34, %s12138_s15 }
 0x42d   : > { %11905 = vmatmul.mubr.msk.bf16.vlgmr.msra.gmra.mrb[240].mxu1 %vm6401_vm11, %v14967_v43 }
 0x42e   : > { %8150 = vmatpush1.bf16.msra.mxu1 %v7985_v32  ;;  %v15003_v5 = vpop.permute.xlu0 %8474  ;;  %v15005_v18 = vpop.permute.xlu1 %8476  ;;  %8181 = vmatprep.mubr.bf16.mxu1 %v13789_v37 }
 0x42f   : > { %11912 = vmatprep.subr.msk.bf16.mxu1 %vm6234_vm15, %v7955_v12  ;;  %v8505_v61 = vsel %vm2799_vm6, %v14986_v60, %v15003_v5  ;;  %v8506_v50 = vsel %vm2799_vm6, %v15003_v5, %v15005_v18 }
 0x430   : > { %10197 = vrot.lane.b32.xlu0 %v14300_v57, %s12138_s15  ;;  %10199 = vrot.lane.b32.xlu1 %v14312_v38, %s12138_s15 }
 0x431   : > { %11907 = vmatmul.mubr.msk.bf16.vlgmr.msra.gmra.mrb[244].mxu0 %vm6401_vm11, %v14967_v43 }
 0x432   : > { %8191 = vmatpush1.bf16.msra.mxu0 %v7991_v14  ;;  %v15022_v41 = vpop.permute.xlu0 %8478  ;;  %v15024_v13 = vpop.permute.xlu1 %8480  ;;  %8222 = vmatprep.mubr.bf16.mxu0 %v13789_v37 }
 0x433   : > { %11914 = vmatprep.subr.msk.bf16.mxu0 %vm6234_vm15, %v7957_v24  ;;  %v8508_v5 = vsel %vm2799_vm6, %v15022_v41, %v15024_v13 }
 0x434   : > { %10201 = vrot.lane.b32.xlu0 %v14310_v26, %s12138_s15  ;;  %10203 = vrot.lane.b32.xlu1 %v14322_v35, %s12138_s15 }
 0x435   : > { %11909 = vmatmul.mubr.msk.bf16.vlgmr.msra.gmra.mrb[244].mxu1 %vm6401_vm11, %v14967_v43 }
 0x436   : > { %8232 = vmatpush1.bf16.msra.mxu1 %v7997_v3  ;;  %v15041_v8 = vpop.permute.xlu0 %8482  ;;  %v15043_v20 = vpop.permute.xlu1 %8484  ;;  %8263 = vmatprep.mubr.bf16.mxu1 %v13789_v37  ;;  %v15160_v3 = vld [vmem:[%s16311_s3 + $0x10] sm:$0xf] }
 0x437   : > { %11916 = vmatprep.subr.msk.bf16.mxu1 %vm6234_vm15, %v7959_v6  ;;  %v8509_v60 = vsel %vm2799_vm6, %v15024_v13, %v15041_v8 }
 0x438   : > { %10205 = vrot.lane.b32.xlu0 %v14320_v21, %s12138_s15  ;;  %10207 = vrot.lane.b32.xlu1 %v14332_v40, %s12138_s15 }
 0x439   : > { %11911 = vmatmul.mubr.msk.bf16.vlgmr.msra.gmra.mrb[248].mxu0 %vm6401_vm11, %v14967_v43 }
 0x43a   : > { %8273 = vmatpush1.bf16.msra.mxu0 %v8003_v63  ;;  %v15060_v44 = vpop.permute.xlu0 %8486  ;;  %v15062_v47 = vpop.permute.xlu1 %8488  ;;  %8304 = vmatprep.mubr.bf16.mxu0 %v13789_v37 }
 0x43b   : > { %11918 = vmatprep.subr.msk.bf16.mxu0 %vm6234_vm15, %v7961_v59 }
 0x43c   : > { %10209 = vrot.lane.b32.xlu0 %v14330_v62, %s12138_s15  ;;  %10211 = vrot.lane.b32.xlu1 %v14342_v52, %s12138_s15 }
 0x43d   : > { %11913 = vmatmul.mubr.msk.bf16.vlgmr.msra.gmra.mrb[248].mxu1 %vm6401_vm11, %v14967_v43 }
 0x43e   : > { %8314 = vmatpush1.bf16.msra.mxu1 %v8009_v39  ;;  %v15076_v56 = vpop.permute.xlu0 %8490  ;;  %v15078_v15 = vpop.permute.xlu1 %8492  ;;  %8345 = vmatprep.mubr.bf16.mxu1 %v13789_v37 }
 0x43f   : > { %11920 = vmatprep.subr.msk.bf16.mxu1 %vm6234_vm15, %v14924_v51  ;;  %v8021_v51 = vsel %vm6234_vm15, %v7962_v4, 0  ;;  %v8513_v13 = vsel %vm2799_vm6, %v15062_v47, %v15076_v56 }
 0x440   : > { %10213 = vrot.lane.b32.xlu0 %v14340_v10, %s12138_s15  ;;  %10215 = vrot.lane.b32.xlu1 %v14355_v25, %s12138_s15 }
 0x441   : > { %11915 = vmatmul.mubr.msk.bf16.vlgmr.msra.gmra.mrb[252].mxu0 %vm6401_vm11, %v14967_v43 }
 0x442   : > { %8355 = vmatpush1.bf16.msra.mxu0 %v8015_v7  ;;  %v15096_v29 = vpop.permute.xlu0 %9012  ;;  %v15098_v2 = vpop.permute.xlu1 %9014  ;;  %8386 = vmatprep.mubr.bf16.mxu0 %v13789_v37 }
 0x443   : > { %11923 = vmatprep.subr.msk.bf16.mxu0 %vm6234_vm15, %v8499_v19  ;;  %v9052_v7 = vsel %vm3449_vm7, %v15096_v29, %v15098_v2 }
 0x444   : > { %10217 = vrot.lane.b32.xlu0 %v14353_v42, %s12138_s15  ;;  %10219 = vrot.lane.b32.xlu1 %v14364_v58, %s12138_s15 }
 0x445   : > { %11917 = vmatmul.mubr.msk.bf16.vlgmr.msra.gmra.mrb[252].mxu1 %vm6401_vm11, %v14967_v43 }
 0x446   : > { %8396 = vmatpush1.bf16.msra.mxu1 %v8021_v51  ;;  %v15115_v49 = vpop.permute.xlu0 %9016  ;;  %v15117_v32 = vpop.permute.xlu1 %8496  ;;  %8427 = vmatprep.mubr.bf16.mxu1 %v13789_v37 }
 0x447   : > { %11925 = vmatprep.subr.msk.bf16.mxu1 %vm6234_vm15, %v8501_v46 }
 0x448   : > { %10221 = vrot.lane.b32.xlu0 %v14362_v17, %s12138_s15  ;;  %10227 = vrot.lane.b32.xlu1 %v14911_v22, %s12138_s15 }
 0x449   : > { %11919 = vmatmul.mubr.msk.bf16.vlgmr.msra.gmra.mrb[0].mxu0 %vm6401_vm11, %v14967_v43 }
 0x44a   : > { %8581 = vmatpush1.bf16.msra.mxu0 %v8521_v28  ;;  %v15134_v12 = vpop.permute.xlu0 %8494  ;;  %v15136_v14 = vpop.permute.xlu1 %9018  ;;  %8612 = vmatprep.mubr.bf16.mxu0 %v13789_v37 }
 0x44b   : > { %11927 = vmatprep.subr.msk.bf16.mxu0 %vm6234_vm15, %v8503_v48  ;;  %v9054_v29 = vsel %vm3449_vm7, %v15115_v49, %v15136_v14 }
 0x44c   : > { %10744 = vrot.lane.b32.xlu0 %v14280_v54, %s12139_s20  ;;  %10223 = vrot.lane.b32.xlu1 %v14372_v1, %s12138_s15 }
 0x44d   : > { %11921 = vmatmul.mubr.msk.bf16.vlgmr.msra.gmra.mrb[0].mxu1 %vm6401_vm11, %v14967_v43  ;;  %v8507_v43 = vsel %vm2799_vm6, %v15005_v18, %v15022_v41  ;;  %v8511_v18 = vsel %vm2799_vm6, %v15043_v20, %v15060_v44  ;;  %v8510_v41 = vsel %vm2799_vm6, %v15041_v8, %v15043_v20  ;;  %v8512_v8 = vsel %vm2799_vm6, %v15060_v44, %v15062_v47 }
 0x44e   : > { %8622 = vmatpush1.bf16.msra.mxu1 %v8527_v53  ;;  %v15153_v24 = vpop.permute.xlu0 %9020  ;;  %v15155_v54 = vpop.permute.xlu1 %9022  ;;  %8653 = vmatprep.mubr.bf16.mxu1 %v13789_v37  ;;  %v8515_v20 = vsel %vm2799_vm6, %v15078_v15, %v15134_v12  ;;  %v8514_v44 = vsel %vm2799_vm6, %v15076_v56, %v15078_v15  ;;  %v9053_v56 = vsel %vm3449_vm7, %v15098_v2, %v15115_v49 }
 0x44f   : > { %11929 = vmatprep.subr.msk.bf16.mxu1 %vm6234_vm15, %v8505_v61  ;;  %v9055_v4 = vsel %vm3449_vm7, %v15136_v14, %v15153_v24  ;;  %v9056_v46 = vsel %vm3449_vm7, %v15153_v24, %v15155_v54 }
 0x450   : > { %10225 = vrot.lane.b32.xlu0 %v14370_v55, %s12138_s15  ;;  %10746 = vrot.lane.b32.xlu1 %v14282_v30, %s12139_s20  ;;  %v8539_v30 = vsel %vm6234_vm15, %v8504_v16, 0  ;;  %v9087_v28 = vsel %vm6234_vm15, %v9056_v46, 0 }
 0x451   : > { %11924 = vmatmul.mubr.msk.bf16.vlgmr.msra.gmra.mrb[4].mxu0 %vm6401_vm11, %v15160_v3 }
 0x452   : > { %8663 = vmatpush1.bf16.msra.mxu0 %v8533_v0  ;;  %v15177_v9 = vpop.permute.xlu0 %9024  ;;  %v15179_v6 = vpop.permute.xlu1 %9026  ;;  %8694 = vmatprep.mubr.bf16.mxu0 %v13789_v37 }
 0x453   : > { %11931 = vmatprep.subr.msk.bf16.mxu0 %vm6234_vm15, %v8507_v43  ;;  %v9057_v2 = vsel %vm3449_vm7, %v15155_v54, %v15177_v9  ;;  %v9058_v23 = vsel %vm3449_vm7, %v15177_v9, %v15179_v6 }
 0x454   : > { %10748 = vrot.lane.b32.xlu0 %v14292_v36, %s12139_s20  ;;  %10750 = vrot.lane.b32.xlu1 %v14290_v27, %s12139_s20  ;;  %v8545_v27 = vsel %vm6234_vm15, %v8506_v50, 0 }
 0x455   : > { %11926 = vmatmul.mubr.msk.bf16.vlgmr.msra.gmra.mrb[4].mxu1 %vm6401_vm11, %v15160_v3 }
 0x456   : > { %8704 = vmatpush1.bf16.msra.mxu1 %v8539_v30  ;;  %v15196_v63 = vpop.permute.xlu0 %9028  ;;  %v15198_v36 = vpop.permute.xlu1 %9030  ;;  %8735 = vmatprep.mubr.bf16.mxu1 %v13789_v37 }
 0x457   : > { %11933 = vmatprep.subr.msk.bf16.mxu1 %vm6234_vm15, %v8509_v60  ;;  %v9060_v53 = vsel %vm3449_vm7, %v15196_v63, %v15198_v36 }
 0x458   : > { %10752 = vrot.lane.b32.xlu0 %v14302_v34, %s12139_s20  ;;  %10754 = vrot.lane.b32.xlu1 %v14300_v57, %s12139_s20  ;;  %v8551_v57 = vsel %vm6234_vm15, %v8508_v5, 0  ;;  %v9099_v54 = vsel %vm6234_vm15, %v9060_v53, 0 }
 0x459   : > { %11928 = vmatmul.mubr.msk.bf16.vlgmr.msra.gmra.mrb[8].mxu0 %vm6401_vm11, %v15160_v3 }
 0x45a   : > { %8745 = vmatpush1.bf16.msra.mxu0 %v8545_v27  ;;  %v15215_v45 = vpop.permute.xlu0 %9032  ;;  %v15217_v34 = vpop.permute.xlu1 %9034  ;;  %8776 = vmatprep.mubr.bf16.mxu0 %v13789_v37 }
 0x45b   : > { %11935 = vmatprep.subr.msk.bf16.mxu0 %vm6234_vm15, %v8511_v18  ;;  %v9061_v48 = vsel %vm3449_vm7, %v15198_v36, %v15215_v45 }
 0x45c   : > { %10756 = vrot.lane.b32.xlu0 %v14312_v38, %s12139_s20  ;;  %10758 = vrot.lane.b32.xlu1 %v14310_v26, %s12139_s20  ;;  %v8557_v26 = vsel %vm6234_vm15, %v8510_v41, 0 }
 0x45d   : > { %11930 = vmatmul.mubr.msk.bf16.vlgmr.msra.gmra.mrb[8].mxu1 %vm6401_vm11, %v15160_v3 }
 0x45e   : > { %8786 = vmatpush1.bf16.msra.mxu1 %v8551_v57  ;;  %v15234_v59 = vpop.permute.xlu0 %9036  ;;  %v15236_v38 = vpop.permute.xlu1 %9038  ;;  %8817 = vmatprep.mubr.bf16.mxu1 %v13789_v37 }
 0x45f   : > { %11937 = vmatprep.subr.msk.bf16.mxu1 %vm6234_vm15, %v8513_v13  ;;  %v9063_v33 = vsel %vm3449_vm7, %v15217_v34, %v15234_v59  ;;  %v9064_v50 = vsel %vm3449_vm7, %v15234_v59, %v15236_v38 }
 0x460   : > { %10760 = vrot.lane.b32.xlu0 %v14322_v35, %s12139_s20  ;;  %10762 = vrot.lane.b32.xlu1 %v14320_v21, %s12139_s20  ;;  %v8563_v21 = vsel %vm6234_vm15, %v8512_v8, 0 }
 0x461   : > { %11932 = vmatmul.mubr.msk.bf16.vlgmr.msra.gmra.mrb[12].mxu0 %vm6401_vm11, %v15160_v3 }
 0x462   : > { %8827 = vmatpush1.bf16.msra.mxu0 %v8557_v26  ;;  %v15253_v39 = vpop.permute.xlu0 %9040  ;;  %v15255_v35 = vpop.permute.xlu1 %9042  ;;  %8858 = vmatprep.mubr.bf16.mxu0 %v13789_v37 }
 0x463   : > { %11939 = vmatprep.subr.msk.bf16.mxu0 %vm6234_vm15, %v8515_v20  ;;  %v9065_v0 = vsel %vm3449_vm7, %v15236_v38, %v15253_v39  ;;  %v9066_v57 = vsel %vm3449_vm7, %v15253_v39, %v15255_v35 }
 0x464   : > { %10764 = vrot.lane.b32.xlu0 %v14332_v40, %s12139_s20  ;;  %10766 = vrot.lane.b32.xlu1 %v14330_v62, %s12139_s20  ;;  %v8569_v62 = vsel %vm6234_vm15, %v8514_v44, 0  ;;  %v8516_v40 = vsel %vm2799_vm6, %v15134_v12, %v15117_v32  ;;  %v9117_v20 = vsel %vm6234_vm15, %v9066_v57, 0  ;;  %v15539_v57 = vld [vmem:[%s16311_s3 + $0x18] sm:$0xf]  ;;  %vm11435_vm6 = vmor %vm11434_vm4, %vm6234_vm15 }
 0x465   : > { %11934 = vmatmul.mubr.msk.bf16.vlgmr.msra.gmra.mrb[12].mxu1 %vm6401_vm11, %v15160_v3 }
 0x466   : > { %8868 = vmatpush1.bf16.msra.mxu1 %v8563_v21  ;;  %v15269_v47 = vpop.permute.xlu0 %9044  ;;  %v15271_v11 = vpop.permute.xlu1 %9046  ;;  %8899 = vmatprep.mubr.bf16.mxu1 %v13789_v37 }
 0x467   : > { %11941 = vmatprep.subr.msk.bf16.mxu1 %vm6234_vm15, %v15117_v32  ;;  %v15356_v32 = vld [vmem:[%s16311_s3 + $0x14] sm:$0xf]  ;;  %v9067_v60 = vsel %vm3449_vm7, %v15255_v35, %v15269_v47  ;;  %v9068_v35 = vsel %vm3449_vm7, %v15269_v47, %v15271_v11 }
 0x468   : > { %10768 = vrot.lane.b32.xlu0 %v14342_v52, %s12139_s20  ;;  %10770 = vrot.lane.b32.xlu1 %v14340_v10, %s12139_s20  ;;  %v8575_v10 = vsel %vm6234_vm15, %v8516_v40, 0 }
 0x469   : > { %11936 = vmatmul.mubr.msk.bf16.vlgmr.msra.gmra.mrb[16].mxu0 %vm6401_vm11, %v15160_v3 }
 0x46a   : > { %8909 = vmatpush1.bf16.msra.mxu0 %v8569_v62  ;;  %v15289_v15 = vpop.permute.xlu0 %9630  ;;  %v15291_v52 = vpop.permute.xlu1 %9632  ;;  %8940 = vmatprep.mubr.bf16.mxu0 %v13789_v37 }
 0x46b   : > { %11944 = vmatprep.subr.msk.bf16.mxu0 %vm6234_vm15, %v9053_v56 }
 0x46c   : > { %10772 = vrot.lane.b32.xlu0 %v14355_v25, %s12139_s20  ;;  %10774 = vrot.lane.b32.xlu1 %v14353_v42, %s12139_s20  ;;  %v9075_v42 = vsel %vm6234_vm15, %v9052_v7, 0 }
 0x46d   : > { %11938 = vmatmul.mubr.msk.bf16.vlgmr.msra.gmra.mrb[16].mxu1 %vm6401_vm11, %v15160_v3 }
 0x46e   : > { %8950 = vmatpush1.bf16.msra.mxu1 %v8575_v10  ;;  %v15308_v19 = vpop.permute.xlu0 %9634  ;;  %v15310_v25 = vpop.permute.xlu1 %9050  ;;  %8981 = vmatprep.mubr.bf16.mxu1 %v13789_v37  ;;  %v9123_v10 = vsel %vm6234_vm15, %v9068_v35, 0 }
 0x46f   : > { %11946 = vmatprep.subr.msk.bf16.mxu1 %vm6234_vm15, %v9055_v4 }
 0x470   : > { %10776 = vrot.lane.b32.xlu0 %v14364_v58, %s12139_s20  ;;  %10778 = vrot.lane.b32.xlu1 %v14362_v17, %s12139_s20  ;;  %v9081_v17 = vsel %vm6234_vm15, %v9054_v29, 0 }
 0x471   : > { %11940 = vmatmul.mubr.msk.bf16.vlgmr.msra.gmra.mrb[20].mxu0 %vm6401_vm11, %v15160_v3 }
 0x472   : > { %9135 = vmatpush1.bf16.msra.mxu0 %v9075_v42  ;;  %v15327_v51 = vpop.permute.xlu0 %9048  ;;  %v15329_v58 = vpop.permute.xlu1 %9636  ;;  %9166 = vmatprep.mubr.bf16.mxu0 %v13789_v37 }
 0x473   : > { %11948 = vmatprep.subr.msk.bf16.mxu0 %vm6234_vm15, %v9057_v2  ;;  %v9069_v41 = vsel %vm3449_vm7, %v15271_v11, %v15327_v51  ;;  %v9673_v11 = vsel %vm4110_vm8, %v15291_v52, %v15308_v19  ;;  %v9070_v7 = vsel %vm3449_vm7, %v15327_v51, %v15310_v25 }
 0x474   : > { %10780 = vrot.lane.b32.xlu0 %v14372_v1, %s12139_s20  ;;  %10782 = vrot.lane.b32.xlu1 %v14370_v55, %s12139_s20  ;;  %v9059_v1 = vsel %vm3449_vm7, %v15179_v6, %v15196_v63 }
 0x475   : > { %11942 = vmatmul.mubr.msk.bf16.vlgmr.msra.gmra.mrb[20].mxu1 %vm6401_vm11, %v15160_v3  ;;  %v9062_v3 = vsel %vm3449_vm7, %v15215_v45, %v15217_v34  ;;  %v9111_v45 = vsel %vm6234_vm15, %v9064_v50, 0 }
 0x476   : > { %9176 = vmatpush1.bf16.msra.mxu1 %v9081_v17  ;;  %v15349_v49 = vpop.permute.xlu0 %9638  ;;  %v15351_v55 = vpop.permute.xlu1 %9640  ;;  %9207 = vmatprep.mubr.bf16.mxu1 %v13789_v37  ;;  %v9105_v6 = vsel %vm6234_vm15, %v9062_v3, 0 }
 0x477   : > { %11950 = vmatprep.subr.msk.bf16.mxu1 %vm6234_vm15, %v9059_v1  ;;  %v9675_v51 = vsel %vm4110_vm8, %v15329_v58, %v15349_v49 }
 0x478   : > { %10784 = vrot.lane.b32.xlu0 %v14911_v22, %s12139_s20  ;;  %11302 = vperm.xlu1 %12102, %v11299_v31   ;;  %v9093_v22 = vsel %vm6234_vm15, %v9058_v23, 0  ;;  %v9129_v31 = vsel %vm6234_vm15, %v9070_v7, 0 }
 0x479   : > { %11945 = vmatmul.mubr.msk.bf16.vlgmr.msra.gmra.mrb[24].mxu0 %vm6401_vm11, %v15356_v32 }
 0x47a   : > { %9217 = vmatpush1.bf16.msra.mxu0 %v9087_v28  ;;  %v15371_v12 = vpop.permute.xlu0 %9642  ;;  %v15373_v14 = vpop.permute.xlu1 %9644  ;;  %9248 = vmatprep.mubr.bf16.mxu0 %v13789_v37 }
 0x47b   : > { %11952 = vmatprep.subr.msk.bf16.mxu0 %vm6234_vm15, %v9061_v48 }
 0x47d   : > { %11947 = vmatmul.mubr.msk.bf16.vlgmr.msra.gmra.mrb[24].mxu1 %vm6401_vm11, %v15356_v32 }
 0x47e   : > { %9258 = vmatpush1.bf16.msra.mxu1 %v9093_v22  ;;  %v15386_v61 = vpop.permute.xlu0 %9646  ;;  %v15388_v24 = vpop.permute.xlu1 %9648  ;;  %9289 = vmatprep.mubr.bf16.mxu1 %v13789_v37 }
 0x47f   : > { %11954 = vmatprep.subr.msk.bf16.mxu1 %vm6234_vm15, %v9063_v33  ;;  %v9677_v33 = vsel %vm4110_vm8, %v15351_v55, %v15371_v12 }
 0x481   : > { %11949 = vmatmul.mubr.msk.bf16.vlgmr.msra.gmra.mrb[28].mxu0 %vm6401_vm11, %v15356_v32 }
 0x482   : > { %9299 = vmatpush1.bf16.msra.mxu0 %v9099_v54  ;;  %v15401_v16 = vpop.permute.xlu0 %9650  ;;  %v15403_v43 = vpop.permute.xlu1 %9652  ;;  %9330 = vmatprep.mubr.bf16.mxu0 %v13789_v37 }
 0x483   : > { %11956 = vmatprep.subr.msk.bf16.mxu0 %vm6234_vm15, %v9065_v0 }
 0x484   : > { %v15407_v9 = vpop.f32.mrb[180].mxu0 }
 0x485   : > { %11951 = vmatmul.mubr.msk.bf16.vlgmr.msra.gmra.mrb[28].mxu1 %vm6401_vm11, %v15356_v32  ;;  %v15412_v30 = vpop.f32.mrb[181].mxu0 }
 0x486   : > { %9340 = vmatpush1.bf16.msra.mxu1 %v9105_v6  ;;  %v15420_v63 = vpop.permute.xlu0 %9654  ;;  %v15422_v36 = vpop.permute.xlu1 %9656  ;;  %9371 = vmatprep.mubr.bf16.mxu1 %v13789_v37 }
 0x487   : > { %11958 = vmatprep.subr.msk.bf16.mxu1 %vm6234_vm15, %v9067_v60  ;;  %v6503_v27 = vpop.f32.mrb[182].mxu0 }
 0x488   : > { %v6504_v5 = vpop.f32.mrb[183].mxu0  ;;  %v15426_v18 = vpop.f32.mrb[180].mxu1  ;;  %v9679_v27 = vsel %vm4110_vm8, %v15373_v14, %v15386_v61 }
 0x489   : > { %11953 = vmatmul.mubr.msk.bf16.vlgmr.msra.gmra.mrb[32].mxu0 %vm6401_vm11, %v15356_v32  ;;  %v15431_v34 = vpop.f32.mrb[181].mxu1 }
 0x48a   : > { %9381 = vmatpush1.bf16.msra.mxu0 %v9111_v45  ;;  %v15439_v13 = vpop.permute.xlu0 %9658  ;;  %v15441_v59 = vpop.permute.xlu1 %9660  ;;  %9412 = vmatprep.mubr.bf16.mxu0 %v13789_v37 }
 0x48b   : > { %11960 = vmatprep.subr.msk.bf16.mxu0 %vm6234_vm15, %v9069_v41  ;;  %v6544_v38 = vpop.f32.mrb[182].mxu1 }
 0x48c   : > { %v6545_v26 = vpop.f32.mrb[183].mxu1  ;;  %v15445_v8 = vpop.f32.mrb[184].mxu0 }
 0x48d   : > { %11955 = vmatmul.mubr.msk.bf16.vlgmr.msra.gmra.mrb[32].mxu1 %vm6401_vm11, %v15356_v32  ;;  %v15450_v39 = vpop.f32.mrb[185].mxu0  ;;  %v9678_v26 = vsel %vm4110_vm8, %v15371_v12, %v15373_v14  ;;  %v9680_v14 = vsel %vm4110_vm8, %v15386_v61, %v15388_v24 }
 0x48e   : > { %9422 = vmatpush1.bf16.msra.mxu1 %v9117_v20  ;;  %v15455_v21 = vpop.permute.xlu0 %9662  ;;  %v15457_v44 = vpop.permute.xlu1 %9664  ;;  %9453 = vmatprep.mubr.bf16.mxu1 %v13789_v37  ;;  %v9681_v20 = vsel %vm4110_vm8, %v15388_v24, %v15401_v16  ;;  %v9714_v7 = vsel %vm6234_vm15, %v9678_v26, 0  ;;  %v9682_v24 = vsel %vm4110_vm8, %v15401_v16, %v15403_v43 }
 0x48f   : > { %11962 = vmatprep.subr.msk.bf16.mxu1 %vm6234_vm15, %v15310_v25  ;;  %v6585_v62 = vpop.f32.mrb[186].mxu0  ;;  %v9672_v25 = vsel %vm4110_vm8, %v15289_v15, %v15291_v52  ;;  %v9674_v52 = vsel %vm4110_vm8, %v15308_v19, %v15329_v58  ;;  %v9676_v58 = vsel %vm4110_vm8, %v15349_v49, %v15351_v55 }
 0x490   : > { %v6586_v40 = vpop.f32.mrb[187].mxu0  ;;  %v15462_v56 = vpop.f32.mrb[184].mxu1  ;;  %v9696_v53 = vsel %vm6234_vm15, %v9672_v25, 0  ;;  %v9702_v60 = vsel %vm6234_vm15, %v9674_v52, 0  ;;  %v9708_v41 = vsel %vm6234_vm15, %v9676_v58, 0  ;;  %v9726_v58 = vsel %vm6234_vm15, %v9682_v24, 0 }
 0x491   : > { %11957 = vmatmul.mubr.msk.bf16.vlgmr.msra.gmra.mrb[36].mxu0 %vm6401_vm11, %v15356_v32  ;;  %v15467_v47 = vpop.f32.mrb[185].mxu1 }
 0x492   : > { %9463 = vmatpush1.bf16.msra.mxu0 %v9123_v10  ;;  %v15475_v4 = vpop.permute.xlu0 %9670  ;;  %v15477_v42 = vpop.permute.xlu1 %10187  ;;  %9494 = vmatprep.mubr.bf16.mxu0 %v13789_v37 }
 0x493   : > { %11986 = vmatprep.subr.msk.bf16.mxu0 %vm6234_vm15, %v9673_v11  ;;  %v6626_v29 = vpop.f32.mrb[186].mxu1 }
 0x494   : > { %v6627_v2 = vpop.f32.mrb[187].mxu1  ;;  %v15481_v17 = vpop.f32.mrb[188].mxu0  ;;  %v9683_v29 = vsel %vm4110_vm8, %v15403_v43, %v15420_v63 }
 0x495   : > { %11959 = vmatmul.mubr.msk.bf16.vlgmr.msra.gmra.mrb[36].mxu1 %vm6401_vm11, %v15356_v32  ;;  %v15486_v46 = vpop.f32.mrb[189].mxu0 }
 0x496   : > { %9504 = vmatpush1.bf16.msra.mxu1 %v9129_v31  ;;  %v15494_v1 = vpop.permute.xlu0 %10189  ;;  %v15496_v28 = vpop.permute.xlu1 %9668  ;;  %9535 = vmatprep.mubr.bf16.mxu1 %v13789_v37 }
 0x497   : > { %11988 = vmatprep.subr.msk.bf16.mxu1 %vm6234_vm15, %v9675_v51  ;;  %v6667_v23 = vpop.f32.mrb[190].mxu0  ;;  %v9691_v24 = vsel %vm4110_vm8, %v15496_v28, %v15475_v4 }
 0x498   : > { %v6668_v48 = vpop.f32.mrb[191].mxu0  ;;  %v15500_v22 = vpop.f32.mrb[188].mxu1 }
 0x499   : > { %11961 = vmatmul.mubr.msk.bf16.vlgmr.msra.gmra.mrb[40].mxu0 %vm6401_vm11, %v15356_v32  ;;  %v15505_v15 = vpop.f32.mrb[189].mxu1  ;;  %v9720_v48 = vsel %vm6234_vm15, %v9680_v14, 0 }
 0x49a   : > { %9756 = vmatpush1.bf16.msra.mxu0 %v9696_v53  ;;  %v15513_v54 = vpop.permute.xlu0 %9666  ;;  %v15515_v3 = vpop.permute.xlu1 %10191  ;;  %9787 = vmatprep.mubr.bf16.mxu0 %v13789_v37  ;;  %v9685_v53 = vsel %vm4110_vm8, %v15422_v36, %v15439_v13 }
 0x49b   : > { %11990 = vmatprep.subr.msk.bf16.mxu0 %vm6234_vm15, %v9677_v33  ;;  %v6708_v0 = vpop.f32.mrb[190].mxu1 }
 0x49c   : > { %v6709_v6 = vpop.f32.mrb[191].mxu1  ;;  %v15519_v50 = vpop.f32.mrb[192].mxu0 }
 0x49d   : > { %11963 = vmatmul.mubr.msk.bf16.vlgmr.msra.gmra.mrb[40].mxu1 %vm6401_vm11, %v15356_v32  ;;  %v15524_v19 = vpop.f32.mrb[193].mxu0 }
 0x49e   : > { %9797 = vmatpush1.bf16.msra.mxu1 %v9702_v60  ;;  %v15532_v5 = vpop.permute.xlu0 %10193  ;;  %v15534_v45 = vpop.permute.xlu1 %10195  ;;  %9828 = vmatprep.mubr.bf16.mxu1 %v13789_v37 }
 0x49f   : > { %11992 = vmatprep.subr.msk.bf16.mxu1 %vm6234_vm15, %v9679_v27  ;;  %v6749_v32 = vpop.f32.mrb[194].mxu0  ;;  %v9684_v27 = vsel %vm4110_vm8, %v15420_v63, %v15422_v36 }
 0x4a0   : > { %v6750_v49 = vpop.f32.mrb[195].mxu0  ;;  %v15543_v55 = vpop.f32.mrb[192].mxu1  ;;  %v9687_v32 = vsel %vm4110_vm8, %v15441_v59, %v15455_v21 }
 0x4a1   : > { %11987 = vmatmul.mubr.msk.bf16.vlgmr.msra.gmra.mrb[44].mxu0 %vm6401_vm11, %v15539_v57  ;;  %v15548_v38 = vpop.f32.mrb[193].mxu1 }
 0x4a2   : > { %9838 = vmatpush1.bf16.msra.mxu0 %v9708_v41  ;;  %v15556_v35 = vpop.permute.xlu0 %10197  ;;  %v15558_v62 = vpop.permute.xlu1 %10199  ;;  %9869 = vmatprep.mubr.bf16.mxu0 %v13789_v37 }
 0x4a3   : > { %11994 = vmatprep.subr.msk.bf16.mxu0 %vm6234_vm15, %v9681_v20  ;;  %v6790_v40 = vpop.f32.mrb[194].mxu1 }
 0x4a4   : > { %v6791_v10 = vpop.f32.mrb[195].mxu1  ;;  %v15562_v11 = vpop.f32.mrb[196].mxu0  ;;  %v9732_v40 = vsel %vm6234_vm15, %v9684_v27, 0 }
 0x4a5   : > { %11989 = vmatmul.mubr.msk.bf16.vlgmr.msra.gmra.mrb[44].mxu1 %vm6401_vm11, %v15539_v57  ;;  %v15567_v12 = vpop.f32.mrb[197].mxu0 }
 0x4a6   : > { %9879 = vmatpush1.bf16.msra.mxu1 %v9714_v7  ;;  %v15575_v2 = vpop.permute.xlu0 %10201  ;;  %v15577_v31 = vpop.permute.xlu1 %10203  ;;  %9910 = vmatprep.mubr.bf16.mxu1 %v13789_v37  ;;  %v9689_v7 = vsel %vm4110_vm8, %v15457_v44, %v15513_v54 }
 0x4a7   : > { %11996 = vmatprep.subr.msk.bf16.mxu1 %vm6234_vm15, %v9683_v29  ;;  %v6831_v25 = vpop.f32.mrb[198].mxu0 }
 0x4a8   : > { %v6832_v51 = vpop.f32.mrb[199].mxu0  ;;  %v15581_v23 = vpop.f32.mrb[196].mxu1 }
 0x4a9   : > { %11991 = vmatmul.mubr.msk.bf16.vlgmr.msra.gmra.mrb[48].mxu0 %vm6401_vm11, %v15539_v57  ;;  %v15586_v61 = vpop.f32.mrb[197].mxu1 }
 0x4aa   : > { %9920 = vmatpush1.bf16.msra.mxu0 %v9720_v48  ;;  %v15594_v52 = vpop.permute.xlu0 %10205  ;;  %9951 = vmatprep.mubr.bf16.mxu0 %v13789_v37  ;;  %v15598_v33 = vpop.permute.xlu1 %10207 }
 0x4ab   : > { %11998 = vmatprep.subr.msk.bf16.mxu0 %vm6234_vm15, %v9685_v53  ;;  %v6872_v0 = vpop.f32.mrb[198].mxu1 }
 0x4ac   : > { %v6972_v6 = vpop.f32.mrb[200].mxu0  ;;  %v6873_v60 = vpop.f32.mrb[199].mxu1 }
 0x4ad   : > { %v15602_v16 = vadd.f32 %v6972_v6, %v15407_v9  ;;  %v6974_v43 = vpop.f32.mrb[201].mxu0  ;;  %11993 = vmatmul.mubr.msk.bf16.vlgmr.msra.gmra.mrb[48].mxu1 %vm6401_vm11, %v15539_v57 }
 0x4ae   : > { %v15613_v49 = vadd.f32 %v6974_v43, %v15412_v30  ;;  %9961 = vmatpush1.bf16.msra.mxu1 %v9726_v58  ;;  %v15615_v41 = vpop.permute.xlu0 %10209  ;;  %9992 = vmatprep.mubr.bf16.mxu1 %v13789_v37  ;;  %v6976_v9 = vpop.f32.mrb[202].mxu0  ;;  %v9686_v30 = vsel %vm4110_vm8, %v15439_v13, %v15441_v59  ;;  %v10230_v43 = vsel %vm4772_vm9, %v15494_v1, %v15515_v3 }
 0x4af   : > { %12000 = vmatprep.subr.msk.bf16.mxu1 %vm6234_vm15, %v9687_v32  ;;  %v6977_v20 = vpop.f32.mrb[203].mxu0  ;;  %v15620_v63 = vpop.permute.xlu1 %10211  ;;  %v9738_v48 = vsel %vm6234_vm15, %v9686_v30, 0 }
 0x4b0   : > { %v7013_v26 = vpop.f32.mrb[200].mxu1 }
 0x4b1   : > { %v15623_v36 = vadd.f32 %v7013_v26, %v15426_v18  ;;  %v7015_v10 = vpop.f32.mrb[201].mxu1  ;;  %11995 = vmatmul.mubr.msk.bf16.vlgmr.msra.gmra.mrb[52].mxu0 %vm6401_vm11, %v15539_v57 }
 0x4b2   : > { %v15634_v14 = vadd.f32 %v7015_v10, %v15431_v34  ;;  %10002 = vmatpush1.bf16.msra.mxu0 %v9732_v40  ;;  %v15636_v29 = vpop.permute.xlu0 %10213  ;;  %10033 = vmatprep.mubr.bf16.mxu0 %v13789_v37  ;;  %v7017_v18 = vpop.f32.mrb[202].mxu1  ;;  %v9688_v34 = vsel %vm4110_vm8, %v15455_v21, %v15457_v44  ;;  %v10232_v10 = vsel %vm4772_vm9, %v15532_v5, %v15534_v45 }
 0x4b3   : > { %12002 = vmatprep.subr.msk.bf16.mxu0 %vm6234_vm15, %v9689_v7  ;;  %v7018_v51 = vpop.f32.mrb[203].mxu1  ;;  %v9744_v21 = vsel %vm6234_vm15, %v9688_v34, 0 }
 0x4b4   : > { %v7054_v25 = vpop.f32.mrb[204].mxu0 }
 0x4b5   : > { %v15642_v13 = vadd.f32 %v7054_v25, %v15445_v8  ;;  %v7056_v59 = vpop.f32.mrb[205].mxu0  ;;  %11997 = vmatmul.mubr.msk.bf16.vlgmr.msra.gmra.mrb[52].mxu1 %vm6401_vm11, %v15539_v57  ;;  %v15658_v8 = vpop.permute.xlu1 %10215 }
 0x4b6   : > { %v15653_v53 = vadd.f32 %v7056_v59, %v15450_v39  ;;  %10043 = vmatpush1.bf16.msra.mxu1 %v9738_v48  ;;  %v15655_v0 = vpop.permute.xlu0 %10217  ;;  %10074 = vmatprep.mubr.bf16.mxu1 %v13789_v37  ;;  %v7058_v6 = vpop.f32.mrb[206].mxu0  ;;  %v9690_v39 = vsel %vm4110_vm8, %v15513_v54, %v15496_v28  ;;  %v10234_v48 = vsel %vm4772_vm9, %v15556_v35, %v15558_v62 }
 0x4b7   : > { %12004 = vmatprep.subr.msk.bf16.mxu1 %vm6234_vm15, %v9691_v24  ;;  %v7059_v58 = vpop.f32.mrb[207].mxu0  ;;  %v9750_v20 = vsel %vm6234_vm15, %v9690_v39, 0 }
 0x4b8   : > { %v7095_v60 = vpop.f32.mrb[204].mxu1  ;;  %v10236_v58 = vsel %vm4772_vm9, %v15575_v2, %v15577_v31 }
 0x4b9   : > { %v15663_v44 = vadd.f32 %v7095_v60, %v15462_v56  ;;  %v7097_v4 = vpop.f32.mrb[205].mxu1  ;;  %11999 = vmatmul.mubr.msk.bf16.vlgmr.msra.gmra.mrb[56].mxu0 %vm6401_vm11, %v15539_v57  ;;  %v15681_v28 = vpop.permute.xlu1 %10219 }
 0x4ba   : > { %v15674_v27 = vadd.f32 %v7097_v4, %v15467_v47  ;;  %10084 = vmatpush1.bf16.msra.mxu0 %v9744_v21  ;;  %10115 = vmatprep.mubr.bf16.mxu0 %v13789_v37  ;;  %v15678_v56 = vpop.permute.xlu0 %10221  ;;  %v7099_v32 = vpop.f32.mrb[206].mxu1  ;;  %v10229_v47 = vsel %vm4772_vm9, %v15477_v42, %v15494_v1 }
 0x4bb   : > { %12007 = vmatprep.subr.msk.bf16.mxu0 %vm6234_vm15, %v10230_v43  ;;  %v7100_v26 = vpop.f32.mrb[207].mxu1  ;;  %v10253_v25 = vsel %vm6234_vm15, %v10229_v47, 0 }
 0x4bc   : > { %v7136_v9 = vpop.f32.mrb[208].mxu0  ;;  %v10238_v26 = vsel %vm4772_vm9, %v15594_v52, %v15598_v33 }
 0x4bd   : > { %v15684_v54 = vadd.f32 %v7136_v9, %v15481_v17  ;;  %v7138_v40 = vpop.f32.mrb[209].mxu0  ;;  %12001 = vmatmul.mubr.msk.bf16.vlgmr.msra.gmra.mrb[56].mxu1 %vm6401_vm11, %v15539_v57  ;;  %v10235_v9 = vsel %vm4772_vm9, %v15558_v62, %v15575_v2 }
 0x4be   : > { %v15695_v30 = vadd.f32 %v7138_v40, %v15486_v46  ;;  %10125 = vmatpush1.bf16.msra.mxu1 %v9750_v20  ;;  %10156 = vmatprep.mubr.bf16.mxu1 %v13789_v37  ;;  %v7140_v17 = vpop.f32.mrb[210].mxu0  ;;  %v15700_v51 = vpop.permute.xlu0 %10744  ;;  %v10231_v46 = vsel %vm4772_vm9, %v15515_v3, %v15532_v5 }
 0x4bf   : > { %12009 = vmatprep.subr.msk.bf16.mxu1 %vm6234_vm15, %v10232_v10  ;;  %v7141_v18 = vpop.f32.mrb[211].mxu0  ;;  %v10259_v60 = vsel %vm6234_vm15, %v10231_v46, 0  ;;  %v10271_v10 = vsel %vm6234_vm15, %v10235_v9, 0 }
 0x4c0   : > { %v7177_v7 = vpop.f32.mrb[208].mxu1 }
 0x4c1   : > { %v15703_v42 = vadd.f32 %v7177_v7, %v15500_v22  ;;  %v7179_v1 = vpop.f32.mrb[209].mxu1  ;;  %12003 = vmatmul.mubr.msk.bf16.vlgmr.msra.gmra.mrb[60].mxu0 %vm6401_vm11, %v15539_v57  ;;  %v15717_v22 = vpop.permute.xlu1 %10227  ;;  %v10240_v7 = vsel %vm4772_vm9, %v15615_v41, %v15620_v63 }
 0x4c2   : > { %v15714_v59 = vadd.f32 %v7179_v1, %v15505_v15  ;;  %10313 = vmatpush1.bf16.msra.mxu0 %v10253_v25  ;;  %10344 = vmatprep.mubr.bf16.mxu0 %v13789_v37  ;;  %v7181_v34 = vpop.f32.mrb[210].mxu1  ;;  %v10233_v15 = vsel %vm4772_vm9, %v15534_v45, %v15556_v35 }
 0x4c3   : > { %12011 = vmatprep.subr.msk.bf16.mxu0 %vm6234_vm15, %v10234_v48  ;;  %v7182_v6 = vpop.f32.mrb[211].mxu1  ;;  %v10265_v39 = vsel %vm6234_vm15, %v10233_v15, 0  ;;  %v10242_v34 = vsel %vm4772_vm9, %v15636_v29, %v15658_v8 }
 0x4c4   : > { %v7218_v24 = vpop.f32.mrb[212].mxu0 }
 0x4c5   : > { %v15722_v3 = vadd.f32 %v7218_v24, %v15519_v50  ;;  %v7220_v5 = vpop.f32.mrb[213].mxu0  ;;  %12005 = vmatmul.mubr.msk.bf16.vlgmr.msra.gmra.mrb[60].mxu1 %vm6401_vm11, %v15539_v57  ;;  %v15738_v50 = vld [vmem:[%s16311_s3 + $0x1c] sm:$0xf]  ;;  %v15741_v57 = vpop.permute.xlu0 %10225 }
 0x4c6   : > { %v15733_v21 = vadd.f32 %v7220_v5, %v15524_v19  ;;  %10354 = vmatpush1.bf16.msra.mxu1 %v10259_v60  ;;  %10385 = vmatprep.mubr.bf16.mxu1 %v13789_v37  ;;  %v7222_v45 = vpop.f32.mrb[214].mxu0  ;;  %v15745_v43 = vpop.permute.xlu1 %10223 }
 0x4c7   : > { %12013 = vmatprep.subr.msk.bf16.mxu1 %vm6234_vm15, %v10236_v58  ;;  %v7223_v4 = vpop.f32.mrb[215].mxu0  ;;  %v10244_v45 = vsel %vm4772_vm9, %v15655_v0, %v15681_v28 }
 0x4c8   : > { %v7259_v35 = vpop.f32.mrb[212].mxu1 }
 0x4c9   : > { %v15748_v19 = vadd.f32 %v7259_v35, %v15543_v55  ;;  %v7261_v32 = vpop.f32.mrb[213].mxu1  ;;  %12008 = vmatmul.mubr.msk.bf16.vlgmr.msra.gmra.mrb[64].mxu0 %vm6401_vm11, %v15738_v50  ;;  %v15764_v17 = vpop.permute.xlu0 %10748 }
 0x4ca   : > { %v15759_v20 = vadd.f32 %v7261_v32, %v15548_v38  ;;  %10395 = vmatpush1.bf16.msra.mxu0 %v10265_v39  ;;  %10426 = vmatprep.mubr.bf16.mxu0 %v13789_v37  ;;  %v7263_v55 = vpop.f32.mrb[214].mxu1  ;;  %v10237_v38 = vsel %vm4772_vm9, %v15577_v31, %v15594_v52 }
 0x4cb   : > { %12015 = vmatprep.subr.msk.bf16.mxu0 %vm6234_vm15, %v10238_v26  ;;  %v7264_v47 = vpop.f32.mrb[215].mxu1  ;;  %v10277_v48 = vsel %vm6234_vm15, %v10237_v38, 0  ;;  %v10246_v26 = vsel %vm4772_vm9, %v15678_v56, %v15745_v43  ;;  %v10248_v38 = vsel %vm4772_vm9, %v15741_v57, %v15717_v22 }
 0x4cc   : > { %v7300_v40 = vpop.f32.mrb[216].mxu0 }
 0x4cd   : > { %v15767_v62 = vadd.f32 %v7300_v40, %v15562_v11  ;;  %v7302_v2 = vpop.f32.mrb[217].mxu0  ;;  %12010 = vmatmul.mubr.msk.bf16.vlgmr.msra.gmra.mrb[64].mxu1 %vm6401_vm11, %v15738_v50  ;;  %v15781_v11 = vpop.permute.xlu1 %10746 }
 0x4ce   : > { %v15778_v18 = vadd.f32 %v7302_v2, %v15567_v12  ;;  %10436 = vmatpush1.bf16.msra.mxu1 %v10271_v10  ;;  %10467 = vmatprep.mubr.bf16.mxu1 %v13789_v37  ;;  %v7304_v25 = vpop.f32.mrb[218].mxu0  ;;  %v10239_v12 = vsel %vm4772_vm9, %v15598_v33, %v15615_v41 }
 0x4cf   : > { %12017 = vmatprep.subr.msk.bf16.mxu1 %vm6234_vm15, %v10240_v7  ;;  %v7305_v46 = vpop.f32.mrb[219].mxu0  ;;  %v10283_v15 = vsel %vm6234_vm15, %v10239_v12, 0 }
 0x4d0   : > { %v7341_v1 = vpop.f32.mrb[216].mxu1 }
 0x4d1   : > { %v15786_v31 = vadd.f32 %v7341_v1, %v15581_v23  ;;  %v7343_v52 = vpop.f32.mrb[217].mxu1  ;;  %12012 = vmatmul.mubr.msk.bf16.vlgmr.msra.gmra.mrb[68].mxu0 %vm6401_vm11, %v15738_v50  ;;  %v15800_v23 = vpop.permute.xlu0 %10752 }
 0x4d2   : > { %v15797_v24 = vadd.f32 %v7343_v52, %v15586_v61  ;;  %10477 = vmatpush1.bf16.msra.mxu0 %v10277_v48  ;;  %10508 = vmatprep.mubr.bf16.mxu0 %v13789_v37  ;;  %v7345_v6 = vpop.f32.mrb[218].mxu1  ;;  %v15804_v33 = vpop.permute.xlu1 %10750  ;;  %v10241_v61 = vsel %vm4772_vm9, %v15620_v63, %v15636_v29  ;;  %v10787_v52 = vsel %vm5434_vm10, %v15781_v11, %v15764_v17 }
 0x4d3   : > { %12019 = vmatprep.subr.msk.bf16.mxu0 %vm6234_vm15, %v10242_v34  ;;  %v7346_v5 = vpop.f32.mrb[219].mxu1  ;;  %v10289_v32 = vsel %vm6234_vm15, %v10241_v61, 0 }
 0x4d4   : > { %v7506_v60 = vpop.f32.mrb[220].mxu0 }
 0x4d5   : > { %v15807_v41 = vadd.f32 %v7506_v60, %v15602_v16  ;;  %v7508_v58 = vpop.f32.mrb[221].mxu0  ;;  %12014 = vmatmul.mubr.msk.bf16.vlgmr.msra.gmra.mrb[68].mxu1 %vm6401_vm11, %v15738_v50  ;;  %v15823_v9 = vpop.permute.xlu0 %10756 }
 0x4d6   : > { %v15818_v35 = vadd.f32 %v7508_v58, %v15613_v49  ;;  %10518 = vmatpush1.bf16.msra.mxu1 %v10283_v15  ;;  %10549 = vmatprep.mubr.bf16.mxu1 %v13789_v37  ;;  %v7510_v16 = vpop.f32.mrb[222].mxu0  ;;  %v10243_v49 = vsel %vm4772_vm9, %v15658_v8, %v15655_v0  ;;  %v10789_v15 = vsel %vm5434_vm10, %v15804_v33, %v15800_v23 }
 0x4d7   : > { %12021 = vmatprep.subr.msk.bf16.mxu1 %vm6234_vm15, %v10244_v45  ;;  %v7511_v39 = vpop.f32.mrb[223].mxu0  ;;  %v10295_v2 = vsel %vm6234_vm15, %v10243_v49, 0 }
 0x4d8   : > { %v7547_v4 = vpop.f32.mrb[220].mxu1 }
 0x4d9   : > { %v15826_v63 = vadd.f32 %v7547_v4, %v15623_v36  ;;  %v7549_v29 = vpop.f32.mrb[221].mxu1  ;;  %12016 = vmatmul.mubr.msk.bf16.vlgmr.msra.gmra.mrb[72].mxu0 %vm6401_vm11, %v15738_v50  ;;  %v15840_v36 = vpop.permute.xlu1 %10754 }
 0x4da   : > { %v15837_v55 = vadd.f32 %v7549_v29, %v15634_v14  ;;  %10559 = vmatpush1.bf16.msra.mxu0 %v10289_v32  ;;  %10590 = vmatprep.mubr.bf16.mxu0 %v13789_v37  ;;  %v7551_v40 = vpop.f32.mrb[222].mxu1  ;;  %v10245_v14 = vsel %vm4772_vm9, %v15681_v28, %v15678_v56  ;;  %v10791_v39 = vsel %vm5434_vm10, %v15840_v36, %v15823_v9 }
 0x4db   : > { %12023 = vmatprep.subr.msk.bf16.mxu0 %vm6234_vm15, %v10246_v26  ;;  %v7552_v10 = vpop.f32.mrb[223].mxu1  ;;  %v10301_v48 = vsel %vm6234_vm15, %v10245_v14, 0 }
 0x4dc   : > { %v7588_v47 = vpop.f32.mrb[224].mxu0 }
 0x4dd   : > { %v15845_v0 = vadd.f32 %v7588_v47, %v15642_v13  ;;  %v7590_v8 = vpop.f32.mrb[225].mxu0  ;;  %12018 = vmatmul.mubr.msk.bf16.vlgmr.msra.gmra.mrb[72].mxu1 %vm6401_vm11, %v15738_v50  ;;  %v15859_v13 = vpop.permute.xlu0 %10760 }
 0x4de   : > { %v15856_v7 = vadd.f32 %v7590_v8, %v15653_v53  ;;  %10600 = vmatpush1.bf16.msra.mxu1 %v10295_v2  ;;  %10631 = vmatprep.mubr.bf16.mxu1 %v13789_v37  ;;  %v7592_v25 = vpop.f32.mrb[226].mxu0  ;;  %v15863_v56 = vpop.permute.xlu1 %10758  ;;  %v10247_v53 = vsel %vm4772_vm9, %v15745_v43, %v15741_v57 }
 0x4df   : > { %12025 = vmatprep.subr.msk.bf16.mxu1 %vm6234_vm15, %v10248_v38  ;;  %v7593_v46 = vpop.f32.mrb[227].mxu0  ;;  %v10307_v60 = vsel %vm6234_vm15, %v10247_v53, 0  ;;  %v10793_v10 = vsel %vm5434_vm10, %v15863_v56, %v15859_v13  ;;  %v10792_v25 = vsel %vm5434_vm10, %v15823_v9, %v15863_v56 }
 0x4e0   : > { %v7629_v1 = vpop.f32.mrb[224].mxu1 }
 0x4e1   : > { %v15866_v28 = vadd.f32 %v7629_v1, %v15663_v44  ;;  %v7631_v22 = vpop.f32.mrb[225].mxu1  ;;  %12020 = vmatmul.mubr.msk.bf16.vlgmr.msra.gmra.mrb[76].mxu0 %vm6401_vm11, %v15738_v50  ;;  %v15882_v5 = vpop.permute.xlu0 %10764 }
 0x4e2   : > { %v15877_v12 = vadd.f32 %v7631_v22, %v15674_v27  ;;  %10641 = vmatpush1.bf16.msra.mxu0 %v10301_v48  ;;  %10672 = vmatprep.mubr.bf16.mxu0 %v13789_v37  ;;  %v7633_v44 = vpop.f32.mrb[226].mxu1  ;;  %v10786_v27 = vsel %vm5434_vm10, %v15700_v51, %v15781_v11 }
 0x4e3   : > { %12028 = vmatprep.subr.msk.bf16.mxu0 %vm6234_vm15, %v10787_v52  ;;  %v7634_v6 = vpop.f32.mrb[227].mxu1  ;;  %v10810_v4 = vsel %vm6234_vm15, %v10786_v27, 0  ;;  %v10828_v52 = vsel %vm6234_vm15, %v10792_v25, 0 }
 0x4e4   : > { %v7670_v34 = vpop.f32.mrb[228].mxu0 }
 0x4e5   : > { %v15885_v57 = vadd.f32 %v7670_v34, %v15684_v54  ;;  %v7672_v43 = vpop.f32.mrb[229].mxu0  ;;  %12022 = vmatmul.mubr.msk.bf16.vlgmr.msra.gmra.mrb[76].mxu1 %vm6401_vm11, %v15738_v50  ;;  %v10763_v54 = vpop.permute.xlu1 %10762 }
 0x4e6   : > { %v15896_v58 = vadd.f32 %v7672_v43, %v15695_v30  ;;  %10682 = vmatpush1.bf16.msra.mxu1 %v10307_v60  ;;  %10713 = vmatprep.mubr.bf16.mxu1 %v13789_v37  ;;  %v7674_v61 = vpop.f32.mrb[230].mxu0  ;;  %v10788_v30 = vsel %vm5434_vm10, %v15764_v17, %v15804_v33  ;;  %v10795_v1 = vsel %vm5434_vm10, %v10763_v54, %v15882_v5 }
 0x4e7   : > { %12030 = vmatprep.subr.msk.bf16.mxu1 %vm6234_vm15, %v10789_v15  ;;  %v7675_v16 = vpop.f32.mrb[231].mxu0  ;;  %v10816_v40 = vsel %vm6234_vm15, %v10788_v30, 0 }
 0x4e8   : > { %v7711_v45 = vpop.f32.mrb[228].mxu1 }
 0x4e9   : > { %v15902_v51 = vadd.f32 %v7711_v45, %v15703_v42  ;;  %v7713_v11 = vpop.f32.mrb[229].mxu1  ;;  %12024 = vmatmul.mubr.msk.bf16.vlgmr.msra.gmra.mrb[80].mxu0 %vm6401_vm11, %v15738_v50  ;;  %v15916_v42 = vpop.permute.xlu0 %10768 }
 0x4ea   : > { %v15913_v32 = vadd.f32 %v7713_v11, %v15714_v59  ;;  %10870 = vmatpush1.bf16.msra.mxu0 %v10810_v4  ;;  %v7715_v29 = vpop.f32.mrb[230].mxu1  ;;  %10901 = vmatprep.mubr.bf16.mxu0 %v13789_v37  ;;  %v10767_v17 = vpop.permute.xlu1 %10766  ;;  %v10790_v59 = vsel %vm5434_vm10, %v15800_v23, %v15840_v36 }
 0x4eb   : > { %12032 = vmatprep.subr.msk.bf16.mxu0 %vm6234_vm15, %v10791_v39  ;;  %v7716_v49 = vpop.f32.mrb[231].mxu1  ;;  %v10822_v36 = vsel %vm6234_vm15, %v10790_v59, 0  ;;  %v10797_v56 = vsel %vm5434_vm10, %v10767_v17, %v15916_v42 }
 0x4ec   : > { %v7752_v26 = vpop.f32.mrb[232].mxu0 }
 0x4ed   : > { %v15921_v33 = vadd.f32 %v7752_v26, %v15722_v3  ;;  %v7754_v47 = vpop.f32.mrb[233].mxu0  ;;  %12026 = vmatmul.mubr.msk.bf16.vlgmr.msra.gmra.mrb[80].mxu1 %vm6401_vm11, %v15738_v50  ;;  %v15937_v3 = vld [vmem:[%s16311_s3 + $0x20] sm:$0xf]  ;;  %v10773_v14 = vpop.permute.xlu0 %10772 }
 0x4ee   : > { %v15932_v2 = vadd.f32 %v7754_v47, %v15733_v21  ;;  %10911 = vmatpush1.bf16.msra.mxu1 %v10816_v40  ;;  %v7756_v8 = vpop.f32.mrb[234].mxu0  ;;  %10942 = vmatprep.mubr.bf16.mxu1 %v13789_v37 }
 0x4ef   : > { %12034 = vmatprep.subr.msk.bf16.mxu1 %vm6234_vm15, %v10793_v10  ;;  %v7757_v50 = vpop.f32.mrb[235].mxu0 }
 0x4f0   : > { %v7793_v23 = vpop.f32.mrb[232].mxu1 }
 0x4f1   : > { %v15943_v38 = vadd.f32 %v7793_v23, %v15748_v19  ;;  %v7795_v21 = vpop.f32.mrb[233].mxu1  ;;  %12029 = vmatmul.mubr.msk.bf16.vlgmr.msra.gmra.mrb[84].mxu0 %vm6401_vm11, %v15937_v3  ;;  %v10771_v19 = vpop.permute.xlu1 %10770 }
 0x4f2   : > { %v15953_v46 = vadd.f32 %v7795_v21, %v15759_v20  ;;  %10952 = vmatpush1.bf16.msra.mxu0 %v10822_v36  ;;  %v7797_v48 = vpop.f32.mrb[234].mxu1  ;;  %10983 = vmatprep.mubr.bf16.mxu0 %v13789_v37  ;;  %v10794_v20 = vsel %vm5434_vm10, %v15859_v13, %v10763_v54  ;;  %v10777_v60 = vpop.permute.xlu0 %10776  ;;  %v10799_v61 = vsel %vm5434_vm10, %v10771_v19, %v10773_v14 }
 0x4f3   : > { %12036 = vmatprep.subr.msk.bf16.mxu0 %vm6234_vm15, %v10795_v1  ;;  %v7798_v22 = vpop.f32.mrb[235].mxu1  ;;  %v10834_v27 = vsel %vm6234_vm15, %v10794_v20, 0 }
 0x4f4   : > { %v7834_v53 = vpop.f32.mrb[236].mxu0 }
 0x4f5   : > { %v15959_v44 = vadd.f32 %v7834_v53, %v15767_v62  ;;  %v7836_v9 = vpop.f32.mrb[237].mxu0  ;;  %12031 = vmatmul.mubr.msk.bf16.vlgmr.msra.gmra.mrb[84].mxu1 %vm6401_vm11, %v15937_v3  ;;  %v10775_v15 = vpop.permute.xlu1 %10774 }
 0x4f6   : > { %v15968_v34 = vadd.f32 %v7836_v9, %v15778_v18  ;;  %10993 = vmatpush1.bf16.msra.mxu1 %v10828_v52  ;;  %v7838_v6 = vpop.f32.mrb[238].mxu0  ;;  %11024 = vmatprep.mubr.bf16.mxu1 %v13789_v37  ;;  %v10796_v18 = vsel %vm5434_vm10, %v15882_v5, %v10767_v17  ;;  %v10781_v30 = vpop.permute.xlu0 %10780  ;;  %v10801_v29 = vsel %vm5434_vm10, %v10775_v15, %v10777_v60 }
 0x4f7   : > { %12038 = vmatprep.subr.msk.bf16.mxu1 %vm6234_vm15, %v10797_v56  ;;  %v7839_v62 = vpop.f32.mrb[239].mxu0  ;;  %v10840_v11 = vsel %vm6234_vm15, %v10796_v18, 0 }
 0x4f8   : > { %v7875_v43 = vpop.f32.mrb[236].mxu1 }
 0x4f9   : > { %v15974_v13 = vadd.f32 %v7875_v43, %v15786_v31  ;;  %v7877_v54 = vpop.f32.mrb[237].mxu1  ;;  %12033 = vmatmul.mubr.msk.bf16.vlgmr.msra.gmra.mrb[88].mxu0 %vm6401_vm11, %v15937_v3  ;;  %v10779_v40 = vpop.permute.xlu1 %10778 }
 0x4fa   : > { %v15982_v45 = vadd.f32 %v7877_v54, %v15797_v24  ;;  %11034 = vmatpush1.bf16.msra.mxu0 %v10834_v27  ;;  %v7879_v16 = vpop.f32.mrb[238].mxu1  ;;  %11065 = vmatprep.mubr.bf16.mxu0 %v13789_v37  ;;  %v10798_v24 = vsel %vm5434_vm10, %v15916_v42, %v10771_v19  ;;  %v10803_v10 = vsel %vm5434_vm10, %v10779_v40, %v10781_v30  ;;  %v10785_v23 = vpop.permute.xlu0 %10784 }
 0x4fb   : > { %12040 = vmatprep.subr.msk.bf16.mxu0 %vm6234_vm15, %v10799_v61  ;;  %v7880_v31 = vpop.f32.mrb[239].mxu1  ;;  %v10846_v47 = vsel %vm6234_vm15, %v10798_v24, 0 }
 0x4fc   : > { %v8060_v4 = vpop.f32.mrb[240].mxu0 }
 0x4fd   : > { %v15988_v39 = vadd.f32 %v8060_v4, %v15807_v41  ;;  %v8062_v5 = vpop.f32.mrb[241].mxu0  ;;  %12035 = vmatmul.mubr.msk.bf16.vlgmr.msra.gmra.mrb[88].mxu1 %vm6401_vm11, %v15937_v3  ;;  %v10783_v25 = vpop.permute.xlu1 %10782 }
 0x4fe   : > { %v15996_v49 = vadd.f32 %v8062_v5, %v15818_v35  ;;  %11075 = vmatpush1.bf16.msra.mxu1 %v10840_v11  ;;  %v8064_v26 = vpop.f32.mrb[242].mxu0  ;;  %11106 = vmatprep.mubr.bf16.mxu1 %v13789_v37  ;;  %v10800_v35 = vsel %vm5434_vm10, %v10773_v14, %v10775_v15  ;;  %v10805_v48 = vsel %vm5434_vm10, %v10783_v25, %v10785_v23 }
 0x4ff   : > { %12042 = vmatprep.subr.msk.bf16.mxu1 %vm6234_vm15, %v10801_v29  ;;  %v8065_v41 = vpop.f32.mrb[243].mxu0  ;;  %v10852_v21 = vsel %vm6234_vm15, %v10800_v35, 0 }
 0x500   : > { %v8101_v17 = vpop.f32.mrb[240].mxu1 }
 0x501   : > { %v16002_v59 = vadd.f32 %v8101_v17, %v15826_v63  ;;  %v8103_v42 = vpop.f32.mrb[241].mxu1  ;;  %12037 = vmatmul.mubr.msk.bf16.vlgmr.msra.gmra.mrb[92].mxu0 %vm6401_vm11, %v15937_v3 }
 0x502   : > { %v16009_v8 = vadd.f32 %v8103_v42, %v15837_v55  ;;  %11116 = vmatpush1.bf16.msra.mxu0 %v10846_v47  ;;  %v8105_v50 = vpop.f32.mrb[242].mxu1  ;;  %11147 = vmatprep.mubr.bf16.mxu0 %v13789_v37  ;;  %v10802_v55 = vsel %vm5434_vm10, %v10777_v60, %v10779_v40 }
 0x503   : > { %12044 = vmatprep.subr.msk.bf16.mxu0 %vm6234_vm15, %v10803_v10  ;;  %v8106_v63 = vpop.f32.mrb[243].mxu1  ;;  %v10858_v52 = vsel %vm6234_vm15, %v10802_v55, 0 }
 0x504   : > { %v8142_v36 = vpop.f32.mrb[244].mxu0 }
 0x505   : > { %v16015_v1 = vadd.f32 %v8142_v36, %v15845_v0  ;;  %v8144_v14 = vpop.f32.mrb[245].mxu0  ;;  %12039 = vmatmul.mubr.msk.bf16.vlgmr.msra.gmra.mrb[92].mxu1 %vm6401_vm11, %v15937_v3 }
 0x506   : > { %v16022_v19 = vadd.f32 %v8144_v14, %v15856_v7  ;;  %11157 = vmatpush1.bf16.msra.mxu1 %v10852_v21  ;;  %v8146_v22 = vpop.f32.mrb[246].mxu0  ;;  %11188 = vmatprep.mubr.bf16.mxu1 %v13789_v37  ;;  %v10804_v7 = vsel %vm5434_vm10, %v10781_v30, %v10783_v25 }
 0x507   : > { %12046 = vmatprep.subr.msk.bf16.mxu1 %vm6234_vm15, %v10805_v48  ;;  %v8147_v53 = vpop.f32.mrb[247].mxu0  ;;  %v10864_v43 = vsel %vm6234_vm15, %v10804_v7, 0 }
 0x508   : > { %v8183_v0 = vpop.f32.mrb[244].mxu1 }
 0x509   : > { %v16028_v9 = vadd.f32 %v8183_v0, %v15866_v28  ;;  %v8185_v20 = vpop.f32.mrb[245].mxu1  ;;  %12041 = vmatmul.mubr.msk.bf16.vlgmr.msra.gmra.mrb[96].mxu0 %vm6401_vm11, %v15937_v3 }
 0x50a   : > { %v16034_v56 = vadd.f32 %v8185_v20, %v15877_v12  ;;  %11198 = vmatpush1.bf16.msra.mxu0 %v10858_v52  ;;  %v8187_v6 = vpop.f32.mrb[246].mxu1  ;;  %11229 = vmatprep.mubr.bf16.mxu0 %v13789_v37 }
 0x50b   : > { %v8188_v60 = vpop.f32.mrb[247].mxu1 }
 0x50c   : > { %v8224_v62 = vpop.f32.mrb[248].mxu0 }
 0x50d   : > { %v16039_v28 = vadd.f32 %v8224_v62, %v15885_v57  ;;  %v8226_v27 = vpop.f32.mrb[249].mxu0  ;;  %12043 = vmatmul.mubr.msk.bf16.vlgmr.msra.gmra.mrb[96].mxu1 %vm6401_vm11, %v15937_v3 }
 0x50e   : > { %v16044_v15 = vadd.f32 %v8226_v27, %v15896_v58  ;;  %11239 = vmatpush1.bf16.msra.mxu1 %v10864_v43  ;;  %v8228_v12 = vpop.f32.mrb[250].mxu0  ;;  %11270 = vmatprep.mubr.bf16.mxu1 %v13789_v37 }
 0x50f   : > { %v8229_v54 = vpop.f32.mrb[251].mxu0 }
 0x510   : > { %v8265_v18 = vpop.f32.mrb[248].mxu1 }
 0x511   : > { %v8446_v61 = vadd.f32 %v8265_v18, %v15902_v51  ;;  %v8267_v16 = vpop.f32.mrb[249].mxu1  ;;  %12045 = vmatmul.mubr.msk.bf16.vlgmr.msra.gmra.mrb[100].mxu0 %vm6401_vm11, %v15937_v3 }
 0x512   : > { %v8447_v57 = vadd.f32 %v8267_v16, %v15913_v32  ;;  %v8269_v31 = vpop.f32.mrb[250].mxu1 }
 0x513   : > { %v8270_v4 = vpop.f32.mrb[251].mxu1 }
 0x514   : > { %v8306_v11 = vpop.f32.mrb[252].mxu0 }
 0x515   : > { %v8448_v58 = vadd.f32 %v8306_v11, %v15921_v33  ;;  %v8308_v30 = vpop.f32.mrb[253].mxu0  ;;  %12047 = vmatmul.mubr.msk.bf16.vlgmr.msra.gmra.mrb[100].mxu1 %vm6401_vm11, %v15937_v3 }
 0x516   : > { %v8449_v37 = vadd.f32 %v8308_v30, %v15932_v2  ;;  %v8310_v5 = vpop.f32.mrb[254].mxu0 }
 0x517   : > { %v8311_v24 = vpop.f32.mrb[255].mxu0 }
 0x518   : > { %v8347_v51 = vpop.f32.mrb[252].mxu1 }
 0x519   : > { %v8450_v29 = vadd.f32 %v8347_v51, %v15943_v38  ;;  %v8349_v26 = vpop.f32.mrb[253].mxu1 }
 0x51a   : > { %v8451_v40 = vadd.f32 %v8349_v26, %v15953_v46  ;;  %v8351_v32 = vpop.f32.mrb[254].mxu1 }
 0x51b   : > { %v8352_v41 = vpop.f32.mrb[255].mxu1 }
 0x51c   : > { %v8388_v17 = vpop.f32.mrb[0].mxu0 }
 0x51d   : > { %v8452_v47 = vadd.f32 %v8388_v17, %v15959_v44  ;;  %v8390_v33 = vpop.f32.mrb[1].mxu0 }
 0x51e   : > { %v8453_v42 = vadd.f32 %v8390_v33, %v15968_v34  ;;  %v8392_v35 = vpop.f32.mrb[2].mxu0 }
 0x51f   : > { %v8393_v3 = vpop.f32.mrb[3].mxu0 }
 0x520   : > { %v8429_v10 = vpop.f32.mrb[0].mxu1 }
 0x521   : > { %v8454_v2 = vadd.f32 %v8429_v10, %v15974_v13  ;;  %v8431_v50 = vpop.f32.mrb[1].mxu1 }
 0x522   : > { %v8455_v23 = vadd.f32 %v8431_v50, %v15982_v45  ;;  %v8433_v38 = vpop.f32.mrb[2].mxu1 }
 0x523   : > { %v8434_v63 = vpop.f32.mrb[3].mxu1 }
 0x524   : > { %v8614_v36 = vpop.f32.mrb[4].mxu0 }
 0x525   : > { %v8990_v46 = vadd.f32 %v8614_v36, %v15988_v39  ;;  %v8616_v21 = vpop.f32.mrb[5].mxu0 }
 0x526   : > { %v8991_v25 = vadd.f32 %v8616_v21, %v15996_v49  ;;  %v8618_v44 = vpop.f32.mrb[6].mxu0 }
 0x527   : > { %v8619_v14 = vpop.f32.mrb[7].mxu0 }
 0x528   : > { %v8655_v55 = vpop.f32.mrb[4].mxu1 }
 0x529   : > { %v8992_v34 = vadd.f32 %v8655_v55, %v16002_v59  ;;  %v8657_v48 = vpop.f32.mrb[5].mxu1 }
 0x52a   : > { %v8993_v22 = vadd.f32 %v8657_v48, %v16009_v8  ;;  %v8659_v13 = vpop.f32.mrb[6].mxu1 }
 0x52b   : > { %v8660_v53 = vpop.f32.mrb[7].mxu1 }
 0x52c   : > { %v8696_v0 = vpop.f32.mrb[8].mxu0 }
 0x52d   : > { %v8994_v45 = vadd.f32 %v8696_v0, %v16015_v1  ;;  %v8698_v52 = vpop.f32.mrb[9].mxu0 }
 0x52e   : > { %v8995_v20 = vadd.f32 %v8698_v52, %v16022_v19  ;;  %v8700_v39 = vpop.f32.mrb[10].mxu0 }
 0x52f   : > { %v8701_v7 = vpop.f32.mrb[11].mxu0 }
 0x530   : > { %v8737_v6 = vpop.f32.mrb[8].mxu1 }
 0x531   : > { %v8996_v49 = vadd.f32 %v8737_v6, %v16028_v9  ;;  %v8739_v60 = vpop.f32.mrb[9].mxu1 }
 0x532   : > { %v8997_v62 = vadd.f32 %v8739_v60, %v16034_v56  ;;  %v8741_v59 = vpop.f32.mrb[10].mxu1 }
 0x533   : > { %v8742_v43 = vpop.f32.mrb[11].mxu1 }
 0x534   : > { %v8778_v27 = vpop.f32.mrb[12].mxu0 }
 0x535   : > { %v8998_v8 = vadd.f32 %v8778_v27, %v16039_v28  ;;  %v8780_v12 = vpop.f32.mrb[13].mxu0 }
 0x536   : > { %v8999_v54 = vadd.f32 %v8780_v12, %v16044_v15  ;;  %v8782_v1 = vpop.f32.mrb[14].mxu0 }
 0x537   : > { %v8783_v18 = vpop.f32.mrb[15].mxu0 }
 0x538   : > { %v8819_v16 = vpop.f32.mrb[12].mxu1 }
 0x539   : > { %v9000_v19 = vadd.f32 %v8819_v16, %v8446_v61  ;;  %v8821_v31 = vpop.f32.mrb[13].mxu1 }
 0x53a   : > { %v9001_v4 = vadd.f32 %v8821_v31, %v8447_v57  ;;  %v8823_v11 = vpop.f32.mrb[14].mxu1 }
 0x53b   : > { %v8824_v30 = vpop.f32.mrb[15].mxu1 }
 0x53c   : > { %v8860_v9 = vpop.f32.mrb[16].mxu0 }
 0x53d   : > { %v9002_v5 = vadd.f32 %v8860_v9, %v8448_v58  ;;  %v8862_v24 = vpop.f32.mrb[17].mxu0 }
 0x53e   : > { %v9003_v56 = vadd.f32 %v8862_v24, %v8449_v37  ;;  %v8864_v51 = vpop.f32.mrb[18].mxu0 }
 0x53f   : > { %v8865_v26 = vpop.f32.mrb[19].mxu0 }
 0x540   : > { %v8901_v32 = vpop.f32.mrb[16].mxu1 }
 0x541   : > { %v9004_v41 = vadd.f32 %v8901_v32, %v8450_v29  ;;  %v8903_v28 = vpop.f32.mrb[17].mxu1 }
 0x542   : > { %v9005_v17 = vadd.f32 %v8903_v28, %v8451_v40  ;;  %v8905_v33 = vpop.f32.mrb[18].mxu1 }
 0x543   : > { %v8906_v15 = vpop.f32.mrb[19].mxu1 }
 0x544   : > { %v8942_v35 = vpop.f32.mrb[20].mxu0 }
 0x545   : > { %v9006_v3 = vadd.f32 %v8942_v35, %v8452_v47  ;;  %v8944_v10 = vpop.f32.mrb[21].mxu0 }
 0x546   : > { %v9007_v61 = vadd.f32 %v8944_v10, %v8453_v42  ;;  %v8946_v50 = vpop.f32.mrb[22].mxu0 }
 0x547   : > { %v8947_v57 = vpop.f32.mrb[23].mxu0 }
 0x548   : > { %v8983_v38 = vpop.f32.mrb[20].mxu1 }
 0x549   : > { %v9008_v63 = vadd.f32 %v8983_v38, %v8454_v2  ;;  %v8985_v36 = vpop.f32.mrb[21].mxu1 }
 0x54a   : > { %v9009_v58 = vadd.f32 %v8985_v36, %v8455_v23  ;;  %v8987_v21 = vpop.f32.mrb[22].mxu1 }
 0x54b   : > { %v8988_v37 = vpop.f32.mrb[23].mxu1 }
 0x54c   : > { %v9168_v44 = vpop.f32.mrb[24].mxu0 }
 0x54d   : > { %v9544_v14 = vadd.f32 %v9168_v44, %v8990_v46  ;;  %v9170_v55 = vpop.f32.mrb[25].mxu0 }
 0x54e   : > { %v9545_v29 = vadd.f32 %v9170_v55, %v8991_v25  ;;  %v9172_v48 = vpop.f32.mrb[26].mxu0 }
 0x54f   : > { %v9173_v40 = vpop.f32.mrb[27].mxu0 }
 0x550   : > { %v9209_v13 = vpop.f32.mrb[24].mxu1 }
 0x551   : > { %v9546_v53 = vadd.f32 %v9209_v13, %v8992_v34  ;;  %v9211_v0 = vpop.f32.mrb[25].mxu1 }
 0x552   : > { %v9547_v47 = vadd.f32 %v9211_v0, %v8993_v22  ;;  %v9213_v52 = vpop.f32.mrb[26].mxu1 }
 0x553   : > { %v9214_v42 = vpop.f32.mrb[27].mxu1 }
 0x554   : > { %v9250_v39 = vpop.f32.mrb[28].mxu0 }
 0x555   : > { %v9548_v7 = vadd.f32 %v9250_v39, %v8994_v45  ;;  %v9252_v6 = vpop.f32.mrb[29].mxu0 }
 0x556   : > { %v9549_v2 = vadd.f32 %v9252_v6, %v8995_v20  ;;  %v9254_v60 = vpop.f32.mrb[30].mxu0 }
 0x557   : > { %v9255_v23 = vpop.f32.mrb[31].mxu0 }
 0x558   : > { %v9291_v59 = vpop.f32.mrb[28].mxu1 }
 0x559   : > { %v9550_v43 = vadd.f32 %v9291_v59, %v8996_v49  ;;  %v9293_v27 = vpop.f32.mrb[29].mxu1 }
 0x55a   : > { %v9551_v46 = vadd.f32 %v9293_v27, %v8997_v62  ;;  %v9295_v12 = vpop.f32.mrb[30].mxu1 }
 0x55b   : > { %v9296_v25 = vpop.f32.mrb[31].mxu1 }
 0x55c   : > { %v9332_v1 = vpop.f32.mrb[32].mxu0 }
 0x55d   : > { %v9552_v18 = vadd.f32 %v9332_v1, %v8998_v8  ;;  %v9334_v16 = vpop.f32.mrb[33].mxu0 }
 0x55e   : > { %v9553_v34 = vadd.f32 %v9334_v16, %v8999_v54  ;;  %v9336_v31 = vpop.f32.mrb[34].mxu0 }
 0x55f   : > { %v9337_v22 = vpop.f32.mrb[35].mxu0 }
 0x560   : > { %v9373_v11 = vpop.f32.mrb[32].mxu1 }
 0x561   : > { %v9554_v30 = vadd.f32 %v9373_v11, %v9000_v19  ;;  %v9375_v9 = vpop.f32.mrb[33].mxu1 }
 0x562   : > { %v9555_v45 = vadd.f32 %v9375_v9, %v9001_v4  ;;  %v9377_v24 = vpop.f32.mrb[34].mxu1 }
 0x563   : > { %v9378_v20 = vpop.f32.mrb[35].mxu1 }
 0x564   : > { %v9414_v51 = vpop.f32.mrb[36].mxu0 }
 0x565   : > { %v9556_v26 = vadd.f32 %v9414_v51, %v9002_v5  ;;  %v9416_v32 = vpop.f32.mrb[37].mxu0 }
 0x566   : > { %v9557_v49 = vadd.f32 %v9416_v32, %v9003_v56  ;;  %v9418_v28 = vpop.f32.mrb[38].mxu0 }
 0x567   : > { %v9419_v62 = vpop.f32.mrb[39].mxu0 }
 0x568   : > { %v9455_v33 = vpop.f32.mrb[36].mxu1 }
 0x569   : > { %v9558_v15 = vadd.f32 %v9455_v33, %v9004_v41  ;;  %v9457_v35 = vpop.f32.mrb[37].mxu1 }
 0x56a   : > { %v9559_v8 = vadd.f32 %v9457_v35, %v9005_v17  ;;  %v9459_v10 = vpop.f32.mrb[38].mxu1 }
 0x56b   : > { %v9460_v54 = vpop.f32.mrb[39].mxu1 }
 0x56c   : > { %v9496_v50 = vpop.f32.mrb[40].mxu0 }
 0x56d   : > { %v9560_v57 = vadd.f32 %v9496_v50, %v9006_v3  ;;  %v9498_v38 = vpop.f32.mrb[41].mxu0 }
 0x56e   : > { %v9561_v19 = vadd.f32 %v9498_v38, %v9007_v61  ;;  %v9500_v36 = vpop.f32.mrb[42].mxu0 }
 0x56f   : > { %v9501_v4 = vpop.f32.mrb[43].mxu0 }
 0x570   : > { %v9537_v21 = vpop.f32.mrb[40].mxu1 }
 0x571   : > { %v9562_v37 = vadd.f32 %v9537_v21, %v9008_v63  ;;  %v9539_v44 = vpop.f32.mrb[41].mxu1 }
 0x572   : > { %v9563_v5 = vadd.f32 %v9539_v44, %v9009_v58  ;;  %v9541_v55 = vpop.f32.mrb[42].mxu1 }
 0x573   : > { %v9542_v56 = vpop.f32.mrb[43].mxu1 }
 0x574   : > { %v9789_v48 = vpop.f32.mrb[44].mxu0 }
 0x575   : > { %v10165_v40 = vadd.f32 %v9789_v48, %v9544_v14  ;;  %v9791_v13 = vpop.f32.mrb[45].mxu0 }
 0x576   : > { %v10166_v41 = vadd.f32 %v9791_v13, %v9545_v29  ;;  %v9793_v0 = vpop.f32.mrb[46].mxu0 }
 0x577   : > { %v9794_v17 = vpop.f32.mrb[47].mxu0 }
 0x578   : > { %v9830_v52 = vpop.f32.mrb[44].mxu1 }
 0x579   : > { %v10167_v42 = vadd.f32 %v9830_v52, %v9546_v53  ;;  %v9832_v39 = vpop.f32.mrb[45].mxu1 }
 0x57a   : > { %v10168_v3 = vadd.f32 %v9832_v39, %v9547_v47  ;;  %v9834_v6 = vpop.f32.mrb[46].mxu1 }
 0x57b   : > { %v9835_v61 = vpop.f32.mrb[47].mxu1 }
 0x57c   : > { %v9871_v60 = vpop.f32.mrb[48].mxu0 }
 0x57d   : > { %v10169_v23 = vadd.f32 %v9871_v60, %v9548_v7  ;;  %v9873_v59 = vpop.f32.mrb[49].mxu0 }
 0x57e   : > { %v10170_v63 = vadd.f32 %v9873_v59, %v9549_v2  ;;  %v9875_v27 = vpop.f32.mrb[50].mxu0 }
 0x57f   : > { %v9876_v58 = vpop.f32.mrb[51].mxu0 }
 0x580   : > { %v9912_v12 = vpop.f32.mrb[48].mxu1 }
 0x581   : > { %v10171_v25 = vadd.f32 %v9912_v12, %v9550_v43  ;;  %v9914_v1 = vpop.f32.mrb[49].mxu1 }
 0x582   : > { %v10172_v14 = vadd.f32 %v9914_v1, %v9551_v46  ;;  %v9916_v16 = vpop.f32.mrb[50].mxu1 }
 0x583   : > { %v9917_v29 = vpop.f32.mrb[51].mxu1 }
 0x584   : > { %v9953_v31 = vpop.f32.mrb[52].mxu0 }
 0x585   : > { %v10173_v22 = vadd.f32 %v9953_v31, %v9552_v18  ;;  %v9955_v11 = vpop.f32.mrb[53].mxu0 }
 0x586   : > { %v10174_v53 = vadd.f32 %v9955_v11, %v9553_v34  ;;  %v9957_v9 = vpop.f32.mrb[54].mxu0 }
 0x587   : > { %v9958_v47 = vpop.f32.mrb[55].mxu0 }
 0x588   : > { %v9994_v24 = vpop.f32.mrb[52].mxu1 }
 0x589   : > { %v10175_v20 = vadd.f32 %v9994_v24, %v9554_v30  ;;  %v9996_v51 = vpop.f32.mrb[53].mxu1 }
 0x58a   : > { %v10176_v7 = vadd.f32 %v9996_v51, %v9555_v45  ;;  %v9998_v32 = vpop.f32.mrb[54].mxu1 }
 0x58b   : > { %v9999_v2 = vpop.f32.mrb[55].mxu1 }
 0x58c   : > { %v10035_v28 = vpop.f32.mrb[56].mxu0 }
 0x58d   : > { %v10177_v62 = vadd.f32 %v10035_v28, %v9556_v26  ;;  %v10037_v33 = vpop.f32.mrb[57].mxu0 }
 0x58e   : > { %v10178_v43 = vadd.f32 %v10037_v33, %v9557_v49  ;;  %v10039_v35 = vpop.f32.mrb[58].mxu0 }
 0x58f   : > { %v10040_v46 = vpop.f32.mrb[59].mxu0 }
 0x590   : > { %v10076_v10 = vpop.f32.mrb[56].mxu1 }
 0x591   : > { %v10179_v54 = vadd.f32 %v10076_v10, %v9558_v15  ;;  %v10078_v50 = vpop.f32.mrb[57].mxu1 }
 0x592   : > { %v10180_v18 = vadd.f32 %v10078_v50, %v9559_v8  ;;  %v10080_v38 = vpop.f32.mrb[58].mxu1 }
 0x593   : > { %v10081_v34 = vpop.f32.mrb[59].mxu1 }
 0x594   : > { %v10117_v36 = vpop.f32.mrb[60].mxu0 }
 0x595   : > { %v10181_v4 = vadd.f32 %v10117_v36, %v9560_v57  ;;  %v10119_v21 = vpop.f32.mrb[61].mxu0 }
 0x596   : > { %v10182_v30 = vadd.f32 %v10119_v21, %v9561_v19  ;;  %v10121_v44 = vpop.f32.mrb[62].mxu0 }
 0x597   : > { %v10122_v45 = vpop.f32.mrb[63].mxu0 }
 0x598   : > { %v10158_v55 = vpop.f32.mrb[60].mxu1 }
 0x599   : > { %v10183_v56 = vadd.f32 %v10158_v55, %v9562_v37  ;;  %v10160_v48 = vpop.f32.mrb[61].mxu1 }
 0x59a   : > { %v10184_v26 = vadd.f32 %v10160_v48, %v9563_v5  ;;  %v10162_v13 = vpop.f32.mrb[62].mxu1 }
 0x59b   : > { %v10163_v49 = vpop.f32.mrb[63].mxu1 }
 0x59c   : > { %v10346_v0 = vpop.f32.mrb[64].mxu0 }
 0x59d   : > { %v10722_v17 = vadd.f32 %v10346_v0, %v10165_v40  ;;  %v10348_v52 = vpop.f32.mrb[65].mxu0 }
 0x59e   : > { %v10723_v15 = vadd.f32 %v10348_v52, %v10166_v41  ;;  %v10350_v39 = vpop.f32.mrb[66].mxu0 }
 0x59f   : > { %v10351_v8 = vpop.f32.mrb[67].mxu0 }
 0x5a0   : > { %v10387_v6 = vpop.f32.mrb[64].mxu1  ;;  %v16107_v8 = vpop.permute.xlu1 %11302 }
 0x5a1   : > { %v16071_v61 = vadd.f32 %v10387_v6, %v10167_v42  ;;  %v10389_v57 = vpop.f32.mrb[65].mxu1 }
 0x5a2   : > { %v16073_v60 = vadd.f32 %v10389_v57, %v10168_v3  ;;  %v10391_v19 = vpop.f32.mrb[66].mxu1 }
 0x5a3   : > { %v10392_v59 = vpop.f32.mrb[67].mxu1 }
 0x5a4   : > { %v10428_v27 = vpop.f32.mrb[68].mxu0 }
 0x5a5   : > { %v16075_v37 = vadd.f32 %v10428_v27, %v10169_v23  ;;  %v10430_v5 = vpop.f32.mrb[69].mxu0 }
 0x5a6   : > { %v16077_v58 = vadd.f32 %v10430_v5, %v10170_v63  ;;  %v10432_v12 = vpop.f32.mrb[70].mxu0 }
 0x5a7   : > { %v10433_v40 = vpop.f32.mrb[71].mxu0 }
 0x5a8   : > { %v10469_v1 = vpop.f32.mrb[68].mxu1 }
 0x5a9   : > { %v16079_v41 = vadd.f32 %v10469_v1, %v10171_v25  ;;  %v10471_v16 = vpop.f32.mrb[69].mxu1 }
 0x5aa   : > { %v16081_v29 = vadd.f32 %v10471_v16, %v10172_v14  ;;  %v10473_v42 = vpop.f32.mrb[70].mxu1 }
 0x5ab   : > { %v10474_v31 = vpop.f32.mrb[71].mxu1 }
 0x5ac   : > { %v10510_v3 = vpop.f32.mrb[72].mxu0 }
 0x5ad   : > { %v16083_v11 = vadd.f32 %v10510_v3, %v10173_v22  ;;  %v10512_v9 = vpop.f32.mrb[73].mxu0 }
 0x5ae   : > { %v16085_v47 = vadd.f32 %v10512_v9, %v10174_v53  ;;  %v10514_v23 = vpop.f32.mrb[74].mxu0 }
 0x5af   : > { %v10515_v24 = vpop.f32.mrb[75].mxu0 }
 0x5b0   : > { %v10551_v63 = vpop.f32.mrb[72].mxu1 }
 0x5b1   : > { %v16087_v51 = vadd.f32 %v10551_v63, %v10175_v20  ;;  %v10553_v32 = vpop.f32.mrb[73].mxu1 }
 0x5b2   : > { %v16089_v2 = vadd.f32 %v10553_v32, %v10176_v7  ;;  %v10555_v25 = vpop.f32.mrb[74].mxu1 }
 0x5b3   : > { %v10556_v28 = vpop.f32.mrb[75].mxu1 }
 0x5b4   : > { %v10592_v14 = vpop.f32.mrb[76].mxu0 }
 0x5b5   : > { %v16091_v33 = vadd.f32 %v10592_v14, %v10177_v62  ;;  %v10594_v35 = vpop.f32.mrb[77].mxu0 }
 0x5b6   : > { %v16093_v46 = vadd.f32 %v10594_v35, %v10178_v43  ;;  %v10596_v22 = vpop.f32.mrb[78].mxu0 }
 0x5b7   : > { %v10597_v10 = vpop.f32.mrb[79].mxu0 }
 0x5b8   : > { %v10633_v53 = vpop.f32.mrb[76].mxu1 }
 0x5b9   : > { %v16095_v50 = vadd.f32 %v10633_v53, %v10179_v54  ;;  %v10635_v38 = vpop.f32.mrb[77].mxu1 }
 0x5ba   : > { %v16097_v34 = vadd.f32 %v10635_v38, %v10180_v18  ;;  %v10637_v20 = vpop.f32.mrb[78].mxu1 }
 0x5bb   : > { %v10638_v36 = vpop.f32.mrb[79].mxu1 }
 0x5bc   : > { %v10674_v7 = vpop.f32.mrb[80].mxu0 }
 0x5bd   : > { %v16099_v21 = vadd.f32 %v10674_v7, %v10181_v4  ;;  %v10676_v44 = vpop.f32.mrb[81].mxu0 }
 0x5be   : > { %v16101_v45 = vadd.f32 %v10676_v44, %v10182_v30  ;;  %v10678_v62 = vpop.f32.mrb[82].mxu0 }
 0x5bf   : > { %v10679_v55 = vpop.f32.mrb[83].mxu0 }
 0x5c0   : > { %v10715_v43 = vpop.f32.mrb[80].mxu1 }
 0x5c1   : > { %v16103_v48 = vadd.f32 %v10715_v43, %v10183_v56  ;;  %v10717_v13 = vpop.f32.mrb[81].mxu1 }
 0x5c2   : > { %v16105_v49 = vadd.f32 %v10717_v13, %v10184_v26  ;;  %v10719_v54 = vpop.f32.mrb[82].mxu1 }
 0x5c3   : > { %v10720_v0 = vpop.f32.mrb[83].mxu1 }
 0x5c4   : > { %v10903_v18 = vpop.f32.mrb[84].mxu0 }
 0x5c5   : > { %v11279_v52 = vadd.f32 %v10903_v18, %v10722_v17  ;;  %v10905_v39 = vpop.f32.mrb[85].mxu0 }
 0x5c6   : > { %v11280_v4 = vadd.f32 %v10905_v39, %v10723_v15  ;;  %v10907_v6 = vpop.f32.mrb[86].mxu0 }
 0x5c7   : > { %v11305_v30 = vadd.f32 %v16107_v8, %v11279_v52  ;;  %v10908_v57 = vpop.f32.mrb[87].mxu0 }
 0x5c8   : > { %v11306_v19 = vadd.f32 %v16107_v8, %v11280_v4  ;;  %v10944_v59 = vpop.f32.mrb[84].mxu1 }
 0x5c9   : > { %v11325_v56 = vmax.f32 %v11305_v30, 0.0  ;;  %v11281_v27 = vadd.f32 %v10944_v59, %v16071_v61  ;;  %v10946_v26 = vpop.f32.mrb[85].mxu1 }
 0x5ca   : > { %v11326_v5 = vmax.f32 %v11306_v19, 0.0  ;;  %v11282_v12 = vadd.f32 %v10946_v26, %v16073_v60  ;;  %v10948_v40 = vpop.f32.mrb[86].mxu1 }
 0x5cb   : > { %v11307_v17 = vadd.f32 %v16107_v8, %v11281_v27  ;;  %v10949_v1 = vpop.f32.mrb[87].mxu1 }
 0x5cc   : > { %v16114_v16 = vpack.c.bf16 %v11326_v5, %v11325_v56  ;;  %v11308_v15 = vadd.f32 %v16107_v8, %v11282_v12  ;;  %v10985_v42 = vpop.f32.mrb[88].mxu0 }
 0x5cd   : > { %v11327_v31 = vmax.f32 %v11307_v17, 0.0  ;;  %v11283_v3 = vadd.f32 %v10985_v42, %v16075_v37  ;;  %v10987_v9 = vpop.f32.mrb[89].mxu0 }
 0x5ce   : > { %11425 = vst [vmem:[#allocation2] sm:$0xff] %v16114_v16  ;;  %v11328_v61 = vmax.f32 %v11308_v15, 0.0  ;;  %v11284_v23 = vadd.f32 %v10987_v9, %v16077_v58  ;;  %v10989_v24 = vpop.f32.mrb[90].mxu0  ;;  %11457 = vrot.lane.b32.xlu0 %v16114_v16, %s12130_s27 }
 0x5cf   : > { %v11309_v60 = vadd.f32 %v16107_v8, %v11283_v3  ;;  %v10990_v63 = vpop.f32.mrb[91].mxu0 }
 0x5d0   : > { %v16123_v32 = vpack.c.bf16 %v11328_v61, %v11327_v31  ;;  %v11310_v25 = vadd.f32 %v16107_v8, %v11284_v23  ;;  %v11026_v28 = vpop.f32.mrb[88].mxu1 }
 0x5d1   : > { %v11329_v14 = vmax.f32 %v11309_v60, 0.0  ;;  %v11285_v37 = vadd.f32 %v11026_v28, %v16079_v41  ;;  %v11028_v35 = vpop.f32.mrb[89].mxu1 }
 0x5d2   : > { %v11330_v22 = vmax.f32 %v11310_v25, 0.0  ;;  %v11286_v10 = vadd.f32 %v11028_v35, %v16081_v29  ;;  %v11030_v58 = vpop.f32.mrb[90].mxu1  ;;  %11459 = vrot.lane.b32.xlu1 %v16123_v32, %s12130_s27 }
 0x5d3   : > { %v11311_v53 = vadd.f32 %v16107_v8, %v11285_v37  ;;  %v11031_v38 = vpop.f32.mrb[91].mxu1 }
 0x5d4   : > { %v16131_v20 = vpack.c.bf16 %v11330_v22, %v11329_v14  ;;  %v11312_v36 = vadd.f32 %v16107_v8, %v11286_v10  ;;  %v11067_v7 = vpop.f32.mrb[92].mxu0 }
 0x5d5   : > { %v11331_v44 = vmax.f32 %v11311_v53, 0.0  ;;  %v11287_v62 = vadd.f32 %v11067_v7, %v16083_v11  ;;  %v11069_v41 = vpop.f32.mrb[93].mxu0 }
 0x5d6   : > { %v11332_v55 = vmax.f32 %v11312_v36, 0.0  ;;  %v11288_v43 = vadd.f32 %v11069_v41, %v16085_v47  ;;  %v11071_v29 = vpop.f32.mrb[94].mxu0  ;;  %11461 = vrot.lane.b32.xlu0 %v16131_v20, %s12130_s27 }
 0x5d7   : > { %v11313_v13 = vadd.f32 %v16107_v8, %v11287_v62  ;;  %v11072_v54 = vpop.f32.mrb[95].mxu0 }
 0x5d8   : > { %v16139_v0 = vpack.c.bf16 %v11332_v55, %v11331_v44  ;;  %v11314_v18 = vadd.f32 %v16107_v8, %v11288_v43  ;;  %v11108_v52 = vpop.f32.mrb[92].mxu1 }
 0x5d9   : > { %v11333_v39 = vmax.f32 %v11313_v13, 0.0  ;;  %v11289_v4 = vadd.f32 %v11108_v52, %v16087_v51  ;;  %v11110_v11 = vpop.f32.mrb[93].mxu1 }
 0x5da   : > { %v11334_v6 = vmax.f32 %v11314_v18, 0.0  ;;  %v11290_v30 = vadd.f32 %v11110_v11, %v16089_v2  ;;  %v11112_v47 = vpop.f32.mrb[94].mxu1  ;;  %11463 = vrot.lane.b32.xlu1 %v16139_v0, %s12130_s27 }
 0x5db   : > { %v11315_v57 = vadd.f32 %v16107_v8, %v11289_v4  ;;  %v11113_v19 = vpop.f32.mrb[95].mxu1 }
 0x5dc   : > { %v16147_v59 = vpack.c.bf16 %v11334_v6, %v11333_v39  ;;  %v11316_v56 = vadd.f32 %v16107_v8, %v11290_v30  ;;  %v11149_v27 = vpop.f32.mrb[96].mxu0 }
 0x5dd   : > { %v11335_v26 = vmax.f32 %v11315_v57, 0.0  ;;  %v11291_v5 = vadd.f32 %v11149_v27, %v16091_v33  ;;  %v11151_v51 = vpop.f32.mrb[97].mxu0 }
 0x5de   : > { %v11336_v12 = vmax.f32 %v11316_v56, 0.0  ;;  %v11292_v40 = vadd.f32 %v11151_v51, %v16093_v46  ;;  %v11153_v2 = vpop.f32.mrb[98].mxu0  ;;  %11465 = vrot.lane.b32.xlu0 %v16147_v59, %s12130_s27 }
 0x5df   : > { %v11317_v17 = vadd.f32 %v16107_v8, %v11291_v5  ;;  %v11154_v1 = vpop.f32.mrb[99].mxu0 }
 0x5e0   : > { %v16155_v15 = vpack.c.bf16 %v11336_v12, %v11335_v26  ;;  %v11318_v42 = vadd.f32 %v16107_v8, %v11292_v40  ;;  %v11190_v31 = vpop.f32.mrb[96].mxu1 }
 0x5e1   : > { %v11337_v3 = vmax.f32 %v11317_v17, 0.0  ;;  %v11293_v9 = vadd.f32 %v11190_v31, %v16095_v50  ;;  %v11192_v33 = vpop.f32.mrb[97].mxu1 }
 0x5e2   : > { %v11338_v61 = vmax.f32 %v11318_v42, 0.0  ;;  %v11294_v23 = vadd.f32 %v11192_v33, %v16097_v34  ;;  %v11194_v46 = vpop.f32.mrb[98].mxu1  ;;  %11467 = vrot.lane.b32.xlu1 %v16155_v15, %s12130_s27 }
 0x5e3   : > { %v11319_v24 = vadd.f32 %v16107_v8, %v11293_v9  ;;  %v11195_v60 = vpop.f32.mrb[99].mxu1 }
 0x5e4   : > { %v16163_v63 = vpack.c.bf16 %v11338_v61, %v11337_v3  ;;  %v11320_v25 = vadd.f32 %v16107_v8, %v11294_v23  ;;  %v11231_v28 = vpop.f32.mrb[100].mxu0 }
 0x5e5   : > { %v11339_v14 = vmax.f32 %v11319_v24, 0.0  ;;  %v11295_v37 = vadd.f32 %v11231_v28, %v16099_v21  ;;  %v11233_v50 = vpop.f32.mrb[101].mxu0 }
 0x5e6   : > { %v11340_v35 = vmax.f32 %v11320_v25, 0.0  ;;  %v11296_v22 = vadd.f32 %v11233_v50, %v16101_v45  ;;  %v11235_v34 = vpop.f32.mrb[102].mxu0  ;;  %11469 = vrot.lane.b32.xlu0 %v16163_v63, %s12130_s27 }
 0x5e7   : > { %v11321_v10 = vadd.f32 %v16107_v8, %v11295_v37  ;;  %v11236_v58 = vpop.f32.mrb[103].mxu0 }
 0x5e8   : > { %v16171_v53 = vpack.c.bf16 %v11340_v35, %v11339_v14  ;;  %v11322_v38 = vadd.f32 %v16107_v8, %v11296_v22  ;;  %v11272_v36 = vpop.f32.mrb[100].mxu1 }
 0x5e9   : > { %v11341_v7 = vmax.f32 %v11321_v10, 0.0  ;;  %v11297_v44 = vadd.f32 %v11272_v36, %v16103_v48  ;;  %v11274_v21 = vpop.f32.mrb[101].mxu1 }
 0x5ea   : > { %v11342_v62 = vmax.f32 %v11322_v38, 0.0  ;;  %v11298_v41 = vadd.f32 %v11274_v21, %v16105_v49  ;;  %v11276_v45 = vpop.f32.mrb[102].mxu1  ;;  %11471 = vrot.lane.b32.xlu1 %v16171_v53, %s12130_s27 }
 0x5eb   : > { %v11323_v55 = vadd.f32 %v16107_v8, %v11297_v44  ;;  %v11277_v43 = vpop.f32.mrb[103].mxu1 }
 0x5ec   : > { %v16179_v29 = vpack.c.bf16 %v11342_v62, %v11341_v7  ;;  %v11324_v13 = vadd.f32 %v16107_v8, %v11298_v41 }
 0x5ed   : > { %v11343_v54 = vmax.f32 %v11323_v55, 0.0 }
 0x5ee   : > { %v11344_v18 = vmax.f32 %v11324_v13, 0.0  ;;  %11473 = vrot.lane.b32.xlu0 %v16179_v29, %s12130_s27 }
 0x5f0   : > { %v12079_v48 = vpack.c.bf16 %v11344_v18, %v11343_v54 }
 0x5f2   : > { %11436 = vst.msk [vmem:[#allocation2 + $0x48] sm:$0xff] %vm11435_vm6, %v12079_v48 }
 0x5f9   : > { %v11446_v49 = vld [vmem:[#allocation2 + $0x48] sm:$0xff] }
 0x5fa   : > { %11475 = vrot.lane.b32.xlu1 %v11446_v49, %s12130_s27  ;;  %s12081_s27 = smul.u32 160, %s16316_s22 }
 0x5fc   : > { %s16257_s7 = scalar_lea.vmem %s16314_s6, %s12081_s27 }
 0x640   : > { %v11458_v52 = vpop.permute.xlu0 %11457 }
 0x641   : > { %v11477_v4 = vrot.slane %v11458_v52, 4 }
 0x644   : > { %v11460_v39 = vpop.permute.xlu1 %11459 }
 0x645   : > { %v11478_v11 = vrot.slane %v11460_v39, 4 }
 0x647   : > { %v11487_v6 = vsel %vm6234_vm15, %v11477_v4, %v11478_v11 }
 0x648   : > { %v11462_v8 = vpop.permute.xlu0 %11461  ;;  %v11488_v30 = vsel %vm391_vm2, %v11458_v52, %v11487_v6 }
 0x649   : > { %v11479_v47 = vrot.slane %v11462_v8, 4  ;;  %v11516_v57 = vmax.bf16 %v16114_v16, %v11488_v30 }
 0x64b   : > { %v11489_v19 = vsel %vm6234_vm15, %v11478_v11, %v11479_v47  ;;  %11536 = vrot.lane.b32.xlu0 %v11516_v57, %s12133_s29 }
 0x64c   : > { %v11464_v56 = vpop.permute.xlu1 %11463  ;;  %v11490_v27 = vsel %vm391_vm2, %v11460_v39, %v11489_v19 }
 0x64d   : > { %v11480_v26 = vrot.slane %v11464_v56, 4  ;;  %v16193_v5 = vmax.bf16 %v16123_v32, %v11490_v27 }
 0x64f   : > { %v11491_v51 = vsel %vm6234_vm15, %v11479_v47, %v11480_v26  ;;  %11538 = vrot.lane.b32.xlu1 %v16193_v5, %s12133_s29 }
 0x650   : > { %v11466_v12 = vpop.permute.xlu0 %11465  ;;  %v11492_v40 = vsel %vm391_vm2, %v11462_v8, %v11491_v51 }
 0x651   : > { %v11481_v16 = vrot.slane %v11466_v12, 4  ;;  %v16200_v2 = vmax.bf16 %v16131_v20, %v11492_v40 }
 0x653   : > { %v11493_v17 = vsel %vm6234_vm15, %v11480_v26, %v11481_v16  ;;  %11540 = vrot.lane.b32.xlu0 %v16200_v2, %s12133_s29 }
 0x654   : > { %v11468_v1 = vpop.permute.xlu1 %11467  ;;  %v11494_v32 = vsel %vm391_vm2, %v11464_v56, %v11493_v17 }
 0x655   : > { %v11482_v42 = vrot.slane %v11468_v1, 4  ;;  %v16207_v31 = vmax.bf16 %v16139_v0, %v11494_v32 }
 0x657   : > { %v11495_v3 = vsel %vm6234_vm15, %v11481_v16, %v11482_v42  ;;  %11542 = vrot.lane.b32.xlu1 %v16207_v31, %s12133_s29 }
 0x658   : > { %v11470_v9 = vpop.permute.xlu0 %11469  ;;  %v11496_v20 = vsel %vm391_vm2, %v11466_v12, %v11495_v3 }
 0x659   : > { %v11483_v33 = vrot.slane %v11470_v9, 4  ;;  %v16214_v61 = vmax.bf16 %v16147_v59, %v11496_v20 }
 0x65b   : > { %v11497_v23 = vsel %vm6234_vm15, %v11482_v42, %v11483_v33  ;;  %11544 = vrot.lane.b32.xlu0 %v16214_v61, %s12133_s29 }
 0x65c   : > { %v11472_v46 = vpop.permute.xlu1 %11471  ;;  %v11498_v0 = vsel %vm391_vm2, %v11468_v1, %v11497_v23 }
 0x65d   : > { %v11484_v24 = vrot.slane %v11472_v46, 4  ;;  %v16221_v60 = vmax.bf16 %v16155_v15, %v11498_v0 }
 0x65f   : > { %v11499_v25 = vsel %vm6234_vm15, %v11483_v33, %v11484_v24  ;;  %11546 = vrot.lane.b32.xlu1 %v16221_v60, %s12133_s29 }
 0x660   : > { %v11474_v28 = vpop.permute.xlu0 %11473  ;;  %v11500_v59 = vsel %vm391_vm2, %v11470_v9, %v11499_v25 }
 0x661   : > { %v11485_v14 = vrot.slane %v11474_v28, 4  ;;  %v16228_v37 = vmax.bf16 %v16163_v63, %v11500_v59 }
 0x663   : > { %v11501_v50 = vsel %vm6234_vm15, %v11484_v24, %v11485_v14  ;;  %11548 = vrot.lane.b32.xlu0 %v16228_v37, %s12133_s29 }
 0x664   : > { %v11502_v15 = vsel %vm391_vm2, %v11472_v46, %v11501_v50 }
 0x665   : > { %v16235_v35 = vmax.bf16 %v16171_v53, %v11502_v15 }
 0x667   : > { %11550 = vrot.lane.b32.xlu1 %v16235_v35, %s12133_s29 }
 0x66c   : > { %v11476_v22 = vpop.permute.xlu1 %11475 }
 0x66d   : > { %v11486_v34 = vrot.slane %v11476_v22, 4 }
 0x66f   : > { %v11503_v10 = vsel %vm6234_vm15, %v11485_v14, %v11486_v34  ;;  %v11505_v63 = vsel %vm391_vm2, %v11476_v22, %v11486_v34 }
 0x670   : > { %v16241_v58 = vmax.bf16 %v11505_v63, %v11446_v49  ;;  %v11504_v38 = vsel %vm391_vm2, %v11474_v28, %v11503_v10  ;;  %vm11644_vm2 = vcmask 556032  }
 0x671   : > { %v16245_v36 = vmax.bf16 %v16179_v29, %v11504_v38 }
 0x672   : > { %11554 = vrot.lane.b32.xlu1 %v16241_v58, %s12133_s29 }
 0x673   : > { %11552 = vrot.lane.b32.xlu0 %v16245_v36, %s12133_s29 }
 0x6bd   : > { %v11537_v53 = vpop.permute.xlu0 %11536 }
 0x6be   : > { %v11556_v44 = vrot.slane %v11537_v53, 4 }
 0x6c1   : > { %v11539_v7 = vpop.permute.xlu1 %11538 }
 0x6c2   : > { %v11557_v21 = vrot.slane %v11539_v7, 4 }
 0x6c4   : > { %v11566_v62 = vsel %vm6234_vm15, %v11556_v44, %v11557_v21 }
 0x6c5   : > { %v11567_v41 = vsel %vm2149_vm5, %v11537_v53, %v11566_v62  ;;  %v11541_v45 = vpop.permute.xlu0 %11540 }
 0x6c6   : > { %v11595_v55 = vmax.bf16 %v11567_v41, %v11516_v57  ;;  %v11558_v43 = vrot.slane %v11541_v45, 4 }
 0x6c8   : > { %v11605_v29 = vunpack.c.l.bf16 %v11595_v55  ;;  %v11606_v13 = vunpack.c.h.bf16 %v11595_v55  ;;  %v11568_v54 = vsel %vm6234_vm15, %v11557_v21, %v11558_v43 }
 0x6c9   : > { %v11569_v18 = vsel %vm2149_vm5, %v11539_v7, %v11568_v54  ;;  %v11543_v48 = vpop.permute.xlu1 %11542 }
 0x6ca   : > { %11625 = vst [vmem:[%s16257_s7] sm:$0xff] %v11605_v29  ;;  %11626 = vst [vmem:[%s16257_s7 + $0x8] sm:$0xff] %v11606_v13  ;;  %v11596_v49 = vmax.bf16 %v11569_v18, %v16193_v5  ;;  %v11559_v52 = vrot.slane %v11543_v48, 4 }
 0x6cc   : > { %v11607_v39 = vunpack.c.l.bf16 %v11596_v49  ;;  %v11608_v4 = vunpack.c.h.bf16 %v11596_v49  ;;  %v11570_v11 = vsel %vm6234_vm15, %v11558_v43, %v11559_v52 }
 0x6cd   : > { %v11571_v6 = vsel %vm2149_vm5, %v11541_v45, %v11570_v11  ;;  %v11545_v8 = vpop.permute.xlu0 %11544 }
 0x6ce   : > { %11627 = vst [vmem:[%s16257_s7 + $0x10] sm:$0xff] %v11607_v39  ;;  %11628 = vst [vmem:[%s16257_s7 + $0x18] sm:$0xff] %v11608_v4  ;;  %v11597_v30 = vmax.bf16 %v11571_v6, %v16200_v2  ;;  %v11560_v47 = vrot.slane %v11545_v8, 4 }
 0x6d0   : > { %v11609_v57 = vunpack.c.l.bf16 %v11597_v30  ;;  %v11610_v19 = vunpack.c.h.bf16 %v11597_v30  ;;  %v11572_v56 = vsel %vm6234_vm15, %v11559_v52, %v11560_v47 }
 0x6d1   : > { %v11573_v27 = vsel %vm2149_vm5, %v11543_v48, %v11572_v56  ;;  %v11547_v26 = vpop.permute.xlu1 %11546 }
 0x6d2   : > { %11629 = vst [vmem:[%s16257_s7 + $0x20] sm:$0xff] %v11609_v57  ;;  %11630 = vst [vmem:[%s16257_s7 + $0x28] sm:$0xff] %v11610_v19  ;;  %v11598_v5 = vmax.bf16 %v11573_v27, %v16207_v31  ;;  %v11561_v51 = vrot.slane %v11547_v26, 4 }
 0x6d4   : > { %v11611_v12 = vunpack.c.l.bf16 %v11598_v5  ;;  %v11612_v40 = vunpack.c.h.bf16 %v11598_v5  ;;  %v11574_v16 = vsel %vm6234_vm15, %v11560_v47, %v11561_v51 }
 0x6d5   : > { %v11575_v2 = vsel %vm2149_vm5, %v11545_v8, %v11574_v16  ;;  %v11549_v17 = vpop.permute.xlu0 %11548 }
 0x6d6   : > { %11631 = vst [vmem:[%s16257_s7 + $0x30] sm:$0xff] %v11611_v12  ;;  %11632 = vst [vmem:[%s16257_s7 + $0x38] sm:$0xff] %v11612_v40  ;;  %v11599_v1 = vmax.bf16 %v11575_v2, %v16214_v61  ;;  %v11562_v32 = vrot.slane %v11549_v17, 4 }
 0x6d8   : > { %v11613_v42 = vunpack.c.l.bf16 %v11599_v1  ;;  %v11614_v3 = vunpack.c.h.bf16 %v11599_v1  ;;  %v11576_v31 = vsel %vm6234_vm15, %v11561_v51, %v11562_v32 }
 0x6d9   : > { %v11577_v9 = vsel %vm2149_vm5, %v11547_v26, %v11576_v31  ;;  %v11551_v20 = vpop.permute.xlu1 %11550 }
 0x6da   : > { %11633 = vst [vmem:[%s16257_s7 + $0x40] sm:$0xff] %v11613_v42  ;;  %11634 = vst [vmem:[%s16257_s7 + $0x48] sm:$0xff] %v11614_v3  ;;  %v11600_v33 = vmax.bf16 %v11577_v9, %v16221_v60  ;;  %v11563_v23 = vrot.slane %v11551_v20, 4 }
 0x6dc   : > { %v11615_v46 = vunpack.c.l.bf16 %v11600_v33  ;;  %v11616_v0 = vunpack.c.h.bf16 %v11600_v33  ;;  %v11578_v61 = vsel %vm6234_vm15, %v11562_v32, %v11563_v23 }
 0x6dd   : > { %v11579_v24 = vsel %vm2149_vm5, %v11549_v17, %v11578_v61 }
 0x6de   : > { %11635 = vst [vmem:[%s16257_s7 + $0x50] sm:$0xff] %v11615_v46  ;;  %11636 = vst [vmem:[%s16257_s7 + $0x58] sm:$0xff] %v11616_v0  ;;  %v11601_v25 = vmax.bf16 %v11579_v24, %v16228_v37 }
 0x6e0   : > { %v11617_v28 = vunpack.c.l.bf16 %v11601_v25  ;;  %v11618_v59 = vunpack.c.h.bf16 %v11601_v25 }
 0x6e2   : > { %11637 = vst [vmem:[%s16257_s7 + $0x60] sm:$0xff] %v11617_v28  ;;  %11638 = vst [vmem:[%s16257_s7 + $0x68] sm:$0xff] %v11618_v59 }
 0x6e4   : > { %v11555_v14 = vpop.permute.xlu1 %11554 }
 0x6e5   : > { %v11565_v50 = vrot.slane %v11555_v14, 4  ;;  %v11553_v60 = vpop.permute.xlu0 %11552 }
 0x6e6   : > { %v11564_v15 = vrot.slane %v11553_v60, 4 }
 0x6e7   : > { %v11584_v22 = vsel %vm2149_vm5, %v11555_v14, %v11565_v50 }
 0x6e8   : > { %v11604_v34 = vmax.bf16 %v11584_v22, %v16241_v58  ;;  %v11580_v10 = vsel %vm6234_vm15, %v11563_v23, %v11564_v15  ;;  %v11582_v37 = vsel %vm6234_vm15, %v11564_v15, %v11565_v50 }
 0x6e9   : > { %v11581_v63 = vsel %vm2149_vm5, %v11551_v20, %v11580_v10  ;;  %v11583_v38 = vsel %vm2149_vm5, %v11553_v60, %v11582_v37 }
 0x6ea   : > { %v11623_v53 = vunpack.c.l.bf16 %v11604_v34  ;;  %v11624_v7 = vunpack.c.h.bf16 %v11604_v34  ;;  %v11602_v44 = vmax.bf16 %v11581_v63, %v16235_v35  ;;  %v11603_v21 = vmax.bf16 %v11583_v38, %v16245_v36 }
 0x6ec   : > { %11643 = vst [vmem:[%s16257_s7 + $0x90] sm:$0xff] %v11623_v53  ;;  %11645 = vst.msk [vmem:[%s16257_s7 + $0x98] sm:$0xff] %vm11644_vm2, %v11624_v7  ;;  %v11619_v58 = vunpack.c.l.bf16 %v11602_v44  ;;  %v11620_v62 = vunpack.c.h.bf16 %v11602_v44  ;;  %v11621_v41 = vunpack.c.l.bf16 %v11603_v21  ;;  %v11622_v45 = vunpack.c.h.bf16 %v11603_v21 }
 0x6ee   : > { %11639 = vst [vmem:[%s16257_s7 + $0x70] sm:$0xff] %v11619_v58  ;;  %11640 = vst [vmem:[%s16257_s7 + $0x78] sm:$0xff] %v11620_v62 }
 0x6ef   : > { %11641 = vst [vmem:[%s16257_s7 + $0x80] sm:$0xff] %v11621_v41  ;;  %11642 = vst [vmem:[%s16257_s7 + $0x88] sm:$0xff] %v11622_v45 }
 0x6f0 PF: > { %s16_s21 = sadd.s32 1, %s12127_s21  }
 0x6f1   : > { %p13_p4 = scmp.ge.s32.totalorder %s16_s21, 4  }
 0x6f3   :  { %15 = sbr.rel (!%p13_p4) target bundleno = 1 (0x1), region = 90 }

// kernel: forward.7
= control target key start
LH: loop header
LB: loop body
LE: loop exit
PB: predicated region body
PF: predicated region fallthrough
CT: control target
= control target key end

     0   :  { %s2551_s21 = smov 0   ;;  %s2865_s0 = inlined_call_operand.vmem [shape: bf16[2,16,222], index: 0, kind: input, shape index: {}]   ;;  %s2866_s1 = inlined_call_operand.vmem [shape: bf16[9,32,16], index: 1, kind: input, shape index: {}]   ;;  %s2867_s2 = inlined_call_operand.vmem [shape: f32[32,1], index: 2, kind: input, shape index: {}]   ;;  %s2868_s3 = inlined_call_operand.vmem [shape: bf16[9,32,32], index: 3, kind: input, shape index: {}]   ;;  %s2869_s4 = inlined_call_operand.vmem [shape: f32[32,1], index: 4, kind: input, shape index: {}]   ;;  %s2870_s5 = inlined_call_operand.vmem [shape: f32[1,144], index: 5, kind: input, shape index: {}]   ;;  %s2871_s6 = inlined_call_operand.vmem [shape: f32[2,32,144], index: 6, kind: output, shape index: {}]  }
   0x1 LB: > { %s2156_s22 = sadd.s32 4294967295, %s2502_s21   ;;  %p2160_p0 = scmp.ge.s32.totalorder %s2502_s21, 1  ;;  %s2502_s21 = sphi %s2551_s21, %s16_s21  }
   0x2   : > { %p212_p1 = scmp.lt.s32.totalorder %s2502_s21, 3 }
   0x4   : > { %p213_p2 = pnand %p2160_p0, %p212_p1 }
   0x5   : > { %p242_p3 = scmp.lt.s32.totalorder (!%p213_p2), %s2156_s22, 1  ;;  %v2504_v0 = vmov (!%p213_p2), 0   ;;  %s2505_s27 = smov (!%p213_p2), 125   ;;  %vm286_vm0 = vcmask (!%p213_p2), 1022976   ;;  %v2460_v7 = vld [vmem:[%s2866_s1 + $0x10] sm:$0xff] (!%p213_p2)   ;;  %vm290_vm1 = vcmask (!%p213_p2), 130048   ;;  %v1098_v49 = vlaneseq (!%p213_p2) }
   0x6   : > { %216 = sbr.rel (%p213_p2) target bundleno = 1346 (0x542), region = 44  ;;  %329 = vmatprep.mubr.bf16.mxu0 (!%p213_p2), %v2504_v0  ;;  %1091 = vst [vmem:[#allocation2] sm:$0xff] (!%p213_p2), %v2504_v0  ;;  %1094 = vst [vmem:[#allocation2 + $0x10] sm:$0xff] (!%p213_p2), %v2504_v0  ;;  %2455 = vset.pattern.permute.xlu0 (!%p213_p2), %v2504_v0  ;;  %s2506_s28 = smov (!%p213_p2), 122   ;;  %v2461_v9 = vld [vmem:[%s2866_s1 + $0x18] sm:$0xff] (!%p213_p2)   ;;  %v1051_v10 = vld [vmem:[%s2867_s2] sm:$0xff] (!%p213_p2) }
   0x7   : > { %2456 = vset.pattern.permute.xlu1 (!%p213_p2), %v2504_v0  ;;  %1225 = vmatprep.mubr.bf16.mxu1 (!%p213_p2), %v2504_v0  ;;  %s2507_s29 = smov (!%p213_p2), 92   ;;  %s2508_s30 = smov (!%p213_p2), 89   ;;  %v1052_v11 = vld [vmem:[%s2867_s2 + $0x8] sm:$0xff] (!%p213_p2)  ;;  %v1054_v12 = vld [vmem:[%s2867_s2 + $0x18] sm:$0xff] (!%p213_p2)  ;;  %vm440_vm2 = vcmask (!%p213_p2), 998400   ;;  %v1053_v13 = vld [vmem:[%s2867_s2 + $0x10] sm:$0xff] (!%p213_p2) }
   0x8   : > { %s2509_s7 = smov (!%p213_p2), 86   ;;  %s2510_s8 = smov (!%p213_p2), 56   ;;  %v2462_v14 = vld [vmem:[%s2866_s1] sm:$0xff] (!%p213_p2)   ;;  %v2463_v17 = vld [vmem:[%s2866_s1 + $0x8] sm:$0xff] (!%p213_p2)   ;;  %vm530_vm3 = vcmask (!%p213_p2), 752640   ;;  %vm620_vm4 = vcmask (!%p213_p2), 728064  }
   0x9   : > { %s2511_s9 = smov (!%p213_p2), 53   ;;  %s2512_s10 = smov (!%p213_p2), 50   ;;  %v2464_v19 = vld [vmem:[%s2866_s1 + $0x20] sm:$0xff] (!%p213_p2)   ;;  %v2465_v22 = vld [vmem:[%s2866_s1 + $0x28] sm:$0xff] (!%p213_p2)   ;;  %v2466_v24 = vld [vmem:[%s2866_s1 + $0x30] sm:$0xff] (!%p213_p2)   ;;  %vm710_vm5 = vcmask (!%p213_p2), 703488  }
   0xa   : > { %v2467_v27 = vld [vmem:[%s2866_s1 + $0x38] sm:$0xff] (!%p213_p2)   ;;  %v2468_v29 = vld [vmem:[%s2866_s1 + $0x40] sm:$0xff] (!%p213_p2)   ;;  %v2469_v32 = vld [vmem:[%s2866_s1 + $0x48] sm:$0xff] (!%p213_p2)   ;;  %vm800_vm6 = vcmask (!%p213_p2), 457728   ;;  %vm890_vm7 = vcmask (!%p213_p2), 433152   ;;  %vm980_vm8 = vcmask (!%p213_p2), 408576  }
   0xb   : > { %v2470_v34 = vld [vmem:[%s2866_s1 + $0x50] sm:$0xff] (!%p213_p2)   ;;  %v2471_v37 = vld [vmem:[%s2866_s1 + $0x58] sm:$0xff] (!%p213_p2)   ;;  %v2472_v39 = vld [vmem:[%s2866_s1 + $0x60] sm:$0xff] (!%p213_p2)   ;;  %v1099_v50 = vshrl.u32 (!%p213_p2), %v1098_v49, 7  ;;  %vm1092_vm9 = vcmask (!%p213_p2), 769024   ;;  %s2513_s15 = smov (!%p213_p2), 13  }
   0xc   : > { %v2473_v42 = vld [vmem:[%s2866_s1 + $0x68] sm:$0xff] (!%p213_p2)   ;;  %v2474_v44 = vld [vmem:[%s2866_s1 + $0x70] sm:$0xff] (!%p213_p2)   ;;  %v2475_v46 = vld [vmem:[%s2866_s1 + $0x78] sm:$0xff] (!%p213_p2)   ;;  %1093 = vst.msk [vmem:[#allocation2 + $0x8] sm:$0xff] (!%p213_p2), %vm1092_vm9, %v2504_v0  ;;  %vm1139_vm10 = vcmask (!%p213_p2), 1047656   ;;  %vm1132_vm11 = vcmask (!%p213_p2), 105472  }
   0xd   : > { %s2873_s22 = smov (!%p242_p3, %s2156_s22), 1  ;;  %v2476_v47 = vld [vmem:[%s2866_s1 + $0x80] sm:$0xff]   ;;  %v2477_v48 = vld [vmem:[%s2866_s1 + $0x88] sm:$0xff]   ;;  %v1100_v52 = vsub.s32 0, %v1099_v50  ;;  %1095 = vst.msk [vmem:[#allocation2 + $0x18] sm:$0xff] %vm1092_vm9, %v2504_v0  ;;  %v1104_v55 = vsub.s32 1, %v1099_v50 }
   0xe   : > { %s2305_s23 = sshll.u32 %s2873_s22, 4  ;;  %v1096_v54 = vld [vmem:[%s2870_s5] sm:$0x3]  ;;  %vm1141_vm12 = vcmask 236544   ;;  %vm1186_vm13 = vcmask 261120   ;;  %vm2051_vm14 = vcmask 1039360  }
   0xf   : > { %s246_s26 = scalar_lea.vmem %s2865_s0, %s2305_s23  ;;  %v1101_v61 = vrot.slane %v1096_v54, %v1100_v52  ;;  %vm2074_vm15 = vcmask 949248  }
  0x10   : > { %v2457_v1 = vld [vmem:[%s246_s26] ss:$8 sps:$4 sm:$0xff]   ;;  %v2459_v2 = vld [vmem:[%s246_s26 + $0x4] ss:$8 sps:$4 sm:$0xff]  }
  0x11   : > { %282 = vrot.lane.b32.xlu0 %v2457_v1, %s2505_s27  ;;  %436 = vrot.lane.b32.xlu1 %v2457_v1, %s2506_s28 }
  0x15   : > { %284 = vrot.lane.b32.xlu0 %v2459_v2, %s2505_s27  ;;  %438 = vrot.lane.b32.xlu1 %v2459_v2, %s2506_s28 }
  0x19   : > { %528 = vrot.lane.b32.xlu1 %v2459_v2, %s2507_s29  ;;  %526 = vrot.lane.b32.xlu0 %v2457_v1, %s2507_s29 }
  0x1d   : > { %618 = vrot.lane.b32.xlu1 %v2459_v2, %s2508_s30  ;;  %616 = vrot.lane.b32.xlu0 %v2457_v1, %s2508_s30 }
  0x21   : > { %708 = vrot.lane.b32.xlu1 %v2459_v2, %s2509_s7  ;;  %706 = vrot.lane.b32.xlu0 %v2457_v1, %s2509_s7 }
  0x25   : > { %798 = vrot.lane.b32.xlu1 %v2459_v2, %s2510_s8  ;;  %796 = vrot.lane.b32.xlu0 %v2457_v1, %s2510_s8 }
  0x29   : > { %888 = vrot.lane.b32.xlu1 %v2459_v2, %s2511_s9  ;;  %886 = vrot.lane.b32.xlu0 %v2457_v1, %s2511_s9 }
  0x2d   : > { %978 = vrot.lane.b32.xlu1 %v2459_v2, %s2512_s10  ;;  %976 = vrot.lane.b32.xlu0 %v2457_v1, %s2512_s10 }
  0x31   : > { %1057 = vperm.xlu0 %2455, %v1051_v10   ;;  %1062 = vperm.xlu1 %2456, %v1052_v11  }
  0x35   : > { %1072 = vperm.xlu0 %2455, %v1054_v12   ;;  %1067 = vperm.xlu1 %2456, %v1053_v13  }
  0x83   : > { %v283_v3 = vpop.permute.xlu0 %282  ;;  %v437_v4 = vpop.permute.xlu1 %436 }
  0x87   : > { %v285_v5 = vpop.permute.xlu0 %284  ;;  %v439_v8 = vpop.permute.xlu1 %438 }
  0x88   : > { %297 = vmatprep.subr.bf16.mxu0 %v285_v5  ;;  %v287_v6 = vsel %vm286_vm0, %v283_v3, %v285_v5  ;;  %v441_v15 = vsel %vm440_vm2, %v437_v4, %v439_v8  ;;  %v1105_v3 = vrot.slane %v1096_v54, %v1104_v55  ;;  %v2479_v54 = vld [vmem:[%s2868_s3 + $0x18] sm:$0xff]  }
  0x89   : > { %298 = vmatpush1.bf16.msra.mxu0 %v287_v6 }
  0x8a   : > { %368 = vmatprep.subr.bf16.mxu0 %v2459_v2 }
  0x8b   : > { %v529_v16 = vpop.permute.xlu1 %528  ;;  %v527_v18 = vpop.permute.xlu0 %526 }
  0x8c   : > { %2173 = vmatmul.mubr.msk.bf16.vlgmr.msra.gmra.mrb[0].mxu0 %vm290_vm1, %v2460_v7  ;;  %v531_v20 = vsel %vm530_vm3, %v527_v18, %v529_v16 }
  0x8d   : > { %369 = vmatpush1.bf16.msra.mxu0 %v2457_v1  ;;  %339 = vmatprep.mubr.bf16.mxu0 %v2504_v0 }
  0x8e   : > { %450 = vmatprep.subr.bf16.mxu0 %v439_v8 }
  0x8f   : > { %v619_v21 = vpop.permute.xlu1 %618  ;;  %v617_v23 = vpop.permute.xlu0 %616 }
  0x90   : > { %v621_v25 = vsel %vm620_vm4, %v617_v23, %v619_v21 }
  0x93   : > { %v709_v26 = vpop.permute.xlu1 %708  ;;  %v707_v28 = vpop.permute.xlu0 %706 }
  0x94   : > { %2174 = vmatmul.mubr.msk.bf16.gmra.mrb[4].mxu0 %vm290_vm1, %v2461_v9  ;;  %v711_v30 = vsel %vm710_vm5, %v707_v28, %v709_v26 }
  0x95   : > { %400 = vmatprep.mubr.bf16.mxu0 %v2504_v0 }
  0x97   : > { %v799_v31 = vpop.permute.xlu1 %798  ;;  %v797_v33 = vpop.permute.xlu0 %796 }
  0x98   : > { %v801_v35 = vsel %vm800_vm6, %v797_v33, %v799_v31 }
  0x9b   : > { %v889_v36 = vpop.permute.xlu1 %888  ;;  %v887_v38 = vpop.permute.xlu0 %886 }
  0x9c   : > { %2177 = vmatmul.mubr.msk.bf16.vlgmr.msra.gmra.mrb[0].mxu0 %vm290_vm1, %v2462_v14  ;;  %v891_v40 = vsel %vm890_vm7, %v887_v38, %v889_v36 }
  0x9d   : > { %451 = vmatpush1.bf16.msra.mxu0 %v441_v15  ;;  %410 = vmatprep.mubr.bf16.mxu0 %v2504_v0 }
  0x9e   : > { %540 = vmatprep.subr.bf16.mxu0 %v529_v16 }
  0x9f   : > { %v979_v41 = vpop.permute.xlu1 %978  ;;  %v977_v43 = vpop.permute.xlu0 %976 }
  0xa0   : > { %v981_v45 = vsel %vm980_vm8, %v977_v43, %v979_v41  ;;  %v1987_v43 = vld [vmem:[%s2869_s4] sm:$0xff] }
  0xa4   : > { %2178 = vmatmul.mubr.msk.bf16.gmra.mrb[4].mxu0 %vm290_vm1, %v2463_v17 }
  0xa5   : > { %482 = vmatprep.mubr.bf16.mxu0 %v2504_v0 }
  0xac   : > { %2185 = vmatmul.mubr.msk.bf16.vlgmr.msra.gmra.mrb[0].mxu0 %vm290_vm1, %v2464_v19 }
  0xad   : > { %541 = vmatpush1.bf16.msra.mxu0 %v531_v20  ;;  %492 = vmatprep.mubr.bf16.mxu0 %v2504_v0 }
  0xae   : > { %630 = vmatprep.subr.bf16.mxu0 %v619_v21 }
  0xb0   : > { %v1058_v51 = vpop.permute.xlu0 %1057  ;;  %v1063_v56 = vpop.permute.xlu1 %1062 }
  0xb4   : > { %2186 = vmatmul.mubr.msk.bf16.gmra.mrb[4].mxu0 %vm290_vm1, %v2465_v22  ;;  %v1068_v7 = vpop.permute.xlu1 %1067  ;;  %v1073_v16 = vpop.permute.xlu0 %1072 }
  0xb5   : > { %572 = vmatprep.mubr.bf16.mxu0 %v2504_v0 }
  0xbc   : > { %2193 = vmatmul.mubr.msk.bf16.vlgmr.msra.gmra.mrb[0].mxu0 %vm290_vm1, %v2466_v24 }
  0xbd   : > { %631 = vmatpush1.bf16.msra.mxu0 %v621_v25  ;;  %582 = vmatprep.mubr.bf16.mxu0 %v2504_v0 }
  0xbe   : > { %720 = vmatprep.subr.bf16.mxu0 %v709_v26 }
  0xc4   : > { %2194 = vmatmul.mubr.msk.bf16.gmra.mrb[4].mxu0 %vm290_vm1, %v2467_v27 }
  0xc5   : > { %662 = vmatprep.mubr.bf16.mxu0 %v2504_v0 }
  0xcc   : > { %2201 = vmatmul.mubr.msk.bf16.vlgmr.msra.gmra.mrb[0].mxu0 %vm290_vm1, %v2468_v29 }
  0xcd   : > { %721 = vmatpush1.bf16.msra.mxu0 %v711_v30  ;;  %672 = vmatprep.mubr.bf16.mxu0 %v2504_v0 }
  0xce   : > { %810 = vmatprep.subr.bf16.mxu0 %v799_v31 }
  0xd4   : > { %2202 = vmatmul.mubr.msk.bf16.gmra.mrb[4].mxu0 %vm290_vm1, %v2469_v32 }
  0xd5   : > { %752 = vmatprep.mubr.bf16.mxu0 %v2504_v0 }
  0xdc   : > { %2209 = vmatmul.mubr.msk.bf16.vlgmr.msra.gmra.mrb[0].mxu0 %vm290_vm1, %v2470_v34 }
  0xdd   : > { %811 = vmatpush1.bf16.msra.mxu0 %v801_v35  ;;  %762 = vmatprep.mubr.bf16.mxu0 %v2504_v0 }
  0xde   : > { %900 = vmatprep.subr.bf16.mxu0 %v889_v36 }
  0xe4   : > { %2210 = vmatmul.mubr.msk.bf16.gmra.mrb[4].mxu0 %vm290_vm1, %v2471_v37 }
  0xe5   : > { %842 = vmatprep.mubr.bf16.mxu0 %v2504_v0 }
  0xec   : > { %2217 = vmatmul.mubr.msk.bf16.vlgmr.msra.gmra.mrb[0].mxu0 %vm290_vm1, %v2472_v39 }
  0xed   : > { %901 = vmatpush1.bf16.msra.mxu0 %v891_v40  ;;  %852 = vmatprep.mubr.bf16.mxu0 %v2504_v0 }
  0xee   : > { %990 = vmatprep.subr.bf16.mxu0 %v979_v41 }
  0xf4   : > { %2218 = vmatmul.mubr.msk.bf16.gmra.mrb[4].mxu0 %vm290_vm1, %v2473_v42 }
  0xf5   : > { %932 = vmatprep.mubr.bf16.mxu0 %v2504_v0 }
  0xfc   : > { %2225 = vmatmul.mubr.msk.bf16.vlgmr.msra.gmra.mrb[0].mxu0 %vm290_vm1, %v2474_v44  ;;  %v1988_v44 = vld [vmem:[%s2869_s4 + $0x8] sm:$0xff] }
  0xfd   : > { %991 = vmatpush1.bf16.msra.mxu0 %v981_v45  ;;  %942 = vmatprep.mubr.bf16.mxu0 %v2504_v0  ;;  %v1989_v45 = vld [vmem:[%s2869_s4 + $0x10] sm:$0xff] }
 0x104   : > { %2226 = vmatmul.mubr.msk.bf16.gmra.mrb[4].mxu0 %vm290_vm1, %v2475_v46  ;;  %v1990_v46 = vld [vmem:[%s2869_s4 + $0x18] sm:$0xff] }
 0x105   : > { %1022 = vmatprep.mubr.bf16.mxu0 %v2504_v0 }
 0x10c   : > { %2233 = vmatmul.mubr.msk.bf16.vlgmr.msra.gmra.mrb[0].mxu0 %vm290_vm1, %v2476_v47 }
 0x10d   : > { %1032 = vmatprep.mubr.bf16.mxu0 %v2504_v0 }
 0x114   : > { %2234 = vmatmul.mubr.msk.bf16.gmra.mrb[4].mxu0 %vm290_vm1, %v2477_v48 }
 0x1df   : > { %v1024_v53 = vpop.f32.mrb[0].mxu0 }
 0x1e0   : > { %v1075_v57 = vadd.f32 %v1058_v51, %v1024_v53  ;;  %v1026_v58 = vpop.f32.mrb[1].mxu0  ;;  %v2478_v53 = vld [vmem:[%s2868_s3 + $0x10] sm:$0xff]  }
 0x1e1   : > { %v1076_v59 = vadd.f32 %v1058_v51, %v1026_v58  ;;  %v1028_v60 = vpop.f32.mrb[2].mxu0 }
 0x1e2   : > { %v1083_v62 = vmax.f32 %v1075_v57, 0.0  ;;  %v1077_v63 = vadd.f32 %v1063_v56, %v1028_v60  ;;  %v1030_v1 = vpop.f32.mrb[3].mxu0 }
 0x1e3   : > { %v1084_v2 = vmax.f32 %v1076_v59, 0.0  ;;  %v1078_v4 = vadd.f32 %v1063_v56, %v1030_v1  ;;  %v2480_v56 = vld [vmem:[%s2868_s3] sm:$0xff]  }
 0x1e4   : > { %v1085_v5 = vmax.f32 %v1077_v63, 0.0  ;;  %v1108_v8 = vmul.f32 %v1101_v61, %v1083_v62  ;;  %v2481_v62 = vld [vmem:[%s2868_s3 + $0x8] sm:$0xff]   ;;  %v2482_v1 = vld [vmem:[%s2868_s3 + $0x20] sm:$0xff]  }
 0x1e5   : > { %v1086_v6 = vmax.f32 %v1078_v4, 0.0  ;;  %v1109_v10 = vmul.f32 %v1105_v3, %v1084_v2 }
 0x1e6   : > { %v1110_v9 = vmul.f32 %v1101_v61, %v1085_v5 }
 0x1e7   : > { %v1111_v11 = vmul.f32 %v1105_v3, %v1086_v6  ;;  %v1034_v12 = vpop.f32.mrb[4].mxu0 }
 0x1e8   : > { %v1079_v13 = vadd.f32 %v1068_v7, %v1034_v12  ;;  %v1036_v14 = vpop.f32.mrb[5].mxu0  ;;  %v1116_v15 = vpack.c.bf16 %v1110_v9, %v1108_v8  ;;  %v2484_v9 = vld [vmem:[%s2868_s3 + $0x30] sm:$0xff]  }
 0x1e9   : > { %v1080_v17 = vadd.f32 %v1068_v7, %v1036_v14  ;;  %v1038_v18 = vpop.f32.mrb[6].mxu0  ;;  %v1117_v19 = vpack.c.bf16 %v1111_v11, %v1109_v10  ;;  %v2483_v7 = vld [vmem:[%s2868_s3 + $0x28] sm:$0xff]  }
 0x1ea   : > { %v1087_v20 = vmax.f32 %v1079_v13, 0.0  ;;  %v1081_v21 = vadd.f32 %v1073_v16, %v1038_v18  ;;  %v1040_v22 = vpop.f32.mrb[7].mxu0  ;;  %1124 = vrot.lane.b32.xlu1 %v1116_v15, %s2513_s15  ;;  %v2485_v15 = vld [vmem:[%s2868_s3 + $0x38] sm:$0xff]  }
 0x1eb   : > { %v1088_v23 = vmax.f32 %v1080_v17, 0.0  ;;  %v1082_v24 = vadd.f32 %v1073_v16, %v1040_v22  ;;  %1126 = vrot.lane.b32.xlu0 %v1117_v19, %s2513_s15  ;;  %v2486_v17 = vld [vmem:[%s2868_s3 + $0x40] sm:$0xff]  }
 0x1ec   : > { %v1089_v25 = vmax.f32 %v1081_v21, 0.0  ;;  %v1112_v27 = vmul.f32 %v1101_v61, %v1087_v20 }
 0x1ed   : > { %v1090_v26 = vmax.f32 %v1082_v24, 0.0  ;;  %v1113_v29 = vmul.f32 %v1105_v3, %v1088_v23  ;;  %v2487_v23 = vld [vmem:[%s2868_s3 + $0x48] sm:$0xff]  }
 0x1ee   : > { %v1114_v28 = vmul.f32 %v1101_v61, %v1089_v25  ;;  %v2488_v25 = vld [vmem:[%s2868_s3 + $0x50] sm:$0xff]  }
 0x1ef   : > { %v1115_v30 = vmul.f32 %v1105_v3, %v1090_v26 }
 0x1f0   : > { %v1118_v31 = vpack.c.bf16 %v1114_v28, %v1112_v27 }
 0x1f1   : > { %v1119_v32 = vpack.c.bf16 %v1115_v30, %v1113_v29 }
 0x1f2   : > { %1128 = vrot.lane.b32.xlu1 %v1118_v31, %s2513_s15  ;;  %v2489_v31 = vld [vmem:[%s2868_s3 + $0x58] sm:$0xff]  }
 0x1f3   : > { %1130 = vrot.lane.b32.xlu0 %v1119_v32, %s2513_s15 }
 0x25c   : > { %v1125_v33 = vpop.permute.xlu1 %1124 }
 0x25d   : > { %1140 = vst.msk [vmem:[#allocation2] sm:$0xff] %vm1139_vm10, %v1125_v33  ;;  %v1127_v34 = vpop.permute.xlu0 %1126 }
 0x25e   : > { %v1133_v35 = vsel %vm1132_vm11, %v1125_v33, %v1127_v34  ;;  %v2490_v33 = vld [vmem:[%s2868_s3 + $0x60] sm:$0xff]  }
 0x25f   : > { %1142 = vst.msk [vmem:[#allocation2 + $0x8] sm:$0xff] %vm1141_vm12, %v1133_v35 }
 0x264   : > { %v1129_v36 = vpop.permute.xlu1 %1128  ;;  %v1149_v37 = vld [vmem:[#allocation2] sm:$0xff] }
 0x265   : > { %1143 = vst.msk [vmem:[#allocation2 + $0x10] sm:$0xff] %vm1139_vm10, %v1129_v36  ;;  %1172 = vrot.lane.b32.xlu1 %v1149_v37, %s2505_s27  ;;  %v1131_v38 = vpop.permute.xlu0 %1130 }
 0x266   : > { %v1134_v39 = vsel %vm1132_vm11, %v1129_v36, %v1131_v38  ;;  %v1150_v40 = vld [vmem:[#allocation2 + $0x8] sm:$0xff] }
 0x267   : > { %1144 = vst.msk [vmem:[#allocation2 + $0x18] sm:$0xff] %vm1141_vm12, %v1134_v39  ;;  %1174 = vrot.lane.b32.xlu0 %v1150_v40, %s2505_s27  ;;  %v2491_v39 = vld [vmem:[%s2868_s3 + $0x68] sm:$0xff]  }
 0x26c   : > { %v1151_v41 = vld [vmem:[#allocation2 + $0x10] sm:$0xff] }
 0x26d   : > { %1176 = vrot.lane.b32.xlu1 %v1151_v41, %s2505_s27 }
 0x26e   : > { %v1152_v42 = vld [vmem:[#allocation2 + $0x18] sm:$0xff] }
 0x26f   : > { %1178 = vrot.lane.b32.xlu0 %v1152_v42, %s2505_s27  ;;  %s2514_s27 = smov 127  }
 0x271   : > { %1330 = vrot.lane.b32.xlu1 %v1149_v37, %s2506_s28 }
 0x273   : > { %1332 = vrot.lane.b32.xlu0 %v1150_v40, %s2506_s28 }
 0x275   : > { %1334 = vrot.lane.b32.xlu1 %v1151_v41, %s2506_s28 }
 0x277   : > { %1336 = vrot.lane.b32.xlu0 %v1152_v42, %s2506_s28  ;;  %s2515_s28 = smov 116  }
 0x279   : > { %1426 = vrot.lane.b32.xlu1 %v1149_v37, %s2507_s29 }
 0x27b   : > { %1428 = vrot.lane.b32.xlu0 %v1150_v40, %s2507_s29 }
 0x27d   : > { %1430 = vrot.lane.b32.xlu1 %v1151_v41, %s2507_s29 }
 0x27f   : > { %1432 = vrot.lane.b32.xlu0 %v1152_v42, %s2507_s29  ;;  %s2306_s29 = sshll.u32 %s2873_s22, 6 }
 0x281   : > { %1522 = vrot.lane.b32.xlu1 %v1149_v37, %s2508_s30 }
 0x283   : > { %1524 = vrot.lane.b32.xlu0 %v1150_v40, %s2508_s30 }
 0x285   : > { %1526 = vrot.lane.b32.xlu1 %v1151_v41, %s2508_s30 }
 0x287   : > { %1528 = vrot.lane.b32.xlu0 %v1152_v42, %s2508_s30 }
 0x289   : > { %1618 = vrot.lane.b32.xlu1 %v1149_v37, %s2509_s7 }
 0x28b   : > { %1620 = vrot.lane.b32.xlu0 %v1150_v40, %s2509_s7 }
 0x28d   : > { %1622 = vrot.lane.b32.xlu1 %v1151_v41, %s2509_s7 }
 0x28f   : > { %1624 = vrot.lane.b32.xlu0 %v1152_v42, %s2509_s7 }
 0x291   : > { %1714 = vrot.lane.b32.xlu1 %v1149_v37, %s2510_s8 }
 0x293   : > { %1716 = vrot.lane.b32.xlu0 %v1150_v40, %s2510_s8 }
 0x295   : > { %1718 = vrot.lane.b32.xlu1 %v1151_v41, %s2510_s8 }
 0x297   : > { %1720 = vrot.lane.b32.xlu0 %v1152_v42, %s2510_s8  ;;  %s251_s8 = scalar_lea.vmem %s2871_s6, %s2306_s29 }
 0x299   : > { %1810 = vrot.lane.b32.xlu1 %v1149_v37, %s2511_s9 }
 0x29b   : > { %1812 = vrot.lane.b32.xlu0 %v1150_v40, %s2511_s9 }
 0x29d   : > { %1814 = vrot.lane.b32.xlu1 %v1151_v41, %s2511_s9 }
 0x29f   : > { %1816 = vrot.lane.b32.xlu0 %v1152_v42, %s2511_s9 }
 0x2a1   : > { %1906 = vrot.lane.b32.xlu1 %v1149_v37, %s2512_s10 }
 0x2a3   : > { %1908 = vrot.lane.b32.xlu0 %v1150_v40, %s2512_s10 }
 0x2a5   : > { %1910 = vrot.lane.b32.xlu1 %v1151_v41, %s2512_s10 }
 0x2a7   : > { %1912 = vrot.lane.b32.xlu0 %v1152_v42, %s2512_s10 }
 0x2a9   : > { %1993 = vperm.xlu1 %2456, %v1987_v43  }
 0x2ab   : > { %1998 = vperm.xlu0 %2455, %v1988_v44  }
 0x2ad   : > { %2003 = vperm.xlu1 %2456, %v1989_v45  }
 0x2af   : > { %2008 = vperm.xlu0 %2455, %v1990_v46  }
 0x2d7   : > { %v1173_v47 = vpop.permute.xlu1 %1172 }
 0x2d9   : > { %v1175_v48 = vpop.permute.xlu0 %1174 }
 0x2da   : > { %1193 = vmatprep.subr.bf16.mxu1 %v1175_v48  ;;  %v1180_v49 = vsel %vm286_vm0, %v1173_v47, %v1175_v48  ;;  %v2493_v47 = vld [vmem:[%s2868_s3 + $0x78] sm:$0xff]   ;;  %v2494_v48 = vld [vmem:[%s2868_s3 + $0x80] sm:$0xff]  }
 0x2db   : > { %1194 = vmatpush1.bf16.msra.mxu1 %v1180_v49  ;;  %v2495_v49 = vld [vmem:[%s2868_s3 + $0x88] sm:$0xff]  }
 0x2df   : > { %v1177_v50 = vpop.permute.xlu1 %1176 }
 0x2e1   : > { %v1179_v51 = vpop.permute.xlu0 %1178 }
 0x2e2   : > { %1195 = vmatprep.subr.bf16.mxu1 %v1179_v51  ;;  %v1181_v52 = vsel %vm286_vm0, %v1177_v50, %v1179_v51 }
 0x2e3   : > { %1196 = vmatpush1.bf16.msra.mxu1 %v1181_v52  ;;  %v1331_v57 = vpop.permute.xlu1 %1330 }
 0x2e4   : > { %1262 = vmatprep.subr.bf16.mxu1 %v1150_v40 }
 0x2e5   : > { %v1333_v55 = vpop.permute.xlu0 %1332 }
 0x2e6   : > { %2241 = vmatmul.mubr.msk.bf16.vlgmr.msra.gmra.mrb[0].mxu1 %vm1186_vm13, %v2478_v53  ;;  %v1338_v59 = vsel %vm440_vm2, %v1331_v57, %v1333_v55 }
 0x2e7   : > { %1263 = vmatpush1.bf16.msra.mxu1 %v1149_v37  ;;  %1235 = vmatprep.mubr.bf16.mxu1 %v2504_v0  ;;  %v1335_v60 = vpop.permute.xlu1 %1334 }
 0x2e8   : > { %1264 = vmatprep.subr.bf16.mxu1 %v1152_v42 }
 0x2e9   : > { %v1337_v58 = vpop.permute.xlu0 %1336 }
 0x2ea   : > { %v1339_v61 = vsel %vm440_vm2, %v1335_v60, %v1337_v58 }
 0x2eb   : > { %1265 = vmatpush1.bf16.msra.mxu1 %v1151_v41  ;;  %v1427_v2 = vpop.permute.xlu1 %1426  ;;  %v2492_v41 = vld [vmem:[%s2868_s3 + $0x70] sm:$0xff]  }
 0x2ec   : > { %1350 = vmatprep.subr.bf16.mxu1 %v1333_v55 }
 0x2ed   : > { %v1429_v63 = vpop.permute.xlu0 %1428 }
 0x2ee   : > { %2242 = vmatmul.mubr.msk.bf16.gmra.mrb[4].mxu1 %vm1186_vm13, %v2479_v54  ;;  %v1434_v4 = vsel %vm530_vm3, %v1427_v2, %v1429_v63 }
 0x2ef   : > { %1294 = vmatprep.mubr.bf16.mxu1 %v2504_v0  ;;  %v1431_v5 = vpop.permute.xlu1 %1430 }
 0x2f1   : > { %v1433_v3 = vpop.permute.xlu0 %1432 }
 0x2f2   : > { %v1435_v6 = vsel %vm530_vm3, %v1431_v5, %v1433_v3 }
 0x2f3   : > { %v1523_v10 = vpop.permute.xlu1 %1522 }
 0x2f5   : > { %v1525_v8 = vpop.permute.xlu0 %1524 }
 0x2f6   : > { %2245 = vmatmul.mubr.msk.bf16.vlgmr.msra.gmra.mrb[0].mxu1 %vm1186_vm13, %v2480_v56  ;;  %v1530_v12 = vsel %vm620_vm4, %v1523_v10, %v1525_v8 }
 0x2f7   : > { %1351 = vmatpush1.bf16.msra.mxu1 %v1338_v59  ;;  %1304 = vmatprep.mubr.bf16.mxu1 %v2504_v0  ;;  %v1527_v13 = vpop.permute.xlu1 %1526 }
 0x2f8   : > { %1352 = vmatprep.subr.bf16.mxu1 %v1337_v58 }
 0x2f9   : > { %v1529_v11 = vpop.permute.xlu0 %1528 }
 0x2fa   : > { %v1531_v14 = vsel %vm620_vm4, %v1527_v13, %v1529_v11 }
 0x2fb   : > { %1353 = vmatpush1.bf16.msra.mxu1 %v1339_v61  ;;  %v1619_v18 = vpop.permute.xlu1 %1618 }
 0x2fc   : > { %1446 = vmatprep.subr.bf16.mxu1 %v1429_v63 }
 0x2fd   : > { %v1621_v16 = vpop.permute.xlu0 %1620 }
 0x2fe   : > { %2246 = vmatmul.mubr.msk.bf16.gmra.mrb[4].mxu1 %vm1186_vm13, %v2481_v62  ;;  %v1626_v20 = vsel %vm710_vm5, %v1619_v18, %v1621_v16 }
 0x2ff   : > { %1382 = vmatprep.mubr.bf16.mxu1 %v2504_v0  ;;  %v1623_v21 = vpop.permute.xlu1 %1622 }
 0x301   : > { %v1625_v19 = vpop.permute.xlu0 %1624 }
 0x302   : > { %v1627_v22 = vsel %vm710_vm5, %v1623_v21, %v1625_v19 }
 0x303   : > { %v1715_v26 = vpop.permute.xlu1 %1714 }
 0x305   : > { %v1717_v24 = vpop.permute.xlu0 %1716 }
 0x306   : > { %2253 = vmatmul.mubr.msk.bf16.vlgmr.msra.gmra.mrb[0].mxu1 %vm1186_vm13, %v2482_v1  ;;  %v1722_v28 = vsel %vm800_vm6, %v1715_v26, %v1717_v24 }
 0x307   : > { %1447 = vmatpush1.bf16.msra.mxu1 %v1434_v4  ;;  %1392 = vmatprep.mubr.bf16.mxu1 %v2504_v0  ;;  %v1719_v29 = vpop.permute.xlu1 %1718 }
 0x308   : > { %1448 = vmatprep.subr.bf16.mxu1 %v1433_v3 }
 0x309   : > { %v1721_v27 = vpop.permute.xlu0 %1720 }
 0x30a   : > { %v1723_v30 = vsel %vm800_vm6, %v1719_v29, %v1721_v27 }
 0x30b   : > { %1449 = vmatpush1.bf16.msra.mxu1 %v1435_v6  ;;  %v1811_v34 = vpop.permute.xlu1 %1810 }
 0x30c   : > { %1542 = vmatprep.subr.bf16.mxu1 %v1525_v8 }
 0x30d   : > { %v1813_v32 = vpop.permute.xlu0 %1812 }
 0x30e   : > { %2254 = vmatmul.mubr.msk.bf16.gmra.mrb[4].mxu1 %vm1186_vm13, %v2483_v7  ;;  %v1818_v36 = vsel %vm890_vm7, %v1811_v34, %v1813_v32 }
 0x30f   : > { %1478 = vmatprep.mubr.bf16.mxu1 %v2504_v0  ;;  %v1815_v37 = vpop.permute.xlu1 %1814 }
 0x311   : > { %v1817_v35 = vpop.permute.xlu0 %1816 }
 0x312   : > { %v1819_v38 = vsel %vm890_vm7, %v1815_v37, %v1817_v35 }
 0x313   : > { %v1907_v42 = vpop.permute.xlu1 %1906 }
 0x315   : > { %v1909_v40 = vpop.permute.xlu0 %1908 }
 0x316   : > { %2261 = vmatmul.mubr.msk.bf16.vlgmr.msra.gmra.mrb[0].mxu1 %vm1186_vm13, %v2484_v9  ;;  %v1914_v43 = vsel %vm980_vm8, %v1907_v42, %v1909_v40 }
 0x317   : > { %1543 = vmatpush1.bf16.msra.mxu1 %v1530_v12  ;;  %1488 = vmatprep.mubr.bf16.mxu1 %v2504_v0  ;;  %v1911_v45 = vpop.permute.xlu1 %1910 }
 0x318   : > { %1544 = vmatprep.subr.bf16.mxu1 %v1529_v11 }
 0x319   : > { %v1913_v44 = vpop.permute.xlu0 %1912 }
 0x31a   : > { %v1915_v46 = vsel %vm980_vm8, %v1911_v45, %v1913_v44 }
 0x31b   : > { %1545 = vmatpush1.bf16.msra.mxu1 %v1531_v14 }
 0x31c   : > { %1638 = vmatprep.subr.bf16.mxu1 %v1621_v16 }
 0x31e   : > { %2262 = vmatmul.mubr.msk.bf16.gmra.mrb[4].mxu1 %vm1186_vm13, %v2485_v15 }
 0x31f   : > { %1574 = vmatprep.mubr.bf16.mxu1 %v2504_v0 }
 0x326   : > { %2269 = vmatmul.mubr.msk.bf16.vlgmr.msra.gmra.mrb[0].mxu1 %vm1186_vm13, %v2486_v17 }
 0x327   : > { %1639 = vmatpush1.bf16.msra.mxu1 %v1626_v20  ;;  %1584 = vmatprep.mubr.bf16.mxu1 %v2504_v0 }
 0x328   : > { %1640 = vmatprep.subr.bf16.mxu1 %v1625_v19  ;;  %v1994_v50 = vpop.permute.xlu1 %1993 }
 0x32a   : > { %v1999_v54 = vpop.permute.xlu0 %1998 }
 0x32b   : > { %1641 = vmatpush1.bf16.msra.mxu1 %v1627_v22 }
 0x32c   : > { %1734 = vmatprep.subr.bf16.mxu1 %v1717_v24  ;;  %v2004_v1 = vpop.permute.xlu1 %2003 }
 0x32e   : > { %2270 = vmatmul.mubr.msk.bf16.gmra.mrb[4].mxu1 %vm1186_vm13, %v2487_v23  ;;  %v2009_v6 = vpop.permute.xlu0 %2008 }
 0x32f   : > { %1670 = vmatprep.mubr.bf16.mxu1 %v2504_v0 }
 0x336   : > { %2277 = vmatmul.mubr.msk.bf16.vlgmr.msra.gmra.mrb[0].mxu1 %vm1186_vm13, %v2488_v25 }
 0x337   : > { %1735 = vmatpush1.bf16.msra.mxu1 %v1722_v28  ;;  %1680 = vmatprep.mubr.bf16.mxu1 %v2504_v0 }
 0x338   : > { %1736 = vmatprep.subr.bf16.mxu1 %v1721_v27 }
 0x33b   : > { %1737 = vmatpush1.bf16.msra.mxu1 %v1723_v30 }
 0x33c   : > { %1830 = vmatprep.subr.bf16.mxu1 %v1813_v32 }
 0x33e   : > { %2278 = vmatmul.mubr.msk.bf16.gmra.mrb[4].mxu1 %vm1186_vm13, %v2489_v31 }
 0x33f   : > { %1766 = vmatprep.mubr.bf16.mxu1 %v2504_v0 }
 0x346   : > { %2285 = vmatmul.mubr.msk.bf16.vlgmr.msra.gmra.mrb[0].mxu1 %vm1186_vm13, %v2490_v33 }
 0x347   : > { %1831 = vmatpush1.bf16.msra.mxu1 %v1818_v36  ;;  %1776 = vmatprep.mubr.bf16.mxu1 %v2504_v0 }
 0x348   : > { %1832 = vmatprep.subr.bf16.mxu1 %v1817_v35 }
 0x34b   : > { %1833 = vmatpush1.bf16.msra.mxu1 %v1819_v38 }
 0x34c   : > { %1926 = vmatprep.subr.bf16.mxu1 %v1909_v40 }
 0x34e   : > { %2286 = vmatmul.mubr.msk.bf16.gmra.mrb[4].mxu1 %vm1186_vm13, %v2491_v39 }
 0x34f   : > { %1862 = vmatprep.mubr.bf16.mxu1 %v2504_v0 }
 0x356   : > { %2293 = vmatmul.mubr.msk.bf16.vlgmr.msra.gmra.mrb[0].mxu1 %vm1186_vm13, %v2492_v41 }
 0x357   : > { %1927 = vmatpush1.bf16.msra.mxu1 %v1914_v43  ;;  %1872 = vmatprep.mubr.bf16.mxu1 %v2504_v0 }
 0x358   : > { %1928 = vmatprep.subr.bf16.mxu1 %v1913_v44 }
 0x35b   : > { %1929 = vmatpush1.bf16.msra.mxu1 %v1915_v46 }
 0x35e   : > { %2294 = vmatmul.mubr.msk.bf16.gmra.mrb[4].mxu1 %vm1186_vm13, %v2493_v47 }
 0x35f   : > { %1958 = vmatprep.mubr.bf16.mxu1 %v2504_v0 }
 0x366   : > { %2301 = vmatmul.mubr.msk.bf16.vlgmr.msra.gmra.mrb[0].mxu1 %vm1186_vm13, %v2494_v48 }
 0x367   : > { %1968 = vmatprep.mubr.bf16.mxu1 %v2504_v0 }
 0x36e   : > { %2302 = vmatmul.mubr.msk.bf16.gmra.mrb[4].mxu1 %vm1186_vm13, %v2495_v49 }
 0x439   : > { %v1960_v51 = vpop.f32.mrb[0].mxu1 }
 0x43a   : > { %v2011_v52 = vadd.f32 %v1994_v50, %v1960_v51  ;;  %v1962_v53 = vpop.f32.mrb[1].mxu1 }
 0x43b   : > { %v2012_v55 = vadd.f32 %v1994_v50, %v1962_v53  ;;  %v1964_v56 = vpop.f32.mrb[2].mxu1 }
 0x43c   : > { %v2013_v57 = vadd.f32 %v1999_v54, %v1964_v56  ;;  %v1966_v58 = vpop.f32.mrb[3].mxu1  ;;  %v2019_v60 = vmax.f32 %v2011_v52, 0.0 }
 0x43d   : > { %v2014_v59 = vadd.f32 %v1999_v54, %v1966_v58  ;;  %v2020_v62 = vmax.f32 %v2012_v55, 0.0 }
 0x43e   : > { %v2021_v61 = vmax.f32 %v2013_v57, 0.0 }
 0x43f   : > { %v2022_v0 = vmax.f32 %v2014_v59, 0.0 }
 0x440   : > { %v2027_v63 = vpack.c.bf16 %v2021_v61, %v2019_v60 }
 0x441   : > { %v2028_v2 = vpack.c.bf16 %v2022_v0, %v2020_v62  ;;  %v1970_v3 = vpop.f32.mrb[4].mxu1 }
 0x442   : > { %2031 = vst [vmem:[#allocation2] sm:$0xff] %v2027_v63  ;;  %v2015_v4 = vadd.f32 %v2004_v1, %v1970_v3  ;;  %v1972_v5 = vpop.f32.mrb[5].mxu1  ;;  %2043 = vrot.lane.b32.xlu1 %v2027_v63, %s2514_s27 }
 0x443   : > { %2032 = vst.msk [vmem:[#allocation2 + $0x8] sm:$0xff] %vm290_vm1, %v2028_v2  ;;  %v2016_v7 = vadd.f32 %v2004_v1, %v1972_v5  ;;  %v1974_v8 = vpop.f32.mrb[6].mxu1 }
 0x444   : > { %v2017_v9 = vadd.f32 %v2009_v6, %v1974_v8  ;;  %v1976_v10 = vpop.f32.mrb[7].mxu1  ;;  %v2023_v12 = vmax.f32 %v2015_v4, 0.0 }
 0x445   : > { %v2018_v11 = vadd.f32 %v2009_v6, %v1976_v10  ;;  %v2024_v14 = vmax.f32 %v2016_v7, 0.0 }
 0x446   : > { %v2025_v13 = vmax.f32 %v2017_v9, 0.0 }
 0x447   : > { %v2026_v15 = vmax.f32 %v2018_v11, 0.0 }
 0x448   : > { %v2029_v16 = vpack.c.bf16 %v2025_v13, %v2023_v12 }
 0x449   : > { %v2030_v17 = vpack.c.bf16 %v2026_v15, %v2024_v14 }
 0x44a   : > { %2033 = vst [vmem:[#allocation2 + $0x10] sm:$0xff] %v2029_v16  ;;  %v2036_v18 = vld [vmem:[#allocation2 + $0x8] sm:$0xff]  ;;  %2047 = vrot.lane.b32.xlu1 %v2029_v16, %s2514_s27 }
 0x44b   : > { %2034 = vst.msk [vmem:[#allocation2 + $0x18] sm:$0xff] %vm290_vm1, %v2030_v17  ;;  %2045 = vrot.lane.b32.xlu0 %v2036_v18, %s2514_s27 }
 0x452   : > { %v2038_v19 = vld [vmem:[#allocation2 + $0x18] sm:$0xff] }
 0x453   : > { %2049 = vrot.lane.b32.xlu0 %v2038_v19, %s2514_s27 }
 0x4b4   : > { %v2044_v20 = vpop.permute.xlu1 %2043 }
 0x4bc   : > { %v2048_v25 = vpop.permute.xlu1 %2047 }
 0x4bd   : > { %v2046_v21 = vpop.permute.xlu0 %2045 }
 0x4be   : > { %v2052_v22 = vsel %vm2051_vm14, %v2044_v20, %v2046_v21  ;;  %v2059_v23 = vmax.bf16 %v2046_v21, %v2036_v18 }
 0x4bf   : > { %v2058_v24 = vmax.bf16 %v2052_v22, %v2027_v63 }
 0x4c0   : > { %2068 = vrot.lane.b32.xlu0 %v2059_v23, %s2515_s28 }
 0x4c1   : > { %2066 = vrot.lane.b32.xlu1 %v2058_v24, %s2515_s28 }
 0x4c5   : > { %v2050_v26 = vpop.permute.xlu0 %2049 }
 0x4c6   : > { %v2053_v27 = vsel %vm2051_vm14, %v2048_v25, %v2050_v26  ;;  %v2061_v28 = vmax.bf16 %v2050_v26, %v2038_v19 }
 0x4c7   : > { %v2060_v29 = vmax.bf16 %v2053_v27, %v2029_v16 }
 0x4c8   : > { %2072 = vrot.lane.b32.xlu0 %v2061_v28, %s2515_s28 }
 0x4c9   : > { %2070 = vrot.lane.b32.xlu1 %v2060_v29, %s2515_s28 }
 0x532   : > { %v2069_v30 = vpop.permute.xlu0 %2068 }
 0x533   : > { %v2082_v31 = vmax.bf16 %v2069_v30, %v2059_v23  ;;  %v2067_v32 = vpop.permute.xlu1 %2066 }
 0x534   : > { %v2075_v33 = vsel %vm2074_vm15, %v2067_v32, %v2069_v30 }
 0x535   : > { %v2086_v34 = vunpack.c.l.bf16 %v2082_v31  ;;  %v2088_v35 = vunpack.c.h.bf16 %v2082_v31  ;;  %v2081_v36 = vmax.bf16 %v2075_v33, %v2058_v24 }
 0x537   : > { %2094 = vst.msk [vmem:[%s251_s8 + $0x8] sm:$0xff] %vm290_vm1, %v2086_v34  ;;  %2096 = vst.msk [vmem:[%s251_s8 + $0x18] sm:$0xff] %vm290_vm1, %v2088_v35  ;;  %v2085_v37 = vunpack.c.l.bf16 %v2081_v36  ;;  %v2087_v38 = vunpack.c.h.bf16 %v2081_v36 }
 0x539   : > { %2093 = vst [vmem:[%s251_s8] sm:$0xff] %v2085_v37  ;;  %2095 = vst [vmem:[%s251_s8 + $0x10] sm:$0xff] %v2087_v38 }
 0x53a   : > { %v2073_v39 = vpop.permute.xlu0 %2072 }
 0x53b   : > { %v2084_v40 = vmax.bf16 %v2073_v39, %v2061_v28  ;;  %v2071_v41 = vpop.permute.xlu1 %2070 }
 0x53c   : > { %v2076_v42 = vsel %vm2074_vm15, %v2071_v41, %v2073_v39 }
 0x53d   : > { %v2090_v43 = vunpack.c.l.bf16 %v2084_v40  ;;  %v2092_v44 = vunpack.c.h.bf16 %v2084_v40  ;;  %v2083_v45 = vmax.bf16 %v2076_v42, %v2060_v29 }
 0x53f   : > { %2098 = vst.msk [vmem:[%s251_s8 + $0x28] sm:$0xff] %vm290_vm1, %v2090_v43  ;;  %2100 = vst.msk [vmem:[%s251_s8 + $0x38] sm:$0xff] %vm290_vm1, %v2092_v44  ;;  %v2089_v46 = vunpack.c.l.bf16 %v2083_v45  ;;  %v2091_v47 = vunpack.c.h.bf16 %v2083_v45 }
 0x541   : > { %2097 = vst [vmem:[%s251_s8 + $0x20] sm:$0xff] %v2089_v46  ;;  %2099 = vst [vmem:[%s251_s8 + $0x30] sm:$0xff] %v2091_v47 }
 0x542 PF: > { %s16_s21 = sadd.s32 1, %s2502_s21  }
 0x543   : > { %p13_p4 = scmp.ge.s32.totalorder %s16_s21, 4  }
 0x545   :  { %15 = sbr.rel (!%p13_p4) target bundleno = 1 (0x1), region = 90 }

// kernel: forward.9
= control target key start
LH: loop header
LB: loop body
LE: loop exit
PB: predicated region body
PF: predicated region fallthrough
CT: control target
= control target key end

     0   :  { %v49_v3 = vlaneseq  ;;  %v602_v8 = vmov 0.0   ;;  %v603_v9 = vmov 1966171168   ;;  %vm76_vm0 = vcmask 523264   ;;  %s1013_s0 = inlined_call_operand.vmem [shape: f32[2,1,64], index: 0, kind: input, shape index: {}]   ;;  %s1014_s1 = inlined_call_operand.vmem [shape: f32[64,256], index: 1, kind: input, shape index: {}]   ;;  %s1015_s2 = inlined_call_operand.vmem [shape: f32[1,256], index: 2, kind: input, shape index: {}]   ;;  %s1016_s3 = inlined_call_operand.vmem [shape: f32[256,256], index: 3, kind: input, shape index: {}]   ;;  %s1017_s4 = inlined_call_operand.vmem [shape: f32[1,256], index: 4, kind: input, shape index: {}]   ;;  %s1018_s5 = inlined_call_operand.vmem [shape: f32[256,10], index: 5, kind: input, shape index: {}]   ;;  %s1019_s6 = inlined_call_operand.vmem [shape: f32[1,10], index: 6, kind: input, shape index: {}]   ;;  %s1020_s7 = inlined_call_operand.hbm [shape: f32[2,10], index: 7, kind: output, shape index: {}]  }
   0x1   :  { %v32_v0 = vld [vmem:[%s1014_s1 + $0x8] sm:$0xff]  ;;  %v34_v1 = vld [vmem:[%s1014_s1 + $0x18] sm:$0xff]  ;;  %v31_v2 = vld [vmem:[%s1014_s1] sm:$0xff]  ;;  %143 = vmatprep.mubr.f32.mxu0 %v602_v8  ;;  %v63_v10 = vunpack.c.l.s4 %v603_v9 }
   0x2   :  { %v463_v4 = vpack.c.bf16 %v34_v1, %v32_v0  ;;  %v33_v5 = vld [vmem:[%s1014_s1 + $0x10] sm:$0xff]  ;;  %v36_v6 = vld [vmem:[%s1014_s1 + $0x28] sm:$0xff]  ;;  %v38_v7 = vld [vmem:[%s1014_s1 + $0x38] sm:$0xff]  ;;  %v675_v17 = vshrl.u32 %v49_v3, 7 }
   0x3   :  { %v465_v11 = vpack.c.bf16 %v33_v5, %v31_v2  ;;  %v467_v12 = vpack.c.bf16 %v38_v7, %v36_v6  ;;  %v35_v13 = vld [vmem:[%s1014_s1 + $0x20] sm:$0xff]  ;;  %v37_v14 = vld [vmem:[%s1014_s1 + $0x30] sm:$0xff]  ;;  %v40_v15 = vld [vmem:[%s1014_s1 + $0x48] sm:$0xff]  ;;  %v64_v18 = vunpack.c.0.s8 %v63_v10 }
   0x4   :  { %464 = vmatprep.subr.bf16.mxu0 %v463_v4  ;;  %v42_v16 = vld [vmem:[%s1014_s1 + $0x58] sm:$0xff]  ;;  %v469_v19 = vpack.c.bf16 %v37_v14, %v35_v13  ;;  %v39_v20 = vld [vmem:[%s1014_s1 + $0x40] sm:$0xff]  ;;  %v41_v21 = vld [vmem:[%s1014_s1 + $0x50] sm:$0xff] }
   0x5   :  { %466 = vmatpush1.bf16.msra.mxu0 %v465_v11  ;;  %v44_v22 = vld [vmem:[%s1014_s1 + $0x68] sm:$0xff]  ;;  %v471_v23 = vpack.c.bf16 %v42_v16, %v40_v15  ;;  %v46_v24 = vld [vmem:[%s1014_s1 + $0x78] sm:$0xff]  ;;  %v27_v25 = vld [vmem:[%s1013_s0] sm:$0x1]  ;;  %v67_v31 = vsub.s32 %v64_v18, %v675_v17  ;;  %v473_v36 = vpack.c.bf16 %v41_v21, %v39_v20 }
   0x6   :  { %468 = vmatprep.subr.bf16.mxu0 %v467_v12  ;;  %v28_v26 = vld [vmem:[%s1013_s0 + $0x1] sm:$0x1]  ;;  %v153_v27 = vld [vmem:[%s1016_s3 + $0x8] sm:$0xff]  ;;  %v155_v28 = vld [vmem:[%s1016_s3 + $0x18] sm:$0xff]  ;;  %v475_v42 = vpack.c.bf16 %v46_v24, %v44_v22 }
   0x7   :  { %v152_v29 = vld [vmem:[%s1016_s3] sm:$0xff]  ;;  %v61_v30 = vcombine.low %v27_v25, %v28_v26  ;;  %v479_v32 = vpack.c.bf16 %v155_v28, %v153_v27  ;;  %v154_v33 = vld [vmem:[%s1016_s3 + $0x10] sm:$0xff]  ;;  %v157_v34 = vld [vmem:[%s1016_s3 + $0x28] sm:$0xff] }
   0x8   :  { %v159_v35 = vld [vmem:[%s1016_s3 + $0x38] sm:$0xff]  ;;  %v481_v37 = vpack.c.bf16 %v154_v33, %v152_v29  ;;  %v156_v39 = vld [vmem:[%s1016_s3 + $0x20] sm:$0xff]  ;;  %v158_v40 = vld [vmem:[%s1016_s3 + $0x30] sm:$0xff] }
   0x9   :  { %470 = vmatpush1.bf16.msra.mxu0 %v469_v19  ;;  %v483_v38 = vpack.c.bf16 %v159_v35, %v157_v34  ;;  %v161_v41 = vld [vmem:[%s1016_s3 + $0x48] sm:$0xff]  ;;  %v43_v43 = vld [vmem:[%s1014_s1 + $0x60] sm:$0xff]  ;;  %v45_v44 = vld [vmem:[%s1014_s1 + $0x70] sm:$0xff]  ;;  %480 = vmatprep.subr.bf16.mxu1 %v479_v32  ;;  %v485_v46 = vpack.c.bf16 %v158_v40, %v156_v39  ;;  %v68_v47 = vrot.slane %v61_v30, %v67_v31 }
   0xa   :  { %472 = vmatprep.subr.bf16.mxu0 %v471_v23  ;;  %v163_v45 = vld [vmem:[%s1016_s3 + $0x58] sm:$0xff]  ;;  %482 = vmatpush1.bf16.msra.mxu1 %v481_v37  ;;  %v160_v49 = vld [vmem:[%s1016_s3 + $0x40] sm:$0xff]  ;;  %v162_v50 = vld [vmem:[%s1016_s3 + $0x50] sm:$0xff]  ;;  %v477_v51 = vpack.c.bf16 %v45_v44, %v43_v43 }
   0xb   :  { %484 = vmatprep.subr.bf16.mxu1 %v483_v38  ;;  %v487_v48 = vpack.c.bf16 %v163_v45, %v161_v41  ;;  %v165_v52 = vld [vmem:[%s1016_s3 + $0x68] sm:$0xff]  ;;  %v167_v53 = vld [vmem:[%s1016_s3 + $0x78] sm:$0xff]  ;;  %v489_v54 = vpack.c.bf16 %v162_v50, %v160_v49  ;;  %v75_v55 = vrot.slane %v68_v47, %v67_v31  ;;  %v164_v57 = vld [vmem:[%s1016_s3 + $0x60] sm:$0xff] }
   0xc   :  { %v491_v56 = vpack.c.bf16 %v167_v53, %v165_v52  ;;  %v166_v58 = vld [vmem:[%s1016_s3 + $0x70] sm:$0xff]  ;;  %v169_v59 = vld [vmem:[%s1016_s3 + $0x88] sm:$0xff]  ;;  %v171_v60 = vld [vmem:[%s1016_s3 + $0x98] sm:$0xff] }
   0xd   :  { %474 = vmatpush1.bf16.msra.mxu0 %v473_v36  ;;  %v493_v61 = vpack.c.bf16 %v166_v58, %v164_v57  ;;  %v495_v62 = vpack.c.bf16 %v171_v60, %v169_v59  ;;  %v168_v63 = vld [vmem:[%s1016_s3 + $0x80] sm:$0xff]  ;;  %v170_v0 = vld [vmem:[%s1016_s3 + $0x90] sm:$0xff]  ;;  %v173_v1 = vld [vmem:[%s1016_s3 + $0xa8] sm:$0xff] }
   0xe   :  { %476 = vmatprep.subr.bf16.mxu0 %v475_v42  ;;  %486 = vmatpush1.bf16.msra.mxu1 %v485_v46  ;;  %v175_v2 = vld [vmem:[%s1016_s3 + $0xb8] sm:$0xff]  ;;  %v497_v3 = vpack.c.bf16 %v170_v0, %v168_v63  ;;  %v172_v5 = vld [vmem:[%s1016_s3 + $0xa0] sm:$0xff]  ;;  %v174_v6 = vld [vmem:[%s1016_s3 + $0xb0] sm:$0xff] }
   0xf   :  { %488 = vmatprep.subr.bf16.mxu1 %v487_v48  ;;  %v499_v4 = vpack.c.bf16 %v175_v2, %v173_v1  ;;  %v177_v7 = vld [vmem:[%s1016_s3 + $0xc8] sm:$0xff]  ;;  %v179_v8 = vld [vmem:[%s1016_s3 + $0xd8] sm:$0xff] }
  0x11   :  { %478 = vmatpush1.bf16.msra.mxu0 %v477_v51 }
  0x12   :  { %490 = vmatpush1.bf16.msra.mxu1 %v489_v54 }
  0x13   :  { %492 = vmatprep.subr.bf16.mxu1 %v491_v56 }
  0x14   :  { %426 = vmatmul.mubr.msk.f32.vlgmr.msra.gmra.mrb[0].mxu0 %vm76_vm0, %v75_v55 }
  0x16   :  { %494 = vmatpush1.bf16.msra.mxu1 %v493_v61 }
  0x17   :  { %496 = vmatprep.subr.bf16.mxu1 %v495_v62 }
  0x18   :  { %12 = vsyncpa [#allocation3], 0  ;;  %v501_v9 = vpack.c.bf16 %v174_v6, %v172_v5  ;;  %v503_v10 = vpack.c.bf16 %v179_v8, %v177_v7  ;;  %v176_v11 = vld [vmem:[%s1016_s3 + $0xc0] sm:$0xff]  ;;  %v178_v12 = vld [vmem:[%s1016_s3 + $0xd0] sm:$0xff]  ;;  %s604_s8 = smov [#allocation2]   ;;  %vm410_vm1 = vcmask 74752  }
  0x19   :  { %v181_v13 = vld [vmem:[%s1016_s3 + $0xe8] sm:$0xff]  ;;  %v183_v14 = vld [vmem:[%s1016_s3 + $0xf8] sm:$0xff]  ;;  %v505_v15 = vpack.c.bf16 %v178_v12, %v176_v11  ;;  %v180_v18 = vld [vmem:[%s1016_s3 + $0xe0] sm:$0xff]  ;;  %s418_s9 = sshll.u32 %s604_s8, 4  ;;  %s419_s9 = int_to_ptr.vmem [resolvable:$true] %s418_s9 }
  0x1a   :  { %498 = vmatpush1.bf16.msra.mxu1 %v497_v3  ;;  %v507_v16 = vpack.c.bf16 %v183_v14, %v181_v13  ;;  %v182_v19 = vld [vmem:[%s1016_s3 + $0xf0] sm:$0xff]  ;;  %v185_v20 = vld [vmem:[%s1016_s3 + $0x108] sm:$0xff]  ;;  %v187_v21 = vld [vmem:[%s1016_s3 + $0x118] sm:$0xff]  ;;  %p583_p1 = scmp.lt.s32.totalorder %s419_s9, %s419_s9 }
  0x1b   :  { %500 = vmatprep.subr.bf16.mxu1 %v499_v4  ;;  %v509_v22 = vpack.c.bf16 %v182_v19, %v180_v18  ;;  %v511_v23 = vpack.c.bf16 %v187_v21, %v185_v20  ;;  %v184_v24 = vld [vmem:[%s1016_s3 + $0x100] sm:$0xff]  ;;  %v186_v25 = vld [vmem:[%s1016_s3 + $0x110] sm:$0xff]  ;;  %v189_v26 = vld [vmem:[%s1016_s3 + $0x128] sm:$0xff] }
  0x1c   :  { %v191_v27 = vld [vmem:[%s1016_s3 + $0x138] sm:$0xff]  ;;  %v513_v28 = vpack.c.bf16 %v186_v25, %v184_v24  ;;  %v188_v30 = vld [vmem:[%s1016_s3 + $0x120] sm:$0xff]  ;;  %v190_v31 = vld [vmem:[%s1016_s3 + $0x130] sm:$0xff] }
  0x1d   :  { %v515_v29 = vpack.c.bf16 %v191_v27, %v189_v26  ;;  %v193_v32 = vld [vmem:[%s1016_s3 + $0x148] sm:$0xff]  ;;  %v195_v33 = vld [vmem:[%s1016_s3 + $0x158] sm:$0xff]  ;;  %v517_v34 = vpack.c.bf16 %v190_v31, %v188_v30  ;;  %v192_v36 = vld [vmem:[%s1016_s3 + $0x140] sm:$0xff] }
  0x1e   :  { %502 = vmatpush1.bf16.msra.mxu1 %v501_v9  ;;  %v519_v35 = vpack.c.bf16 %v195_v33, %v193_v32  ;;  %v194_v37 = vld [vmem:[%s1016_s3 + $0x150] sm:$0xff]  ;;  %v197_v38 = vld [vmem:[%s1016_s3 + $0x168] sm:$0xff]  ;;  %v199_v39 = vld [vmem:[%s1016_s3 + $0x178] sm:$0xff] }
  0x1f   :  { %504 = vmatprep.subr.bf16.mxu1 %v503_v10  ;;  %v521_v40 = vpack.c.bf16 %v194_v37, %v192_v36  ;;  %v523_v41 = vpack.c.bf16 %v199_v39, %v197_v38  ;;  %v196_v42 = vld [vmem:[%s1016_s3 + $0x160] sm:$0xff]  ;;  %v198_v43 = vld [vmem:[%s1016_s3 + $0x170] sm:$0xff]  ;;  %v201_v44 = vld [vmem:[%s1016_s3 + $0x188] sm:$0xff] }
  0x20   :  { %v203_v45 = vld [vmem:[%s1016_s3 + $0x198] sm:$0xff]  ;;  %v525_v46 = vpack.c.bf16 %v198_v43, %v196_v42  ;;  %v200_v48 = vld [vmem:[%s1016_s3 + $0x180] sm:$0xff]  ;;  %v202_v49 = vld [vmem:[%s1016_s3 + $0x190] sm:$0xff] }
  0x21   :  { %v527_v47 = vpack.c.bf16 %v203_v45, %v201_v44  ;;  %v205_v50 = vld [vmem:[%s1016_s3 + $0x1a8] sm:$0xff]  ;;  %v207_v51 = vld [vmem:[%s1016_s3 + $0x1b8] sm:$0xff]  ;;  %v529_v52 = vpack.c.bf16 %v202_v49, %v200_v48  ;;  %v204_v54 = vld [vmem:[%s1016_s3 + $0x1a0] sm:$0xff]  ;;  %v51_v45 = vsub.s32 0, %v675_v17 }
  0x22   :  { %506 = vmatpush1.bf16.msra.mxu1 %v505_v15  ;;  %v531_v53 = vpack.c.bf16 %v207_v51, %v205_v50  ;;  %v206_v55 = vld [vmem:[%s1016_s3 + $0x1b0] sm:$0xff]  ;;  %v209_v56 = vld [vmem:[%s1016_s3 + $0x1c8] sm:$0xff]  ;;  %v211_v57 = vld [vmem:[%s1016_s3 + $0x1d8] sm:$0xff] }
  0x23   :  { %508 = vmatprep.subr.bf16.mxu1 %v507_v16  ;;  %v533_v58 = vpack.c.bf16 %v206_v55, %v204_v54  ;;  %v535_v59 = vpack.c.bf16 %v211_v57, %v209_v56  ;;  %v208_v60 = vld [vmem:[%s1016_s3 + $0x1c0] sm:$0xff]  ;;  %v210_v61 = vld [vmem:[%s1016_s3 + $0x1d0] sm:$0xff]  ;;  %v213_v63 = vld [vmem:[%s1016_s3 + $0x1e8] sm:$0xff] }
  0x24   :  { %v537_v62 = vpack.c.bf16 %v210_v61, %v208_v60  ;;  %v215_v0 = vld [vmem:[%s1016_s3 + $0x1f8] sm:$0xff]  ;;  %v212_v2 = vld [vmem:[%s1016_s3 + $0x1e0] sm:$0xff]  ;;  %v214_v3 = vld [vmem:[%s1016_s3 + $0x1f0] sm:$0xff] }
  0x25   :  { %v539_v1 = vpack.c.bf16 %v215_v0, %v213_v63  ;;  %v541_v4 = vpack.c.bf16 %v214_v3, %v212_v2  ;;  %v317_v5 = vld [vmem:[%s1018_s5 + $0x80] sm:$0xff]  ;;  %v318_v6 = vld [vmem:[%s1018_s5 + $0x88] sm:$0xff]  ;;  %v319_v10 = vld [vmem:[%s1018_s5 + $0x90] sm:$0xff] }
  0x26   :  { %510 = vmatpush1.bf16.msra.mxu1 %v509_v22  ;;  %v301_v7 = vld [vmem:[%s1018_s5] sm:$0xff]  ;;  %v543_v8 = vpack.c.bf16 %v318_v6, %v317_v5  ;;  %v302_v9 = vld [vmem:[%s1018_s5 + $0x8] sm:$0xff]  ;;  %v320_v11 = vld [vmem:[%s1018_s5 + $0x98] sm:$0xff] }
  0x27   :  { %512 = vmatprep.subr.bf16.mxu1 %v511_v23  ;;  %v545_v12 = vpack.c.bf16 %v302_v9, %v301_v7  ;;  %v547_v13 = vpack.c.bf16 %v320_v11, %v319_v10  ;;  %v303_v14 = vld [vmem:[%s1018_s5 + $0x10] sm:$0xff]  ;;  %v304_v15 = vld [vmem:[%s1018_s5 + $0x18] sm:$0xff]  ;;  %v321_v16 = vld [vmem:[%s1018_s5 + $0xa0] sm:$0xff] }
  0x28   :  { %544 = vmatprep.subr.bf16.mxu0 %v543_v8  ;;  %v322_v18 = vld [vmem:[%s1018_s5 + $0xa8] sm:$0xff]  ;;  %v549_v19 = vpack.c.bf16 %v304_v15, %v303_v14  ;;  %v305_v21 = vld [vmem:[%s1018_s5 + $0x20] sm:$0xff]  ;;  %v323_v23 = vld [vmem:[%s1018_s5 + $0xb0] sm:$0xff] }
  0x29   :  { %546 = vmatpush3.bf16.msra.mxu0 %v545_v12  ;;  %v551_v20 = vpack.c.bf16 %v322_v18, %v321_v16  ;;  %v306_v22 = vld [vmem:[%s1018_s5 + $0x28] sm:$0xff]  ;;  %v324_v24 = vld [vmem:[%s1018_s5 + $0xb8] sm:$0xff]  ;;  %v307_v27 = vld [vmem:[%s1018_s5 + $0x30] sm:$0xff] }
  0x2a   :  { %514 = vmatpush1.bf16.msra.mxu1 %v513_v28  ;;  %548 = vmatprep.subr.bf16.mxu0 %v547_v13  ;;  %v553_v25 = vpack.c.bf16 %v306_v22, %v305_v21  ;;  %v555_v26 = vpack.c.bf16 %v324_v24, %v323_v23  ;;  %v308_v28 = vld [vmem:[%s1018_s5 + $0x38] sm:$0xff]  ;;  %v326_v30 = vld [vmem:[%s1018_s5 + $0xc8] sm:$0xff]  ;;  %v309_v33 = vld [vmem:[%s1018_s5 + $0x40] sm:$0xff] }
  0x2b   :  { %516 = vmatprep.subr.bf16.mxu1 %v515_v29  ;;  %v325_v29 = vld [vmem:[%s1018_s5 + $0xc0] sm:$0xff]  ;;  %v557_v31 = vpack.c.bf16 %v308_v28, %v307_v27  ;;  %v328_v36 = vld [vmem:[%s1018_s5 + $0xd8] sm:$0xff]  ;;  %v311_v39 = vld [vmem:[%s1018_s5 + $0x50] sm:$0xff] }
  0x2c   :  { %v559_v32 = vpack.c.bf16 %v326_v30, %v325_v29  ;;  %v330_v42 = vld [vmem:[%s1018_s5 + $0xe8] sm:$0xff]  ;;  %v313_v56 = vld [vmem:[%s1018_s5 + $0x60] sm:$0xff]  ;;  %v315_v61 = vld [vmem:[%s1018_s5 + $0x70] sm:$0xff] }
  0x2d   :  { %550 = vmatpush3.bf16.msra.mxu0 %v549_v19  ;;  %v314_v57 = vld [vmem:[%s1018_s5 + $0x68] sm:$0xff]  ;;  %v216_v0 = vld [vmem:[%s1017_s4] sm:$0x3]  ;;  %s578_s4 = scalar_lea.vmem %s419_s9, 32 }
  0x2e   :  { %518 = vmatpush1.bf16.msra.mxu1 %v517_v34  ;;  %552 = vmatprep.subr.bf16.mxu0 %v551_v20  ;;  %v310_v34 = vld [vmem:[%s1018_s5 + $0x48] sm:$0xff]  ;;  %v427_v10 = vld [vmem:[%s1019_s6] ss:$0 sm:$0xff]  ;;  %p579_p0 = scmp.ne.s32.totalorder %s419_s9, %s578_s4  ;;  %p584_p2 = scmp.lt.s32.totalorder %s578_s4, %s578_s4 }
  0x2f   :  { %520 = vmatprep.subr.bf16.mxu1 %v519_v35  ;;  %v327_v35 = vld [vmem:[%s1018_s5 + $0xd0] sm:$0xff]  ;;  %v561_v37 = vpack.c.bf16 %v310_v34, %v309_v33 }
  0x30   :  { %v563_v38 = vpack.c.bf16 %v328_v36, %v327_v35  ;;  %p585_p3 = por %p584_p2, %p583_p1 }
  0x31   :  { %554 = vmatpush3.bf16.msra.mxu0 %v553_v25 }
  0x32   :  { %522 = vmatpush1.bf16.msra.mxu1 %v521_v40  ;;  %556 = vmatprep.subr.bf16.mxu0 %v555_v26  ;;  %v312_v40 = vld [vmem:[%s1018_s5 + $0x58] sm:$0xff]  ;;  %p586_p4 = pnand %p585_p3, %p579_p0 }
  0x33   :  { %524 = vmatprep.subr.bf16.mxu1 %v523_v41  ;;  %v329_v41 = vld [vmem:[%s1018_s5 + $0xe0] sm:$0xff]  ;;  %v565_v43 = vpack.c.bf16 %v312_v40, %v311_v39 }
  0x34   :  { %v567_v44 = vpack.c.bf16 %v330_v42, %v329_v41 }
  0x35   :  { %558 = vmatpush3.bf16.msra.mxu0 %v557_v31 }
  0x36   :  { %526 = vmatpush1.bf16.msra.mxu1 %v525_v46  ;;  %560 = vmatprep.subr.bf16.mxu0 %v559_v32  ;;  %v47_v46 = vld [vmem:[%s1015_s2] sm:$0x3] }
  0x37   :  { %528 = vmatprep.subr.bf16.mxu1 %v527_v47  ;;  %v55_v47 = vsub.s32 1, %v675_v17  ;;  %v52_v48 = vrot.slane %v47_v46, %v51_v45  ;;  %v331_v17 = vld [vmem:[%s1018_s5 + $0xf0] sm:$0xff] }
  0x39   :  { %562 = vmatpush3.bf16.msra.mxu0 %v561_v37  ;;  %v56_v49 = vrot.slane %v47_v46, %v55_v47  ;;  %v225_v2 = vrot.slane %v216_v0, %v55_v47 }
  0x3a   :  { %530 = vmatpush1.bf16.msra.mxu1 %v529_v52  ;;  %564 = vmatprep.subr.bf16.mxu0 %v563_v38 }
  0x3b   :  { %532 = vmatprep.subr.bf16.mxu1 %v531_v53 }
  0x3d   :  { %566 = vmatpush3.bf16.msra.mxu0 %v565_v43 }
  0x3e   :  { %534 = vmatpush1.bf16.msra.mxu1 %v533_v58  ;;  %568 = vmatprep.subr.bf16.mxu0 %v567_v44  ;;  %v569_v58 = vpack.c.bf16 %v314_v57, %v313_v56 }
  0x3f   :  { %536 = vmatprep.subr.bf16.mxu1 %v535_v59  ;;  %v332_v59 = vld [vmem:[%s1018_s5 + $0xf8] sm:$0xff] }
  0x40   :  { %v571_v60 = vpack.c.bf16 %v332_v59, %v331_v17 }
  0x41   :  { %570 = vmatpush3.bf16.msra.mxu0 %v569_v58 }
  0x42   :  { %538 = vmatpush1.bf16.msra.mxu1 %v537_v62  ;;  %v316_v62 = vld [vmem:[%s1018_s5 + $0x78] sm:$0xff]  ;;  %572 = vmatprep.subr.bf16.mxu0 %v571_v60 }
  0x43   :  { %540 = vmatprep.subr.bf16.mxu1 %v539_v1  ;;  %v573_v63 = vpack.c.bf16 %v316_v62, %v315_v61  ;;  %v221_v1 = vrot.slane %v216_v0, %v51_v45 }
  0x45   :  { %574 = vmatpush3.bf16.msra.mxu0 %v573_v63 }
  0x46   :  { %542 = vmatpush1.bf16.msra.mxu1 %v541_v4 }
  0xe7   :  { %v145_v50 = vpop.f32.mrb[0].mxu0 }
  0xe8   :  { %v146_v51 = vadd.f32 %v145_v50, %v52_v48  ;;  %v147_v52 = vpop.f32.mrb[1].mxu0 }
  0xe9   :  { %v148_v53 = vadd.f32 %v147_v52, %v56_v49 }
  0xea   :  { %v150_v55 = vmax.f32 %v146_v51, 0.0 }
  0xeb   :  { %v151_v54 = vmax.f32 %v148_v53, 0.0 }
  0xed   :  { %292 = vmatprep.mubr.f32.mxu1 %v151_v54 }
  0xee   :  { %293 = vmatmul.mubr.f32.vlgmr.msra.gmra.mrb[0].mxu1 %v150_v55 }
 0x1c1   :  { %v294_v3 = vpop.f32.mrb[0].mxu1 }
 0x1c2   :  { %v295_v4 = vadd.f32 %v294_v3, %v221_v1  ;;  %v296_v5 = vpop.f32.mrb[1].mxu1 }
 0x1c3   :  { %v297_v6 = vadd.f32 %v296_v5, %v225_v2 }
 0x1c4   :  { %v299_v8 = vmax.f32 %v295_v4, 0.0 }
 0x1c5   :  { %v300_v7 = vmax.f32 %v297_v6, 0.0 }
 0x1c7   :  { %404 = vmatprep.mubr.f32.mxu0 %v300_v7 }
 0x1c8   :  { %405 = vmatmul.mubr.f32.vlgmr.msra.gmra.mrb[2].mxu0 %v299_v8 }
 0x29b   :  { %v460_v9 = vpop.f32.mrb[2].mxu0 }
 0x29c   :  { %v461_v11 = vpop.f32.mrb[3].mxu0 }
 0x29d   :  { %v462_v12 = vadd.f32 %v461_v11, %v460_v9 }
 0x29f   :  { %v407_v13 = vadd.f32 %v462_v12, %v427_v10 }
 0x2a1   :  { %411 = vst.msk [vmem:[#allocation2] sm:$0x3] %vm410_vm1, %v407_v13 }
 0x2a2   :  { %589 = shalt.err (!%p586_p4)
}
 0x2a3   :  { %s590_s12 = scalar_lea.hbm %s1020_s7, 32 }
 0x2a4   :  { %p591_p5 = scmp.ne.s32.totalorder %s1020_s7, %s590_s12  ;;  %p594_p6 = scmp.lt.u32.totalorder %s590_s12, %s1020_s7 }
 0x2a6   :  { %p596_p7 = pnand %p594_p6, %p591_p5 }
 0x2a8   :  { %599 = shalt.err (!%p596_p7)
}
 0x2a9   :  { %421 = dma.vmem_to_hbm [thread:$0]  %s419_s9, 32, %s1020_s7, [#allocation3]  }
 0x2aa   :  { %600 = dma.done.wait [#allocation3], 32  }
 0x2ab   :  { %601 = vsyncadd [#allocation3], 4294967264 }
 0x2ac   :  { %425 = vsyncpa [#allocation3], 1 }

// kernel: forward.8
= control target key start
LH: loop header
LB: loop body
LE: loop exit
PB: predicated region body
PF: predicated region fallthrough
CT: control target
= control target key end

     0   :  { %s3619_s21 = smov 0   ;;  %s4099_s0 = inlined_call_operand.vmem [shape: bf16[2,32,17], index: 0, kind: input, shape index: {}]   ;;  %s4100_s1 = inlined_call_operand.vmem [shape: bf16[9,64,32], index: 1, kind: input, shape index: {}]   ;;  %s4101_s2 = inlined_call_operand.vmem [shape: f32[64,1], index: 2, kind: input, shape index: {}]   ;;  %s4102_s3 = inlined_call_operand.vmem [shape: bf16[9,64,64], index: 3, kind: input, shape index: {}]   ;;  %s4103_s4 = inlined_call_operand.vmem [shape: f32[64,1], index: 4, kind: input, shape index: {}]   ;;  %s4104_s5 = inlined_call_operand.vmem [shape: f32[1,9], index: 5, kind: input, shape index: {}]   ;;  %s4105_s6 = inlined_call_operand.vmem [shape: f32[2,64,9], index: 6, kind: output, shape index: {}]  }
   0x1 LB: > { %s2678_s22 = sadd.s32 4294967295, %s3572_s21   ;;  %p2682_p0 = scmp.ge.s32.totalorder %s3572_s21, 1  ;;  %s3572_s21 = sphi %s3619_s21, %s16_s21  }
   0x2   : > { %p212_p1 = scmp.lt.s32.totalorder %s3572_s21, 3 }
   0x4   : > { %p213_p2 = pnand %p2682_p0, %p212_p1 }
   0x5   : > { %p242_p3 = scmp.lt.s32.totalorder (!%p213_p2), %s2678_s22, 1  ;;  %v3494_v0 = vld [vmem:[%s4100_s1 + $0x20] sm:$0xff] (!%p213_p2)   ;;  %vm310_vm0 = vcmask (!%p213_p2), 261120   ;;  %s3574_s29 = smov (!%p213_p2), 127   ;;  %v3495_v5 = vld [vmem:[%s4100_s1 + $0x28] sm:$0xff] (!%p213_p2)   ;;  %v3496_v6 = vld [vmem:[%s4100_s1 + $0x30] sm:$0xff] (!%p213_p2)  }
   0x6   : > { %216 = sbr.rel (%p213_p2) target bundleno = 1101 (0x44d), region = 44  ;;  %3096 = vmatprep.mubr.msk.bf16.mxu0 (!%p213_p2), %vm310_vm0, %v3494_v0  ;;  %s3575_s30 = smov (!%p213_p2), 126   ;;  %v3497_v8 = vld [vmem:[%s4100_s1 + $0x38] sm:$0xff] (!%p213_p2)   ;;  %v3498_v9 = vld [vmem:[%s4100_s1] sm:$0xff] (!%p213_p2)   ;;  %v1328_v10 = vld [vmem:[%s4101_s2 + $0x8] sm:$0xff] (!%p213_p2)  ;;  %v3582_v12 = vmov (!%p213_p2), 0  }
   0x7   : > { %s3576_s7 = smov (!%p213_p2), 125   ;;  %s3577_s8 = smov (!%p213_p2), 124   ;;  %v1327_v11 = vld [vmem:[%s4101_s2] sm:$0xff] (!%p213_p2)  ;;  %3491 = vset.pattern.permute.xlu1 (!%p213_p2), %v3582_v12  ;;  %3490 = vset.pattern.permute.xlu0 (!%p213_p2), %v3582_v12  ;;  %v1329_v13 = vld [vmem:[%s4101_s2 + $0x10] sm:$0xff] (!%p213_p2)  ;;  %v3499_v14 = vld [vmem:[%s4100_s1 + $0x8] sm:$0xff] (!%p213_p2)   ;;  %vm1391_vm1 = vcmask (!%p213_p2), 138240  }
   0x8   : > { %s3578_s9 = smov (!%p213_p2), 123   ;;  %s3579_s10 = smov (!%p213_p2), 122   ;;  %v1330_v15 = vld [vmem:[%s4101_s2 + $0x18] sm:$0xff] (!%p213_p2)  ;;  %v3500_v16 = vld [vmem:[%s4100_s1 + $0x10] sm:$0xff] (!%p213_p2)   ;;  %v1331_v18 = vld [vmem:[%s4101_s2 + $0x20] sm:$0xff] (!%p213_p2)  ;;  %1393 = vst.msk [vmem:[#allocation2 + $0x8] sm:$0xff] (!%p213_p2), %vm1391_vm1, %v3582_v12 }
   0x9   : > { %s3580_s11 = smov (!%p213_p2), 121   ;;  %s3581_s12 = smov (!%p213_p2), 120   ;;  %v1332_v19 = vld [vmem:[%s4101_s2 + $0x28] sm:$0xff] (!%p213_p2)  ;;  %v1333_v21 = vld [vmem:[%s4101_s2 + $0x30] sm:$0xff] (!%p213_p2)  ;;  %v3501_v22 = vld [vmem:[%s4100_s1 + $0x18] sm:$0xff] (!%p213_p2)   ;;  %1392 = vst.msk [vmem:[#allocation2] sm:$0xff] (!%p213_p2), %vm1391_vm1, %v3582_v12 }
   0xa   : > { %v1334_v23 = vld [vmem:[%s4101_s2 + $0x38] sm:$0xff] (!%p213_p2)  ;;  %v3502_v24 = vld [vmem:[%s4100_s1 + $0x40] sm:$0xff] (!%p213_p2)   ;;  %v3503_v25 = vld [vmem:[%s4100_s1 + $0x48] sm:$0xff] (!%p213_p2)   ;;  %1394 = vst.msk [vmem:[#allocation2 + $0x10] sm:$0xff] (!%p213_p2), %vm1391_vm1, %v3582_v12  ;;  %s3583_s17 = smov (!%p213_p2), 4   ;;  %vm1431_vm2 = vcmask (!%p213_p2), 105504  }
   0xb   : > { %v3504_v26 = vld [vmem:[%s4100_s1 + $0x50] sm:$0xff] (!%p213_p2)   ;;  %v3505_v29 = vld [vmem:[%s4100_s1 + $0x58] sm:$0xff] (!%p213_p2)   ;;  %v3506_v30 = vld [vmem:[%s4100_s1 + $0x60] sm:$0xff] (!%p213_p2)   ;;  %1395 = vst.msk [vmem:[#allocation2 + $0x18] sm:$0xff] (!%p213_p2), %vm1391_vm1, %v3582_v12  ;;  %vm1493_vm3 = vcmask (!%p213_p2), 523264   ;;  %vm2614_vm4 = vcmask (!%p213_p2), 72704  }
   0xc   : > { %v3507_v31 = vld [vmem:[%s4100_s1 + $0x68] sm:$0xff] (!%p213_p2)   ;;  %v3508_v32 = vld [vmem:[%s4100_s1 + $0x70] sm:$0xff] (!%p213_p2)   ;;  %v3509_v35 = vld [vmem:[%s4100_s1 + $0x78] sm:$0xff] (!%p213_p2)  }
   0xd   : > { %s4107_s22 = smov (!%p242_p3, %s2678_s22), 1  ;;  %v3510_v36 = vld [vmem:[%s4100_s1 + $0x80] sm:$0xff]   ;;  %v3511_v37 = vld [vmem:[%s4100_s1 + $0x88] sm:$0xff]   ;;  %v3512_v38 = vld [vmem:[%s4100_s1 + $0x90] sm:$0xff]  }
   0xe   : > { %s2964_s25 = sshll.u32 %s4107_s22, 4  ;;  %v3513_v41 = vld [vmem:[%s4100_s1 + $0x98] sm:$0xff]   ;;  %v3514_v42 = vld [vmem:[%s4100_s1 + $0xa0] sm:$0xff]   ;;  %v3515_v43 = vld [vmem:[%s4100_s1 + $0xa8] sm:$0xff]   ;;  %s2965_s18 = sshll.u32 %s4107_s22, 6 }
   0xf   : > { %s246_s28 = scalar_lea.vmem %s4099_s0, %s2964_s25  ;;  %v3516_v44 = vld [vmem:[%s4100_s1 + $0xb0] sm:$0xff]   ;;  %v3517_v47 = vld [vmem:[%s4100_s1 + $0xb8] sm:$0xff]   ;;  %v3518_v48 = vld [vmem:[%s4100_s1 + $0xc0] sm:$0xff]  }
  0x10   : > { %v3492_v1 = vld [vmem:[%s246_s28] sm:$0xff]   ;;  %v3493_v2 = vld [vmem:[%s246_s28 + $0x8] sm:$0xff]   ;;  %v3520_v50 = vld [vmem:[%s4100_s1 + $0xd0] sm:$0xff]  }
  0x11   : > { %304 = vrot.lane.b32.xlu0 %v3492_v1, %s3574_s29  ;;  %516 = vrot.lane.b32.xlu1 %v3492_v1, %s3575_s30  ;;  %v3519_v49 = vld [vmem:[%s4100_s1 + $0xc8] sm:$0xff]   ;;  %v3521_v53 = vld [vmem:[%s4100_s1 + $0xd8] sm:$0xff]  }
  0x12   : > { %v3522_v54 = vld [vmem:[%s4100_s1 + $0xe0] sm:$0xff]   ;;  %v3523_v55 = vld [vmem:[%s4100_s1 + $0xe8] sm:$0xff]   ;;  %v3524_v56 = vld [vmem:[%s4100_s1 + $0xf0] sm:$0xff]  }
  0x13   : > { %v3525_v58 = vld [vmem:[%s4100_s1 + $0xf8] sm:$0xff]   ;;  %v3526_v59 = vld [vmem:[%s4100_s1 + $0x100] sm:$0xff]   ;;  %v3527_v60 = vld [vmem:[%s4100_s1 + $0x108] sm:$0xff]  }
  0x14   : > { %v3528_v61 = vld [vmem:[%s4100_s1 + $0x110] sm:$0xff]   ;;  %v3529_v62 = vld [vmem:[%s4100_s1 + $0x118] sm:$0xff]  }
  0x15   : > { %306 = vrot.lane.b32.xlu0 %v3493_v2, %s3574_s29  ;;  %518 = vrot.lane.b32.xlu1 %v3493_v2, %s3575_s30 }
  0x19   : > { %636 = vrot.lane.b32.xlu0 %v3492_v1, %s3576_s7  ;;  %638 = vrot.lane.b32.xlu1 %v3493_v2, %s3576_s7 }
  0x1d   : > { %756 = vrot.lane.b32.xlu0 %v3492_v1, %s3577_s8  ;;  %758 = vrot.lane.b32.xlu1 %v3493_v2, %s3577_s8 }
  0x21   : > { %876 = vrot.lane.b32.xlu0 %v3492_v1, %s3578_s9  ;;  %878 = vrot.lane.b32.xlu1 %v3493_v2, %s3578_s9 }
  0x25   : > { %996 = vrot.lane.b32.xlu0 %v3492_v1, %s3579_s10  ;;  %998 = vrot.lane.b32.xlu1 %v3493_v2, %s3579_s10 }
  0x29   : > { %1116 = vrot.lane.b32.xlu0 %v3492_v1, %s3580_s11  ;;  %1118 = vrot.lane.b32.xlu1 %v3493_v2, %s3580_s11 }
  0x2d   : > { %1236 = vrot.lane.b32.xlu0 %v3492_v1, %s3581_s12  ;;  %1238 = vrot.lane.b32.xlu1 %v3493_v2, %s3581_s12 }
  0x31   : > { %1342 = vperm.xlu1 %3491, %v1328_v10   ;;  %1337 = vperm.xlu0 %3490, %v1327_v11  }
  0x35   : > { %1347 = vperm.xlu1 %3491, %v1329_v13   ;;  %1352 = vperm.xlu0 %3490, %v1330_v15  }
  0x39   : > { %1357 = vperm.xlu1 %3491, %v1331_v18   ;;  %1362 = vperm.xlu0 %3490, %v1332_v19  }
  0x3d   : > { %1367 = vperm.xlu1 %3491, %v1333_v21   ;;  %1372 = vperm.xlu0 %3490, %v1334_v23  }
  0x83   : > { %v305_v3 = vpop.permute.xlu0 %304  ;;  %v517_v7 = vpop.permute.xlu1 %516 }
  0x84   : > { %3092 = vmatprep.subr.bf16.mxu0 %v305_v3 }
  0x85   : > { %3093 = vmatpush3.bf16.msra.mxu0 %v305_v3 }
  0x87   : > { %v307_v4 = vpop.permute.xlu0 %306  ;;  %v519_v17 = vpop.permute.xlu1 %518 }
  0x88   : > { %3094 = vmatprep.subr.bf16.mxu0 %v307_v4 }
  0x89   : > { %3095 = vmatpush3.bf16.msra.mxu0 %v307_v4 }
  0x8a   : > { %3104 = vmatprep.subr.bf16.mxu0 %v3492_v1 }
  0x8b   : > { %v637_v20 = vpop.permute.xlu0 %636  ;;  %v639_v27 = vpop.permute.xlu1 %638 }
  0x8c   : > { %3097 = vmatmul.mubr.msk.bf16.vlgmr.msra.gmra.mrb[0].mxu0 %vm310_vm0, %v3495_v5 }
  0x8d   : > { %3105 = vmatpush3.bf16.msra.mxu0 %v3492_v1  ;;  %3100 = vmatprep.mubr.msk.bf16.mxu0 %vm310_vm0, %v3496_v6 }
  0x8e   : > { %3106 = vmatprep.subr.bf16.mxu0 %v3493_v2 }
  0x8f   : > { %v757_v28 = vpop.permute.xlu0 %756  ;;  %v759_v33 = vpop.permute.xlu1 %758 }
  0x91   : > { %3107 = vmatpush3.bf16.msra.mxu0 %v3493_v2 }
  0x92   : > { %3116 = vmatprep.subr.bf16.mxu0 %v517_v7 }
  0x93   : > { %v877_v34 = vpop.permute.xlu0 %876  ;;  %v879_v39 = vpop.permute.xlu1 %878 }
  0x94   : > { %3101 = vmatmul.mubr.msk.bf16.gmra.mrb[4].mxu0 %vm310_vm0, %v3497_v8 }
  0x95   : > { %3108 = vmatprep.mubr.msk.bf16.mxu0 %vm310_vm0, %v3498_v9 }
  0x97   : > { %v997_v40 = vpop.permute.xlu0 %996  ;;  %v999_v45 = vpop.permute.xlu1 %998 }
  0x9b   : > { %v1117_v46 = vpop.permute.xlu0 %1116  ;;  %v1119_v51 = vpop.permute.xlu1 %1118 }
  0x9c   : > { %3109 = vmatmul.mubr.msk.bf16.vlgmr.msra.gmra.mrb[0].mxu0 %vm310_vm0, %v3499_v14  ;;  %v2825_v14 = vld [vmem:[%s4104_s5] ss:$0 sm:$0xff] }
  0x9d   : > { %3117 = vmatpush3.bf16.msra.mxu0 %v517_v7  ;;  %3112 = vmatprep.mubr.msk.bf16.mxu0 %vm310_vm0, %v3500_v16 }
  0x9e   : > { %3118 = vmatprep.subr.bf16.mxu0 %v519_v17 }
  0x9f   : > { %v1237_v52 = vpop.permute.xlu0 %1236  ;;  %v1239_v57 = vpop.permute.xlu1 %1238 }
  0xa1   : > { %3119 = vmatpush3.bf16.msra.mxu0 %v519_v17 }
  0xa2   : > { %3128 = vmatprep.subr.bf16.mxu0 %v637_v20 }
  0xa4   : > { %3113 = vmatmul.mubr.msk.bf16.gmra.mrb[4].mxu0 %vm310_vm0, %v3501_v22 }
  0xa5   : > { %3120 = vmatprep.mubr.msk.bf16.mxu0 %vm310_vm0, %v3502_v24 }
  0xac   : > { %3121 = vmatmul.mubr.msk.bf16.vlgmr.msra.gmra.mrb[0].mxu0 %vm310_vm0, %v3503_v25 }
  0xad   : > { %3129 = vmatpush3.bf16.msra.mxu0 %v637_v20  ;;  %3124 = vmatprep.mubr.msk.bf16.mxu0 %vm310_vm0, %v3504_v26 }
  0xae   : > { %3130 = vmatprep.subr.bf16.mxu0 %v639_v27 }
  0xb0   : > { %v1343_v63 = vpop.permute.xlu1 %1342  ;;  %v1338_v0 = vpop.permute.xlu0 %1337 }
  0xb1   : > { %3131 = vmatpush3.bf16.msra.mxu0 %v639_v27 }
  0xb2   : > { %3140 = vmatprep.subr.bf16.mxu0 %v757_v28 }
  0xb4   : > { %3125 = vmatmul.mubr.msk.bf16.gmra.mrb[4].mxu0 %vm310_vm0, %v3505_v29  ;;  %v1348_v1 = vpop.permute.xlu1 %1347  ;;  %v1353_v2 = vpop.permute.xlu0 %1352 }
  0xb5   : > { %3132 = vmatprep.mubr.msk.bf16.mxu0 %vm310_vm0, %v3506_v30 }
  0xb8   : > { %v1358_v6 = vpop.permute.xlu1 %1357  ;;  %v1363_v13 = vpop.permute.xlu0 %1362 }
  0xbc   : > { %3133 = vmatmul.mubr.msk.bf16.vlgmr.msra.gmra.mrb[0].mxu0 %vm310_vm0, %v3507_v31  ;;  %v1368_v21 = vpop.permute.xlu1 %1367  ;;  %v1373_v27 = vpop.permute.xlu0 %1372 }
  0xbd   : > { %3141 = vmatpush3.bf16.msra.mxu0 %v757_v28  ;;  %3136 = vmatprep.mubr.msk.bf16.mxu0 %vm310_vm0, %v3508_v32 }
  0xbe   : > { %3142 = vmatprep.subr.bf16.mxu0 %v759_v33 }
  0xc1   : > { %3143 = vmatpush3.bf16.msra.mxu0 %v759_v33 }
  0xc2   : > { %3152 = vmatprep.subr.bf16.mxu0 %v877_v34 }
  0xc4   : > { %3137 = vmatmul.mubr.msk.bf16.gmra.mrb[4].mxu0 %vm310_vm0, %v3509_v35 }
  0xc5   : > { %3144 = vmatprep.mubr.msk.bf16.mxu0 %vm310_vm0, %v3510_v36 }
  0xcc   : > { %3145 = vmatmul.mubr.msk.bf16.vlgmr.msra.gmra.mrb[0].mxu0 %vm310_vm0, %v3511_v37 }
  0xcd   : > { %3153 = vmatpush3.bf16.msra.mxu0 %v877_v34  ;;  %3148 = vmatprep.mubr.msk.bf16.mxu0 %vm310_vm0, %v3512_v38 }
  0xce   : > { %3154 = vmatprep.subr.bf16.mxu0 %v879_v39 }
  0xd1   : > { %3155 = vmatpush3.bf16.msra.mxu0 %v879_v39 }
  0xd2   : > { %3164 = vmatprep.subr.bf16.mxu0 %v997_v40 }
  0xd4   : > { %3149 = vmatmul.mubr.msk.bf16.gmra.mrb[4].mxu0 %vm310_vm0, %v3513_v41 }
  0xd5   : > { %3156 = vmatprep.mubr.msk.bf16.mxu0 %vm310_vm0, %v3514_v42 }
  0xdc   : > { %3157 = vmatmul.mubr.msk.bf16.vlgmr.msra.gmra.mrb[0].mxu0 %vm310_vm0, %v3515_v43 }
  0xdd   : > { %3165 = vmatpush3.bf16.msra.mxu0 %v997_v40  ;;  %3160 = vmatprep.mubr.msk.bf16.mxu0 %vm310_vm0, %v3516_v44 }
  0xde   : > { %3166 = vmatprep.subr.bf16.mxu0 %v999_v45 }
  0xe1   : > { %3167 = vmatpush3.bf16.msra.mxu0 %v999_v45 }
  0xe2   : > { %3176 = vmatprep.subr.bf16.mxu0 %v1117_v46 }
  0xe4   : > { %3161 = vmatmul.mubr.msk.bf16.gmra.mrb[4].mxu0 %vm310_vm0, %v3517_v47 }
  0xe5   : > { %3168 = vmatprep.mubr.msk.bf16.mxu0 %vm310_vm0, %v3518_v48 }
  0xec   : > { %3169 = vmatmul.mubr.msk.bf16.vlgmr.msra.gmra.mrb[0].mxu0 %vm310_vm0, %v3519_v49 }
  0xed   : > { %3177 = vmatpush3.bf16.msra.mxu0 %v1117_v46  ;;  %3172 = vmatprep.mubr.msk.bf16.mxu0 %vm310_vm0, %v3520_v50  ;;  %v3530_v50 = vld [vmem:[%s4102_s3 + $0x20] sm:$0xff]  }
  0xee   : > { %3178 = vmatprep.subr.bf16.mxu0 %v1119_v51  ;;  %3208 = vmatprep.mubr.msk.bf16.mxu1 %vm1493_vm3, %v3530_v50 }
  0xf1   : > { %3179 = vmatpush3.bf16.msra.mxu0 %v1119_v51 }
  0xf2   : > { %3188 = vmatprep.subr.bf16.mxu0 %v1237_v52 }
  0xf4   : > { %3173 = vmatmul.mubr.msk.bf16.gmra.mrb[4].mxu0 %vm310_vm0, %v3521_v53  ;;  %v2551_v53 = vld [vmem:[%s4103_s4 + $0x8] sm:$0xff] }
  0xf5   : > { %3180 = vmatprep.mubr.msk.bf16.mxu0 %vm310_vm0, %v3522_v54  ;;  %v2550_v54 = vld [vmem:[%s4103_s4] sm:$0xff] }
  0xfc   : > { %3181 = vmatmul.mubr.msk.bf16.vlgmr.msra.gmra.mrb[0].mxu0 %vm310_vm0, %v3523_v55  ;;  %v2553_v55 = vld [vmem:[%s4103_s4 + $0x18] sm:$0xff] }
  0xfd   : > { %3189 = vmatpush3.bf16.msra.mxu0 %v1237_v52  ;;  %3184 = vmatprep.mubr.msk.bf16.mxu0 %vm310_vm0, %v3524_v56  ;;  %v2552_v56 = vld [vmem:[%s4103_s4 + $0x10] sm:$0xff] }
  0xfe   : > { %3190 = vmatprep.subr.bf16.mxu0 %v1239_v57 }
 0x101   : > { %3191 = vmatpush3.bf16.msra.mxu0 %v1239_v57  ;;  %v2555_v57 = vld [vmem:[%s4103_s4 + $0x28] sm:$0xff] }
 0x104   : > { %3185 = vmatmul.mubr.msk.bf16.gmra.mrb[4].mxu0 %vm310_vm0, %v3525_v58  ;;  %v2554_v58 = vld [vmem:[%s4103_s4 + $0x20] sm:$0xff] }
 0x105   : > { %3192 = vmatprep.mubr.msk.bf16.mxu0 %vm310_vm0, %v3526_v59  ;;  %v2557_v59 = vld [vmem:[%s4103_s4 + $0x38] sm:$0xff] }
 0x10c   : > { %3193 = vmatmul.mubr.msk.bf16.vlgmr.msra.gmra.mrb[0].mxu0 %vm310_vm0, %v3527_v60  ;;  %v2556_v60 = vld [vmem:[%s4103_s4 + $0x30] sm:$0xff] }
 0x10d   : > { %3196 = vmatprep.mubr.msk.bf16.mxu0 %vm310_vm0, %v3528_v61 }
 0x114   : > { %3197 = vmatmul.mubr.msk.bf16.gmra.mrb[4].mxu0 %vm310_vm0, %v3529_v62 }
 0x1df   : > { %v3194_v3 = vpop.f32.mrb[0].mxu0 }
 0x1e0   : > { %v1377_v4 = vadd.f32 %v3194_v3, %v1348_v1  ;;  %v1288_v5 = vpop.f32.mrb[1].mxu0  ;;  %v3531_v1 = vld [vmem:[%s4102_s3 + $0x28] sm:$0xff]   ;;  %v3533_v3 = vld [vmem:[%s4102_s3 + $0x38] sm:$0xff]  }
 0x1e1   : > { %v1375_v7 = vadd.f32 %v1338_v0, %v1288_v5  ;;  %v3195_v8 = vpop.f32.mrb[2].mxu0  ;;  %v3535_v5 = vld [vmem:[%s4102_s3 + $0x8] sm:$0xff]  }
 0x1e2   : > { %v1385_v9 = vmax.f32 %v1377_v4, 0.0  ;;  %v1378_v10 = vadd.f32 %v3195_v8, %v1353_v2  ;;  %v1291_v11 = vpop.f32.mrb[3].mxu0  ;;  %v3532_v2 = vld [vmem:[%s4102_s3 + $0x30] sm:$0xff]   ;;  %v3534_v4 = vld [vmem:[%s4102_s3] sm:$0xff]  }
 0x1e3   : > { %v1383_v15 = vmax.f32 %v1375_v7, 0.0  ;;  %v1376_v12 = vadd.f32 %v1343_v63, %v1291_v11  ;;  %v3536_v7 = vld [vmem:[%s4102_s3 + $0x10] sm:$0xff]   ;;  %v3538_v11 = vld [vmem:[%s4102_s3 + $0x40] sm:$0xff]  }
 0x1e4   : > { %v1386_v16 = vmax.f32 %v1378_v10, 0.0  ;;  %v1405_v18 = vmul.f32 %v2825_v14, %v1385_v9  ;;  %v3537_v9 = vld [vmem:[%s4102_s3 + $0x18] sm:$0xff]  }
 0x1e5   : > { %v1384_v17 = vmax.f32 %v1376_v12, 0.0  ;;  %v1403_v20 = vmul.f32 %v2825_v14, %v1383_v15  ;;  %v3540_v12 = vld [vmem:[%s4102_s3 + $0x50] sm:$0xff]  }
 0x1e6   : > { %v1406_v19 = vmul.f32 %v2825_v14, %v1386_v16 }
 0x1e7   : > { %v1404_v22 = vmul.f32 %v2825_v14, %v1384_v17  ;;  %v3198_v23 = vpop.f32.mrb[4].mxu0  ;;  %v3541_v17 = vld [vmem:[%s4102_s3 + $0x58] sm:$0xff]  }
 0x1e8   : > { %v1381_v24 = vadd.f32 %v3198_v23, %v1368_v21  ;;  %v1304_v25 = vpop.f32.mrb[5].mxu0  ;;  %v1412_v26 = vpack.c.bf16 %v1406_v19, %v1405_v18  ;;  %v3542_v19 = vld [vmem:[%s4102_s3 + $0x60] sm:$0xff]   ;;  %v3543_v21 = vld [vmem:[%s4102_s3 + $0x68] sm:$0xff]   ;;  %v3544_v23 = vld [vmem:[%s4102_s3 + $0x70] sm:$0xff]  }
 0x1e9   : > { %v1379_v28 = vadd.f32 %v1358_v6, %v1304_v25  ;;  %v3199_v29 = vpop.f32.mrb[6].mxu0  ;;  %v1411_v30 = vpack.c.bf16 %v1404_v22, %v1403_v20  ;;  %v3545_v25 = vld [vmem:[%s4102_s3 + $0x78] sm:$0xff]  }
 0x1ea   : > { %v1389_v31 = vmax.f32 %v1381_v24, 0.0  ;;  %v1382_v32 = vadd.f32 %v3199_v29, %v1373_v27  ;;  %v1307_v33 = vpop.f32.mrb[7].mxu0  ;;  %1421 = vrot.lane.b32.xlu0 %v1412_v26, %s3583_s17  ;;  %v3546_v27 = vld [vmem:[%s4102_s3 + $0x80] sm:$0xff]   ;;  %v3547_v29 = vld [vmem:[%s4102_s3 + $0x88] sm:$0xff]  }
 0x1eb   : > { %v1387_v34 = vmax.f32 %v1379_v28, 0.0  ;;  %v1380_v35 = vadd.f32 %v1363_v13, %v1307_v33  ;;  %1419 = vrot.lane.b32.xlu1 %v1411_v30, %s3583_s17  ;;  %v3549_v33 = vld [vmem:[%s4102_s3 + $0x98] sm:$0xff]  }
 0x1ec   : > { %v1390_v36 = vmax.f32 %v1382_v32, 0.0  ;;  %v1409_v38 = vmul.f32 %v2825_v14, %v1389_v31  ;;  %v3548_v31 = vld [vmem:[%s4102_s3 + $0x90] sm:$0xff]  }
 0x1ed   : > { %v1388_v37 = vmax.f32 %v1380_v35, 0.0  ;;  %v1407_v40 = vmul.f32 %v2825_v14, %v1387_v34  ;;  %v3550_v35 = vld [vmem:[%s4102_s3 + $0xa0] sm:$0xff]  }
 0x1ee   : > { %v1410_v39 = vmul.f32 %v2825_v14, %v1390_v36 }
 0x1ef   : > { %v1408_v41 = vmul.f32 %v2825_v14, %v1388_v37  ;;  %v3539_v14 = vld [vmem:[%s4102_s3 + $0x48] sm:$0xff]  }
 0x1f0   : > { %v1414_v42 = vpack.c.bf16 %v1410_v39, %v1409_v38  ;;  %v3551_v37 = vld [vmem:[%s4102_s3 + $0xa8] sm:$0xff]   ;;  %v3552_v39 = vld [vmem:[%s4102_s3 + $0xb0] sm:$0xff]  }
 0x1f1   : > { %v1413_v43 = vpack.c.bf16 %v1408_v41, %v1407_v40  ;;  %v3553_v41 = vld [vmem:[%s4102_s3 + $0xb8] sm:$0xff]  }
 0x1f2   : > { %1425 = vrot.lane.b32.xlu0 %v1414_v42, %s3583_s17 }
 0x1f3   : > { %1423 = vrot.lane.b32.xlu1 %v1413_v43, %s3583_s17  ;;  %v3554_v43 = vld [vmem:[%s4102_s3 + $0xc0] sm:$0xff]  }
 0x25c   : > { %v1422_v44 = vpop.permute.xlu0 %1421 }
 0x25d   : > { %1433 = vst.msk [vmem:[#allocation2 + $0x8] sm:$0xff] %vm1431_vm2, %v1422_v44  ;;  %v1420_v45 = vpop.permute.xlu1 %1419 }
 0x25e   : > { %1432 = vst.msk [vmem:[#allocation2] sm:$0xff] %vm1431_vm2, %v1420_v45  ;;  %v3555_v45 = vld [vmem:[%s4102_s3 + $0xc8] sm:$0xff]  }
 0x264   : > { %v1426_v46 = vpop.permute.xlu0 %1425  ;;  %v3826_v47 = vld [vmem:[#allocation2 + $0x8] sm:$0xff] }
 0x265   : > { %1435 = vst.msk [vmem:[#allocation2 + $0x18] sm:$0xff] %vm1431_vm2, %v1426_v46  ;;  %v1424_v48 = vpop.permute.xlu1 %1423  ;;  %1483 = vrot.lane.b32.xlu0 %v3826_v47, %s3574_s29  ;;  %v3830_v49 = vld [vmem:[#allocation2] sm:$0xff] }
 0x266   : > { %1434 = vst.msk [vmem:[#allocation2 + $0x10] sm:$0xff] %vm1431_vm2, %v1424_v48  ;;  %1481 = vrot.lane.b32.xlu1 %v3830_v49, %s3574_s29 }
 0x26c   : > { %v3838_v51 = vld [vmem:[#allocation2 + $0x18] sm:$0xff] }
 0x26d   : > { %1487 = vrot.lane.b32.xlu0 %v3838_v51, %s3574_s29  ;;  %v3842_v52 = vld [vmem:[#allocation2 + $0x10] sm:$0xff] }
 0x26e   : > { %1485 = vrot.lane.b32.xlu1 %v3842_v52, %s3574_s29 }
 0x271   : > { %1699 = vrot.lane.b32.xlu0 %v3826_v47, %s3575_s30 }
 0x272   : > { %1697 = vrot.lane.b32.xlu1 %v3830_v49, %s3575_s30 }
 0x275   : > { %1703 = vrot.lane.b32.xlu0 %v3838_v51, %s3575_s30 }
 0x276   : > { %1701 = vrot.lane.b32.xlu1 %v3842_v52, %s3575_s30  ;;  %s4078_s30 = scalar_lea.vmem %s4105_s6, %s2965_s18 }
 0x279   : > { %1825 = vrot.lane.b32.xlu0 %v3826_v47, %s3576_s7 }
 0x27a   : > { %1823 = vrot.lane.b32.xlu1 %v3830_v49, %s3576_s7 }
 0x27d   : > { %1829 = vrot.lane.b32.xlu0 %v3838_v51, %s3576_s7 }
 0x27e   : > { %1827 = vrot.lane.b32.xlu1 %v3842_v52, %s3576_s7 }
 0x281   : > { %1951 = vrot.lane.b32.xlu0 %v3826_v47, %s3577_s8 }
 0x282   : > { %1949 = vrot.lane.b32.xlu1 %v3830_v49, %s3577_s8 }
 0x285   : > { %1955 = vrot.lane.b32.xlu0 %v3838_v51, %s3577_s8 }
 0x286   : > { %1953 = vrot.lane.b32.xlu1 %v3842_v52, %s3577_s8 }
 0x289   : > { %2077 = vrot.lane.b32.xlu0 %v3826_v47, %s3578_s9 }
 0x28a   : > { %2075 = vrot.lane.b32.xlu1 %v3830_v49, %s3578_s9 }
 0x28d   : > { %2081 = vrot.lane.b32.xlu0 %v3838_v51, %s3578_s9 }
 0x28e   : > { %2079 = vrot.lane.b32.xlu1 %v3842_v52, %s3578_s9 }
 0x291   : > { %2203 = vrot.lane.b32.xlu0 %v3826_v47, %s3579_s10 }
 0x292   : > { %2201 = vrot.lane.b32.xlu1 %v3830_v49, %s3579_s10 }
 0x295   : > { %2207 = vrot.lane.b32.xlu0 %v3838_v51, %s3579_s10 }
 0x296   : > { %2205 = vrot.lane.b32.xlu1 %v3842_v52, %s3579_s10 }
 0x299   : > { %2329 = vrot.lane.b32.xlu0 %v3826_v47, %s3580_s11 }
 0x29a   : > { %2327 = vrot.lane.b32.xlu1 %v3830_v49, %s3580_s11 }
 0x29d   : > { %2333 = vrot.lane.b32.xlu0 %v3838_v51, %s3580_s11 }
 0x29e   : > { %2331 = vrot.lane.b32.xlu1 %v3842_v52, %s3580_s11 }
 0x2a1   : > { %2455 = vrot.lane.b32.xlu0 %v3826_v47, %s3581_s12 }
 0x2a2   : > { %2453 = vrot.lane.b32.xlu1 %v3830_v49, %s3581_s12 }
 0x2a5   : > { %2459 = vrot.lane.b32.xlu0 %v3838_v51, %s3581_s12 }
 0x2a6   : > { %2457 = vrot.lane.b32.xlu1 %v3842_v52, %s3581_s12 }
 0x2a9   : > { %2565 = vperm.xlu0 %3490, %v2551_v53   ;;  %v3559_v53 = vld [vmem:[%s4102_s3 + $0xe8] sm:$0xff]  }
 0x2aa   : > { %2560 = vperm.xlu1 %3491, %v2550_v54  }
 0x2ad   : > { %2575 = vperm.xlu0 %3490, %v2553_v55   ;;  %v3560_v55 = vld [vmem:[%s4102_s3 + $0xf0] sm:$0xff]  }
 0x2ae   : > { %2570 = vperm.xlu1 %3491, %v2552_v56  }
 0x2b1   : > { %2585 = vperm.xlu0 %3490, %v2555_v57   ;;  %v3561_v57 = vld [vmem:[%s4102_s3 + $0xf8] sm:$0xff]  }
 0x2b2   : > { %2580 = vperm.xlu1 %3491, %v2554_v58  }
 0x2b5   : > { %2595 = vperm.xlu0 %3490, %v2557_v59   ;;  %v3562_v59 = vld [vmem:[%s4102_s3 + $0x100] sm:$0xff]  }
 0x2b6   : > { %2590 = vperm.xlu1 %3491, %v2556_v60  }
 0x2d7   : > { %v1484_v62 = vpop.permute.xlu0 %1483 }
 0x2d8   : > { %v1482_v61 = vpop.permute.xlu1 %1481 }
 0x2d9   : > { %3200 = vmatprep.subr.bf16.mxu1 %v1482_v61 }
 0x2da   : > { %3201 = vmatpush3.bf16.msra.mxu1 %v1482_v61  ;;  %v3563_v61 = vld [vmem:[%s4102_s3 + $0x108] sm:$0xff]  }
 0x2db   : > { %3202 = vmatprep.subr.bf16.mxu1 %v1484_v62 }
 0x2de   : > { %3203 = vmatpush3.bf16.msra.mxu1 %v1484_v62  ;;  %v3564_v62 = vld [vmem:[%s4102_s3 + $0x110] sm:$0xff]  }
 0x2df   : > { %v1488_v0 = vpop.permute.xlu0 %1487 }
 0x2e0   : > { %v1486_v63 = vpop.permute.xlu1 %1485 }
 0x2e1   : > { %3204 = vmatprep.subr.bf16.mxu1 %v1486_v63 }
 0x2e2   : > { %3205 = vmatpush3.bf16.msra.mxu1 %v1486_v63  ;;  %v3565_v63 = vld [vmem:[%s4102_s3 + $0x118] sm:$0xff]  }
 0x2e3   : > { %3206 = vmatprep.subr.bf16.mxu1 %v1488_v0  ;;  %v1700_v8 = vpop.permute.xlu0 %1699 }
 0x2e4   : > { %v1698_v6 = vpop.permute.xlu1 %1697 }
 0x2e6   : > { %3207 = vmatpush3.bf16.msra.mxu1 %v1488_v0 }
 0x2e7   : > { %3216 = vmatprep.subr.bf16.mxu1 %v3830_v49  ;;  %v1704_v13 = vpop.permute.xlu0 %1703 }
 0x2e8   : > { %v1702_v10 = vpop.permute.xlu1 %1701 }
 0x2e9   : > { %3209 = vmatmul.mubr.msk.bf16.vlgmr.msra.gmra.mrb[0].mxu1 %vm1493_vm3, %v3531_v1 }
 0x2ea   : > { %3217 = vmatpush3.bf16.msra.mxu1 %v3830_v49  ;;  %3212 = vmatprep.mubr.msk.bf16.mxu1 %vm1493_vm3, %v3532_v2  ;;  %v3557_v49 = vld [vmem:[%s4102_s3 + $0xd8] sm:$0xff]  }
 0x2eb   : > { %3218 = vmatprep.subr.bf16.mxu1 %v3826_v47  ;;  %v1826_v16 = vpop.permute.xlu0 %1825 }
 0x2ec   : > { %v1824_v15 = vpop.permute.xlu1 %1823 }
 0x2ee   : > { %3219 = vmatpush3.bf16.msra.mxu1 %v3826_v47  ;;  %v3556_v47 = vld [vmem:[%s4102_s3 + $0xd0] sm:$0xff]  }
 0x2ef   : > { %3220 = vmatprep.subr.bf16.mxu1 %v3842_v52  ;;  %v1830_v20 = vpop.permute.xlu0 %1829 }
 0x2f0   : > { %v1828_v18 = vpop.permute.xlu1 %1827 }
 0x2f1   : > { %3213 = vmatmul.mubr.msk.bf16.gmra.mrb[4].mxu1 %vm1493_vm3, %v3533_v3 }
 0x2f2   : > { %3221 = vmatpush3.bf16.msra.mxu1 %v3842_v52  ;;  %3224 = vmatprep.mubr.msk.bf16.mxu1 %vm1493_vm3, %v3534_v4 }
 0x2f3   : > { %3222 = vmatprep.subr.bf16.mxu1 %v3838_v51  ;;  %v1952_v24 = vpop.permute.xlu0 %1951 }
 0x2f4   : > { %v1950_v22 = vpop.permute.xlu1 %1949 }
 0x2f6   : > { %3223 = vmatpush3.bf16.msra.mxu1 %v3838_v51  ;;  %v3558_v51 = vld [vmem:[%s4102_s3 + $0xe0] sm:$0xff]  }
 0x2f7   : > { %3232 = vmatprep.subr.bf16.mxu1 %v1698_v6  ;;  %v1956_v28 = vpop.permute.xlu0 %1955 }
 0x2f8   : > { %v1954_v26 = vpop.permute.xlu1 %1953 }
 0x2f9   : > { %3225 = vmatmul.mubr.msk.bf16.vlgmr.msra.gmra.mrb[0].mxu1 %vm1493_vm3, %v3535_v5 }
 0x2fa   : > { %3233 = vmatpush3.bf16.msra.mxu1 %v1698_v6  ;;  %3228 = vmatprep.mubr.msk.bf16.mxu1 %vm1493_vm3, %v3536_v7 }
 0x2fb   : > { %3234 = vmatprep.subr.bf16.mxu1 %v1700_v8  ;;  %v2078_v32 = vpop.permute.xlu0 %2077 }
 0x2fc   : > { %v2076_v30 = vpop.permute.xlu1 %2075 }
 0x2fe   : > { %3235 = vmatpush3.bf16.msra.mxu1 %v1700_v8 }
 0x2ff   : > { %3236 = vmatprep.subr.bf16.mxu1 %v1702_v10  ;;  %v2082_v36 = vpop.permute.xlu0 %2081 }
 0x300   : > { %v2080_v34 = vpop.permute.xlu1 %2079 }
 0x301   : > { %3229 = vmatmul.mubr.msk.bf16.gmra.mrb[4].mxu1 %vm1493_vm3, %v3537_v9 }
 0x302   : > { %3237 = vmatpush3.bf16.msra.mxu1 %v1702_v10  ;;  %3240 = vmatprep.mubr.msk.bf16.mxu1 %vm1493_vm3, %v3538_v11 }
 0x303   : > { %3238 = vmatprep.subr.bf16.mxu1 %v1704_v13  ;;  %v2204_v40 = vpop.permute.xlu0 %2203 }
 0x304   : > { %v2202_v38 = vpop.permute.xlu1 %2201 }
 0x306   : > { %3239 = vmatpush3.bf16.msra.mxu1 %v1704_v13 }
 0x307   : > { %3248 = vmatprep.subr.bf16.mxu1 %v1824_v15  ;;  %v2208_v44 = vpop.permute.xlu0 %2207 }
 0x308   : > { %v2206_v42 = vpop.permute.xlu1 %2205 }
 0x309   : > { %3241 = vmatmul.mubr.msk.bf16.vlgmr.msra.gmra.mrb[0].mxu1 %vm1493_vm3, %v3539_v14 }
 0x30a   : > { %3249 = vmatpush3.bf16.msra.mxu1 %v1824_v15  ;;  %3244 = vmatprep.mubr.msk.bf16.mxu1 %vm1493_vm3, %v3540_v12 }
 0x30b   : > { %3250 = vmatprep.subr.bf16.mxu1 %v1826_v16  ;;  %v2330_v48 = vpop.permute.xlu0 %2329 }
 0x30c   : > { %v2328_v46 = vpop.permute.xlu1 %2327 }
 0x30e   : > { %3251 = vmatpush3.bf16.msra.mxu1 %v1826_v16 }
 0x30f   : > { %3252 = vmatprep.subr.bf16.mxu1 %v1828_v18  ;;  %v2334_v52 = vpop.permute.xlu0 %2333 }
 0x310   : > { %v2332_v50 = vpop.permute.xlu1 %2331 }
 0x311   : > { %3245 = vmatmul.mubr.msk.bf16.gmra.mrb[4].mxu1 %vm1493_vm3, %v3541_v17 }
 0x312   : > { %3253 = vmatpush3.bf16.msra.mxu1 %v1828_v18  ;;  %3256 = vmatprep.mubr.msk.bf16.mxu1 %vm1493_vm3, %v3542_v19 }
 0x313   : > { %3254 = vmatprep.subr.bf16.mxu1 %v1830_v20  ;;  %v2456_v56 = vpop.permute.xlu0 %2455 }
 0x314   : > { %v2454_v54 = vpop.permute.xlu1 %2453 }
 0x316   : > { %3255 = vmatpush3.bf16.msra.mxu1 %v1830_v20 }
 0x317   : > { %3264 = vmatprep.subr.bf16.mxu1 %v1950_v22  ;;  %v2460_v60 = vpop.permute.xlu0 %2459 }
 0x318   : > { %v2458_v58 = vpop.permute.xlu1 %2457 }
 0x319   : > { %3257 = vmatmul.mubr.msk.bf16.vlgmr.msra.gmra.mrb[0].mxu1 %vm1493_vm3, %v3543_v21 }
 0x31a   : > { %3265 = vmatpush3.bf16.msra.mxu1 %v1950_v22  ;;  %3260 = vmatprep.mubr.msk.bf16.mxu1 %vm1493_vm3, %v3544_v23 }
 0x31b   : > { %3266 = vmatprep.subr.bf16.mxu1 %v1952_v24 }
 0x31e   : > { %3267 = vmatpush3.bf16.msra.mxu1 %v1952_v24 }
 0x31f   : > { %3268 = vmatprep.subr.bf16.mxu1 %v1954_v26 }
 0x321   : > { %3261 = vmatmul.mubr.msk.bf16.gmra.mrb[4].mxu1 %vm1493_vm3, %v3545_v25 }
 0x322   : > { %3269 = vmatpush3.bf16.msra.mxu1 %v1954_v26  ;;  %3272 = vmatprep.mubr.msk.bf16.mxu1 %vm1493_vm3, %v3546_v27 }
 0x323   : > { %3270 = vmatprep.subr.bf16.mxu1 %v1956_v28 }
 0x326   : > { %3271 = vmatpush3.bf16.msra.mxu1 %v1956_v28 }
 0x327   : > { %3280 = vmatprep.subr.bf16.mxu1 %v2076_v30 }
 0x328   : > { %v2566_v1 = vpop.permute.xlu0 %2565 }
 0x329   : > { %3273 = vmatmul.mubr.msk.bf16.vlgmr.msra.gmra.mrb[0].mxu1 %vm1493_vm3, %v3547_v29  ;;  %v2561_v0 = vpop.permute.xlu1 %2560 }
 0x32a   : > { %3281 = vmatpush3.bf16.msra.mxu1 %v2076_v30  ;;  %3276 = vmatprep.mubr.msk.bf16.mxu1 %vm1493_vm3, %v3548_v31 }
 0x32b   : > { %3282 = vmatprep.subr.bf16.mxu1 %v2078_v32 }
 0x32c   : > { %v2576_v3 = vpop.permute.xlu0 %2575 }
 0x32d   : > { %v2571_v2 = vpop.permute.xlu1 %2570 }
 0x32e   : > { %3283 = vmatpush3.bf16.msra.mxu1 %v2078_v32 }
 0x32f   : > { %3284 = vmatprep.subr.bf16.mxu1 %v2080_v34 }
 0x330   : > { %v2586_v14 = vpop.permute.xlu0 %2585 }
 0x331   : > { %3277 = vmatmul.mubr.msk.bf16.gmra.mrb[4].mxu1 %vm1493_vm3, %v3549_v33  ;;  %v2581_v7 = vpop.permute.xlu1 %2580 }
 0x332   : > { %3285 = vmatpush3.bf16.msra.mxu1 %v2080_v34  ;;  %3288 = vmatprep.mubr.msk.bf16.mxu1 %vm1493_vm3, %v3550_v35 }
 0x333   : > { %3286 = vmatprep.subr.bf16.mxu1 %v2082_v36 }
 0x334   : > { %v2596_v22 = vpop.permute.xlu0 %2595 }
 0x335   : > { %v2591_v18 = vpop.permute.xlu1 %2590 }
 0x336   : > { %3287 = vmatpush3.bf16.msra.mxu1 %v2082_v36 }
 0x337   : > { %3296 = vmatprep.subr.bf16.mxu1 %v2202_v38 }
 0x339   : > { %3289 = vmatmul.mubr.msk.bf16.vlgmr.msra.gmra.mrb[0].mxu1 %vm1493_vm3, %v3551_v37 }
 0x33a   : > { %3297 = vmatpush3.bf16.msra.mxu1 %v2202_v38  ;;  %3292 = vmatprep.mubr.msk.bf16.mxu1 %vm1493_vm3, %v3552_v39 }
 0x33b   : > { %3298 = vmatprep.subr.bf16.mxu1 %v2204_v40 }
 0x33e   : > { %3299 = vmatpush3.bf16.msra.mxu1 %v2204_v40 }
 0x33f   : > { %3300 = vmatprep.subr.bf16.mxu1 %v2206_v42 }
 0x341   : > { %3293 = vmatmul.mubr.msk.bf16.gmra.mrb[4].mxu1 %vm1493_vm3, %v3553_v41 }
 0x342   : > { %3301 = vmatpush3.bf16.msra.mxu1 %v2206_v42  ;;  %3304 = vmatprep.mubr.msk.bf16.mxu1 %vm1493_vm3, %v3554_v43 }
 0x343   : > { %3302 = vmatprep.subr.bf16.mxu1 %v2208_v44 }
 0x346   : > { %3303 = vmatpush3.bf16.msra.mxu1 %v2208_v44 }
 0x347   : > { %3312 = vmatprep.subr.bf16.mxu1 %v2328_v46 }
 0x349   : > { %3305 = vmatmul.mubr.msk.bf16.vlgmr.msra.gmra.mrb[0].mxu1 %vm1493_vm3, %v3555_v45 }
 0x34a   : > { %3313 = vmatpush3.bf16.msra.mxu1 %v2328_v46  ;;  %3308 = vmatprep.mubr.msk.bf16.mxu1 %vm1493_vm3, %v3556_v47 }
 0x34b   : > { %3314 = vmatprep.subr.bf16.mxu1 %v2330_v48 }
 0x34e   : > { %3315 = vmatpush3.bf16.msra.mxu1 %v2330_v48 }
 0x34f   : > { %3316 = vmatprep.subr.bf16.mxu1 %v2332_v50 }
 0x351   : > { %3309 = vmatmul.mubr.msk.bf16.gmra.mrb[4].mxu1 %vm1493_vm3, %v3557_v49 }
 0x352   : > { %3317 = vmatpush3.bf16.msra.mxu1 %v2332_v50  ;;  %3320 = vmatprep.mubr.msk.bf16.mxu1 %vm1493_vm3, %v3558_v51 }
 0x353   : > { %3318 = vmatprep.subr.bf16.mxu1 %v2334_v52 }
 0x356   : > { %3319 = vmatpush3.bf16.msra.mxu1 %v2334_v52 }
 0x357   : > { %3328 = vmatprep.subr.bf16.mxu1 %v2454_v54 }
 0x359   : > { %3321 = vmatmul.mubr.msk.bf16.vlgmr.msra.gmra.mrb[0].mxu1 %vm1493_vm3, %v3559_v53 }
 0x35a   : > { %3329 = vmatpush3.bf16.msra.mxu1 %v2454_v54  ;;  %3324 = vmatprep.mubr.msk.bf16.mxu1 %vm1493_vm3, %v3560_v55 }
 0x35b   : > { %3330 = vmatprep.subr.bf16.mxu1 %v2456_v56 }
 0x35e   : > { %3331 = vmatpush3.bf16.msra.mxu1 %v2456_v56 }
 0x35f   : > { %3332 = vmatprep.subr.bf16.mxu1 %v2458_v58 }
 0x361   : > { %3325 = vmatmul.mubr.msk.bf16.gmra.mrb[4].mxu1 %vm1493_vm3, %v3561_v57 }
 0x362   : > { %3333 = vmatpush3.bf16.msra.mxu1 %v2458_v58  ;;  %3336 = vmatprep.mubr.msk.bf16.mxu1 %vm1493_vm3, %v3562_v59 }
 0x363   : > { %3334 = vmatprep.subr.bf16.mxu1 %v2460_v60 }
 0x366   : > { %3335 = vmatpush3.bf16.msra.mxu1 %v2460_v60 }
 0x369   : > { %3337 = vmatmul.mubr.msk.bf16.vlgmr.msra.gmra.mrb[0].mxu1 %vm1493_vm3, %v3563_v61 }
 0x36a   : > { %3340 = vmatprep.mubr.msk.bf16.mxu1 %vm1493_vm3, %v3564_v62 }
 0x371   : > { %3341 = vmatmul.mubr.msk.bf16.gmra.mrb[4].mxu1 %vm1493_vm3, %v3565_v63 }
 0x43c   : > { %v3338_v4 = vpop.f32.mrb[0].mxu1 }
 0x43d   : > { %v2600_v5 = vadd.f32 %v3338_v4, %v2571_v2  ;;  %v2511_v6 = vpop.f32.mrb[1].mxu1 }
 0x43e   : > { %v2598_v8 = vadd.f32 %v2561_v0, %v2511_v6  ;;  %v3339_v9 = vpop.f32.mrb[2].mxu1 }
 0x43f   : > { %v2608_v10 = vmax.f32 %v2600_v5, 0.0  ;;  %v2601_v11 = vadd.f32 %v3339_v9, %v2576_v3  ;;  %v2514_v13 = vpop.f32.mrb[3].mxu1 }
 0x440   : > { %v2606_v15 = vmax.f32 %v2598_v8, 0.0  ;;  %v2599_v12 = vadd.f32 %v2566_v1, %v2514_v13 }
 0x441   : > { %2617 = vst.msk [vmem:[%s4078_s30 + $0x10] sm:$0xff] %vm2614_vm4, %v2608_v10  ;;  %v2609_v16 = vmax.f32 %v2601_v11, 0.0 }
 0x442   : > { %2615 = vst.msk [vmem:[%s4078_s30] sm:$0xff] %vm2614_vm4, %v2606_v15  ;;  %v2607_v17 = vmax.f32 %v2599_v12, 0.0 }
 0x443   : > { %2618 = vst.msk [vmem:[%s4078_s30 + $0x18] sm:$0xff] %vm2614_vm4, %v2609_v16 }
 0x444   : > { %2616 = vst.msk [vmem:[%s4078_s30 + $0x8] sm:$0xff] %vm2614_vm4, %v2607_v17  ;;  %v3342_v19 = vpop.f32.mrb[4].mxu1 }
 0x445   : > { %v2604_v20 = vadd.f32 %v3342_v19, %v2591_v18  ;;  %v2527_v21 = vpop.f32.mrb[5].mxu1 }
 0x446   : > { %v2602_v23 = vadd.f32 %v2581_v7, %v2527_v21  ;;  %v3343_v24 = vpop.f32.mrb[6].mxu1 }
 0x447   : > { %v2612_v25 = vmax.f32 %v2604_v20, 0.0  ;;  %v2605_v26 = vadd.f32 %v3343_v24, %v2596_v22  ;;  %v2530_v27 = vpop.f32.mrb[7].mxu1 }
 0x448   : > { %v2610_v28 = vmax.f32 %v2602_v23, 0.0  ;;  %v2603_v29 = vadd.f32 %v2586_v14, %v2530_v27 }
 0x449   : > { %2621 = vst.msk [vmem:[%s4078_s30 + $0x30] sm:$0xff] %vm2614_vm4, %v2612_v25  ;;  %v2613_v30 = vmax.f32 %v2605_v26, 0.0 }
 0x44a   : > { %2619 = vst.msk [vmem:[%s4078_s30 + $0x20] sm:$0xff] %vm2614_vm4, %v2610_v28  ;;  %v2611_v31 = vmax.f32 %v2603_v29, 0.0 }
 0x44b   : > { %2622 = vst.msk [vmem:[%s4078_s30 + $0x38] sm:$0xff] %vm2614_vm4, %v2613_v30 }
 0x44c   : > { %2620 = vst.msk [vmem:[%s4078_s30 + $0x28] sm:$0xff] %vm2614_vm4, %v2611_v31 }
 0x44d PF: > { %s16_s21 = sadd.s32 1, %s3572_s21  }
 0x44e   : > { %p13_p4 = scmp.ge.s32.totalorder %s16_s21, 4  }
 0x450   :  { %15 = sbr.rel (!%p13_p4) target bundleno = 1 (0x1), region = 90 }

</bundles_post_ra>
